<compile_context>
chip_gen: v7x
topology: tpu7x:2x2x1
jax: 0.10.0
libtpu: 0.0.40
codegen_flags: <defaults>
</compile_context>

<pallas_src>
import jax
import jax.numpy as jnp
from jax.experimental import pallas as pl
from jax.experimental.pallas import tpu as pltpu

HIDDEN = 400        # Linear(1, 400)
HIDDEN_PAD = 512    # padded hidden size (multiple of 128; padded w2 rows are 0)
GRAIN = 8 * 128     # minimum batch tile: 8 sublanes x 128 lanes


def pack_params(w1, b1, w2, b2):
    """One-time (init-time) packing of the module parameters into column form.

    w1: (HIDDEN, 1)  hidden1.weight
    b1: (HIDDEN,)    hidden1.bias
    w2: (1, HIDDEN)  output.weight
    b2: (1,)         output.bias
    Returns (w1c, b1c, w2c) each (HIDDEN_PAD, 1) f32 and b2s (1, 1) f32.
    """
    def col(v):
        out = jnp.zeros((HIDDEN_PAD, 1), jnp.float32)
        return out.at[:HIDDEN, 0].set(v.reshape(HIDDEN).astype(jnp.float32))

    w1c = col(w1)
    b1c = col(b1)
    w2c = col(w2)          # padded rows are exactly 0 -> padded hidden units contribute nothing
    b2s = b2.reshape(1, 1).astype(jnp.float32)
    return w1c, b1c, w2c, b2s


def regression_kernel(x_ref, w1_ref, b1_ref, w2_ref, b2_ref, o_ref):
    # x_ref:  (8, L)           f32, VMEM  -- batch laid out on sublanes x lanes
    # w1_ref: (HIDDEN_PAD, 1)  f32, VMEM  -- hidden1.weight as a column
    # b1_ref: (HIDDEN_PAD, 1)  f32, VMEM  -- hidden1.bias   as a column
    # w2_ref: (HIDDEN_PAD, 1)  f32, VMEM  -- output.weight  as a column
    # b2_ref: (1, 1)           f32, SMEM  -- output.bias scalar
    # o_ref:  (8, L)           f32, VMEM  -- lane-dense output tile
    w1c = w1_ref[...]
    b1c = b1_ref[...]
    w2c = w2_ref[...]
    b2 = b2_ref[0, 0]
    x = x_ref[...]                                        # (8, L)

    # Process one sublane row (L batch elements on lanes) at a time; hidden
    # units live on sublanes so the layer-2 reduction lands lane-dense.
    for s in range(8):
        xs = x[s:s + 1, :]                                # (1, L)
        # Layer 1: in_features == 1 -> broadcasted multiply/add + ReLU (VPU).
        h = jnp.maximum(w1c * xs + b1c, 0.0)              # (HIDDEN_PAD, L)
        # Layer 2: out_features == 1 -> multiply + sublane reduce (VPU/XLU),
        # result is already a lane-dense (1, L) row. Padded w2 rows are 0.
        o_ref[s:s + 1, :] = jnp.sum(h * w2c, axis=0, keepdims=True) + b2


def regression_forward(x, w1c, b1c, w2c, b2s, *, tb=4096):
    """Forward pass. x: (B, 1); params come from pack_params()."""
    if x.dtype != jnp.float32:
        x = x.astype(jnp.float32)
    B = x.shape[0]

    # Batch tile: multiple of GRAIN (8 sublanes x 128 lanes), capped at `tb`
    # (4096 keeps per-step intermediates well inside v7x's smaller VMEM while
    # amortizing the per-grid-step pipeline overhead; B > tb gives >= 2 tiles
    # so the parallel grid axis can shard across both v7x TensorCores).
    TB = min(tb, pl.cdiv(B, GRAIN) * GRAIN)
    TB = max(GRAIN, (TB // GRAIN) * GRAIN)
    num_tiles = pl.cdiv(B, TB)
    B_pad = num_tiles * TB
    L = TB // 8
    R = num_tiles * 8

    # Lane-dense input slab: batch on lanes (contiguous reshape, essentially free).
    x_flat = x.reshape(B)
    if B_pad != B:
        # TODO(synk): ragged B pays one wrapper-side pad + tail slice (extra HBM
        # pass); edge-block masking could remove it but is kept simple here.
        x_flat = jnp.pad(x_flat, (0, B_pad - B))
    x2d = x_flat.reshape(R, L)

    out2d = pl.pallas_call(
        regression_kernel,
        out_shape=jax.ShapeDtypeStruct((R, L), jnp.float32),
        grid=(num_tiles,),
        in_specs=[
            pl.BlockSpec((8, L), lambda i: (i, 0)),                  # x tile (lane-dense)
            pl.BlockSpec((HIDDEN_PAD, 1), lambda i: (0, 0)),         # w1 column
            pl.BlockSpec((HIDDEN_PAD, 1), lambda i: (0, 0)),         # b1 column
            pl.BlockSpec((HIDDEN_PAD, 1), lambda i: (0, 0)),         # w2 column
            pl.BlockSpec(memory_space=pltpu.MemorySpace.SMEM),       # b2 scalar
        ],
        out_specs=pl.BlockSpec((8, L), lambda i: (i, 0)),            # lane-dense output
        compiler_params=pltpu.CompilerParams(
            dimension_semantics=("parallel",)),
    )(x2d, w1c, b1c, w2c, b2s)

    out = out2d.reshape(B_pad, 1)
    return out[:B] if B_pad != B else out


def reference_forward(x, w1, b1, w2, b2):
    # Pure-JAX reference written without matmuls (avoids TPU matmul precision
    # ambiguity; math is identical to Linear -> ReLU -> Linear).
    h = jnp.maximum(x * w1.reshape(1, HIDDEN) + b1.reshape(1, HIDDEN), 0.0)
    return jnp.sum(h * w2.reshape(1, HIDDEN), axis=-1, keepdims=True) + b2


if __name__ == "__main__":
    key = jax.random.PRNGKey(0)
    kx, k1, k2, k3, k4 = jax.random.split(key, 5)

    batch = 8
    # Deterministic parameter init (shapes from the module's __init__).
    w1 = jax.random.uniform(k1, (HIDDEN, 1), jnp.float32, -1.0, 1.0)    # hidden1.weight
    b1 = jax.random.uniform(k2, (HIDDEN,), jnp.float32, -1.0, 1.0)      # hidden1.bias
    w2 = jax.random.uniform(k3, (1, HIDDEN), jnp.float32, -0.05, 0.05)  # output.weight
    b2 = jax.random.uniform(k4, (1,), jnp.float32, -0.05, 0.05)         # output.bias

    x = jax.random.uniform(kx, (batch, 1), jnp.float32, -2 * jnp.pi, 2 * jnp.pi)

    # Init-time packing (kept out of the per-call hot path).
    w1c, b1c, w2c, b2s = jax.block_until_ready(pack_params(w1, b1, w2, b2))

    out = regression_forward(x, w1c, b1c, w2c, b2s)
    out = jax.block_until_ready(out)

    ref = reference_forward(x, w1, b1, w2, b2)
    assert out.shape == (batch, 1)
    assert jnp.allclose(out, ref, atol=1e-4, rtol=1e-4)

    print("KERNEL_OK")
</pallas_src>

<mosaic_0001>
module attributes {stable_mosaic.version = 11 : i64} {
  func.func @regression_kernel(%arg0: i32, %arg1: memref<8x128xf32, #tpu.memory_space<vmem>>, %arg2: memref<512x1xf32, #tpu.memory_space<vmem>>, %arg3: memref<512x1xf32, #tpu.memory_space<vmem>>, %arg4: memref<512x1xf32, #tpu.memory_space<vmem>>, %arg5: memref<1x1xf32, #tpu.memory_space<smem>>, %arg6: memref<8x128xf32, #tpu.memory_space<vmem>>) attributes {dimension_semantics = [#tpu.dimension_semantics<parallel>], iteration_bounds = array<i64: 1>, scalar_prefetch = 0 : i64, scratch_operands = 0 : i64, tpu.core_type = #tpu.core_type<tc>, window_params = [{transform_indices = @transform_0, window_bounds = array<i64: 8, 128>}, {pipeline_mode = #tpu.pipeline_mode<synchronous>, transform_indices = @transform_1, window_bounds = array<i64: 512, 1>}, {pipeline_mode = #tpu.pipeline_mode<synchronous>, transform_indices = @transform_2, window_bounds = array<i64: 512, 1>}, {pipeline_mode = #tpu.pipeline_mode<synchronous>, transform_indices = @transform_3, window_bounds = array<i64: 512, 1>}, {transform_indices = @transform_4, window_bounds = array<i64: 1, 1>}, {transform_indices = @transform_5, window_bounds = array<i64: 8, 128>}]} {
    %c0 = arith.constant 0 : index
    %c0_0 = arith.constant 0 : index
    %0 = vector.load %arg2[%c0, %c0_0] : memref<512x1xf32, #tpu.memory_space<vmem>>, vector<512x1xf32>
    %c0_1 = arith.constant 0 : index
    %c0_2 = arith.constant 0 : index
    %1 = vector.load %arg3[%c0_1, %c0_2] : memref<512x1xf32, #tpu.memory_space<vmem>>, vector<512x1xf32>
    %c0_3 = arith.constant 0 : index
    %c0_4 = arith.constant 0 : index
    %2 = vector.load %arg4[%c0_3, %c0_4] : memref<512x1xf32, #tpu.memory_space<vmem>>, vector<512x1xf32>
    %c0_5 = arith.constant 0 : index
    %c0_6 = arith.constant 0 : index
    %3 = memref.load %arg5[%c0_5, %c0_6] : memref<1x1xf32, #tpu.memory_space<smem>>
    %c0_7 = arith.constant 0 : index
    %c0_8 = arith.constant 0 : index
    %4 = vector.load %arg1[%c0_7, %c0_8] : memref<8x128xf32, #tpu.memory_space<vmem>>, vector<8x128xf32>
    %5 = vector.extract_strided_slice %4 {offsets = [0, 0], sizes = [1, 128], strides = [1, 1]} : vector<8x128xf32> to vector<1x128xf32>
    %6 = vector.broadcast %0 : vector<512x1xf32> to vector<512x128xf32>
    %7 = vector.broadcast %5 : vector<1x128xf32> to vector<512x128xf32>
    %8 = arith.mulf %6, %7 : vector<512x128xf32>
    %9 = vector.broadcast %1 : vector<512x1xf32> to vector<512x128xf32>
    %10 = arith.addf %8, %9 : vector<512x128xf32>
    %cst = arith.constant 0.000000e+00 : f32
    %11 = vector.broadcast %cst : f32 to vector<512x128xf32>
    %12 = arith.maximumf %10, %11 : vector<512x128xf32>
    %13 = vector.broadcast %2 : vector<512x1xf32> to vector<512x128xf32>
    %14 = arith.mulf %12, %13 : vector<512x128xf32>
    %cst_9 = arith.constant dense<0.000000e+00> : vector<128xf32>
    %15 = vector.multi_reduction <add>, %14, %cst_9 [0] : vector<512x128xf32> to vector<128xf32>
    %16 = vector.shape_cast %15 : vector<128xf32> to vector<1x128xf32>
    %17 = vector.broadcast %3 : f32 to vector<1x128xf32>
    %18 = arith.addf %16, %17 : vector<1x128xf32>
    %c0_10 = arith.constant 0 : index
    %c0_11 = arith.constant 0 : index
    %19 = vector.load %arg6[%c0_10, %c0_11] : memref<8x128xf32, #tpu.memory_space<vmem>>, vector<1x128xf32>
    tpu.vector_store %arg6[%c0_10, %c0_11], %18 {strides = array<i32>} : memref<8x128xf32, #tpu.memory_space<vmem>>, vector<1x128xf32>,
    %20 = vector.extract_strided_slice %4 {offsets = [1, 0], sizes = [1, 128], strides = [1, 1]} : vector<8x128xf32> to vector<1x128xf32>
    %21 = vector.broadcast %0 : vector<512x1xf32> to vector<512x128xf32>
    %22 = vector.broadcast %20 : vector<1x128xf32> to vector<512x128xf32>
    %23 = arith.mulf %21, %22 : vector<512x128xf32>
    %24 = vector.broadcast %1 : vector<512x1xf32> to vector<512x128xf32>
    %25 = arith.addf %23, %24 : vector<512x128xf32>
    %cst_12 = arith.constant 0.000000e+00 : f32
    %26 = vector.broadcast %cst_12 : f32 to vector<512x128xf32>
    %27 = arith.maximumf %25, %26 : vector<512x128xf32>
    %28 = vector.broadcast %2 : vector<512x1xf32> to vector<512x128xf32>
    %29 = arith.mulf %27, %28 : vector<512x128xf32>
    %cst_13 = arith.constant dense<0.000000e+00> : vector<128xf32>
    %30 = vector.multi_reduction <add>, %29, %cst_13 [0] : vector<512x128xf32> to vector<128xf32>
    %31 = vector.shape_cast %30 : vector<128xf32> to vector<1x128xf32>
    %32 = vector.broadcast %3 : f32 to vector<1x128xf32>
    %33 = arith.addf %31, %32 : vector<1x128xf32>
    %c1 = arith.constant 1 : index
    %c0_14 = arith.constant 0 : index
    %34 = vector.load %arg6[%c1, %c0_14] : memref<8x128xf32, #tpu.memory_space<vmem>>, vector<1x128xf32>
    tpu.vector_store %arg6[%c1, %c0_14], %33 {strides = array<i32>} : memref<8x128xf32, #tpu.memory_space<vmem>>, vector<1x128xf32>,
    %35 = vector.extract_strided_slice %4 {offsets = [2, 0], sizes = [1, 128], strides = [1, 1]} : vector<8x128xf32> to vector<1x128xf32>
    %36 = vector.broadcast %0 : vector<512x1xf32> to vector<512x128xf32>
    %37 = vector.broadcast %35 : vector<1x128xf32> to vector<512x128xf32>
    %38 = arith.mulf %36, %37 : vector<512x128xf32>
    %39 = vector.broadcast %1 : vector<512x1xf32> to vector<512x128xf32>
    %40 = arith.addf %38, %39 : vector<512x128xf32>
    %cst_15 = arith.constant 0.000000e+00 : f32
    %41 = vector.broadcast %cst_15 : f32 to vector<512x128xf32>
    %42 = arith.maximumf %40, %41 : vector<512x128xf32>
    %43 = vector.broadcast %2 : vector<512x1xf32> to vector<512x128xf32>
    %44 = arith.mulf %42, %43 : vector<512x128xf32>
    %cst_16 = arith.constant dense<0.000000e+00> : vector<128xf32>
    %45 = vector.multi_reduction <add>, %44, %cst_16 [0] : vector<512x128xf32> to vector<128xf32>
    %46 = vector.shape_cast %45 : vector<128xf32> to vector<1x128xf32>
    %47 = vector.broadcast %3 : f32 to vector<1x128xf32>
    %48 = arith.addf %46, %47 : vector<1x128xf32>
    %c2 = arith.constant 2 : index
    %c0_17 = arith.constant 0 : index
    %49 = vector.load %arg6[%c2, %c0_17] : memref<8x128xf32, #tpu.memory_space<vmem>>, vector<1x128xf32>
    tpu.vector_store %arg6[%c2, %c0_17], %48 {strides = array<i32>} : memref<8x128xf32, #tpu.memory_space<vmem>>, vector<1x128xf32>,
    %50 = vector.extract_strided_slice %4 {offsets = [3, 0], sizes = [1, 128], strides = [1, 1]} : vector<8x128xf32> to vector<1x128xf32>
    %51 = vector.broadcast %0 : vector<512x1xf32> to vector<512x128xf32>
    %52 = vector.broadcast %50 : vector<1x128xf32> to vector<512x128xf32>
    %53 = arith.mulf %51, %52 : vector<512x128xf32>
    %54 = vector.broadcast %1 : vector<512x1xf32> to vector<512x128xf32>
    %55 = arith.addf %53, %54 : vector<512x128xf32>
    %cst_18 = arith.constant 0.000000e+00 : f32
    %56 = vector.broadcast %cst_18 : f32 to vector<512x128xf32>
    %57 = arith.maximumf %55, %56 : vector<512x128xf32>
    %58 = vector.broadcast %2 : vector<512x1xf32> to vector<512x128xf32>
    %59 = arith.mulf %57, %58 : vector<512x128xf32>
    %cst_19 = arith.constant dense<0.000000e+00> : vector<128xf32>
    %60 = vector.multi_reduction <add>, %59, %cst_19 [0] : vector<512x128xf32> to vector<128xf32>
    %61 = vector.shape_cast %60 : vector<128xf32> to vector<1x128xf32>
    %62 = vector.broadcast %3 : f32 to vector<1x128xf32>
    %63 = arith.addf %61, %62 : vector<1x128xf32>
    %c3 = arith.constant 3 : index
    %c0_20 = arith.constant 0 : index
    %64 = vector.load %arg6[%c3, %c0_20] : memref<8x128xf32, #tpu.memory_space<vmem>>, vector<1x128xf32>
    tpu.vector_store %arg6[%c3, %c0_20], %63 {strides = array<i32>} : memref<8x128xf32, #tpu.memory_space<vmem>>, vector<1x128xf32>,
    %65 = vector.extract_strided_slice %4 {offsets = [4, 0], sizes = [1, 128], strides = [1, 1]} : vector<8x128xf32> to vector<1x128xf32>
    %66 = vector.broadcast %0 : vector<512x1xf32> to vector<512x128xf32>
    %67 = vector.broadcast %65 : vector<1x128xf32> to vector<512x128xf32>
    %68 = arith.mulf %66, %67 : vector<512x128xf32>
    %69 = vector.broadcast %1 : vector<512x1xf32> to vector<512x128xf32>
    %70 = arith.addf %68, %69 : vector<512x128xf32>
    %cst_21 = arith.constant 0.000000e+00 : f32
    %71 = vector.broadcast %cst_21 : f32 to vector<512x128xf32>
    %72 = arith.maximumf %70, %71 : vector<512x128xf32>
    %73 = vector.broadcast %2 : vector<512x1xf32> to vector<512x128xf32>
    %74 = arith.mulf %72, %73 : vector<512x128xf32>
    %cst_22 = arith.constant dense<0.000000e+00> : vector<128xf32>
    %75 = vector.multi_reduction <add>, %74, %cst_22 [0] : vector<512x128xf32> to vector<128xf32>
    %76 = vector.shape_cast %75 : vector<128xf32> to vector<1x128xf32>
    %77 = vector.broadcast %3 : f32 to vector<1x128xf32>
    %78 = arith.addf %76, %77 : vector<1x128xf32>
    %c4 = arith.constant 4 : index
    %c0_23 = arith.constant 0 : index
    %79 = vector.load %arg6[%c4, %c0_23] : memref<8x128xf32, #tpu.memory_space<vmem>>, vector<1x128xf32>
    tpu.vector_store %arg6[%c4, %c0_23], %78 {strides = array<i32>} : memref<8x128xf32, #tpu.memory_space<vmem>>, vector<1x128xf32>,
    %80 = vector.extract_strided_slice %4 {offsets = [5, 0], sizes = [1, 128], strides = [1, 1]} : vector<8x128xf32> to vector<1x128xf32>
    %81 = vector.broadcast %0 : vector<512x1xf32> to vector<512x128xf32>
    %82 = vector.broadcast %80 : vector<1x128xf32> to vector<512x128xf32>
    %83 = arith.mulf %81, %82 : vector<512x128xf32>
    %84 = vector.broadcast %1 : vector<512x1xf32> to vector<512x128xf32>
    %85 = arith.addf %83, %84 : vector<512x128xf32>
    %cst_24 = arith.constant 0.000000e+00 : f32
    %86 = vector.broadcast %cst_24 : f32 to vector<512x128xf32>
    %87 = arith.maximumf %85, %86 : vector<512x128xf32>
    %88 = vector.broadcast %2 : vector<512x1xf32> to vector<512x128xf32>
    %89 = arith.mulf %87, %88 : vector<512x128xf32>
    %cst_25 = arith.constant dense<0.000000e+00> : vector<128xf32>
    %90 = vector.multi_reduction <add>, %89, %cst_25 [0] : vector<512x128xf32> to vector<128xf32>
    %91 = vector.shape_cast %90 : vector<128xf32> to vector<1x128xf32>
    %92 = vector.broadcast %3 : f32 to vector<1x128xf32>
    %93 = arith.addf %91, %92 : vector<1x128xf32>
    %c5 = arith.constant 5 : index
    %c0_26 = arith.constant 0 : index
    %94 = vector.load %arg6[%c5, %c0_26] : memref<8x128xf32, #tpu.memory_space<vmem>>, vector<1x128xf32>
    tpu.vector_store %arg6[%c5, %c0_26], %93 {strides = array<i32>} : memref<8x128xf32, #tpu.memory_space<vmem>>, vector<1x128xf32>,
    %95 = vector.extract_strided_slice %4 {offsets = [6, 0], sizes = [1, 128], strides = [1, 1]} : vector<8x128xf32> to vector<1x128xf32>
    %96 = vector.broadcast %0 : vector<512x1xf32> to vector<512x128xf32>
    %97 = vector.broadcast %95 : vector<1x128xf32> to vector<512x128xf32>
    %98 = arith.mulf %96, %97 : vector<512x128xf32>
    %99 = vector.broadcast %1 : vector<512x1xf32> to vector<512x128xf32>
    %100 = arith.addf %98, %99 : vector<512x128xf32>
    %cst_27 = arith.constant 0.000000e+00 : f32
    %101 = vector.broadcast %cst_27 : f32 to vector<512x128xf32>
    %102 = arith.maximumf %100, %101 : vector<512x128xf32>
    %103 = vector.broadcast %2 : vector<512x1xf32> to vector<512x128xf32>
    %104 = arith.mulf %102, %103 : vector<512x128xf32>
    %cst_28 = arith.constant dense<0.000000e+00> : vector<128xf32>
    %105 = vector.multi_reduction <add>, %104, %cst_28 [0] : vector<512x128xf32> to vector<128xf32>
    %106 = vector.shape_cast %105 : vector<128xf32> to vector<1x128xf32>
    %107 = vector.broadcast %3 : f32 to vector<1x128xf32>
    %108 = arith.addf %106, %107 : vector<1x128xf32>
    %c6 = arith.constant 6 : index
    %c0_29 = arith.constant 0 : index
    %109 = vector.load %arg6[%c6, %c0_29] : memref<8x128xf32, #tpu.memory_space<vmem>>, vector<1x128xf32>
    tpu.vector_store %arg6[%c6, %c0_29], %108 {strides = array<i32>} : memref<8x128xf32, #tpu.memory_space<vmem>>, vector<1x128xf32>,
    %110 = vector.extract_strided_slice %4 {offsets = [7, 0], sizes = [1, 128], strides = [1, 1]} : vector<8x128xf32> to vector<1x128xf32>
    %111 = vector.broadcast %0 : vector<512x1xf32> to vector<512x128xf32>
    %112 = vector.broadcast %110 : vector<1x128xf32> to vector<512x128xf32>
    %113 = arith.mulf %111, %112 : vector<512x128xf32>
    %114 = vector.broadcast %1 : vector<512x1xf32> to vector<512x128xf32>
    %115 = arith.addf %113, %114 : vector<512x128xf32>
    %cst_30 = arith.constant 0.000000e+00 : f32
    %116 = vector.broadcast %cst_30 : f32 to vector<512x128xf32>
    %117 = arith.maximumf %115, %116 : vector<512x128xf32>
    %118 = vector.broadcast %2 : vector<512x1xf32> to vector<512x128xf32>
    %119 = arith.mulf %117, %118 : vector<512x128xf32>
    %cst_31 = arith.constant dense<0.000000e+00> : vector<128xf32>
    %120 = vector.multi_reduction <add>, %119, %cst_31 [0] : vector<512x128xf32> to vector<128xf32>
    %121 = vector.shape_cast %120 : vector<128xf32> to vector<1x128xf32>
    %122 = vector.broadcast %3 : f32 to vector<1x128xf32>
    %123 = arith.addf %121, %122 : vector<1x128xf32>
    %c7 = arith.constant 7 : index
    %c0_32 = arith.constant 0 : index
    %124 = vector.load %arg6[%c7, %c0_32] : memref<8x128xf32, #tpu.memory_space<vmem>>, vector<1x128xf32>
    tpu.vector_store %arg6[%c7, %c0_32], %123 {strides = array<i32>} : memref<8x128xf32, #tpu.memory_space<vmem>>, vector<1x128xf32>,
    return
  }
  func.func @transform_0(%arg0: i32) -> (i32, i32) {
    %c0_i32 = arith.constant 0 : i32
    %c0_i32_0 = arith.constant 0 : i32
    return %arg0, %c0_i32 : i32, i32
  }
  func.func @transform_1(%arg0: i32) -> (i32, i32) {
    %c0_i32 = arith.constant 0 : i32
    %c0_i32_0 = arith.constant 0 : i32
    %c0_i32_1 = arith.constant 0 : i32
    return %c0_i32, %c0_i32_0 : i32, i32
  }
  func.func @transform_2(%arg0: i32) -> (i32, i32) {
    %c0_i32 = arith.constant 0 : i32
    %c0_i32_0 = arith.constant 0 : i32
    %c0_i32_1 = arith.constant 0 : i32
    return %c0_i32, %c0_i32_0 : i32, i32
  }
  func.func @transform_3(%arg0: i32) -> (i32, i32) {
    %c0_i32 = arith.constant 0 : i32
    %c0_i32_0 = arith.constant 0 : i32
    %c0_i32_1 = arith.constant 0 : i32
    return %c0_i32, %c0_i32_0 : i32, i32
  }
  func.func @transform_4(%arg0: i32) -> (i32, i32) {
    %c0_i32 = arith.constant 0 : i32
    %c0_i32_0 = arith.constant 0 : i32
    %c0_i32_1 = arith.constant 0 : i32
    return %c0_i32, %c0_i32_0 : i32, i32
  }
  func.func @transform_5(%arg0: i32) -> (i32, i32) {
    %c0_i32 = arith.constant 0 : i32
    %c0_i32_0 = arith.constant 0 : i32
    return %arg0, %c0_i32 : i32, i32
  }
}

</mosaic_0001>

<bundles_post_ra>
// kernel: tpu_custom_call.1
= control target key start
LH: loop header
LB: loop body
LE: loop exit
PB: predicated region body
PF: predicated region fallthrough
CT: control target
= control target key end

     0   :  { %v3867_v2 = vmov 0   ;;  %s8926_s0 = inlined_call_operand.vmem [shape: f32[8,128], index: 0, kind: input, shape index: {}]   ;;  %s8927_s1 = inlined_call_operand.vmem [shape: f32[512,1], index: 1, kind: input, shape index: {}]   ;;  %s8928_s2 = inlined_call_operand.vmem [shape: f32[512,1], index: 2, kind: input, shape index: {}]   ;;  %s8929_s3 = inlined_call_operand.vmem [shape: f32[512,1], index: 3, kind: input, shape index: {}]   ;;  %s8930_s4 = inlined_call_operand.<no memory space> [shape: f32[1,1], index: 4, kind: input, shape index: {}]   ;;  %s8931_s5 = inlined_call_operand.hbm [shape: f32[8,128], index: 5, kind: output, shape index: {}]  }
   0x1   :  { %v24_v0 = vld [vmem:[%s8927_s1 + $0x10] sm:$0xff]  ;;  %v22_v1 = vld [vmem:[%s8927_s1] sm:$0xff]  ;;  %3842 = vset.pattern.permute.xlu1 %v3867_v2  ;;  %3841 = vset.pattern.permute.xlu0 %v3867_v2  ;;  %v25_v3 = vld [vmem:[%s8927_s1 + $0x18] sm:$0xff] }
   0x2   :  { %228 = vperm.xlu1 %3842, %v24_v0   ;;  %218 = vperm.xlu0 %3841, %v22_v1   ;;  %v23_v4 = vld [vmem:[%s8927_s1 + $0x8] sm:$0xff]  ;;  %v26_v6 = vld [vmem:[%s8927_s1 + $0x20] sm:$0xff]  ;;  %v29_v7 = vld [vmem:[%s8927_s1 + $0x38] sm:$0xff] }
   0x3   :  { %v27_v5 = vld [vmem:[%s8927_s1 + $0x28] sm:$0xff]  ;;  %v28_v8 = vld [vmem:[%s8927_s1 + $0x30] sm:$0xff]  ;;  %v30_v10 = vld [vmem:[%s8927_s1 + $0x40] sm:$0xff] }
   0x4   :  { %v31_v9 = vld [vmem:[%s8927_s1 + $0x48] sm:$0xff]  ;;  %v33_v11 = vld [vmem:[%s8927_s1 + $0x58] sm:$0xff]  ;;  %v32_v12 = vld [vmem:[%s8927_s1 + $0x50] sm:$0xff] }
   0x5   :  { %v35_v13 = vld [vmem:[%s8927_s1 + $0x68] sm:$0xff]  ;;  %v34_v14 = vld [vmem:[%s8927_s1 + $0x60] sm:$0xff] }
   0x6   :  { %233 = vperm.xlu1 %3842, %v25_v3   ;;  %223 = vperm.xlu0 %3841, %v23_v4  }
   0xa   :  { %243 = vperm.xlu1 %3842, %v27_v5   ;;  %238 = vperm.xlu0 %3841, %v26_v6  }
   0xe   :  { %253 = vperm.xlu1 %3842, %v29_v7   ;;  %248 = vperm.xlu0 %3841, %v28_v8  }
  0x12   :  { %263 = vperm.xlu1 %3842, %v31_v9   ;;  %258 = vperm.xlu0 %3841, %v30_v10  }
  0x16   :  { %273 = vperm.xlu1 %3842, %v33_v11   ;;  %268 = vperm.xlu0 %3841, %v32_v12  }
  0x1a   :  { %283 = vperm.xlu1 %3842, %v35_v13   ;;  %278 = vperm.xlu0 %3841, %v34_v14  }
  0x1b   :  { %11 = vsyncpa [#allocation4], 0  ;;  %v37_v15 = vld [vmem:[%s8927_s1 + $0x78] sm:$0xff]  ;;  %v36_v16 = vld [vmem:[%s8927_s1 + $0x70] sm:$0xff] }
  0x1c   :  { %v39_v17 = vld [vmem:[%s8927_s1 + $0x88] sm:$0xff]  ;;  %v38_v18 = vld [vmem:[%s8927_s1 + $0x80] sm:$0xff]  ;;  %v41_v19 = vld [vmem:[%s8927_s1 + $0x98] sm:$0xff] }
  0x1d   :  { %v40_v20 = vld [vmem:[%s8927_s1 + $0x90] sm:$0xff]  ;;  %v43_v21 = vld [vmem:[%s8927_s1 + $0xa8] sm:$0xff]  ;;  %v42_v22 = vld [vmem:[%s8927_s1 + $0xa0] sm:$0xff] }
  0x1e   :  { %293 = vperm.xlu1 %3842, %v37_v15   ;;  %288 = vperm.xlu0 %3841, %v36_v16   ;;  %v45_v23 = vld [vmem:[%s8927_s1 + $0xb8] sm:$0xff]  ;;  %v44_v24 = vld [vmem:[%s8927_s1 + $0xb0] sm:$0xff]  ;;  %v47_v25 = vld [vmem:[%s8927_s1 + $0xc8] sm:$0xff] }
  0x1f   :  { %v46_v26 = vld [vmem:[%s8927_s1 + $0xc0] sm:$0xff]  ;;  %v49_v27 = vld [vmem:[%s8927_s1 + $0xd8] sm:$0xff]  ;;  %v48_v28 = vld [vmem:[%s8927_s1 + $0xd0] sm:$0xff] }
  0x20   :  { %v51_v29 = vld [vmem:[%s8927_s1 + $0xe8] sm:$0xff]  ;;  %v50_v30 = vld [vmem:[%s8927_s1 + $0xe0] sm:$0xff]  ;;  %v53_v31 = vld [vmem:[%s8927_s1 + $0xf8] sm:$0xff] }
  0x21   :  { %v52_v32 = vld [vmem:[%s8927_s1 + $0xf0] sm:$0xff]  ;;  %v55_v33 = vld [vmem:[%s8927_s1 + $0x108] sm:$0xff]  ;;  %v54_v34 = vld [vmem:[%s8927_s1 + $0x100] sm:$0xff] }
  0x22   :  { %303 = vperm.xlu1 %3842, %v39_v17   ;;  %298 = vperm.xlu0 %3841, %v38_v18   ;;  %v57_v35 = vld [vmem:[%s8927_s1 + $0x118] sm:$0xff]  ;;  %v56_v36 = vld [vmem:[%s8927_s1 + $0x110] sm:$0xff]  ;;  %v59_v37 = vld [vmem:[%s8927_s1 + $0x128] sm:$0xff]  ;;  %v536_v17 = vlaneseq }
  0x23   :  { %v58_v38 = vld [vmem:[%s8927_s1 + $0x120] sm:$0xff]  ;;  %v61_v39 = vld [vmem:[%s8927_s1 + $0x138] sm:$0xff]  ;;  %v60_v40 = vld [vmem:[%s8927_s1 + $0x130] sm:$0xff] }
  0x24   :  { %v63_v41 = vld [vmem:[%s8927_s1 + $0x148] sm:$0xff]  ;;  %v62_v42 = vld [vmem:[%s8927_s1 + $0x140] sm:$0xff]  ;;  %v65_v43 = vld [vmem:[%s8927_s1 + $0x158] sm:$0xff] }
  0x25   :  { %v64_v44 = vld [vmem:[%s8927_s1 + $0x150] sm:$0xff]  ;;  %v67_v45 = vld [vmem:[%s8927_s1 + $0x168] sm:$0xff]  ;;  %v66_v46 = vld [vmem:[%s8927_s1 + $0x160] sm:$0xff] }
  0x26   :  { %313 = vperm.xlu1 %3842, %v41_v19   ;;  %308 = vperm.xlu0 %3841, %v40_v20   ;;  %v69_v47 = vld [vmem:[%s8927_s1 + $0x178] sm:$0xff]  ;;  %v68_v48 = vld [vmem:[%s8927_s1 + $0x170] sm:$0xff]  ;;  %v71_v49 = vld [vmem:[%s8927_s1 + $0x188] sm:$0xff] }
  0x27   :  { %v70_v50 = vld [vmem:[%s8927_s1 + $0x180] sm:$0xff]  ;;  %v73_v51 = vld [vmem:[%s8927_s1 + $0x198] sm:$0xff]  ;;  %v72_v52 = vld [vmem:[%s8927_s1 + $0x190] sm:$0xff] }
  0x28   :  { %v75_v53 = vld [vmem:[%s8927_s1 + $0x1a8] sm:$0xff]  ;;  %v74_v54 = vld [vmem:[%s8927_s1 + $0x1a0] sm:$0xff]  ;;  %v77_v55 = vld [vmem:[%s8927_s1 + $0x1b8] sm:$0xff] }
  0x29   :  { %v76_v56 = vld [vmem:[%s8927_s1 + $0x1b0] sm:$0xff]  ;;  %v79_v57 = vld [vmem:[%s8927_s1 + $0x1c8] sm:$0xff]  ;;  %v78_v58 = vld [vmem:[%s8927_s1 + $0x1c0] sm:$0xff] }
  0x2a   :  { %323 = vperm.xlu1 %3842, %v43_v21   ;;  %318 = vperm.xlu0 %3841, %v42_v22   ;;  %v81_v59 = vld [vmem:[%s8927_s1 + $0x1d8] sm:$0xff]  ;;  %v80_v60 = vld [vmem:[%s8927_s1 + $0x1d0] sm:$0xff]  ;;  %v83_v61 = vld [vmem:[%s8927_s1 + $0x1e8] sm:$0xff]  ;;  %v537_v22 = vshrl.u32 %v536_v17, 7 }
  0x2b   :  { %v82_v62 = vld [vmem:[%s8927_s1 + $0x1e0] sm:$0xff]  ;;  %v85_v63 = vld [vmem:[%s8927_s1 + $0x1f8] sm:$0xff]  ;;  %v84_v0 = vld [vmem:[%s8927_s1 + $0x1f0] sm:$0xff] }
  0x2c   :  { %v87_v1 = vld [vmem:[%s8928_s2 + $0x8] sm:$0xff]  ;;  %v86_v2 = vld [vmem:[%s8928_s2] sm:$0xff]  ;;  %v89_v5 = vld [vmem:[%s8928_s2 + $0x18] sm:$0xff] }
  0x2d   :  { %v88_v6 = vld [vmem:[%s8928_s2 + $0x10] sm:$0xff]  ;;  %v91_v9 = vld [vmem:[%s8928_s2 + $0x28] sm:$0xff]  ;;  %v90_v10 = vld [vmem:[%s8928_s2 + $0x20] sm:$0xff] }
  0x2e   :  { %333 = vperm.xlu1 %3842, %v45_v23   ;;  %328 = vperm.xlu0 %3841, %v44_v24   ;;  %v93_v13 = vld [vmem:[%s8928_s2 + $0x38] sm:$0xff]  ;;  %v92_v14 = vld [vmem:[%s8928_s2 + $0x30] sm:$0xff]  ;;  %v95_v18 = vld [vmem:[%s8928_s2 + $0x48] sm:$0xff] }
  0x2f   :  { %v94_v19 = vld [vmem:[%s8928_s2 + $0x40] sm:$0xff]  ;;  %v97_v23 = vld [vmem:[%s8928_s2 + $0x58] sm:$0xff]  ;;  %v96_v24 = vld [vmem:[%s8928_s2 + $0x50] sm:$0xff] }
  0x30   :  { %v104_v17 = vld [vmem:[%s8928_s2 + $0x90] sm:$0xff] }
  0x32   :  { %343 = vperm.xlu1 %3842, %v47_v25   ;;  %338 = vperm.xlu0 %3841, %v46_v26  }
  0x36   :  { %353 = vperm.xlu1 %3842, %v49_v27   ;;  %348 = vperm.xlu0 %3841, %v48_v28   ;;  %v538_v27 = vsub.s32 0, %v537_v22  ;;  %v1510_v28 = vsub.s32 1, %v537_v22 }
  0x3a   :  { %363 = vperm.xlu1 %3842, %v51_v29   ;;  %358 = vperm.xlu0 %3841, %v50_v30   ;;  %v1841_v29 = vsub.s32 2, %v537_v22  ;;  %v99_v30 = vld [vmem:[%s8928_s2 + $0x68] sm:$0xff] }
  0x3e   :  { %373 = vperm.xlu1 %3842, %v53_v31   ;;  %368 = vperm.xlu0 %3841, %v52_v32   ;;  %v98_v31 = vld [vmem:[%s8928_s2 + $0x60] sm:$0xff] }
  0x3f   :  { %v215_v32 = vld [vmem:[%s8926_s0] sm:$0xff] }
  0x42   :  { %383 = vperm.xlu1 %3842, %v55_v33   ;;  %378 = vperm.xlu0 %3841, %v54_v34   ;;  %v2172_v33 = vsub.s32 3, %v537_v22  ;;  %v2503_v34 = vsub.s32 4, %v537_v22 }
  0x46   :  { %393 = vperm.xlu1 %3842, %v57_v35   ;;  %388 = vperm.xlu0 %3841, %v56_v36   ;;  %v2834_v35 = vsub.s32 5, %v537_v22  ;;  %v3165_v36 = vsub.s32 6, %v537_v22 }
  0x4a   :  { %403 = vperm.xlu1 %3842, %v59_v37   ;;  %398 = vperm.xlu0 %3841, %v58_v38   ;;  %v3496_v37 = vsub.s32 7, %v537_v22 }
  0x4e   :  { %413 = vperm.xlu1 %3842, %v61_v39   ;;  %408 = vperm.xlu0 %3841, %v60_v40   ;;  %v4164_v40 = vrot.slane %v215_v32, %v538_v27 }
  0x50   :  { %9313 = vst [vmem:[#allocation6_spill] sm:$0xff] %v4164_v40 }
  0x52   :  { %423 = vperm.xlu1 %3842, %v63_v41   ;;  %418 = vperm.xlu0 %3841, %v62_v42   ;;  %v4166_v41 = vrot.slane %v215_v32, %v1510_v28  ;;  %v101_v42 = vld [vmem:[%s8928_s2 + $0x78] sm:$0xff] }
  0x54   :  { %9314 = vst [vmem:[#allocation7_spill] sm:$0xff] %v4166_v41 }
  0x56   :  { %433 = vperm.xlu1 %3842, %v65_v43   ;;  %428 = vperm.xlu0 %3841, %v64_v44   ;;  %v100_v43 = vld [vmem:[%s8928_s2 + $0x70] sm:$0xff]  ;;  %v4174_v44 = vrot.slane %v215_v32, %v1841_v29 }
  0x58   :  { %9315 = vst [vmem:[#allocation8_spill] sm:$0xff] %v4174_v44 }
  0x5a   :  { %443 = vperm.xlu1 %3842, %v67_v45   ;;  %438 = vperm.xlu0 %3841, %v66_v46   ;;  %v4176_v45 = vrot.slane %v215_v32, %v2172_v33  ;;  %v4178_v46 = vrot.slane %v215_v32, %v2503_v34 }
  0x5c   :  { %9316 = vst [vmem:[#allocation9_spill] sm:$0xff] %v4176_v45  ;;  %9317 = vst [vmem:[#allocation10_spill] sm:$0xff] %v4178_v46 }
  0x5e   :  { %453 = vperm.xlu1 %3842, %v69_v47   ;;  %448 = vperm.xlu0 %3841, %v68_v48   ;;  %v4180_v47 = vrot.slane %v215_v32, %v2834_v35  ;;  %v4182_v48 = vrot.slane %v215_v32, %v3165_v36 }
  0x60   :  { %9318 = vst [vmem:[#allocation11_spill] sm:$0xff] %v4180_v47  ;;  %9319 = vst [vmem:[#allocation12_spill] sm:$0xff] %v4182_v48 }
  0x62   :  { %463 = vperm.xlu1 %3842, %v71_v49   ;;  %458 = vperm.xlu0 %3841, %v70_v50   ;;  %v4184_v49 = vrot.slane %v215_v32, %v3496_v37 }
  0x64   :  { %9320 = vst [vmem:[#allocation13_spill] sm:$0xff] %v4184_v49 }
  0x66   :  { %473 = vperm.xlu1 %3842, %v73_v51   ;;  %468 = vperm.xlu0 %3841, %v72_v52  }
  0x6a   :  { %483 = vperm.xlu1 %3842, %v75_v53   ;;  %478 = vperm.xlu0 %3841, %v74_v54   ;;  %v103_v54 = vld [vmem:[%s8928_s2 + $0x88] sm:$0xff] }
  0x6e   :  { %493 = vperm.xlu1 %3842, %v77_v55   ;;  %488 = vperm.xlu0 %3841, %v76_v56   ;;  %v102_v55 = vld [vmem:[%s8928_s2 + $0x80] sm:$0xff] }
  0x72   :  { %503 = vperm.xlu1 %3842, %v79_v57   ;;  %498 = vperm.xlu0 %3841, %v78_v58  }
  0x76   :  { %513 = vperm.xlu1 %3842, %v81_v59   ;;  %508 = vperm.xlu0 %3841, %v80_v60  }
  0x7a   :  { %523 = vperm.xlu1 %3842, %v83_v61   ;;  %518 = vperm.xlu0 %3841, %v82_v62  }
  0x7e   :  { %533 = vperm.xlu1 %3842, %v85_v63   ;;  %528 = vperm.xlu0 %3841, %v84_v0  }
  0x81   :  { %v4097_v3 = vpop.permute.xlu1 %228  ;;  %v4099_v4 = vpop.permute.xlu0 %218 }
  0x82   :  { %611 = vperm.xlu1 %3842, %v87_v1   ;;  %606 = vperm.xlu0 %3841, %v86_v2   ;;  %v4192_v52 = vmul.f32 %v4164_v40, %v4099_v4  ;;  %v4196_v53 = vmul.f32 %v4166_v41, %v4099_v4  ;;  %v4206_v56 = vmul.f32 %v4174_v44, %v4099_v4 }
  0x83   :  { %v4210_v57 = vmul.f32 %v4176_v45, %v4099_v4  ;;  %v4214_v58 = vmul.f32 %v4178_v46, %v4099_v4  ;;  %v4218_v59 = vmul.f32 %v4180_v47, %v4099_v4  ;;  %v4222_v60 = vmul.f32 %v4182_v48, %v4099_v4 }
  0x84   :  { %v4226_v61 = vmul.f32 %v4184_v49, %v4099_v4  ;;  %v4230_v62 = vmul.f32 %v4164_v40, %v4097_v3  ;;  %v4234_v63 = vmul.f32 %v4166_v41, %v4097_v3  ;;  %v4242_v2 = vmul.f32 %v4174_v44, %v4097_v3 }
  0x85   :  { %v4107_v7 = vpop.permute.xlu1 %233  ;;  %v4109_v8 = vpop.permute.xlu0 %223  ;;  %v4246_v4 = vmul.f32 %v4176_v45, %v4097_v3  ;;  %v4336_v37 = vmul.f32 %v4184_v49, %v4097_v3 }
  0x86   :  { %621 = vperm.xlu1 %3842, %v89_v5   ;;  %616 = vperm.xlu0 %3841, %v88_v6   ;;  %v4250_v5 = vmul.f32 %v4178_v46, %v4097_v3  ;;  %v4254_v6 = vmul.f32 %v4180_v47, %v4097_v3  ;;  %v4284_v22 = vmul.f32 %v4178_v46, %v4109_v8 }
  0x87   :  { %v4296_v27 = vmul.f32 %v4184_v49, %v4109_v8  ;;  %v4300_v28 = vmul.f32 %v4164_v40, %v4107_v7  ;;  %v4304_v29 = vmul.f32 %v4166_v41, %v4107_v7  ;;  %v4312_v32 = vmul.f32 %v4174_v44, %v4107_v7 }
  0x88   :  { %v4320_v33 = vmul.f32 %v4178_v46, %v4107_v7  ;;  %v4324_v34 = vmul.f32 %v4180_v47, %v4107_v7  ;;  %v4328_v35 = vmul.f32 %v4182_v48, %v4107_v7  ;;  %v4332_v36 = vmul.f32 %v4184_v49, %v4107_v7 }
  0x89   :  { %v4117_v11 = vpop.permute.xlu1 %243  ;;  %v4119_v12 = vpop.permute.xlu0 %238 }
  0x8a   :  { %631 = vperm.xlu1 %3842, %v91_v9   ;;  %626 = vperm.xlu0 %3841, %v90_v10   ;;  %v4258_v9 = vmul.f32 %v4164_v40, %v4109_v8  ;;  %v4262_v10 = vmul.f32 %v4166_v41, %v4109_v8 }
  0x8d   :  { %v4127_v15 = vpop.permute.xlu1 %253  ;;  %v4129_v16 = vpop.permute.xlu0 %248 }
  0x8e   :  { %641 = vperm.xlu1 %3842, %v93_v13   ;;  %636 = vperm.xlu0 %3841, %v92_v14   ;;  %v4266_v13 = vmul.f32 %v4182_v48, %v4097_v3  ;;  %v105_v14 = vld [vmem:[%s8928_s2 + $0x98] sm:$0xff]  ;;  %v4354_v3 = vmul.f32 %v4174_v44, %v4117_v11 }
  0x91   :  { %v4137_v20 = vpop.permute.xlu1 %263  ;;  %v4139_v21 = vpop.permute.xlu0 %258 }
  0x92   :  { %651 = vperm.xlu1 %3842, %v95_v18   ;;  %646 = vperm.xlu0 %3841, %v94_v19   ;;  %v4276_v18 = vmul.f32 %v4174_v44, %v4109_v8  ;;  %v4280_v19 = vmul.f32 %v4176_v45, %v4109_v8 }
  0x95   :  { %v4147_v25 = vpop.permute.xlu1 %273  ;;  %v4149_v26 = vpop.permute.xlu0 %268 }
  0x96   :  { %661 = vperm.xlu1 %3842, %v97_v23   ;;  %656 = vperm.xlu0 %3841, %v96_v24   ;;  %v4288_v23 = vmul.f32 %v4180_v47, %v4109_v8  ;;  %v4292_v24 = vmul.f32 %v4182_v48, %v4109_v8  ;;  %v4316_v8 = vmul.f32 %v4176_v45, %v4107_v7 }
  0x97   :  { %v4350_v7 = vmul.f32 %v4166_v41, %v4117_v11 }
  0x99   :  { %v4160_v38 = vpop.permute.xlu1 %283  ;;  %v4162_v39 = vpop.permute.xlu0 %278 }
  0x9a   :  { %671 = vperm.xlu1 %3842, %v99_v30   ;;  %666 = vperm.xlu0 %3841, %v98_v31  }
  0x9d   :  { %v4186_v50 = vpop.permute.xlu1 %293  ;;  %v4188_v51 = vpop.permute.xlu0 %288 }
  0x9e   :  { %9321 = vst [vmem:[#allocation14_spill] sm:$0xff] %v4186_v50  ;;  %9322 = vst [vmem:[#allocation15_spill] sm:$0xff] %v4188_v51  ;;  %681 = vperm.xlu1 %3842, %v101_v42   ;;  %676 = vperm.xlu0 %3841, %v100_v43   ;;  %v107_v42 = vld [vmem:[%s8928_s2 + $0xa8] sm:$0xff]  ;;  %v106_v43 = vld [vmem:[%s8928_s2 + $0xa0] sm:$0xff]  ;;  %v4382_v51 = vmul.f32 %v4164_v40, %v4119_v12 }
  0xa0   :  { %9331 = vst [vmem:[#allocation24_spill] sm:$0xff] %v4382_v51 }
  0xa1   :  { %v4236_v0 = vpop.permute.xlu1 %303  ;;  %v4238_v1 = vpop.permute.xlu0 %298 }
  0xa2   :  { %9323 = vst [vmem:[#allocation16_spill] sm:$0xff] %v4236_v0  ;;  %9324 = vst [vmem:[#allocation17_spill] sm:$0xff] %v4238_v1  ;;  %691 = vperm.xlu1 %3842, %v103_v54   ;;  %686 = vperm.xlu0 %3841, %v102_v55   ;;  %v4346_v54 = vmul.f32 %v4164_v40, %v4117_v11  ;;  %v4358_v55 = vmul.f32 %v4176_v45, %v4117_v11 }
  0xa5   :  { %v4306_v30 = vpop.permute.xlu1 %313  ;;  %v4308_v31 = vpop.permute.xlu0 %308 }
  0xa6   :  { %9325 = vst [vmem:[#allocation18_spill] sm:$0xff] %v4306_v30  ;;  %9326 = vst [vmem:[#allocation19_spill] sm:$0xff] %v4308_v31  ;;  %701 = vperm.xlu1 %3842, %v105_v14   ;;  %696 = vperm.xlu0 %3841, %v104_v17   ;;  %v4362_v14 = vmul.f32 %v4178_v46, %v4117_v11  ;;  %v4366_v17 = vmul.f32 %v4180_v47, %v4117_v11 }
  0xa7   :  { %v4370_v31 = vmul.f32 %v4182_v48, %v4117_v11  ;;  %v4374_v30 = vmul.f32 %v4184_v49, %v4117_v11  ;;  %v4394_v11 = vmul.f32 %v4176_v45, %v4119_v12 }
  0xa8   :  { %9327 = vst [vmem:[#allocation20_spill] sm:$0xff] %v4362_v14  ;;  %9328 = vst [vmem:[#allocation21_spill] sm:$0xff] %v4366_v17  ;;  %v4386_v14 = vmul.f32 %v4166_v41, %v4119_v12  ;;  %v4390_v17 = vmul.f32 %v4174_v44, %v4119_v12 }
  0xa9   :  { %v4376_v1 = vpop.permute.xlu1 %323  ;;  %v4378_v0 = vpop.permute.xlu0 %318  ;;  %9334 = vst [vmem:[#allocation27_spill] sm:$0xff] %v4394_v11  ;;  %v4432_v11 = vmul.f32 %v4176_v45, %v4127_v15 }
  0xaa   :  { %9329 = vst [vmem:[#allocation22_spill] sm:$0xff] %v4376_v1  ;;  %9330 = vst [vmem:[#allocation23_spill] sm:$0xff] %v4378_v0  ;;  %711 = vperm.xlu1 %3842, %v107_v42   ;;  %706 = vperm.xlu0 %3841, %v106_v43   ;;  %v4398_v0 = vmul.f32 %v4178_v46, %v4119_v12  ;;  %v4402_v1 = vmul.f32 %v4180_v47, %v4119_v12  ;;  %v108_v42 = vld [vmem:[%s8928_s2 + $0xb0] sm:$0xff] }
  0xab   :  { %9332 = vst [vmem:[#allocation25_spill] sm:$0xff] %v4386_v14  ;;  %9333 = vst [vmem:[#allocation26_spill] sm:$0xff] %v4390_v17  ;;  %v4406_v14 = vmul.f32 %v4182_v48, %v4119_v12  ;;  %v109_v17 = vld [vmem:[%s8928_s2 + $0xb8] sm:$0xff]  ;;  %v4416_v43 = vmul.f32 %v4184_v49, %v4119_v12  ;;  %v4436_v12 = vmul.f32 %v4178_v46, %v4127_v15 }
  0xac   :  { %9335 = vst [vmem:[#allocation28_spill] sm:$0xff] %v4398_v0  ;;  %9336 = vst [vmem:[#allocation29_spill] sm:$0xff] %v4402_v1  ;;  %v4420_v0 = vmul.f32 %v4164_v40, %v4127_v15  ;;  %v4424_v1 = vmul.f32 %v4166_v41, %v4127_v15 }
  0xad   :  { %9337 = vst [vmem:[#allocation30_spill] sm:$0xff] %v4406_v14  ;;  %9338 = vst [vmem:[#allocation31_spill] sm:$0xff] %v4416_v43  ;;  %v4428_v14 = vmul.f32 %v4174_v44, %v4127_v15  ;;  %v4440_v43 = vmul.f32 %v4180_v47, %v4127_v15  ;;  %v4448_v51 = vpop.permute.xlu0 %328 }
  0xae   :  { %9339 = vst [vmem:[#allocation32_spill] sm:$0xff] %v4420_v0  ;;  %9340 = vst [vmem:[#allocation33_spill] sm:$0xff] %v4424_v1  ;;  %v4444_v0 = vmul.f32 %v4182_v48, %v4127_v15  ;;  %v4446_v1 = vpop.permute.xlu1 %333  ;;  %721 = vperm.xlu1 %3842, %v109_v17   ;;  %716 = vperm.xlu0 %3841, %v108_v42   ;;  %v110_v17 = vld [vmem:[%s8928_s2 + $0xc0] sm:$0xff]  ;;  %v4486_v42 = vmul.f32 %v4182_v48, %v4129_v16 }
  0xaf   :  { %9341 = vst [vmem:[#allocation34_spill] sm:$0xff] %v4428_v14  ;;  %9342 = vst [vmem:[#allocation35_spill] sm:$0xff] %v4432_v11  ;;  %v4452_v14 = vmul.f32 %v4184_v49, %v4127_v15  ;;  %v4456_v11 = vmul.f32 %v4164_v40, %v4129_v16  ;;  %v4472_v15 = vmul.f32 %v4178_v46, %v4129_v16 }
  0xb0   :  { %9343 = vst [vmem:[#allocation36_spill] sm:$0xff] %v4436_v12  ;;  %9344 = vst [vmem:[#allocation37_spill] sm:$0xff] %v4440_v43  ;;  %v4460_v12 = vmul.f32 %v4166_v41, %v4129_v16  ;;  %v4464_v43 = vmul.f32 %v4174_v44, %v4129_v16 }
  0xb1   :  { %9345 = vst [vmem:[#allocation38_spill] sm:$0xff] %v4446_v1  ;;  %9346 = vst [vmem:[#allocation39_spill] sm:$0xff] %v4448_v51  ;;  %v4468_v51 = vmul.f32 %v4176_v45, %v4129_v16  ;;  %v4476_v1 = vmul.f32 %v4180_v47, %v4129_v16 }
  0xb2   :  { %9347 = vst [vmem:[#allocation40_spill] sm:$0xff] %v4456_v11  ;;  %9348 = vst [vmem:[#allocation41_spill] sm:$0xff] %v4460_v12  ;;  %v111_v12 = vld [vmem:[%s8928_s2 + $0xc8] sm:$0xff]  ;;  %v4506_v11 = vmul.f32 %v4176_v45, %v4137_v20  ;;  %726 = vperm.xlu0 %3841, %v110_v17   ;;  %v4556_v17 = vmul.f32 %v4180_v47, %v4139_v21 }
  0xb3   :  { %9349 = vst [vmem:[#allocation42_spill] sm:$0xff] %v4464_v43  ;;  %9350 = vst [vmem:[#allocation43_spill] sm:$0xff] %v4468_v51  ;;  %v4490_v51 = vmul.f32 %v4184_v49, %v4129_v16  ;;  %v4502_v43 = vmul.f32 %v4174_v44, %v4137_v20  ;;  %v4510_v16 = vmul.f32 %v4178_v46, %v4137_v20  ;;  %731 = vperm.xlu1 %3842, %v111_v12   ;;  %v112_v12 = vld [vmem:[%s8928_s2 + $0xd0] sm:$0xff] }
  0xb4   :  { %9351 = vst [vmem:[#allocation44_spill] sm:$0xff] %v4472_v15  ;;  %9352 = vst [vmem:[#allocation45_spill] sm:$0xff] %v4476_v1  ;;  %v4494_v15 = vmul.f32 %v4164_v40, %v4137_v20  ;;  %v4498_v1 = vmul.f32 %v4166_v41, %v4137_v20 }
  0xb5   :  { %9353 = vst [vmem:[#allocation46_spill] sm:$0xff] %v4486_v42  ;;  %9354 = vst [vmem:[#allocation47_spill] sm:$0xff] %v4490_v51  ;;  %v4514_v51 = vmul.f32 %v4180_v47, %v4137_v20  ;;  %v4518_v42 = vpop.permute.xlu0 %338 }
  0xb6   :  { %9355 = vst [vmem:[#allocation48_spill] sm:$0xff] %v4494_v15  ;;  %9356 = vst [vmem:[#allocation49_spill] sm:$0xff] %v4498_v1  ;;  %v4516_v15 = vpop.permute.xlu1 %343  ;;  %v4522_v1 = vmul.f32 %v4182_v48, %v4137_v20  ;;  %736 = vperm.xlu0 %3841, %v112_v12   ;;  %v4626_v12 = vmul.f32 %v4178_v46, %v4149_v26 }
  0xb7   :  { %9357 = vst [vmem:[#allocation50_spill] sm:$0xff] %v4502_v43  ;;  %9358 = vst [vmem:[#allocation51_spill] sm:$0xff] %v4506_v11  ;;  %v4526_v43 = vmul.f32 %v4184_v49, %v4137_v20  ;;  %v4530_v11 = vmul.f32 %v4164_v40, %v4139_v21  ;;  %v4546_v20 = vmul.f32 %v4178_v46, %v4139_v21 }
  0xb8   :  { %9359 = vst [vmem:[#allocation52_spill] sm:$0xff] %v4510_v16  ;;  %9360 = vst [vmem:[#allocation53_spill] sm:$0xff] %v4516_v15  ;;  %v4534_v16 = vmul.f32 %v4166_v41, %v4139_v21  ;;  %v4542_v15 = vmul.f32 %v4176_v45, %v4139_v21 }
  0xb9   :  { %9361 = vst [vmem:[#allocation54_spill] sm:$0xff] %v4518_v42  ;;  %9362 = vst [vmem:[#allocation55_spill] sm:$0xff] %v4526_v43  ;;  %v4538_v42 = vmul.f32 %v4174_v44, %v4139_v21  ;;  %v4576_v43 = vmul.f32 %v4174_v44, %v4147_v25 }
  0xba   :  { %9363 = vst [vmem:[#allocation56_spill] sm:$0xff] %v4530_v11  ;;  %9364 = vst [vmem:[#allocation57_spill] sm:$0xff] %v4534_v16  ;;  %v113_v11 = vld [vmem:[%s8928_s2 + $0xd8] sm:$0xff]  ;;  %v4572_v16 = vmul.f32 %v4166_v41, %v4147_v25 }
  0xbb   :  { %9365 = vst [vmem:[#allocation58_spill] sm:$0xff] %v4538_v42  ;;  %9366 = vst [vmem:[#allocation59_spill] sm:$0xff] %v4542_v15  ;;  %v4560_v42 = vmul.f32 %v4182_v48, %v4139_v21  ;;  %v4564_v15 = vmul.f32 %v4184_v49, %v4139_v21  ;;  %v4584_v21 = vmul.f32 %v4178_v46, %v4147_v25  ;;  %741 = vperm.xlu1 %3842, %v113_v11   ;;  %v114_v11 = vld [vmem:[%s8928_s2 + $0xe0] sm:$0xff] }
  0xbc   :  { %9367 = vst [vmem:[#allocation60_spill] sm:$0xff] %v4546_v20  ;;  %9368 = vst [vmem:[#allocation61_spill] sm:$0xff] %v4556_v17  ;;  %v4568_v20 = vmul.f32 %v4164_v40, %v4147_v25  ;;  %v4580_v17 = vmul.f32 %v4176_v45, %v4147_v25  ;;  %746 = vperm.xlu0 %3841, %v114_v11   ;;  %v4700_v11 = vmul.f32 %v4178_v46, %v4162_v39 }
  0xbd   :  { %9369 = vst [vmem:[#allocation62_spill] sm:$0xff] %v4560_v42  ;;  %9370 = vst [vmem:[#allocation63_spill] sm:$0xff] %v4564_v15  ;;  %v4586_v15 = vpop.permute.xlu1 %353  ;;  %v4588_v42 = vpop.permute.xlu0 %348 }
  0xbe   :  { %9371 = vst [vmem:[#allocation64_spill] sm:$0xff] %v4568_v20  ;;  %9372 = vst [vmem:[#allocation65_spill] sm:$0xff] %v4572_v16  ;;  %v4592_v20 = vmul.f32 %v4180_v47, %v4147_v25  ;;  %v4596_v16 = vmul.f32 %v4182_v48, %v4147_v25 }
  0xbf   :  { %9373 = vst [vmem:[#allocation66_spill] sm:$0xff] %v4576_v43  ;;  %9374 = vst [vmem:[#allocation67_spill] sm:$0xff] %v4580_v17  ;;  %v4600_v43 = vmul.f32 %v4184_v49, %v4147_v25  ;;  %v4604_v17 = vmul.f32 %v4164_v40, %v4149_v26  ;;  %v115_v25 = vld [vmem:[%s8928_s2 + $0xe8] sm:$0xff] }
  0xc0   :  { %9375 = vst [vmem:[#allocation68_spill] sm:$0xff] %v4584_v21  ;;  %9376 = vst [vmem:[#allocation69_spill] sm:$0xff] %v4586_v15  ;;  %v4612_v15 = vmul.f32 %v4174_v44, %v4149_v26  ;;  %751 = vperm.xlu1 %3842, %v115_v25   ;;  %v4696_v25 = vmul.f32 %v4176_v45, %v4162_v39 }
  0xc1   :  { %9377 = vst [vmem:[#allocation70_spill] sm:$0xff] %v4588_v42  ;;  %9378 = vst [vmem:[#allocation71_spill] sm:$0xff] %v4592_v20  ;;  %v4608_v42 = vmul.f32 %v4166_v41, %v4149_v26 }
  0xc2   :  { %9379 = vst [vmem:[#allocation72_spill] sm:$0xff] %v4596_v16  ;;  %9380 = vst [vmem:[#allocation73_spill] sm:$0xff] %v4600_v43  ;;  %v4616_v16 = vmul.f32 %v4176_v45, %v4149_v26  ;;  %v4646_v43 = vmul.f32 %v4166_v41, %v4160_v38 }
  0xc3   :  { %9381 = vst [vmem:[#allocation74_spill] sm:$0xff] %v4604_v17  ;;  %9382 = vst [vmem:[#allocation75_spill] sm:$0xff] %v4608_v42  ;;  %v4630_v42 = vmul.f32 %v4180_v47, %v4149_v26  ;;  %v4642_v17 = vmul.f32 %v4164_v40, %v4160_v38 }
  0xc4   :  { %9383 = vst [vmem:[#allocation76_spill] sm:$0xff] %v4612_v15  ;;  %9384 = vst [vmem:[#allocation77_spill] sm:$0xff] %v4616_v16  ;;  %v4634_v15 = vmul.f32 %v4182_v48, %v4149_v26  ;;  %v4638_v16 = vmul.f32 %v4184_v49, %v4149_v26  ;;  %v4658_v26 = vpop.permute.xlu0 %358 }
  0xc5   :  { %9385 = vst [vmem:[#allocation78_spill] sm:$0xff] %v4626_v12  ;;  %9386 = vst [vmem:[#allocation79_spill] sm:$0xff] %v4630_v42  ;;  %v4650_v12 = vmul.f32 %v4174_v44, %v4160_v38  ;;  %v4654_v42 = vmul.f32 %v4176_v45, %v4160_v38 }
  0xc6   :  { %9387 = vst [vmem:[#allocation80_spill] sm:$0xff] %v4634_v15  ;;  %9388 = vst [vmem:[#allocation81_spill] sm:$0xff] %v4638_v16  ;;  %v4656_v15 = vpop.permute.xlu1 %363  ;;  %v4662_v16 = vmul.f32 %v4178_v46, %v4160_v38 }
  0xc7   :  { %9389 = vst [vmem:[#allocation82_spill] sm:$0xff] %v4642_v17  ;;  %9390 = vst [vmem:[#allocation83_spill] sm:$0xff] %v4646_v43  ;;  %v4666_v17 = vmul.f32 %v4180_v47, %v4160_v38  ;;  %v4670_v43 = vmul.f32 %v4182_v48, %v4160_v38 }
  0xc8   :  { %9391 = vst [vmem:[#allocation84_spill] sm:$0xff] %v4650_v12  ;;  %9392 = vst [vmem:[#allocation85_spill] sm:$0xff] %v4654_v42  ;;  %v4674_v12 = vmul.f32 %v4184_v49, %v4160_v38  ;;  %v116_v38 = vld [vmem:[%s8928_s2 + $0xf0] sm:$0xff] }
  0xc9   :  { %9393 = vst [vmem:[#allocation86_spill] sm:$0xff] %v4656_v15  ;;  %9394 = vst [vmem:[#allocation87_spill] sm:$0xff] %v4658_v26  ;;  %v4678_v26 = vmul.f32 %v4164_v40, %v4162_v39  ;;  %v4682_v15 = vmul.f32 %v4166_v41, %v4162_v39  ;;  %756 = vperm.xlu0 %3841, %v116_v38  }
  0xca   :  { %9395 = vst [vmem:[#allocation88_spill] sm:$0xff] %v4662_v16  ;;  %9396 = vst [vmem:[#allocation89_spill] sm:$0xff] %v4666_v17  ;;  %v4686_v17 = vmul.f32 %v4174_v44, %v4162_v39  ;;  %v369_v16 = vpop.permute.xlu0 %368 }
  0xcb   :  { %9397 = vst [vmem:[#allocation90_spill] sm:$0xff] %v4670_v43  ;;  %9398 = vst [vmem:[#allocation91_spill] sm:$0xff] %v4674_v12  ;;  %v117_v43 = vld [vmem:[%s8928_s2 + $0xf8] sm:$0xff]  ;;  %v4716_v12 = vmul.f32 %v4164_v40, %v4186_v50  ;;  %v4782_v20 = vmul.f32 %v4176_v45, %v369_v16 }
  0xcc   :  { %9399 = vst [vmem:[#allocation92_spill] sm:$0xff] %v4678_v26  ;;  %9400 = vst [vmem:[#allocation93_spill] sm:$0xff] %v4682_v15  ;;  %v4704_v15 = vmul.f32 %v4180_v47, %v4162_v39  ;;  %v4712_v26 = vmul.f32 %v4184_v49, %v4162_v39  ;;  %761 = vperm.xlu1 %3842, %v117_v43  }
  0xcd   :  { %9401 = vst [vmem:[#allocation94_spill] sm:$0xff] %v4686_v17  ;;  %9402 = vst [vmem:[#allocation95_spill] sm:$0xff] %v4696_v25  ;;  %v4708_v17 = vmul.f32 %v4182_v48, %v4162_v39  ;;  %v4720_v25 = vmul.f32 %v4166_v41, %v4186_v50  ;;  %v4732_v39 = vmul.f32 %v4178_v46, %v4186_v50 }
  0xce   :  { %9403 = vst [vmem:[#allocation96_spill] sm:$0xff] %v4700_v11  ;;  %9404 = vst [vmem:[#allocation97_spill] sm:$0xff] %v4704_v15  ;;  %v4724_v11 = vmul.f32 %v4174_v44, %v4186_v50  ;;  %v374_v15 = vpop.permute.xlu1 %373 }
  0xcf   :  { %9405 = vst [vmem:[#allocation98_spill] sm:$0xff] %v4708_v17  ;;  %9406 = vst [vmem:[#allocation99_spill] sm:$0xff] %v4712_v26  ;;  %v4728_v17 = vmul.f32 %v4176_v45, %v4186_v50  ;;  %v4746_v26 = vmul.f32 %v4166_v41, %v374_v15  ;;  %v4758_v43 = vmul.f32 %v4176_v45, %v374_v15 }
  0xd0   :  { %9407 = vst [vmem:[#allocation100_spill] sm:$0xff] %v4716_v12  ;;  %9408 = vst [vmem:[#allocation101_spill] sm:$0xff] %v4720_v25  ;;  %v4736_v12 = vmul.f32 %v4180_v47, %v4186_v50  ;;  %v4740_v25 = vmul.f32 %v4182_v48, %v4186_v50  ;;  %v118_v50 = vld [vmem:[%s8928_s2 + $0x100] sm:$0xff]  ;;  %v4761_v38 = vmul.f32 %v4178_v46, %v374_v15 }
  0xd1   :  { %9409 = vst [vmem:[#allocation102_spill] sm:$0xff] %v4724_v11  ;;  %9410 = vst [vmem:[#allocation103_spill] sm:$0xff] %v4728_v17  ;;  %v4743_v11 = vmul.f32 %v4164_v40, %v374_v15  ;;  %v4749_v17 = vmul.f32 %v4174_v44, %v374_v15  ;;  %766 = vperm.xlu0 %3841, %v118_v50  }
  0xd2   :  { %9411 = vst [vmem:[#allocation104_spill] sm:$0xff] %v4732_v39  ;;  %9412 = vst [vmem:[#allocation105_spill] sm:$0xff] %v4736_v12  ;;  %v119_v39 = vld [vmem:[%s8928_s2 + $0x108] sm:$0xff]  ;;  %v4776_v12 = vmul.f32 %v4166_v41, %v369_v16  ;;  %v384_v42 = vpop.permute.xlu1 %383 }
  0xd3   :  { %9413 = vst [vmem:[#allocation106_spill] sm:$0xff] %v4740_v25  ;;  %9414 = vst [vmem:[#allocation107_spill] sm:$0xff] %v4743_v11  ;;  %v4764_v11 = vmul.f32 %v4180_v47, %v374_v15  ;;  %v4773_v25 = vmul.f32 %v4164_v40, %v369_v16  ;;  %771 = vperm.xlu1 %3842, %v119_v39   ;;  %v4809_v39 = vmul.f32 %v4174_v44, %v384_v42 }
  0xd4   :  { %9415 = vst [vmem:[#allocation108_spill] sm:$0xff] %v4746_v26  ;;  %9416 = vst [vmem:[#allocation109_spill] sm:$0xff] %v4749_v17  ;;  %v4767_v26 = vmul.f32 %v4182_v48, %v374_v15  ;;  %v4770_v17 = vmul.f32 %v4184_v49, %v374_v15  ;;  %v4788_v15 = vmul.f32 %v4180_v47, %v369_v16 }
  0xd5   :  { %9417 = vst [vmem:[#allocation110_spill] sm:$0xff] %v4758_v43  ;;  %9418 = vst [vmem:[#allocation111_spill] sm:$0xff] %v4761_v38  ;;  %v4779_v43 = vmul.f32 %v4174_v44, %v369_v16  ;;  %v379_v38 = vpop.permute.xlu0 %378  ;;  %v4812_v50 = vmul.f32 %v4176_v45, %v384_v42 }
  0xd6   :  { %9419 = vst [vmem:[#allocation112_spill] sm:$0xff] %v4764_v11  ;;  %9420 = vst [vmem:[#allocation113_spill] sm:$0xff] %v4767_v26  ;;  %v4785_v11 = vmul.f32 %v4178_v46, %v369_v16  ;;  %v4833_v26 = vmul.f32 %v4174_v44, %v379_v38 }
  0xd7   :  { %9421 = vst [vmem:[#allocation114_spill] sm:$0xff] %v4770_v17  ;;  %9422 = vst [vmem:[#allocation115_spill] sm:$0xff] %v4773_v25  ;;  %v4791_v17 = vmul.f32 %v4182_v48, %v369_v16  ;;  %v4800_v25 = vmul.f32 %v4166_v41, %v384_v42 }
  0xd8   :  { %9423 = vst [vmem:[#allocation116_spill] sm:$0xff] %v4776_v12  ;;  %9424 = vst [vmem:[#allocation117_spill] sm:$0xff] %v4779_v43  ;;  %v4794_v12 = vmul.f32 %v4184_v49, %v369_v16  ;;  %v4797_v43 = vmul.f32 %v4164_v40, %v384_v42  ;;  %v4815_v16 = vmul.f32 %v4178_v46, %v384_v42 }
  0xd9   :  { %9425 = vst [vmem:[#allocation118_spill] sm:$0xff] %v4782_v20  ;;  %9426 = vst [vmem:[#allocation119_spill] sm:$0xff] %v4785_v11  ;;  %v121_v11 = vld [vmem:[%s8928_s2 + $0x118] sm:$0xff]  ;;  %v394_v20 = vpop.permute.xlu1 %393 }
  0xda   :  { %9427 = vst [vmem:[#allocation120_spill] sm:$0xff] %v4788_v15  ;;  %9428 = vst [vmem:[#allocation121_spill] sm:$0xff] %v4791_v17  ;;  %v120_v15 = vld [vmem:[%s8928_s2 + $0x110] sm:$0xff]  ;;  %v4827_v17 = vmul.f32 %v4164_v40, %v379_v38  ;;  %781 = vperm.xlu1 %3842, %v121_v11   ;;  %v4860_v11 = vmul.f32 %v4166_v41, %v394_v20 }
  0xdb   :  { %9429 = vst [vmem:[#allocation122_spill] sm:$0xff] %v4794_v12  ;;  %9430 = vst [vmem:[#allocation123_spill] sm:$0xff] %v4797_v43  ;;  %v4818_v43 = vmul.f32 %v4180_v47, %v384_v42  ;;  %v4824_v12 = vmul.f32 %v4184_v49, %v384_v42  ;;  %776 = vperm.xlu0 %3841, %v120_v15   ;;  %v4863_v15 = vmul.f32 %v4174_v44, %v394_v20 }
  0xdc   :  { %9431 = vst [vmem:[#allocation124_spill] sm:$0xff] %v4800_v25  ;;  %9432 = vst [vmem:[#allocation125_spill] sm:$0xff] %v4809_v39  ;;  %v4821_v25 = vmul.f32 %v4182_v48, %v384_v42  ;;  %v4830_v39 = vmul.f32 %v4166_v41, %v379_v38  ;;  %v4842_v42 = vmul.f32 %v4180_v47, %v379_v38 }
  0xdd   :  { %9433 = vst [vmem:[#allocation126_spill] sm:$0xff] %v4812_v50  ;;  %9434 = vst [vmem:[#allocation127_spill] sm:$0xff] %v4815_v16  ;;  %v389_v50 = vpop.permute.xlu0 %388  ;;  %v4836_v16 = vmul.f32 %v4176_v45, %v379_v38 }
  0xde   :  { %9435 = vst [vmem:[#allocation128_spill] sm:$0xff] %v4818_v43  ;;  %9436 = vst [vmem:[#allocation129_spill] sm:$0xff] %v4821_v25  ;;  %v4839_v43 = vmul.f32 %v4178_v46, %v379_v38  ;;  %v4884_v25 = vmul.f32 %v4166_v41, %v389_v50 }
  0xdf   :  { %9437 = vst [vmem:[#allocation130_spill] sm:$0xff] %v4824_v12  ;;  %9438 = vst [vmem:[#allocation131_spill] sm:$0xff] %v4827_v17  ;;  %v4845_v17 = vmul.f32 %v4182_v48, %v379_v38  ;;  %v4851_v12 = vmul.f32 %v4164_v40, %v394_v20 }
  0xe0   :  { %9439 = vst [vmem:[#allocation132_spill] sm:$0xff] %v4830_v39  ;;  %9440 = vst [vmem:[#allocation133_spill] sm:$0xff] %v4833_v26  ;;  %v4848_v39 = vmul.f32 %v4184_v49, %v379_v38  ;;  %v4866_v38 = vmul.f32 %v4176_v45, %v394_v20  ;;  %v404_v26 = vpop.permute.xlu1 %403 }
  0xe1   :  { %9441 = vst [vmem:[#allocation134_spill] sm:$0xff] %v4836_v16  ;;  %9442 = vst [vmem:[#allocation135_spill] sm:$0xff] %v4839_v43  ;;  %v123_v16 = vld [vmem:[%s8928_s2 + $0x128] sm:$0xff]  ;;  %v122_v43 = vld [vmem:[%s8928_s2 + $0x120] sm:$0xff] }
  0xe2   :  { %9443 = vst [vmem:[#allocation136_spill] sm:$0xff] %v4842_v42  ;;  %9444 = vst [vmem:[#allocation137_spill] sm:$0xff] %v4845_v17  ;;  %v4875_v17 = vmul.f32 %v4182_v48, %v394_v20  ;;  %v4878_v42 = vmul.f32 %v4184_v49, %v394_v20  ;;  %791 = vperm.xlu1 %3842, %v123_v16   ;;  %786 = vperm.xlu0 %3841, %v122_v43  }
  0xe3   :  { %9445 = vst [vmem:[#allocation138_spill] sm:$0xff] %v4848_v39  ;;  %9446 = vst [vmem:[#allocation139_spill] sm:$0xff] %v4851_v12  ;;  %v4869_v39 = vmul.f32 %v4178_v46, %v394_v20  ;;  %v4872_v12 = vmul.f32 %v4180_v47, %v394_v20  ;;  %v4896_v20 = vmul.f32 %v4180_v47, %v389_v50 }
  0xe4   :  { %9447 = vst [vmem:[#allocation140_spill] sm:$0xff] %v4860_v11  ;;  %9448 = vst [vmem:[#allocation141_spill] sm:$0xff] %v4863_v15  ;;  %v4881_v11 = vmul.f32 %v4164_v40, %v389_v50  ;;  %v399_v15 = vpop.permute.xlu0 %398  ;;  %v4911_v16 = vmul.f32 %v4164_v40, %v404_v26  ;;  %v4914_v43 = vmul.f32 %v4166_v41, %v404_v26 }
  0xe5   :  { %9449 = vst [vmem:[#allocation142_spill] sm:$0xff] %v4866_v38  ;;  %9450 = vst [vmem:[#allocation143_spill] sm:$0xff] %v4869_v39  ;;  %v4887_v38 = vmul.f32 %v4174_v44, %v389_v50  ;;  %v4890_v39 = vmul.f32 %v4176_v45, %v389_v50 }
  0xe6   :  { %9451 = vst [vmem:[#allocation144_spill] sm:$0xff] %v4872_v12  ;;  %9452 = vst [vmem:[#allocation145_spill] sm:$0xff] %v4875_v17  ;;  %v4893_v12 = vmul.f32 %v4178_v46, %v389_v50  ;;  %v4935_v17 = vmul.f32 %v4164_v40, %v399_v15 }
  0xe7   :  { %9453 = vst [vmem:[#allocation146_spill] sm:$0xff] %v4878_v42  ;;  %9454 = vst [vmem:[#allocation147_spill] sm:$0xff] %v4881_v11  ;;  %v4899_v11 = vmul.f32 %v4182_v48, %v389_v50  ;;  %v4902_v42 = vmul.f32 %v4184_v49, %v389_v50  ;;  %v4920_v50 = vmul.f32 %v4176_v45, %v404_v26 }
  0xe8   :  { %9455 = vst [vmem:[#allocation148_spill] sm:$0xff] %v4884_v25  ;;  %9456 = vst [vmem:[#allocation149_spill] sm:$0xff] %v4887_v38  ;;  %v125_v38 = vld [vmem:[%s8928_s2 + $0x138] sm:$0xff]  ;;  %v414_v25 = vpop.permute.xlu1 %413 }
  0xe9   :  { %9457 = vst [vmem:[#allocation150_spill] sm:$0xff] %v4890_v39  ;;  %9458 = vst [vmem:[#allocation151_spill] sm:$0xff] %v4893_v12  ;;  %v124_v39 = vld [vmem:[%s8928_s2 + $0x130] sm:$0xff]  ;;  %v4929_v12 = vmul.f32 %v4182_v48, %v404_v26  ;;  %801 = vperm.xlu1 %3842, %v125_v38   ;;  %v4962_v38 = vmul.f32 %v4184_v49, %v399_v15 }
  0xea   :  { %9459 = vst [vmem:[#allocation152_spill] sm:$0xff] %v4896_v20  ;;  %9460 = vst [vmem:[#allocation153_spill] sm:$0xff] %v4899_v11  ;;  %v4917_v20 = vmul.f32 %v4174_v44, %v404_v26  ;;  %v4926_v11 = vmul.f32 %v4180_v47, %v404_v26  ;;  %796 = vperm.xlu0 %3841, %v124_v39   ;;  %v4965_v39 = vmul.f32 %v4164_v40, %v414_v25 }
  0xeb   :  { %9461 = vst [vmem:[#allocation154_spill] sm:$0xff] %v4902_v42  ;;  %9462 = vst [vmem:[#allocation155_spill] sm:$0xff] %v4911_v16  ;;  %v4923_v42 = vmul.f32 %v4178_v46, %v404_v26  ;;  %v4932_v16 = vmul.f32 %v4184_v49, %v404_v26  ;;  %v4950_v26 = vmul.f32 %v4180_v47, %v399_v15 }
  0xec   :  { %9463 = vst [vmem:[#allocation156_spill] sm:$0xff] %v4914_v43  ;;  %9464 = vst [vmem:[#allocation157_spill] sm:$0xff] %v4917_v20  ;;  %v409_v43 = vpop.permute.xlu0 %408  ;;  %v4938_v20 = vmul.f32 %v4166_v41, %v399_v15 }
  0xed   :  { %9465 = vst [vmem:[#allocation158_spill] sm:$0xff] %v4920_v50  ;;  %9466 = vst [vmem:[#allocation159_spill] sm:$0xff] %v4923_v42  ;;  %v4941_v50 = vmul.f32 %v4174_v44, %v399_v15  ;;  %v4944_v42 = vmul.f32 %v4176_v45, %v399_v15 }
  0xee   :  { %9467 = vst [vmem:[#allocation160_spill] sm:$0xff] %v4926_v11  ;;  %9468 = vst [vmem:[#allocation161_spill] sm:$0xff] %v4929_v12  ;;  %v4947_v12 = vmul.f32 %v4178_v46, %v399_v15  ;;  %v4986_v11 = vmul.f32 %v4184_v49, %v414_v25 }
  0xef   :  { %9469 = vst [vmem:[#allocation162_spill] sm:$0xff] %v4932_v16  ;;  %9470 = vst [vmem:[#allocation163_spill] sm:$0xff] %v4935_v17  ;;  %v4953_v16 = vmul.f32 %v4182_v48, %v399_v15  ;;  %v4980_v17 = vmul.f32 %v4180_v47, %v414_v25  ;;  %v4983_v15 = vmul.f32 %v4182_v48, %v414_v25 }
  0xf0   :  { %9471 = vst [vmem:[#allocation164_spill] sm:$0xff] %v4938_v20  ;;  %9472 = vst [vmem:[#allocation165_spill] sm:$0xff] %v4941_v50  ;;  %v127_v20 = vld [vmem:[%s8928_s2 + $0x148] sm:$0xff]  ;;  %v126_v50 = vld [vmem:[%s8928_s2 + $0x140] sm:$0xff] }
  0xf1   :  { %9473 = vst [vmem:[#allocation166_spill] sm:$0xff] %v4944_v42  ;;  %9474 = vst [vmem:[#allocation167_spill] sm:$0xff] %v4947_v12  ;;  %v4968_v12 = vmul.f32 %v4166_v41, %v414_v25  ;;  %v4977_v42 = vmul.f32 %v4178_v46, %v414_v25  ;;  %811 = vperm.xlu1 %3842, %v127_v20   ;;  %806 = vperm.xlu0 %3841, %v126_v50  }
  0xf2   :  { %9475 = vst [vmem:[#allocation168_spill] sm:$0xff] %v4950_v26  ;;  %9476 = vst [vmem:[#allocation169_spill] sm:$0xff] %v4953_v16  ;;  %v4971_v26 = vmul.f32 %v4174_v44, %v414_v25  ;;  %v4974_v16 = vmul.f32 %v4176_v45, %v414_v25  ;;  %v5004_v25 = vmul.f32 %v4180_v47, %v409_v43 }
  0xf3   :  { %9477 = vst [vmem:[#allocation170_spill] sm:$0xff] %v4962_v38  ;;  %9478 = vst [vmem:[#allocation171_spill] sm:$0xff] %v4965_v39  ;;  %v424_v38 = vpop.permute.xlu1 %423  ;;  %v419_v39 = vpop.permute.xlu0 %418  ;;  %v5013_v20 = vmul.f32 %v4182_v48, %v409_v43  ;;  %v5016_v50 = vmul.f32 %v4184_v49, %v409_v43 }
  0xf4   :  { %9479 = vst [vmem:[#allocation172_spill] sm:$0xff] %v4968_v12  ;;  %9480 = vst [vmem:[#allocation173_spill] sm:$0xff] %v4971_v26  ;;  %v4989_v12 = vmul.f32 %v4164_v40, %v409_v43  ;;  %v4992_v26 = vmul.f32 %v4166_v41, %v409_v43 }
  0xf5   :  { %9481 = vst [vmem:[#allocation174_spill] sm:$0xff] %v4974_v16  ;;  %9482 = vst [vmem:[#allocation175_spill] sm:$0xff] %v4977_v42  ;;  %v4995_v16 = vmul.f32 %v4174_v44, %v409_v43  ;;  %v5037_v42 = vmul.f32 %v4182_v48, %v424_v38 }
  0xf6   :  { %9483 = vst [vmem:[#allocation176_spill] sm:$0xff] %v4980_v17  ;;  %9484 = vst [vmem:[#allocation177_spill] sm:$0xff] %v4983_v15  ;;  %v4998_v17 = vmul.f32 %v4176_v45, %v409_v43  ;;  %v5001_v15 = vmul.f32 %v4178_v46, %v409_v43 }
  0xf7   :  { %9485 = vst [vmem:[#allocation178_spill] sm:$0xff] %v4986_v11  ;;  %9486 = vst [vmem:[#allocation179_spill] sm:$0xff] %v4989_v12  ;;  %v129_v12 = vld [vmem:[%s8928_s2 + $0x158] sm:$0xff]  ;;  %v5031_v11 = vmul.f32 %v4178_v46, %v424_v38  ;;  %v434_v43 = vpop.permute.xlu1 %433 }
  0xf8   :  { %9487 = vst [vmem:[#allocation180_spill] sm:$0xff] %v4992_v26  ;;  %9488 = vst [vmem:[#allocation181_spill] sm:$0xff] %v4995_v16  ;;  %v128_v26 = vld [vmem:[%s8928_s2 + $0x150] sm:$0xff]  ;;  %v5028_v16 = vmul.f32 %v4176_v45, %v424_v38  ;;  %821 = vperm.xlu1 %3842, %v129_v12   ;;  %v5064_v12 = vmul.f32 %v4180_v47, %v419_v39 }
  0xf9   :  { %9489 = vst [vmem:[#allocation182_spill] sm:$0xff] %v4998_v17  ;;  %9490 = vst [vmem:[#allocation183_spill] sm:$0xff] %v5001_v15  ;;  %v5019_v17 = vmul.f32 %v4164_v40, %v424_v38  ;;  %v5022_v15 = vmul.f32 %v4166_v41, %v424_v38  ;;  %816 = vperm.xlu0 %3841, %v128_v26   ;;  %v5067_v26 = vmul.f32 %v4182_v48, %v419_v39 }
  0xfa   :  { %9491 = vst [vmem:[#allocation184_spill] sm:$0xff] %v5004_v25  ;;  %9492 = vst [vmem:[#allocation185_spill] sm:$0xff] %v5013_v20  ;;  %v5025_v25 = vmul.f32 %v4174_v44, %v424_v38  ;;  %v5034_v20 = vmul.f32 %v4180_v47, %v424_v38 }
  0xfb   :  { %9493 = vst [vmem:[#allocation186_spill] sm:$0xff] %v5016_v50  ;;  %9494 = vst [vmem:[#allocation187_spill] sm:$0xff] %v5019_v17  ;;  %v429_v50 = vpop.permute.xlu0 %428  ;;  %v5040_v17 = vmul.f32 %v4184_v49, %v424_v38  ;;  %v131_v38 = vld [vmem:[%s8928_s2 + $0x168] sm:$0xff] }
  0xfc   :  { %9495 = vst [vmem:[#allocation188_spill] sm:$0xff] %v5022_v15  ;;  %9496 = vst [vmem:[#allocation189_spill] sm:$0xff] %v5025_v25  ;;  %v5043_v15 = vmul.f32 %v4164_v40, %v419_v39  ;;  %v5046_v25 = vmul.f32 %v4166_v41, %v419_v39  ;;  %831 = vperm.xlu1 %3842, %v131_v38   ;;  %v5115_v38 = vmul.f32 %v4178_v46, %v429_v50 }
  0xfd   :  { %9497 = vst [vmem:[#allocation190_spill] sm:$0xff] %v5028_v16  ;;  %9498 = vst [vmem:[#allocation191_spill] sm:$0xff] %v5031_v11  ;;  %v5049_v11 = vmul.f32 %v4174_v44, %v419_v39  ;;  %v5055_v16 = vmul.f32 %v4178_v46, %v419_v39 }
  0xfe   :  { %9499 = vst [vmem:[#allocation192_spill] sm:$0xff] %v5034_v20  ;;  %9500 = vst [vmem:[#allocation193_spill] sm:$0xff] %v5037_v42  ;;  %v5052_v20 = vmul.f32 %v4176_v45, %v419_v39  ;;  %v444_v42 = vpop.permute.xlu1 %443 }
  0xff   :  { %9501 = vst [vmem:[#allocation194_spill] sm:$0xff] %v5040_v17  ;;  %9502 = vst [vmem:[#allocation195_spill] sm:$0xff] %v5043_v15  ;;  %v130_v15 = vld [vmem:[%s8928_s2 + $0x160] sm:$0xff]  ;;  %v5082_v17 = vmul.f32 %v4176_v45, %v434_v43  ;;  %v5139_v21 = vmul.f32 %v4178_v46, %v444_v42 }
 0x100   :  { %9503 = vst [vmem:[#allocation196_spill] sm:$0xff] %v5046_v25  ;;  %9504 = vst [vmem:[#allocation197_spill] sm:$0xff] %v5049_v11  ;;  %v5070_v11 = vmul.f32 %v4184_v49, %v419_v39  ;;  %v5079_v25 = vmul.f32 %v4174_v44, %v434_v43  ;;  %v5088_v39 = vmul.f32 %v4180_v47, %v434_v43  ;;  %826 = vperm.xlu0 %3841, %v130_v15  }
 0x101   :  { %9505 = vst [vmem:[#allocation198_spill] sm:$0xff] %v5052_v20  ;;  %9506 = vst [vmem:[#allocation199_spill] sm:$0xff] %v5055_v16  ;;  %v5073_v20 = vmul.f32 %v4164_v40, %v434_v43  ;;  %v5076_v16 = vmul.f32 %v4166_v41, %v434_v43  ;;  %v5118_v15 = vmul.f32 %v4180_v47, %v429_v50 }
 0x102   :  { %9507 = vst [vmem:[#allocation200_spill] sm:$0xff] %v5064_v12  ;;  %9508 = vst [vmem:[#allocation201_spill] sm:$0xff] %v5067_v26  ;;  %v5085_v12 = vmul.f32 %v4178_v46, %v434_v43  ;;  %v439_v26 = vpop.permute.xlu0 %438 }
 0x103   :  { %9509 = vst [vmem:[#allocation202_spill] sm:$0xff] %v5070_v11  ;;  %9510 = vst [vmem:[#allocation203_spill] sm:$0xff] %v5073_v20  ;;  %v5091_v11 = vmul.f32 %v4182_v48, %v434_v43  ;;  %v5094_v20 = vmul.f32 %v4184_v49, %v434_v43  ;;  %v132_v43 = vld [vmem:[%s8928_s2 + $0x170] sm:$0xff] }
 0x104   :  { %9511 = vst [vmem:[#allocation204_spill] sm:$0xff] %v5076_v16  ;;  %9512 = vst [vmem:[#allocation205_spill] sm:$0xff] %v5079_v25  ;;  %v5097_v16 = vmul.f32 %v4164_v40, %v429_v50  ;;  %v5106_v25 = vmul.f32 %v4176_v45, %v429_v50  ;;  %836 = vperm.xlu0 %3841, %v132_v43   ;;  %v5169_v43 = vmul.f32 %v4178_v46, %v439_v26 }
 0x105   :  { %9513 = vst [vmem:[#allocation206_spill] sm:$0xff] %v5082_v17  ;;  %9514 = vst [vmem:[#allocation207_spill] sm:$0xff] %v5085_v12  ;;  %v5100_v17 = vmul.f32 %v4166_v41, %v429_v50  ;;  %v5103_v12 = vmul.f32 %v4174_v44, %v429_v50 }
 0x106   :  { %9515 = vst [vmem:[#allocation208_spill] sm:$0xff] %v5088_v39  ;;  %9516 = vst [vmem:[#allocation209_spill] sm:$0xff] %v5091_v11  ;;  %v133_v11 = vld [vmem:[%s8928_s2 + $0x178] sm:$0xff]  ;;  %v454_v39 = vpop.permute.xlu1 %453 }
 0x107   :  { %9517 = vst [vmem:[#allocation210_spill] sm:$0xff] %v5094_v20  ;;  %9518 = vst [vmem:[#allocation211_spill] sm:$0xff] %v5097_v16  ;;  %v5130_v16 = vmul.f32 %v4166_v41, %v444_v42  ;;  %v5133_v20 = vmul.f32 %v4174_v44, %v444_v42  ;;  %841 = vperm.xlu1 %3842, %v133_v11   ;;  %v5166_v11 = vmul.f32 %v4176_v45, %v439_v26 }
 0x108   :  { %9519 = vst [vmem:[#allocation212_spill] sm:$0xff] %v5100_v17  ;;  %9520 = vst [vmem:[#allocation213_spill] sm:$0xff] %v5103_v12  ;;  %v5121_v17 = vmul.f32 %v4182_v48, %v429_v50  ;;  %v5124_v12 = vmul.f32 %v4184_v49, %v429_v50  ;;  %v5142_v50 = vmul.f32 %v4180_v47, %v444_v42 }
 0x109   :  { %9521 = vst [vmem:[#allocation214_spill] sm:$0xff] %v5106_v25  ;;  %9522 = vst [vmem:[#allocation215_spill] sm:$0xff] %v5115_v38  ;;  %v5127_v25 = vmul.f32 %v4164_v40, %v444_v42  ;;  %v5136_v38 = vmul.f32 %v4176_v45, %v444_v42 }
 0x10a   :  { %9523 = vst [vmem:[#allocation216_spill] sm:$0xff] %v5118_v15  ;;  %9524 = vst [vmem:[#allocation217_spill] sm:$0xff] %v5121_v17  ;;  %v449_v15 = vpop.permute.xlu0 %448  ;;  %v5190_v17 = vmul.f32 %v4176_v45, %v454_v39 }
 0x10b   :  { %9525 = vst [vmem:[#allocation218_spill] sm:$0xff] %v5124_v12  ;;  %9526 = vst [vmem:[#allocation219_spill] sm:$0xff] %v5127_v25  ;;  %v5145_v12 = vmul.f32 %v4182_v48, %v444_v42  ;;  %v5148_v25 = vmul.f32 %v4184_v49, %v444_v42  ;;  %v134_v42 = vld [vmem:[%s8928_s2 + $0x180] sm:$0xff] }
 0x10c   :  { %9527 = vst [vmem:[#allocation220_spill] sm:$0xff] %v5130_v16  ;;  %9528 = vst [vmem:[#allocation221_spill] sm:$0xff] %v5133_v20  ;;  %v5151_v20 = vmul.f32 %v4164_v40, %v439_v26  ;;  %v5157_v16 = vmul.f32 %v4174_v44, %v439_v26  ;;  %846 = vperm.xlu0 %3841, %v134_v42   ;;  %v5223_v42 = vmul.f32 %v4178_v46, %v449_v15 }
 0x10d   :  { %9529 = vst [vmem:[#allocation222_spill] sm:$0xff] %v5136_v38  ;;  %9530 = vst [vmem:[#allocation223_spill] sm:$0xff] %v5139_v21  ;;  %v5154_v38 = vmul.f32 %v4166_v41, %v439_v26  ;;  %v464_v21 = vpop.permute.xlu1 %463 }
 0x10e   :  { %9531 = vst [vmem:[#allocation224_spill] sm:$0xff] %v5142_v50  ;;  %9532 = vst [vmem:[#allocation225_spill] sm:$0xff] %v5145_v12  ;;  %v135_v50 = vld [vmem:[%s8928_s2 + $0x188] sm:$0xff]  ;;  %v5184_v12 = vmul.f32 %v4166_v41, %v454_v39 }
 0x10f   :  { %9533 = vst [vmem:[#allocation226_spill] sm:$0xff] %v5148_v25  ;;  %9534 = vst [vmem:[#allocation227_spill] sm:$0xff] %v5151_v20  ;;  %v5172_v20 = vmul.f32 %v4180_v47, %v439_v26  ;;  %v5181_v25 = vmul.f32 %v4164_v40, %v454_v39  ;;  %851 = vperm.xlu1 %3842, %v135_v50   ;;  %v5217_v50 = vmul.f32 %v4174_v44, %v449_v15 }
 0x110   :  { %9535 = vst [vmem:[#allocation228_spill] sm:$0xff] %v5154_v38  ;;  %9536 = vst [vmem:[#allocation229_spill] sm:$0xff] %v5157_v16  ;;  %v5175_v38 = vmul.f32 %v4182_v48, %v439_v26  ;;  %v5178_v16 = vmul.f32 %v4184_v49, %v439_v26  ;;  %v5196_v26 = vmul.f32 %v4180_v47, %v454_v39 }
 0x111   :  { %9537 = vst [vmem:[#allocation230_spill] sm:$0xff] %v5166_v11  ;;  %9538 = vst [vmem:[#allocation231_spill] sm:$0xff] %v5169_v43  ;;  %v5187_v11 = vmul.f32 %v4174_v44, %v454_v39  ;;  %v459_v43 = vpop.permute.xlu0 %458 }
 0x112   :  { %9539 = vst [vmem:[#allocation232_spill] sm:$0xff] %v5172_v20  ;;  %9540 = vst [vmem:[#allocation233_spill] sm:$0xff] %v5175_v38  ;;  %v5193_v20 = vmul.f32 %v4178_v46, %v454_v39  ;;  %v5241_v38 = vmul.f32 %v4174_v44, %v464_v21 }
 0x113   :  { %9541 = vst [vmem:[#allocation234_spill] sm:$0xff] %v5178_v16  ;;  %9542 = vst [vmem:[#allocation235_spill] sm:$0xff] %v5181_v25  ;;  %v5199_v16 = vmul.f32 %v4182_v48, %v454_v39  ;;  %v5208_v25 = vmul.f32 %v4166_v41, %v449_v15 }
 0x114   :  { %9543 = vst [vmem:[#allocation236_spill] sm:$0xff] %v5184_v12  ;;  %9544 = vst [vmem:[#allocation237_spill] sm:$0xff] %v5187_v11  ;;  %v5202_v12 = vmul.f32 %v4184_v49, %v454_v39  ;;  %v5205_v11 = vmul.f32 %v4164_v40, %v449_v15  ;;  %v5220_v39 = vmul.f32 %v4176_v45, %v449_v15 }
 0x115   :  { %9545 = vst [vmem:[#allocation238_spill] sm:$0xff] %v5190_v17  ;;  %9546 = vst [vmem:[#allocation239_spill] sm:$0xff] %v5193_v20  ;;  %v137_v20 = vld [vmem:[%s8928_s2 + $0x198] sm:$0xff]  ;;  %v474_v17 = vpop.permute.xlu1 %473 }
 0x116   :  { %9547 = vst [vmem:[#allocation240_spill] sm:$0xff] %v5196_v26  ;;  %9548 = vst [vmem:[#allocation241_spill] sm:$0xff] %v5199_v16  ;;  %v136_v26 = vld [vmem:[%s8928_s2 + $0x190] sm:$0xff]  ;;  %v5235_v16 = vmul.f32 %v4164_v40, %v464_v21  ;;  %861 = vperm.xlu1 %3842, %v137_v20   ;;  %v5268_v20 = vmul.f32 %v4166_v41, %v459_v43 }
 0x117   :  { %9549 = vst [vmem:[#allocation242_spill] sm:$0xff] %v5202_v12  ;;  %9550 = vst [vmem:[#allocation243_spill] sm:$0xff] %v5205_v11  ;;  %v5226_v11 = vmul.f32 %v4180_v47, %v449_v15  ;;  %v5232_v12 = vmul.f32 %v4184_v49, %v449_v15  ;;  %856 = vperm.xlu0 %3841, %v136_v26   ;;  %v5271_v26 = vmul.f32 %v4174_v44, %v459_v43 }
 0x118   :  { %9551 = vst [vmem:[#allocation244_spill] sm:$0xff] %v5208_v25  ;;  %9552 = vst [vmem:[#allocation245_spill] sm:$0xff] %v5217_v50  ;;  %v5229_v25 = vmul.f32 %v4182_v48, %v449_v15  ;;  %v5238_v50 = vmul.f32 %v4166_v41, %v464_v21  ;;  %v5250_v15 = vmul.f32 %v4180_v47, %v464_v21 }
 0x119   :  { %9553 = vst [vmem:[#allocation246_spill] sm:$0xff] %v5220_v39  ;;  %9554 = vst [vmem:[#allocation247_spill] sm:$0xff] %v5223_v42  ;;  %v469_v39 = vpop.permute.xlu0 %468  ;;  %v5244_v42 = vmul.f32 %v4176_v45, %v464_v21 }
 0x11a   :  { %9555 = vst [vmem:[#allocation248_spill] sm:$0xff] %v5226_v11  ;;  %9556 = vst [vmem:[#allocation249_spill] sm:$0xff] %v5229_v25  ;;  %v5247_v11 = vmul.f32 %v4178_v46, %v464_v21  ;;  %v5292_v25 = vmul.f32 %v4166_v41, %v474_v17 }
 0x11b   :  { %9557 = vst [vmem:[#allocation250_spill] sm:$0xff] %v5232_v12  ;;  %9558 = vst [vmem:[#allocation251_spill] sm:$0xff] %v5235_v16  ;;  %v5253_v16 = vmul.f32 %v4182_v48, %v464_v21  ;;  %v5259_v12 = vmul.f32 %v4164_v40, %v459_v43 }
 0x11c   :  { %9559 = vst [vmem:[#allocation252_spill] sm:$0xff] %v5238_v50  ;;  %9560 = vst [vmem:[#allocation253_spill] sm:$0xff] %v5241_v38  ;;  %v5256_v50 = vmul.f32 %v4184_v49, %v464_v21  ;;  %v5274_v21 = vmul.f32 %v4176_v45, %v459_v43  ;;  %v484_v38 = vpop.permute.xlu1 %483 }
 0x11d   :  { %9561 = vst [vmem:[#allocation254_spill] sm:$0xff] %v5244_v42  ;;  %9562 = vst [vmem:[#allocation255_spill] sm:$0xff] %v5247_v11  ;;  %v139_v42 = vld [vmem:[%s8928_s2 + $0x1a8] sm:$0xff]  ;;  %v138_v11 = vld [vmem:[%s8928_s2 + $0x1a0] sm:$0xff] }
 0x11e   :  { %9563 = vst [vmem:[#allocation256_spill] sm:$0xff] %v5250_v15  ;;  %9564 = vst [vmem:[#allocation257_spill] sm:$0xff] %v5253_v16  ;;  %v5283_v16 = vmul.f32 %v4182_v48, %v459_v43  ;;  %v5286_v15 = vmul.f32 %v4184_v49, %v459_v43  ;;  %871 = vperm.xlu1 %3842, %v139_v42   ;;  %866 = vperm.xlu0 %3841, %v138_v11  }
 0x11f   :  { %9565 = vst [vmem:[#allocation258_spill] sm:$0xff] %v5256_v50  ;;  %9566 = vst [vmem:[#allocation259_spill] sm:$0xff] %v5259_v12  ;;  %v5277_v50 = vmul.f32 %v4178_v46, %v459_v43  ;;  %v5280_v12 = vmul.f32 %v4180_v47, %v459_v43  ;;  %v5304_v43 = vmul.f32 %v4180_v47, %v474_v17 }
 0x120   :  { %9567 = vst [vmem:[#allocation260_spill] sm:$0xff] %v5268_v20  ;;  %9568 = vst [vmem:[#allocation261_spill] sm:$0xff] %v5271_v26  ;;  %v5289_v20 = vmul.f32 %v4164_v40, %v474_v17  ;;  %v479_v26 = vpop.permute.xlu0 %478  ;;  %v5319_v42 = vmul.f32 %v4164_v40, %v469_v39  ;;  %v5322_v11 = vmul.f32 %v4166_v41, %v469_v39 }
 0x121   :  { %9569 = vst [vmem:[#allocation262_spill] sm:$0xff] %v5274_v21  ;;  %9570 = vst [vmem:[#allocation263_spill] sm:$0xff] %v5277_v50  ;;  %v5295_v21 = vmul.f32 %v4174_v44, %v474_v17  ;;  %v5298_v50 = vmul.f32 %v4176_v45, %v474_v17 }
 0x122   :  { %9571 = vst [vmem:[#allocation264_spill] sm:$0xff] %v5280_v12  ;;  %9572 = vst [vmem:[#allocation265_spill] sm:$0xff] %v5283_v16  ;;  %v5301_v12 = vmul.f32 %v4178_v46, %v474_v17  ;;  %v5343_v16 = vmul.f32 %v4164_v40, %v484_v38 }
 0x123   :  { %9573 = vst [vmem:[#allocation266_spill] sm:$0xff] %v5286_v15  ;;  %9574 = vst [vmem:[#allocation267_spill] sm:$0xff] %v5289_v20  ;;  %v5307_v20 = vmul.f32 %v4182_v48, %v474_v17  ;;  %v5310_v15 = vmul.f32 %v4184_v49, %v474_v17  ;;  %v5328_v17 = vmul.f32 %v4176_v45, %v469_v39 }
 0x124   :  { %9575 = vst [vmem:[#allocation268_spill] sm:$0xff] %v5292_v25  ;;  %9576 = vst [vmem:[#allocation269_spill] sm:$0xff] %v5295_v21  ;;  %v141_v21 = vld [vmem:[%s8928_s2 + $0x1b8] sm:$0xff]  ;;  %v494_v25 = vpop.permute.xlu1 %493 }
 0x125   :  { %9577 = vst [vmem:[#allocation270_spill] sm:$0xff] %v5298_v50  ;;  %9578 = vst [vmem:[#allocation271_spill] sm:$0xff] %v5301_v12  ;;  %v140_v50 = vld [vmem:[%s8928_s2 + $0x1b0] sm:$0xff]  ;;  %v5337_v12 = vmul.f32 %v4182_v48, %v469_v39  ;;  %881 = vperm.xlu1 %3842, %v141_v21   ;;  %v5370_v21 = vmul.f32 %v4184_v49, %v484_v38 }
 0x126   :  { %9579 = vst [vmem:[#allocation272_spill] sm:$0xff] %v5304_v43  ;;  %9580 = vst [vmem:[#allocation273_spill] sm:$0xff] %v5307_v20  ;;  %v5325_v43 = vmul.f32 %v4174_v44, %v469_v39  ;;  %v5334_v20 = vmul.f32 %v4180_v47, %v469_v39  ;;  %876 = vperm.xlu0 %3841, %v140_v50   ;;  %v5373_v50 = vmul.f32 %v4164_v40, %v479_v26 }
 0x127   :  { %9581 = vst [vmem:[#allocation274_spill] sm:$0xff] %v5310_v15  ;;  %9582 = vst [vmem:[#allocation275_spill] sm:$0xff] %v5319_v42  ;;  %v5331_v15 = vmul.f32 %v4178_v46, %v469_v39  ;;  %v5340_v42 = vmul.f32 %v4184_v49, %v469_v39  ;;  %v5358_v39 = vmul.f32 %v4180_v47, %v484_v38 }
 0x128   :  { %9583 = vst [vmem:[#allocation276_spill] sm:$0xff] %v5322_v11  ;;  %9584 = vst [vmem:[#allocation277_spill] sm:$0xff] %v5325_v43  ;;  %v489_v11 = vpop.permute.xlu0 %488  ;;  %v5346_v43 = vmul.f32 %v4166_v41, %v484_v38 }
 0x129   :  { %9585 = vst [vmem:[#allocation278_spill] sm:$0xff] %v5328_v17  ;;  %9586 = vst [vmem:[#allocation279_spill] sm:$0xff] %v5331_v15  ;;  %v5349_v17 = vmul.f32 %v4174_v44, %v484_v38  ;;  %v5352_v15 = vmul.f32 %v4176_v45, %v484_v38 }
 0x12a   :  { %9587 = vst [vmem:[#allocation280_spill] sm:$0xff] %v5334_v20  ;;  %9588 = vst [vmem:[#allocation281_spill] sm:$0xff] %v5337_v12  ;;  %v5355_v12 = vmul.f32 %v4178_v46, %v484_v38  ;;  %v5394_v20 = vmul.f32 %v4184_v49, %v479_v26 }
 0x12b   :  { %9589 = vst [vmem:[#allocation282_spill] sm:$0xff] %v5340_v42  ;;  %9590 = vst [vmem:[#allocation283_spill] sm:$0xff] %v5343_v16  ;;  %v5361_v42 = vmul.f32 %v4182_v48, %v484_v38  ;;  %v5388_v16 = vmul.f32 %v4180_v47, %v479_v26  ;;  %v5391_v38 = vmul.f32 %v4182_v48, %v479_v26 }
 0x12c   :  { %9591 = vst [vmem:[#allocation284_spill] sm:$0xff] %v5346_v43  ;;  %9592 = vst [vmem:[#allocation285_spill] sm:$0xff] %v5349_v17  ;;  %v143_v43 = vld [vmem:[%s8928_s2 + $0x1c8] sm:$0xff]  ;;  %v142_v17 = vld [vmem:[%s8928_s2 + $0x1c0] sm:$0xff] }
 0x12d   :  { %9593 = vst [vmem:[#allocation286_spill] sm:$0xff] %v5352_v15  ;;  %9594 = vst [vmem:[#allocation287_spill] sm:$0xff] %v5355_v12  ;;  %v5376_v12 = vmul.f32 %v4166_v41, %v479_v26  ;;  %v5385_v15 = vmul.f32 %v4178_v46, %v479_v26  ;;  %891 = vperm.xlu1 %3842, %v143_v43   ;;  %886 = vperm.xlu0 %3841, %v142_v17  }
 0x12e   :  { %9595 = vst [vmem:[#allocation288_spill] sm:$0xff] %v5358_v39  ;;  %9596 = vst [vmem:[#allocation289_spill] sm:$0xff] %v5361_v42  ;;  %v5379_v39 = vmul.f32 %v4174_v44, %v479_v26  ;;  %v5382_v42 = vmul.f32 %v4176_v45, %v479_v26  ;;  %v5412_v26 = vmul.f32 %v4180_v47, %v494_v25 }
 0x12f   :  { %9597 = vst [vmem:[#allocation290_spill] sm:$0xff] %v5370_v21  ;;  %9598 = vst [vmem:[#allocation291_spill] sm:$0xff] %v5373_v50  ;;  %v504_v21 = vpop.permute.xlu1 %503  ;;  %v499_v50 = vpop.permute.xlu0 %498  ;;  %v5421_v43 = vmul.f32 %v4182_v48, %v494_v25  ;;  %v5424_v17 = vmul.f32 %v4184_v49, %v494_v25 }
 0x130   :  { %9599 = vst [vmem:[#allocation292_spill] sm:$0xff] %v5376_v12  ;;  %9600 = vst [vmem:[#allocation293_spill] sm:$0xff] %v5379_v39  ;;  %v5397_v12 = vmul.f32 %v4164_v40, %v494_v25  ;;  %v5400_v39 = vmul.f32 %v4166_v41, %v494_v25 }
 0x131   :  { %9601 = vst [vmem:[#allocation294_spill] sm:$0xff] %v5382_v42  ;;  %9602 = vst [vmem:[#allocation295_spill] sm:$0xff] %v5385_v15  ;;  %v5403_v42 = vmul.f32 %v4174_v44, %v494_v25  ;;  %v5445_v15 = vmul.f32 %v4182_v48, %v489_v11 }
 0x132   :  { %9603 = vst [vmem:[#allocation296_spill] sm:$0xff] %v5388_v16  ;;  %9604 = vst [vmem:[#allocation297_spill] sm:$0xff] %v5391_v38  ;;  %v5406_v16 = vmul.f32 %v4176_v45, %v494_v25  ;;  %v5409_v38 = vmul.f32 %v4178_v46, %v494_v25 }
 0x133   :  { %9605 = vst [vmem:[#allocation298_spill] sm:$0xff] %v5394_v20  ;;  %9606 = vst [vmem:[#allocation299_spill] sm:$0xff] %v5397_v12  ;;  %v145_v12 = vld [vmem:[%s8928_s2 + $0x1d8] sm:$0xff]  ;;  %v5439_v20 = vmul.f32 %v4178_v46, %v489_v11  ;;  %v514_v25 = vpop.permute.xlu1 %513 }
 0x134   :  { %9607 = vst [vmem:[#allocation300_spill] sm:$0xff] %v5400_v39  ;;  %9608 = vst [vmem:[#allocation301_spill] sm:$0xff] %v5403_v42  ;;  %v144_v39 = vld [vmem:[%s8928_s2 + $0x1d0] sm:$0xff]  ;;  %v5436_v42 = vmul.f32 %v4176_v45, %v489_v11  ;;  %901 = vperm.xlu1 %3842, %v145_v12   ;;  %v5472_v12 = vmul.f32 %v4180_v47, %v504_v21 }
 0x135   :  { %9609 = vst [vmem:[#allocation302_spill] sm:$0xff] %v5406_v16  ;;  %9610 = vst [vmem:[#allocation303_spill] sm:$0xff] %v5409_v38  ;;  %v5427_v16 = vmul.f32 %v4164_v40, %v489_v11  ;;  %v5430_v38 = vmul.f32 %v4166_v41, %v489_v11  ;;  %896 = vperm.xlu0 %3841, %v144_v39   ;;  %v5475_v39 = vmul.f32 %v4182_v48, %v504_v21 }
 0x136   :  { %9611 = vst [vmem:[#allocation304_spill] sm:$0xff] %v5412_v26  ;;  %9612 = vst [vmem:[#allocation305_spill] sm:$0xff] %v5421_v43  ;;  %v5433_v26 = vmul.f32 %v4174_v44, %v489_v11  ;;  %v5442_v43 = vmul.f32 %v4180_v47, %v489_v11 }
 0x137   :  { %9613 = vst [vmem:[#allocation306_spill] sm:$0xff] %v5424_v17  ;;  %9614 = vst [vmem:[#allocation307_spill] sm:$0xff] %v5427_v16  ;;  %v509_v17 = vpop.permute.xlu0 %508  ;;  %v5448_v16 = vmul.f32 %v4184_v49, %v489_v11  ;;  %v147_v11 = vld [vmem:[%s8928_s2 + $0x1e8] sm:$0xff] }
 0x138   :  { %9615 = vst [vmem:[#allocation308_spill] sm:$0xff] %v5430_v38  ;;  %9616 = vst [vmem:[#allocation309_spill] sm:$0xff] %v5433_v26  ;;  %v5451_v38 = vmul.f32 %v4164_v40, %v504_v21  ;;  %v5454_v26 = vmul.f32 %v4166_v41, %v504_v21  ;;  %911 = vperm.xlu1 %3842, %v147_v11   ;;  %v5523_v11 = vmul.f32 %v4178_v46, %v514_v25 }
 0x139   :  { %9617 = vst [vmem:[#allocation310_spill] sm:$0xff] %v5436_v42  ;;  %9618 = vst [vmem:[#allocation311_spill] sm:$0xff] %v5439_v20  ;;  %v5457_v20 = vmul.f32 %v4174_v44, %v504_v21  ;;  %v5463_v42 = vmul.f32 %v4178_v46, %v504_v21 }
 0x13a   :  { %9619 = vst [vmem:[#allocation312_spill] sm:$0xff] %v5442_v43  ;;  %9620 = vst [vmem:[#allocation313_spill] sm:$0xff] %v5445_v15  ;;  %v5460_v43 = vmul.f32 %v4176_v45, %v504_v21  ;;  %v524_v15 = vpop.permute.xlu1 %523 }
 0x13b   :  { %9621 = vst [vmem:[#allocation314_spill] sm:$0xff] %v5448_v16  ;;  %9622 = vst [vmem:[#allocation315_spill] sm:$0xff] %v5451_v38  ;;  %v146_v38 = vld [vmem:[%s8928_s2 + $0x1e0] sm:$0xff]  ;;  %v5490_v16 = vmul.f32 %v4176_v45, %v499_v50 }
 0x13c   :  { %9623 = vst [vmem:[#allocation316_spill] sm:$0xff] %v5454_v26  ;;  %9624 = vst [vmem:[#allocation317_spill] sm:$0xff] %v5457_v20  ;;  %v5478_v20 = vmul.f32 %v4184_v49, %v504_v21  ;;  %v5487_v26 = vmul.f32 %v4174_v44, %v499_v50  ;;  %v5496_v21 = vmul.f32 %v4180_v47, %v499_v50  ;;  %906 = vperm.xlu0 %3841, %v146_v38  }
 0x13d   :  { %9625 = vst [vmem:[#allocation318_spill] sm:$0xff] %v5460_v43  ;;  %9626 = vst [vmem:[#allocation319_spill] sm:$0xff] %v5463_v42  ;;  %v5481_v43 = vmul.f32 %v4164_v40, %v499_v50  ;;  %v5484_v42 = vmul.f32 %v4166_v41, %v499_v50  ;;  %v5526_v38 = vmul.f32 %v4180_v47, %v514_v25 }
 0x13e   :  { %9627 = vst [vmem:[#allocation320_spill] sm:$0xff] %v5472_v12  ;;  %9628 = vst [vmem:[#allocation321_spill] sm:$0xff] %v5475_v39  ;;  %v5493_v12 = vmul.f32 %v4178_v46, %v499_v50  ;;  %v519_v39 = vpop.permute.xlu0 %518 }
 0x13f   :  { %9629 = vst [vmem:[#allocation322_spill] sm:$0xff] %v5478_v20  ;;  %9630 = vst [vmem:[#allocation323_spill] sm:$0xff] %v5481_v43  ;;  %v5499_v20 = vmul.f32 %v4182_v48, %v499_v50  ;;  %v5502_v43 = vmul.f32 %v4184_v49, %v499_v50  ;;  %v148_v50 = vld [vmem:[%s8928_s2 + $0x1f0] sm:$0xff] }
 0x140   :  { %9631 = vst [vmem:[#allocation324_spill] sm:$0xff] %v5484_v42  ;;  %9632 = vst [vmem:[#allocation325_spill] sm:$0xff] %v5487_v26  ;;  %v5505_v42 = vmul.f32 %v4164_v40, %v514_v25  ;;  %v5514_v26 = vmul.f32 %v4176_v45, %v514_v25  ;;  %916 = vperm.xlu0 %3841, %v148_v50   ;;  %v5581_v50 = vmul.f32 %v4178_v46, %v524_v15 }
 0x141   :  { %9633 = vst [vmem:[#allocation326_spill] sm:$0xff] %v5490_v16  ;;  %9634 = vst [vmem:[#allocation327_spill] sm:$0xff] %v5493_v12  ;;  %v5508_v16 = vmul.f32 %v4166_v41, %v514_v25  ;;  %v5511_v12 = vmul.f32 %v4174_v44, %v514_v25 }
 0x142   :  { %9635 = vst [vmem:[#allocation328_spill] sm:$0xff] %v5496_v21  ;;  %9636 = vst [vmem:[#allocation329_spill] sm:$0xff] %v5499_v20  ;;  %v149_v20 = vld [vmem:[%s8928_s2 + $0x1f8] sm:$0xff]  ;;  %v5546_v21 = vpop.permute.xlu1 %533 }
 0x143   :  { %9637 = vst [vmem:[#allocation330_spill] sm:$0xff] %v5502_v43  ;;  %9638 = vst [vmem:[#allocation331_spill] sm:$0xff] %v5505_v42  ;;  %v5538_v42 = vmul.f32 %v4166_v41, %v509_v17  ;;  %v5541_v43 = vmul.f32 %v4174_v44, %v509_v17  ;;  %921 = vperm.xlu1 %3842, %v149_v20   ;;  %v5578_v20 = vmul.f32 %v4176_v45, %v524_v15 }
 0x144   :  { %9639 = vst [vmem:[#allocation332_spill] sm:$0xff] %v5508_v16  ;;  %9640 = vst [vmem:[#allocation333_spill] sm:$0xff] %v5511_v12  ;;  %v5529_v16 = vmul.f32 %v4182_v48, %v514_v25  ;;  %v5532_v12 = vmul.f32 %v4184_v49, %v514_v25  ;;  %v5554_v25 = vmul.f32 %v4180_v47, %v509_v17 }
 0x145   :  { %9641 = vst [vmem:[#allocation334_spill] sm:$0xff] %v5514_v26  ;;  %9642 = vst [vmem:[#allocation335_spill] sm:$0xff] %v5523_v11  ;;  %v5535_v26 = vmul.f32 %v4164_v40, %v509_v17  ;;  %v5544_v11 = vmul.f32 %v4176_v45, %v509_v17 }
 0x146   :  { %9643 = vst [vmem:[#allocation336_spill] sm:$0xff] %v5526_v38  ;;  %9644 = vst [vmem:[#allocation337_spill] sm:$0xff] %v5529_v16  ;;  %v5548_v38 = vpop.permute.xlu0 %528  ;;  %v5551_v16 = vmul.f32 %v4178_v46, %v509_v17 }
 0x147   :  { %9645 = vst [vmem:[#allocation338_spill] sm:$0xff] %v5535_v26  ;;  %9646 = vst [vmem:[#allocation339_spill] sm:$0xff] %v5538_v42  ;;  %v5557_v26 = vmul.f32 %v4182_v48, %v509_v17  ;;  %v5560_v42 = vmul.f32 %v4184_v49, %v509_v17  ;;  %v150_v17 = vld [vmem:[%s8929_s3] sm:$0xff] }
 0x148   :  { %9647 = vst [vmem:[#allocation340_spill] sm:$0xff] %v5541_v43  ;;  %9648 = vst [vmem:[#allocation341_spill] sm:$0xff] %v5544_v11  ;;  %v5563_v11 = vmul.f32 %v4164_v40, %v524_v15  ;;  %v5602_v43 = vmul.f32 %v4176_v45, %v519_v39  ;;  %1054 = vperm.xlu0 %3841, %v150_v17   ;;  %v157_v17 = vld [vmem:[%s8929_s3 + $0x38] sm:$0xff] }
 0x149   :  { %9649 = vst [vmem:[#allocation342_spill] sm:$0xff] %v5546_v21  ;;  %9650 = vst [vmem:[#allocation343_spill] sm:$0xff] %v5548_v38  ;;  %v5566_v21 = vmul.f32 %v4166_v41, %v524_v15  ;;  %v5569_v38 = vmul.f32 %v4174_v44, %v524_v15 }
 0x14a   :  { %9651 = vst [vmem:[#allocation344_spill] sm:$0xff] %v5551_v16  ;;  %9652 = vst [vmem:[#allocation345_spill] sm:$0xff] %v5554_v25  ;;  %v151_v25 = vld [vmem:[%s8929_s3 + $0x8] sm:$0xff]  ;;  %v612_v16 = vpop.permute.xlu1 %611 }
 0x14b   :  { %9653 = vst [vmem:[#allocation346_spill] sm:$0xff] %v5557_v26  ;;  %9654 = vst [vmem:[#allocation347_spill] sm:$0xff] %v5560_v42  ;;  %v5593_v42 = vmul.f32 %v4164_v40, %v519_v39  ;;  %v5596_v26 = vmul.f32 %v4166_v41, %v519_v39  ;;  %v5611_v40 = vmul.f32 %v4182_v48, %v519_v39  ;;  %1059 = vperm.xlu1 %3842, %v151_v25  }
 0x14c   :  { %9655 = vst [vmem:[#allocation348_spill] sm:$0xff] %v5563_v11  ;;  %9656 = vst [vmem:[#allocation349_spill] sm:$0xff] %v5566_v21  ;;  %v5584_v11 = vmul.f32 %v4180_v47, %v524_v15  ;;  %v5587_v21 = vmul.f32 %v4182_v48, %v524_v15  ;;  %v5614_v41 = vmul.f32 %v4184_v49, %v519_v39  ;;  %v152_v48 = vld [vmem:[%s8929_s3 + $0x10] sm:$0xff] }
 0x14d   :  { %9657 = vst [vmem:[#allocation350_spill] sm:$0xff] %v5569_v38  ;;  %9658 = vst [vmem:[#allocation351_spill] sm:$0xff] %v5578_v20  ;;  %v5590_v38 = vmul.f32 %v4184_v49, %v524_v15  ;;  %v5599_v20 = vmul.f32 %v4174_v44, %v519_v39  ;;  %v5608_v15 = vmul.f32 %v4180_v47, %v519_v39  ;;  %1064 = vperm.xlu0 %3841, %v152_v48  }
 0x14e   :  { %9659 = vst [vmem:[#allocation352_spill] sm:$0xff] %v5581_v50  ;;  %9660 = vst [vmem:[#allocation353_spill] sm:$0xff] %v5584_v11  ;;  %v607_v50 = vpop.permute.xlu0 %606  ;;  %v5605_v11 = vmul.f32 %v4178_v46, %v519_v39  ;;  %v5617_v44 = vadd.f32 %v612_v16, %v4258_v9  ;;  %v5620_v45 = vadd.f32 %v4262_v10, %v612_v16  ;;  %v153_v46 = vld [vmem:[%s8929_s3 + $0x18] sm:$0xff] }
 0x14f   :  { %9662 = vst [vmem:[#allocation355_spill] sm:$0xff] %v5608_v15  ;;  %9663 = vst [vmem:[#allocation356_spill] sm:$0xff] %v5611_v40  ;;  %v5629_v25 = vadd.f32 %v4276_v18, %v612_v16  ;;  %v5632_v39 = vadd.f32 %v4280_v19, %v612_v16  ;;  %v5635_v9 = vadd.f32 %v4284_v22, %v612_v16  ;;  %v622_v18 = vpop.permute.xlu1 %621  ;;  %1069 = vperm.xlu1 %3842, %v153_v46   ;;  %v155_v22 = vld [vmem:[%s8929_s3 + $0x28] sm:$0xff] }
 0x150   :  { %9661 = vst [vmem:[#allocation354_spill] sm:$0xff] %v5605_v11  ;;  %9664 = vst [vmem:[#allocation357_spill] sm:$0xff] %v5614_v41  ;;  %v5638_v10 = vadd.f32 %v4288_v23, %v612_v16  ;;  %v5643_v41 = vadd.f32 %v4292_v24, %v612_v16  ;;  %v5646_v40 = vadd.f32 %v4296_v27, %v612_v16  ;;  %v154_v11 = vld [vmem:[%s8929_s3 + $0x20] sm:$0xff]  ;;  %v156_v24 = vld [vmem:[%s8929_s3 + $0x30] sm:$0xff] }
 0x151   :  { %v5657_v27 = vadd.f32 %v607_v50, %v4192_v52  ;;  %v5660_v16 = vadd.f32 %v4196_v53, %v607_v50  ;;  %v5669_v46 = vadd.f32 %v4206_v56, %v607_v50  ;;  %v5672_v48 = vadd.f32 %v4210_v57, %v607_v50  ;;  %1074 = vperm.xlu0 %3841, %v154_v11  }
 0x152   :  { %v5648_v15 = vpop.permute.xlu0 %616  ;;  %v5675_v52 = vadd.f32 %v4214_v58, %v607_v50  ;;  %v5678_v53 = vadd.f32 %v4218_v59, %v607_v50  ;;  %v5683_v23 = vadd.f32 %v4222_v60, %v607_v50  ;;  %v5686_v19 = vadd.f32 %v4226_v61, %v607_v50 }
 0x153   :  { %v5688_v56 = vpop.permute.xlu1 %631  ;;  %1079 = vperm.xlu1 %3842, %v155_v22   ;;  %v5699_v61 = vadd.f32 %v622_v18, %v4300_v28  ;;  %v5702_v50 = vadd.f32 %v4304_v29, %v622_v18  ;;  %v5711_v11 = vadd.f32 %v4312_v32, %v622_v18  ;;  %v5714_v22 = vadd.f32 %v4316_v8, %v622_v18 }
 0x154   :  { %9665 = vst [vmem:[#allocation358_spill] sm:$0xff] %v5686_v19  ;;  %v5717_v28 = vadd.f32 %v4320_v33, %v622_v18  ;;  %v5720_v29 = vadd.f32 %v4324_v34, %v622_v18  ;;  %v5725_v59 = vadd.f32 %v4328_v35, %v622_v18  ;;  %v5728_v58 = vadd.f32 %v4332_v36, %v622_v18  ;;  %v159_v34 = vld [vmem:[%s8929_s3 + $0x48] sm:$0xff]  ;;  %v161_v35 = vld [vmem:[%s8929_s3 + $0x58] sm:$0xff] }
 0x155   :  { %1084 = vperm.xlu0 %3841, %v156_v24   ;;  %v5742_v36 = vadd.f32 %v5648_v15, %v4230_v62  ;;  %v5746_v18 = vadd.f32 %v4234_v63, %v5648_v15  ;;  %v5756_v24 = vadd.f32 %v4242_v2, %v5648_v15  ;;  %v5760_v62 = vadd.f32 %v4246_v4, %v5648_v15  ;;  %v9687_v33 = vld [vmem:[#allocation28_spill] sm:$0xff] }
 0x156   :  { %v5690_v57 = vpop.permute.xlu0 %626  ;;  %v5764_v63 = vadd.f32 %v4250_v5, %v5648_v15  ;;  %v5768_v60 = vadd.f32 %v4254_v6, %v5648_v15  ;;  %v5774_v2 = vadd.f32 %v4266_v13, %v5648_v15  ;;  %v5778_v4 = vadd.f32 %v4336_v37, %v5648_v15  ;;  %v9677_v13 = vld [vmem:[#allocation21_spill] sm:$0xff]  ;;  %v163_v6 = vld [vmem:[%s8929_s3 + $0x68] sm:$0xff] }
 0x157   :  { %v5730_v32 = vpop.permute.xlu1 %641  ;;  %1089 = vperm.xlu1 %3842, %v157_v17   ;;  %9666 = vst [vmem:[#allocation359_spill] sm:$0xff] %v5746_v18  ;;  %v158_v17 = vld [vmem:[%s8929_s3 + $0x40] sm:$0xff]  ;;  %v5792_v37 = vadd.f32 %v5688_v56, %v4346_v54  ;;  %v5796_v15 = vadd.f32 %v4350_v7, %v5688_v56  ;;  %v5810_v54 = vadd.f32 %v4358_v55, %v5688_v56  ;;  %v9675_v18 = vld [vmem:[#allocation20_spill] sm:$0xff] }
 0x158   :  { %9667 = vst [vmem:[#allocation360_spill] sm:$0xff] %v5764_v63  ;;  %9668 = vst [vmem:[#allocation361_spill] sm:$0xff] %v5768_v60  ;;  %v5814_v7 = vadd.f32 %v9675_v18, %v5688_v56  ;;  %v5818_v47 = vadd.f32 %v9677_v13, %v5688_v56  ;;  %v5828_v55 = vadd.f32 %v4374_v30, %v5688_v56  ;;  %v9681_v30 = vld [vmem:[#allocation24_spill] sm:$0xff]  ;;  %v9689_v13 = vld [vmem:[#allocation29_spill] sm:$0xff] }
 0x159   :  { %9669 = vst [vmem:[#allocation362_spill] sm:$0xff] %v5774_v2  ;;  %9670 = vst [vmem:[#allocation363_spill] sm:$0xff] %v5778_v4  ;;  %1094 = vperm.xlu0 %3841, %v158_v17   ;;  %v5806_v17 = vadd.f32 %v4354_v3, %v5688_v56  ;;  %v5824_v3 = vadd.f32 %v4370_v31, %v5688_v56  ;;  %v5842_v56 = vadd.f32 %v5690_v57, %v9681_v30 }
 0x15a   :  { %v5732_v8 = vpop.permute.xlu0 %636  ;;  %9671 = vst [vmem:[#allocation364_spill] sm:$0xff] %v5792_v37  ;;  %9672 = vst [vmem:[#allocation365_spill] sm:$0xff] %v5796_v15  ;;  %v9683_v37 = vld [vmem:[#allocation25_spill] sm:$0xff]  ;;  %v9686_v15 = vld [vmem:[#allocation27_spill] sm:$0xff]  ;;  %v5868_v2 = vadd.f32 %v9689_v13, %v5690_v57 }
 0x15b   :  { %v5780_v19 = vpop.permute.xlu1 %651  ;;  %1099 = vperm.xlu1 %3842, %v159_v34   ;;  %v160_v34 = vld [vmem:[%s8929_s3 + $0x50] sm:$0xff]  ;;  %9673 = vst [vmem:[#allocation366_spill] sm:$0xff] %v5806_v17  ;;  %9674 = vst [vmem:[#allocation367_spill] sm:$0xff] %v5810_v54  ;;  %v5846_v60 = vadd.f32 %v9683_v37, %v5690_v57  ;;  %v5860_v30 = vadd.f32 %v9686_v15, %v5690_v57  ;;  %v5864_v37 = vadd.f32 %v9687_v33, %v5690_v57  ;;  %v9705_v13 = vld [vmem:[#allocation37_spill] sm:$0xff] }
 0x15c   :  { %9676 = vst [vmem:[#allocation20_spill] sm:$0xff] %v5814_v7  ;;  %9678 = vst [vmem:[#allocation21_spill] sm:$0xff] %v5818_v47  ;;  %v9691_v47 = vld [vmem:[#allocation30_spill] sm:$0xff]  ;;  %v9693_v7 = vld [vmem:[#allocation31_spill] sm:$0xff]  ;;  %v5918_v17 = vadd.f32 %v9705_v13, %v5730_v32 }
 0x15d   :  { %9679 = vst [vmem:[#allocation368_spill] sm:$0xff] %v5824_v3  ;;  %9680 = vst [vmem:[#allocation369_spill] sm:$0xff] %v5828_v55  ;;  %1104 = vperm.xlu0 %3841, %v160_v34   ;;  %v9685_v34 = vld [vmem:[#allocation26_spill] sm:$0xff]  ;;  %v5878_v15 = vadd.f32 %v9693_v7, %v5690_v57  ;;  %v165_v55 = vld [vmem:[%s8929_s3 + $0x78] sm:$0xff] }
 0x15e   :  { %v5782_v5 = vpop.permute.xlu0 %646  ;;  %9682 = vst [vmem:[#allocation24_spill] sm:$0xff] %v5842_v56  ;;  %9684 = vst [vmem:[#allocation25_spill] sm:$0xff] %v5846_v60  ;;  %v5856_v31 = vadd.f32 %v9685_v34, %v5690_v57  ;;  %v5874_v34 = vadd.f32 %v9691_v47, %v5690_v57  ;;  %v9695_v57 = vld [vmem:[#allocation32_spill] sm:$0xff]  ;;  %v9697_v56 = vld [vmem:[#allocation33_spill] sm:$0xff] }
 0x15f   :  { %v5830_v4 = vpop.permute.xlu1 %661  ;;  %1109 = vperm.xlu1 %3842, %v161_v35   ;;  %v162_v35 = vld [vmem:[%s8929_s3 + $0x60] sm:$0xff]  ;;  %9688 = vst [vmem:[#allocation26_spill] sm:$0xff] %v5864_v37  ;;  %9690 = vst [vmem:[#allocation27_spill] sm:$0xff] %v5868_v2  ;;  %v5892_v7 = vadd.f32 %v5730_v32, %v9695_v57  ;;  %v5896_v63 = vadd.f32 %v9697_v56, %v5730_v32  ;;  %v9701_v60 = vld [vmem:[#allocation35_spill] sm:$0xff] }
 0x160   :  { %9692 = vst [vmem:[#allocation28_spill] sm:$0xff] %v5874_v34  ;;  %9694 = vst [vmem:[#allocation29_spill] sm:$0xff] %v5878_v15  ;;  %v5910_v57 = vadd.f32 %v9701_v60, %v5730_v32  ;;  %v9703_v3 = vld [vmem:[#allocation36_spill] sm:$0xff]  ;;  %v5928_v60 = vadd.f32 %v4452_v14, %v5730_v32  ;;  %v167_v15 = vld [vmem:[%s8929_s3 + $0x88] sm:$0xff] }
 0x161   :  { %1114 = vperm.xlu0 %3841, %v162_v35   ;;  %9696 = vst [vmem:[#allocation30_spill] sm:$0xff] %v5892_v7  ;;  %9698 = vst [vmem:[#allocation31_spill] sm:$0xff] %v5896_v63  ;;  %v9699_v35 = vld [vmem:[#allocation34_spill] sm:$0xff]  ;;  %v5914_v56 = vadd.f32 %v9703_v3, %v5730_v32  ;;  %v9711_v14 = vld [vmem:[#allocation40_spill] sm:$0xff] }
 0x162   :  { %v5832_v18 = vpop.permute.xlu0 %656  ;;  %v5906_v47 = vadd.f32 %v9699_v35, %v5730_v32  ;;  %9702 = vst [vmem:[#allocation33_spill] sm:$0xff] %v5910_v57  ;;  %9706 = vst [vmem:[#allocation35_spill] sm:$0xff] %v5918_v17  ;;  %v5924_v35 = vadd.f32 %v4444_v0, %v5730_v32  ;;  %v5942_v32 = vadd.f32 %v5732_v8, %v9711_v14  ;;  %v9715_v63 = vld [vmem:[#allocation43_spill] sm:$0xff]  ;;  %v9716_v34 = vld [vmem:[#allocation44_spill] sm:$0xff] }
 0x163   :  { %v5880_v54 = vpop.permute.xlu1 %671  ;;  %1119 = vperm.xlu1 %3842, %v163_v6   ;;  %v164_v6 = vld [vmem:[%s8929_s3 + $0x70] sm:$0xff]  ;;  %9704 = vst [vmem:[#allocation34_spill] sm:$0xff] %v5914_v56  ;;  %9708 = vst [vmem:[#allocation37_spill] sm:$0xff] %v5928_v60  ;;  %v5960_v14 = vadd.f32 %v9715_v63, %v5732_v8  ;;  %v9718_v13 = vld [vmem:[#allocation45_spill] sm:$0xff] }
 0x164   :  { %9700 = vst [vmem:[#allocation32_spill] sm:$0xff] %v5906_v47  ;;  %9707 = vst [vmem:[#allocation36_spill] sm:$0xff] %v5924_v35  ;;  %v5968_v37 = vadd.f32 %v9718_v13, %v5732_v8  ;;  %v9720_v17 = vld [vmem:[#allocation46_spill] sm:$0xff]  ;;  %v9722_v56 = vld [vmem:[#allocation47_spill] sm:$0xff]  ;;  %v6018_v13 = vadd.f32 %v4514_v51, %v5780_v19 }
 0x165   :  { %1124 = vperm.xlu0 %3841, %v164_v6   ;;  %v9714_v6 = vld [vmem:[#allocation42_spill] sm:$0xff]  ;;  %v5978_v63 = vadd.f32 %v9722_v56, %v5732_v8  ;;  %v169_v60 = vld [vmem:[%s8929_s3 + $0x98] sm:$0xff]  ;;  %v9750_v51 = vld [vmem:[#allocation61_spill] sm:$0xff] }
 0x166   :  { %v5882_v33 = vpop.permute.xlu0 %666  ;;  %v5956_v0 = vadd.f32 %v9714_v6, %v5732_v8  ;;  %9719 = vst [vmem:[#allocation42_spill] sm:$0xff] %v5968_v37  ;;  %v5974_v6 = vadd.f32 %v9720_v17, %v5732_v8  ;;  %v9733_v35 = vld [vmem:[#allocation52_spill] sm:$0xff]  ;;  %v171_v47 = vld [vmem:[%s8929_s3 + $0xa8] sm:$0xff] }
 0x167   :  { %v5930_v2 = vpop.permute.xlu1 %681  ;;  %1129 = vperm.xlu1 %3842, %v165_v55   ;;  %v166_v55 = vld [vmem:[%s8929_s3 + $0x80] sm:$0xff]  ;;  %9723 = vst [vmem:[#allocation44_spill] sm:$0xff] %v5978_v63  ;;  %v9748_v63 = vld [vmem:[#allocation60_spill] sm:$0xff] }
 0x168   :  { %9709 = vst [vmem:[#allocation370_spill] sm:$0xff] %v5930_v2  ;;  %9721 = vst [vmem:[#allocation43_spill] sm:$0xff] %v5974_v6  ;;  %v9737_v6 = vld [vmem:[#allocation55_spill] sm:$0xff] }
 0x169   :  { %1134 = vperm.xlu0 %3841, %v166_v55   ;;  %v9729_v55 = vld [vmem:[#allocation50_spill] sm:$0xff] }
 0x16a   :  { %v5932_v3 = vpop.permute.xlu0 %676  ;;  %v6006_v17 = vadd.f32 %v9729_v55, %v5780_v19  ;;  %v6024_v55 = vadd.f32 %v4522_v1, %v5780_v19 }
 0x16b   :  { %9710 = vst [vmem:[#allocation371_spill] sm:$0xff] %v5932_v3  ;;  %v9712_v3 = vld [vmem:[#allocation41_spill] sm:$0xff]  ;;  %v5980_v57 = vpop.permute.xlu1 %691  ;;  %1139 = vperm.xlu1 %3842, %v167_v15   ;;  %v168_v15 = vld [vmem:[%s8929_s3 + $0x90] sm:$0xff] }
 0x16c   :  { %v5946_v7 = vadd.f32 %v9712_v3, %v5732_v8  ;;  %v5964_v3 = vadd.f32 %v9716_v34, %v5732_v8  ;;  %9724 = vst [vmem:[#allocation45_spill] sm:$0xff] %v5980_v57  ;;  %v9726_v8 = vld [vmem:[#allocation48_spill] sm:$0xff]  ;;  %9736 = vst [vmem:[#allocation52_spill] sm:$0xff] %v6024_v55 }
 0x16d   :  { %v5992_v56 = vadd.f32 %v5780_v19, %v9726_v8  ;;  %9730 = vst [vmem:[#allocation48_spill] sm:$0xff] %v6006_v17  ;;  %1144 = vperm.xlu0 %3841, %v168_v15   ;;  %v9744_v15 = vld [vmem:[#allocation58_spill] sm:$0xff]  ;;  %v9765_v55 = vld [vmem:[#allocation68_spill] sm:$0xff] }
 0x16e   :  { %9713 = vst [vmem:[#allocation40_spill] sm:$0xff] %v5946_v7  ;;  %9717 = vst [vmem:[#allocation41_spill] sm:$0xff] %v5964_v3  ;;  %v5982_v34 = vpop.permute.xlu0 %686  ;;  %v9731_v7 = vld [vmem:[#allocation51_spill] sm:$0xff]  ;;  %v6056_v1 = vadd.f32 %v9744_v15, %v5782_v5  ;;  %v6068_v3 = vadd.f32 %v9750_v51, %v5782_v5 }
 0x16f   :  { %9725 = vst [vmem:[#allocation46_spill] sm:$0xff] %v5982_v34  ;;  %v9727_v34 = vld [vmem:[#allocation49_spill] sm:$0xff]  ;;  %v6010_v8 = vadd.f32 %v9731_v7, %v5780_v19  ;;  %9735 = vst [vmem:[#allocation51_spill] sm:$0xff] %v6018_v13  ;;  %v6028_v7 = vadd.f32 %v9737_v6, %v5780_v19  ;;  %v6030_v37 = vpop.permute.xlu1 %701  ;;  %1149 = vperm.xlu1 %3842, %v169_v60   ;;  %v9752_v13 = vld [vmem:[#allocation62_spill] sm:$0xff] }
 0x170   :  { %v5996_v57 = vadd.f32 %v9727_v34, %v5780_v19  ;;  %v6014_v34 = vadd.f32 %v9733_v35, %v5780_v19  ;;  %9739 = vst [vmem:[#allocation372_spill] sm:$0xff] %v6030_v37  ;;  %v9741_v19 = vld [vmem:[#allocation56_spill] sm:$0xff]  ;;  %v170_v60 = vld [vmem:[%s8929_s3 + $0xa0] sm:$0xff]  ;;  %9751 = vst [vmem:[#allocation60_spill] sm:$0xff] %v6068_v3  ;;  %v6074_v15 = vadd.f32 %v9752_v13, %v5782_v5 }
 0x171   :  { %9732 = vst [vmem:[#allocation49_spill] sm:$0xff] %v6010_v8  ;;  %9738 = vst [vmem:[#allocation55_spill] sm:$0xff] %v6028_v7  ;;  %v6042_v6 = vadd.f32 %v5782_v5, %v9741_v19  ;;  %1154 = vperm.xlu0 %3841, %v170_v60   ;;  %v173_v7 = vld [vmem:[%s8929_s3 + $0xb8] sm:$0xff]  ;;  %v9761_v60 = vld [vmem:[#allocation66_spill] sm:$0xff] }
 0x172   :  { %9728 = vst [vmem:[#allocation47_spill] sm:$0xff] %v5996_v57  ;;  %9734 = vst [vmem:[#allocation50_spill] sm:$0xff] %v6014_v34  ;;  %v6032_v35 = vpop.permute.xlu0 %696  ;;  %v9746_v57 = vld [vmem:[#allocation59_spill] sm:$0xff]  ;;  %v6106_v13 = vadd.f32 %v9761_v60, %v5830_v4  ;;  %v9769_v3 = vld [vmem:[#allocation72_spill] sm:$0xff] }
 0x173   :  { %9740 = vst [vmem:[#allocation373_spill] sm:$0xff] %v6032_v35  ;;  %v9742_v35 = vld [vmem:[#allocation57_spill] sm:$0xff]  ;;  %v6060_v19 = vadd.f32 %v9746_v57, %v5782_v5  ;;  %9753 = vst [vmem:[#allocation61_spill] sm:$0xff] %v6074_v15  ;;  %v9754_v34 = vld [vmem:[#allocation63_spill] sm:$0xff]  ;;  %v6080_v8 = vpop.permute.xlu1 %711  ;;  %1159 = vperm.xlu1 %3842, %v171_v47   ;;  %v6124_v60 = vadd.f32 %v9769_v3, %v5830_v4 }
 0x174   :  { %v6046_v37 = vadd.f32 %v9742_v35, %v5782_v5  ;;  %9745 = vst [vmem:[#allocation57_spill] sm:$0xff] %v6056_v1  ;;  %v6064_v35 = vadd.f32 %v9748_v63, %v5782_v5  ;;  %v6078_v57 = vadd.f32 %v9754_v34, %v5782_v5  ;;  %9756 = vst [vmem:[#allocation63_spill] sm:$0xff] %v6080_v8  ;;  %v9758_v5 = vld [vmem:[#allocation64_spill] sm:$0xff]  ;;  %v172_v47 = vld [vmem:[%s8929_s3 + $0xb0] sm:$0xff] }
 0x175   :  { %9747 = vst [vmem:[#allocation58_spill] sm:$0xff] %v6060_v19  ;;  %v6092_v34 = vadd.f32 %v5830_v4, %v9758_v5  ;;  %v9767_v51 = vld [vmem:[#allocation71_spill] sm:$0xff]  ;;  %1164 = vperm.xlu0 %3841, %v172_v47   ;;  %v9778_v47 = vld [vmem:[#allocation76_spill] sm:$0xff]  ;;  %v9782_v15 = vld [vmem:[#allocation78_spill] sm:$0xff] }
 0x176   :  { %9743 = vst [vmem:[#allocation56_spill] sm:$0xff] %v6046_v37  ;;  %9749 = vst [vmem:[#allocation59_spill] sm:$0xff] %v6064_v35  ;;  %v6082_v63 = vpop.permute.xlu0 %706  ;;  %v9763_v37 = vld [vmem:[#allocation67_spill] sm:$0xff]  ;;  %v6118_v17 = vadd.f32 %v9767_v51, %v5830_v4  ;;  %v9771_v35 = vld [vmem:[#allocation73_spill] sm:$0xff]  ;;  %v6156_v3 = vadd.f32 %v9778_v47, %v5832_v18 }
 0x177   :  { %9755 = vst [vmem:[#allocation62_spill] sm:$0xff] %v6078_v57  ;;  %9757 = vst [vmem:[#allocation374_spill] sm:$0xff] %v6082_v63  ;;  %v9759_v63 = vld [vmem:[#allocation65_spill] sm:$0xff]  ;;  %v6110_v5 = vadd.f32 %v9763_v37, %v5830_v4  ;;  %v6128_v37 = vadd.f32 %v9771_v35, %v5830_v4  ;;  %v6130_v19 = vpop.permute.xlu1 %721  ;;  %1169 = vperm.xlu1 %3842, %v173_v7   ;;  %v175_v57 = vld [vmem:[%s8929_s3 + $0xc8] sm:$0xff] }
 0x178   :  { %v6096_v8 = vadd.f32 %v9759_v63, %v5830_v4  ;;  %9762 = vst [vmem:[#allocation65_spill] sm:$0xff] %v6106_v13  ;;  %v6114_v63 = vadd.f32 %v9765_v55, %v5830_v4  ;;  %9768 = vst [vmem:[#allocation68_spill] sm:$0xff] %v6118_v17  ;;  %v9775_v4 = vld [vmem:[#allocation74_spill] sm:$0xff]  ;;  %v174_v7 = vld [vmem:[%s8929_s3 + $0xc0] sm:$0xff] }
 0x179   :  { %9764 = vst [vmem:[#allocation66_spill] sm:$0xff] %v6110_v5  ;;  %9770 = vst [vmem:[#allocation71_spill] sm:$0xff] %v6124_v60  ;;  %v6142_v35 = vadd.f32 %v5832_v18, %v9775_v4  ;;  %v9784_v51 = vld [vmem:[#allocation79_spill] sm:$0xff]  ;;  %v9786_v17 = vld [vmem:[#allocation80_spill] sm:$0xff]  ;;  %1174 = vperm.xlu0 %3841, %v174_v7  }
 0x17a   :  { %9760 = vst [vmem:[#allocation64_spill] sm:$0xff] %v6096_v8  ;;  %9766 = vst [vmem:[#allocation67_spill] sm:$0xff] %v6114_v63  ;;  %v6132_v55 = vpop.permute.xlu0 %716  ;;  %v9780_v8 = vld [vmem:[#allocation77_spill] sm:$0xff]  ;;  %v6168_v1 = vadd.f32 %v9784_v51, %v5832_v18  ;;  %v6174_v47 = vadd.f32 %v9786_v17, %v5832_v18  ;;  %v9796_v7 = vld [vmem:[#allocation84_spill] sm:$0xff] }
 0x17b   :  { %9772 = vst [vmem:[#allocation72_spill] sm:$0xff] %v6128_v37  ;;  %9773 = vst [vmem:[#allocation73_spill] sm:$0xff] %v6130_v19  ;;  %v6160_v4 = vadd.f32 %v9780_v8, %v5832_v18  ;;  %v9788_v63 = vld [vmem:[#allocation81_spill] sm:$0xff]  ;;  %v6180_v5 = vpop.permute.xlu1 %731  ;;  %1179 = vperm.xlu1 %3842, %v175_v57   ;;  %v177_v37 = vld [vmem:[%s8929_s3 + $0xd8] sm:$0xff]  ;;  %v6206_v17 = vadd.f32 %v9796_v7, %v5880_v54 }
 0x17c   :  { %9774 = vst [vmem:[#allocation375_spill] sm:$0xff] %v6132_v55  ;;  %v9776_v55 = vld [vmem:[#allocation75_spill] sm:$0xff]  ;;  %9785 = vst [vmem:[#allocation78_spill] sm:$0xff] %v6168_v1  ;;  %v6178_v8 = vadd.f32 %v9788_v63, %v5832_v18  ;;  %v9800_v60 = vld [vmem:[#allocation88_spill] sm:$0xff] }
 0x17d   :  { %v6146_v19 = vadd.f32 %v9776_v55, %v5832_v18  ;;  %9779 = vst [vmem:[#allocation75_spill] sm:$0xff] %v6156_v3  ;;  %9781 = vst [vmem:[#allocation76_spill] sm:$0xff] %v6160_v4  ;;  %v6164_v55 = vadd.f32 %v9782_v15, %v5832_v18  ;;  %v9792_v18 = vld [vmem:[#allocation82_spill] sm:$0xff]  ;;  %v176_v57 = vld [vmem:[%s8929_s3 + $0xd0] sm:$0xff] }
 0x17e   :  { %9787 = vst [vmem:[#allocation79_spill] sm:$0xff] %v6174_v47  ;;  %9789 = vst [vmem:[#allocation80_spill] sm:$0xff] %v6178_v8  ;;  %v6182_v15 = vpop.permute.xlu0 %726  ;;  %v6192_v63 = vadd.f32 %v5880_v54, %v9792_v18  ;;  %v9802_v51 = vld [vmem:[#allocation89_spill] sm:$0xff]  ;;  %v9804_v1 = vld [vmem:[#allocation90_spill] sm:$0xff]  ;;  %1184 = vperm.xlu0 %3841, %v176_v57  }
 0x17f   :  { %9777 = vst [vmem:[#allocation74_spill] sm:$0xff] %v6146_v19  ;;  %9783 = vst [vmem:[#allocation77_spill] sm:$0xff] %v6164_v55  ;;  %v9798_v19 = vld [vmem:[#allocation85_spill] sm:$0xff]  ;;  %v6218_v13 = vadd.f32 %v9802_v51, %v5880_v54  ;;  %v6224_v7 = vadd.f32 %v9804_v1, %v5880_v54  ;;  %v9806_v55 = vld [vmem:[#allocation91_spill] sm:$0xff]  ;;  %v6230_v4 = vpop.permute.xlu1 %741  ;;  %1189 = vperm.xlu1 %3842, %v177_v37  }
 0x180   :  { %9790 = vst [vmem:[#allocation81_spill] sm:$0xff] %v6180_v5  ;;  %9791 = vst [vmem:[#allocation376_spill] sm:$0xff] %v6182_v15  ;;  %v9794_v15 = vld [vmem:[#allocation83_spill] sm:$0xff]  ;;  %v6210_v18 = vadd.f32 %v9798_v19, %v5880_v54  ;;  %v6228_v19 = vadd.f32 %v9806_v55, %v5880_v54  ;;  %v179_v8 = vld [vmem:[%s8929_s3 + $0xe8] sm:$0xff] }
 0x181   :  { %9793 = vst [vmem:[#allocation82_spill] sm:$0xff] %v6192_v63  ;;  %v6196_v5 = vadd.f32 %v9794_v15, %v5880_v54  ;;  %9797 = vst [vmem:[#allocation84_spill] sm:$0xff] %v6206_v17  ;;  %v6214_v15 = vadd.f32 %v9800_v60, %v5880_v54  ;;  %v9810_v54 = vld [vmem:[#allocation92_spill] sm:$0xff]  ;;  %v178_v37 = vld [vmem:[%s8929_s3 + $0xe0] sm:$0xff] }
 0x182   :  { %9799 = vst [vmem:[#allocation85_spill] sm:$0xff] %v6210_v18  ;;  %9803 = vst [vmem:[#allocation89_spill] sm:$0xff] %v6218_v13  ;;  %v6232_v60 = vpop.permute.xlu0 %736  ;;  %v6242_v55 = vadd.f32 %v5882_v33, %v9810_v54  ;;  %v9814_v57 = vld [vmem:[#allocation94_spill] sm:$0xff]  ;;  %v9818_v47 = vld [vmem:[#allocation96_spill] sm:$0xff]  ;;  %1194 = vperm.xlu0 %3841, %v178_v37  }
 0x183   :  { %9795 = vst [vmem:[#allocation83_spill] sm:$0xff] %v6196_v5  ;;  %9801 = vst [vmem:[#allocation88_spill] sm:$0xff] %v6214_v15  ;;  %v6256_v1 = vadd.f32 %v9814_v57, %v5882_v33  ;;  %v9816_v5 = vld [vmem:[#allocation95_spill] sm:$0xff]  ;;  %v9820_v51 = vld [vmem:[#allocation97_spill] sm:$0xff]  ;;  %v6280_v18 = vpop.permute.xlu1 %751  ;;  %1199 = vperm.xlu1 %3842, %v179_v8  }
 0x184   :  { %9805 = vst [vmem:[#allocation90_spill] sm:$0xff] %v6224_v7  ;;  %9807 = vst [vmem:[#allocation91_spill] sm:$0xff] %v6228_v19  ;;  %v6260_v54 = vadd.f32 %v9816_v5, %v5882_v33  ;;  %v6268_v3 = vadd.f32 %v9820_v51, %v5882_v33  ;;  %v9822_v13 = vld [vmem:[#allocation98_spill] sm:$0xff]  ;;  %v9824_v15 = vld [vmem:[#allocation99_spill] sm:$0xff] }
 0x185   :  { %9808 = vst [vmem:[#allocation377_spill] sm:$0xff] %v6230_v4  ;;  %9809 = vst [vmem:[#allocation378_spill] sm:$0xff] %v6232_v60  ;;  %v9812_v60 = vld [vmem:[#allocation93_spill] sm:$0xff]  ;;  %v6274_v57 = vadd.f32 %v9822_v13, %v5882_v33  ;;  %v6278_v5 = vadd.f32 %v9824_v15, %v5882_v33  ;;  %v181_v19 = vld [vmem:[%s8929_s3 + $0xf8] sm:$0xff] }
 0x186   :  { %9811 = vst [vmem:[#allocation92_spill] sm:$0xff] %v6242_v55  ;;  %v6246_v4 = vadd.f32 %v9812_v60, %v5882_v33  ;;  %9815 = vst [vmem:[#allocation94_spill] sm:$0xff] %v6256_v1  ;;  %v6264_v60 = vadd.f32 %v9818_v47, %v5882_v33  ;;  %v6282_v47 = vpop.permute.xlu0 %746  ;;  %v9828_v33 = vld [vmem:[#allocation100_spill] sm:$0xff]  ;;  %v9832_v7 = vld [vmem:[#allocation102_spill] sm:$0xff] }
 0x187   :  { %9817 = vst [vmem:[#allocation95_spill] sm:$0xff] %v6260_v54  ;;  %9821 = vst [vmem:[#allocation97_spill] sm:$0xff] %v6268_v3  ;;  %v6292_v15 = vadd.f32 %v5930_v2, %v9828_v33  ;;  %v6303_v8 = vadd.f32 %v9832_v7, %v5930_v2  ;;  %v9834_v37 = vld [vmem:[#allocation103_spill] sm:$0xff]  ;;  %v9838_v51 = vld [vmem:[#allocation105_spill] sm:$0xff]  ;;  %1209 = vperm.xlu1 %3842, %v181_v19  }
 0x188   :  { %9813 = vst [vmem:[#allocation93_spill] sm:$0xff] %v6246_v4  ;;  %9819 = vst [vmem:[#allocation96_spill] sm:$0xff] %v6264_v60  ;;  %v6307_v13 = vadd.f32 %v9834_v37, %v5930_v2  ;;  %v9836_v4 = vld [vmem:[#allocation104_spill] sm:$0xff]  ;;  %v180_v17 = vld [vmem:[%s8929_s3 + $0xf0] sm:$0xff]  ;;  %v762_v60 = vpop.permute.xlu1 %761 }
 0x189   :  { %9823 = vst [vmem:[#allocation98_spill] sm:$0xff] %v6274_v57  ;;  %9825 = vst [vmem:[#allocation99_spill] sm:$0xff] %v6278_v5  ;;  %v6311_v33 = vadd.f32 %v9836_v4, %v5930_v2  ;;  %v9840_v57 = vld [vmem:[#allocation106_spill] sm:$0xff]  ;;  %v9844_v5 = vld [vmem:[#allocation107_spill] sm:$0xff]  ;;  %1204 = vperm.xlu0 %3841, %v180_v17  }
 0x18a   :  { %9826 = vst [vmem:[#allocation379_spill] sm:$0xff] %v6280_v18  ;;  %9827 = vst [vmem:[#allocation380_spill] sm:$0xff] %v6282_v47  ;;  %v9830_v47 = vld [vmem:[#allocation101_spill] sm:$0xff]  ;;  %v6324_v37 = vadd.f32 %v9840_v57, %v5930_v2  ;;  %v9842_v3 = vld [vmem:[#allocation14_spill] sm:$0xff] }
 0x18b   :  { %9829 = vst [vmem:[#allocation100_spill] sm:$0xff] %v6292_v15  ;;  %v6296_v18 = vadd.f32 %v9830_v47, %v5930_v2  ;;  %9833 = vst [vmem:[#allocation102_spill] sm:$0xff] %v6303_v8  ;;  %v6315_v47 = vadd.f32 %v9838_v51, %v5930_v2  ;;  %v6328_v4 = vmul.f32 %v4184_v49, %v9842_v3  ;;  %v9846_v7 = vld [vmem:[#allocation108_spill] sm:$0xff]  ;;  %v9848_v57 = vld [vmem:[#allocation109_spill] sm:$0xff] }
 0x18c   :  { %9835 = vst [vmem:[#allocation103_spill] sm:$0xff] %v6307_v13  ;;  %9837 = vst [vmem:[#allocation104_spill] sm:$0xff] %v6311_v33  ;;  %v6335_v15 = vadd.f32 %v762_v60, %v9844_v5  ;;  %v6341_v2 = vadd.f32 %v9848_v57, %v762_v60  ;;  %v9850_v3 = vld [vmem:[#allocation110_spill] sm:$0xff]  ;;  %v9852_v51 = vld [vmem:[#allocation111_spill] sm:$0xff] }
 0x18d   :  { %9831 = vst [vmem:[#allocation101_spill] sm:$0xff] %v6296_v18  ;;  %9839 = vst [vmem:[#allocation105_spill] sm:$0xff] %v6315_v47  ;;  %v6338_v18 = vadd.f32 %v9846_v7, %v762_v60  ;;  %v6344_v49 = vadd.f32 %v9850_v3, %v762_v60  ;;  %v6347_v8 = vadd.f32 %v9852_v51, %v762_v60  ;;  %v9854_v54 = vld [vmem:[#allocation112_spill] sm:$0xff]  ;;  %v9856_v55 = vld [vmem:[#allocation113_spill] sm:$0xff]  ;;  %v757_v7 = vpop.permute.xlu0 %756 }
 0x18e   :  { %9841 = vst [vmem:[#allocation106_spill] sm:$0xff] %v6324_v37  ;;  %9843 = vst [vmem:[#allocation14_spill] sm:$0xff] %v6328_v4  ;;  %v6350_v1 = vadd.f32 %v9854_v54, %v762_v60  ;;  %v6353_v47 = vadd.f32 %v9856_v55, %v762_v60  ;;  %v9858_v5 = vld [vmem:[#allocation114_spill] sm:$0xff]  ;;  %v182_v55 = vld [vmem:[%s8929_s3 + $0x100] sm:$0xff] }
 0x18f   :  { %9845 = vst [vmem:[#allocation107_spill] sm:$0xff] %v6335_v15  ;;  %9847 = vst [vmem:[#allocation108_spill] sm:$0xff] %v6338_v18  ;;  %v6356_v33 = vadd.f32 %v9858_v5, %v762_v60  ;;  %v183_v57 = vld [vmem:[%s8929_s3 + $0x108] sm:$0xff]  ;;  %v9860_v4 = vld [vmem:[#allocation115_spill] sm:$0xff]  ;;  %1214 = vperm.xlu0 %3841, %v182_v55  }
 0x190   :  { %9849 = vst [vmem:[#allocation109_spill] sm:$0xff] %v6341_v2  ;;  %9851 = vst [vmem:[#allocation110_spill] sm:$0xff] %v6344_v49  ;;  %v6373_v19 = vadd.f32 %v757_v7, %v9860_v4  ;;  %v9862_v51 = vld [vmem:[#allocation116_spill] sm:$0xff]  ;;  %v9864_v3 = vld [vmem:[#allocation117_spill] sm:$0xff]  ;;  %1219 = vperm.xlu1 %3842, %v183_v57  }
 0x191   :  { %9853 = vst [vmem:[#allocation111_spill] sm:$0xff] %v6347_v8  ;;  %9855 = vst [vmem:[#allocation112_spill] sm:$0xff] %v6350_v1  ;;  %v6376_v18 = vadd.f32 %v9862_v51, %v757_v7  ;;  %v6379_v54 = vadd.f32 %v9864_v3, %v757_v7  ;;  %v9866_v49 = vld [vmem:[#allocation118_spill] sm:$0xff]  ;;  %v9868_v60 = vld [vmem:[#allocation119_spill] sm:$0xff]  ;;  %v772_v51 = vpop.permute.xlu1 %771 }
 0x192   :  { %9857 = vst [vmem:[#allocation113_spill] sm:$0xff] %v6353_v47  ;;  %9859 = vst [vmem:[#allocation114_spill] sm:$0xff] %v6356_v33  ;;  %v6382_v2 = vadd.f32 %v9866_v49, %v757_v7  ;;  %v6385_v8 = vadd.f32 %v9868_v60, %v757_v7  ;;  %v9870_v17 = vld [vmem:[#allocation120_spill] sm:$0xff]  ;;  %v9872_v13 = vld [vmem:[#allocation121_spill] sm:$0xff] }
 0x193   :  { %9861 = vst [vmem:[#allocation115_spill] sm:$0xff] %v6373_v19  ;;  %9863 = vst [vmem:[#allocation116_spill] sm:$0xff] %v6376_v18  ;;  %v6388_v5 = vadd.f32 %v9870_v17, %v757_v7  ;;  %v6391_v33 = vadd.f32 %v9872_v13, %v757_v7  ;;  %v9874_v4 = vld [vmem:[#allocation122_spill] sm:$0xff]  ;;  %v185_v49 = vld [vmem:[%s8929_s3 + $0x118] sm:$0xff] }
 0x194   :  { %9865 = vst [vmem:[#allocation117_spill] sm:$0xff] %v6379_v54  ;;  %9867 = vst [vmem:[#allocation118_spill] sm:$0xff] %v6382_v2  ;;  %v6394_v47 = vadd.f32 %v9874_v4, %v757_v7  ;;  %v184_v13 = vld [vmem:[%s8929_s3 + $0x110] sm:$0xff]  ;;  %v9878_v3 = vld [vmem:[#allocation124_spill] sm:$0xff]  ;;  %1229 = vperm.xlu1 %3842, %v185_v49  }
 0x195   :  { %9869 = vst [vmem:[#allocation119_spill] sm:$0xff] %v6385_v8  ;;  %9871 = vst [vmem:[#allocation120_spill] sm:$0xff] %v6388_v5  ;;  %v9876_v15 = vld [vmem:[#allocation123_spill] sm:$0xff]  ;;  %v6414_v18 = vadd.f32 %v9878_v3, %v772_v51  ;;  %v9880_v60 = vld [vmem:[#allocation125_spill] sm:$0xff]  ;;  %v767_v3 = vpop.permute.xlu0 %766  ;;  %1224 = vperm.xlu0 %3841, %v184_v13  }
 0x196   :  { %9873 = vst [vmem:[#allocation121_spill] sm:$0xff] %v6391_v33  ;;  %9875 = vst [vmem:[#allocation122_spill] sm:$0xff] %v6394_v47  ;;  %v6411_v57 = vadd.f32 %v772_v51, %v9876_v15  ;;  %v6417_v17 = vadd.f32 %v9880_v60, %v772_v51  ;;  %v9882_v2 = vld [vmem:[#allocation126_spill] sm:$0xff]  ;;  %v9884_v7 = vld [vmem:[#allocation127_spill] sm:$0xff] }
 0x197   :  { %9879 = vst [vmem:[#allocation124_spill] sm:$0xff] %v6414_v18  ;;  %v6420_v54 = vadd.f32 %v9882_v2, %v772_v51  ;;  %v6423_v8 = vadd.f32 %v9884_v7, %v772_v51  ;;  %v9886_v55 = vld [vmem:[#allocation128_spill] sm:$0xff]  ;;  %v9888_v1 = vld [vmem:[#allocation129_spill] sm:$0xff]  ;;  %v9890_v15 = vld [vmem:[#allocation130_spill] sm:$0xff] }
 0x198   :  { %9877 = vst [vmem:[#allocation123_spill] sm:$0xff] %v6411_v57  ;;  %9881 = vst [vmem:[#allocation125_spill] sm:$0xff] %v6417_v17  ;;  %v6426_v4 = vadd.f32 %v9886_v55, %v772_v51  ;;  %v6429_v47 = vadd.f32 %v9888_v1, %v772_v51  ;;  %v6432_v33 = vadd.f32 %v9890_v15, %v772_v51  ;;  %v187_v2 = vld [vmem:[%s8929_s3 + $0x128] sm:$0xff]  ;;  %v186_v1 = vld [vmem:[%s8929_s3 + $0x120] sm:$0xff] }
 0x199   :  { %9883 = vst [vmem:[#allocation126_spill] sm:$0xff] %v6420_v54  ;;  %9885 = vst [vmem:[#allocation127_spill] sm:$0xff] %v6423_v8  ;;  %v9892_v19 = vld [vmem:[#allocation131_spill] sm:$0xff]  ;;  %v9894_v60 = vld [vmem:[#allocation132_spill] sm:$0xff]  ;;  %1239 = vperm.xlu1 %3842, %v187_v2   ;;  %1234 = vperm.xlu0 %3841, %v186_v1  }
 0x19a   :  { %9887 = vst [vmem:[#allocation128_spill] sm:$0xff] %v6426_v4  ;;  %9889 = vst [vmem:[#allocation129_spill] sm:$0xff] %v6429_v47  ;;  %v6449_v49 = vadd.f32 %v767_v3, %v9892_v19  ;;  %v6452_v18 = vadd.f32 %v9894_v60, %v767_v3  ;;  %v9896_v7 = vld [vmem:[#allocation133_spill] sm:$0xff]  ;;  %v9898_v54 = vld [vmem:[#allocation134_spill] sm:$0xff]  ;;  %v782_v60 = vpop.permute.xlu1 %781 }
 0x19b   :  { %9891 = vst [vmem:[#allocation130_spill] sm:$0xff] %v6432_v33  ;;  %v6455_v55 = vadd.f32 %v9896_v7, %v767_v3  ;;  %v6458_v17 = vadd.f32 %v9898_v54, %v767_v3  ;;  %v9900_v51 = vld [vmem:[#allocation135_spill] sm:$0xff]  ;;  %v9902_v13 = vld [vmem:[#allocation136_spill] sm:$0xff]  ;;  %v9904_v5 = vld [vmem:[#allocation137_spill] sm:$0xff] }
 0x19c   :  { %9893 = vst [vmem:[#allocation131_spill] sm:$0xff] %v6449_v49  ;;  %9895 = vst [vmem:[#allocation132_spill] sm:$0xff] %v6452_v18  ;;  %v6461_v8 = vadd.f32 %v9900_v51, %v767_v3  ;;  %v6464_v15 = vadd.f32 %v9902_v13, %v767_v3  ;;  %v6467_v33 = vadd.f32 %v9904_v5, %v767_v3  ;;  %v9906_v19 = vld [vmem:[#allocation138_spill] sm:$0xff]  ;;  %v189_v54 = vld [vmem:[%s8929_s3 + $0x138] sm:$0xff] }
 0x19d   :  { %9897 = vst [vmem:[#allocation133_spill] sm:$0xff] %v6455_v55  ;;  %9899 = vst [vmem:[#allocation134_spill] sm:$0xff] %v6458_v17  ;;  %v6470_v47 = vadd.f32 %v9906_v19, %v767_v3  ;;  %v188_v5 = vld [vmem:[%s8929_s3 + $0x130] sm:$0xff]  ;;  %v9910_v7 = vld [vmem:[#allocation140_spill] sm:$0xff]  ;;  %1249 = vperm.xlu1 %3842, %v189_v54  }
 0x19e   :  { %9901 = vst [vmem:[#allocation135_spill] sm:$0xff] %v6461_v8  ;;  %9903 = vst [vmem:[#allocation136_spill] sm:$0xff] %v6464_v15  ;;  %v9908_v57 = vld [vmem:[#allocation139_spill] sm:$0xff]  ;;  %v6490_v18 = vadd.f32 %v9910_v7, %v782_v60  ;;  %v9912_v51 = vld [vmem:[#allocation141_spill] sm:$0xff]  ;;  %v777_v7 = vpop.permute.xlu0 %776  ;;  %1244 = vperm.xlu0 %3841, %v188_v5  }
 0x19f   :  { %9905 = vst [vmem:[#allocation137_spill] sm:$0xff] %v6467_v33  ;;  %9907 = vst [vmem:[#allocation138_spill] sm:$0xff] %v6470_v47  ;;  %v6487_v2 = vadd.f32 %v782_v60, %v9908_v57  ;;  %v6493_v13 = vadd.f32 %v9912_v51, %v782_v60  ;;  %v9914_v17 = vld [vmem:[#allocation142_spill] sm:$0xff]  ;;  %v9916_v3 = vld [vmem:[#allocation143_spill] sm:$0xff] }
 0x1a0   :  { %9911 = vst [vmem:[#allocation140_spill] sm:$0xff] %v6490_v18  ;;  %v6496_v55 = vadd.f32 %v9914_v17, %v782_v60  ;;  %v6499_v8 = vadd.f32 %v9916_v3, %v782_v60  ;;  %v9918_v1 = vld [vmem:[#allocation144_spill] sm:$0xff]  ;;  %v9920_v4 = vld [vmem:[#allocation145_spill] sm:$0xff]  ;;  %v9922_v57 = vld [vmem:[#allocation146_spill] sm:$0xff] }
 0x1a1   :  { %9909 = vst [vmem:[#allocation139_spill] sm:$0xff] %v6487_v2  ;;  %9913 = vst [vmem:[#allocation141_spill] sm:$0xff] %v6493_v13  ;;  %v6502_v19 = vadd.f32 %v9918_v1, %v782_v60  ;;  %v6505_v47 = vadd.f32 %v9920_v4, %v782_v60  ;;  %v6508_v33 = vadd.f32 %v9922_v57, %v782_v60  ;;  %v191_v17 = vld [vmem:[%s8929_s3 + $0x148] sm:$0xff]  ;;  %v190_v4 = vld [vmem:[%s8929_s3 + $0x140] sm:$0xff] }
 0x1a2   :  { %9915 = vst [vmem:[#allocation142_spill] sm:$0xff] %v6496_v55  ;;  %9917 = vst [vmem:[#allocation143_spill] sm:$0xff] %v6499_v8  ;;  %v9924_v49 = vld [vmem:[#allocation147_spill] sm:$0xff]  ;;  %v9926_v51 = vld [vmem:[#allocation148_spill] sm:$0xff]  ;;  %1259 = vperm.xlu1 %3842, %v191_v17   ;;  %1254 = vperm.xlu0 %3841, %v190_v4  }
 0x1a3   :  { %9919 = vst [vmem:[#allocation144_spill] sm:$0xff] %v6502_v19  ;;  %9921 = vst [vmem:[#allocation145_spill] sm:$0xff] %v6505_v47  ;;  %v6525_v54 = vadd.f32 %v777_v7, %v9924_v49  ;;  %v6528_v18 = vadd.f32 %v9926_v51, %v777_v7  ;;  %v9928_v3 = vld [vmem:[#allocation149_spill] sm:$0xff]  ;;  %v9930_v55 = vld [vmem:[#allocation150_spill] sm:$0xff]  ;;  %v792_v51 = vpop.permute.xlu1 %791 }
 0x1a4   :  { %9923 = vst [vmem:[#allocation146_spill] sm:$0xff] %v6508_v33  ;;  %v6531_v1 = vadd.f32 %v9928_v3, %v777_v7  ;;  %v6534_v13 = vadd.f32 %v9930_v55, %v777_v7  ;;  %v9932_v60 = vld [vmem:[#allocation151_spill] sm:$0xff]  ;;  %v9934_v5 = vld [vmem:[#allocation152_spill] sm:$0xff]  ;;  %v9936_v15 = vld [vmem:[#allocation153_spill] sm:$0xff] }
 0x1a5   :  { %9925 = vst [vmem:[#allocation147_spill] sm:$0xff] %v6525_v54  ;;  %9927 = vst [vmem:[#allocation148_spill] sm:$0xff] %v6528_v18  ;;  %v6537_v8 = vadd.f32 %v9932_v60, %v777_v7  ;;  %v6540_v57 = vadd.f32 %v9934_v5, %v777_v7  ;;  %v6543_v33 = vadd.f32 %v9936_v15, %v777_v7  ;;  %v9938_v49 = vld [vmem:[#allocation154_spill] sm:$0xff]  ;;  %v193_v55 = vld [vmem:[%s8929_s3 + $0x158] sm:$0xff] }
 0x1a6   :  { %9929 = vst [vmem:[#allocation149_spill] sm:$0xff] %v6531_v1  ;;  %9931 = vst [vmem:[#allocation150_spill] sm:$0xff] %v6534_v13  ;;  %v6546_v47 = vadd.f32 %v9938_v49, %v777_v7  ;;  %v192_v15 = vld [vmem:[%s8929_s3 + $0x150] sm:$0xff]  ;;  %v9942_v3 = vld [vmem:[#allocation156_spill] sm:$0xff]  ;;  %1269 = vperm.xlu1 %3842, %v193_v55  }
 0x1a7   :  { %9933 = vst [vmem:[#allocation151_spill] sm:$0xff] %v6537_v8  ;;  %9935 = vst [vmem:[#allocation152_spill] sm:$0xff] %v6540_v57  ;;  %v9940_v2 = vld [vmem:[#allocation155_spill] sm:$0xff]  ;;  %v6566_v18 = vadd.f32 %v9942_v3, %v792_v51  ;;  %v9944_v60 = vld [vmem:[#allocation157_spill] sm:$0xff]  ;;  %v787_v3 = vpop.permute.xlu0 %786  ;;  %1264 = vperm.xlu0 %3841, %v192_v15  }
 0x1a8   :  { %9937 = vst [vmem:[#allocation153_spill] sm:$0xff] %v6543_v33  ;;  %9939 = vst [vmem:[#allocation154_spill] sm:$0xff] %v6546_v47  ;;  %v6563_v17 = vadd.f32 %v792_v51, %v9940_v2  ;;  %v6569_v5 = vadd.f32 %v9944_v60, %v792_v51  ;;  %v9946_v13 = vld [vmem:[#allocation158_spill] sm:$0xff]  ;;  %v9948_v7 = vld [vmem:[#allocation159_spill] sm:$0xff] }
 0x1a9   :  { %9943 = vst [vmem:[#allocation156_spill] sm:$0xff] %v6566_v18  ;;  %v6572_v1 = vadd.f32 %v9946_v13, %v792_v51  ;;  %v6575_v8 = vadd.f32 %v9948_v7, %v792_v51  ;;  %v9950_v4 = vld [vmem:[#allocation160_spill] sm:$0xff]  ;;  %v9952_v19 = vld [vmem:[#allocation161_spill] sm:$0xff]  ;;  %v9954_v2 = vld [vmem:[#allocation162_spill] sm:$0xff] }
 0x1aa   :  { %9941 = vst [vmem:[#allocation155_spill] sm:$0xff] %v6563_v17  ;;  %9945 = vst [vmem:[#allocation157_spill] sm:$0xff] %v6569_v5  ;;  %v6578_v49 = vadd.f32 %v9950_v4, %v792_v51  ;;  %v6581_v47 = vadd.f32 %v9952_v19, %v792_v51  ;;  %v6584_v33 = vadd.f32 %v9954_v2, %v792_v51  ;;  %v195_v13 = vld [vmem:[%s8929_s3 + $0x168] sm:$0xff]  ;;  %v194_v19 = vld [vmem:[%s8929_s3 + $0x160] sm:$0xff] }
 0x1ab   :  { %9947 = vst [vmem:[#allocation158_spill] sm:$0xff] %v6572_v1  ;;  %9949 = vst [vmem:[#allocation159_spill] sm:$0xff] %v6575_v8  ;;  %v9956_v54 = vld [vmem:[#allocation163_spill] sm:$0xff]  ;;  %v9958_v60 = vld [vmem:[#allocation164_spill] sm:$0xff]  ;;  %1279 = vperm.xlu1 %3842, %v195_v13   ;;  %1274 = vperm.xlu0 %3841, %v194_v19  }
 0x1ac   :  { %9951 = vst [vmem:[#allocation160_spill] sm:$0xff] %v6578_v49  ;;  %9953 = vst [vmem:[#allocation161_spill] sm:$0xff] %v6581_v47  ;;  %v6601_v55 = vadd.f32 %v787_v3, %v9956_v54  ;;  %v6604_v18 = vadd.f32 %v9958_v60, %v787_v3  ;;  %v9960_v7 = vld [vmem:[#allocation165_spill] sm:$0xff]  ;;  %v9962_v1 = vld [vmem:[#allocation166_spill] sm:$0xff]  ;;  %v802_v60 = vpop.permute.xlu1 %801 }
 0x1ad   :  { %9955 = vst [vmem:[#allocation162_spill] sm:$0xff] %v6584_v33  ;;  %v6607_v4 = vadd.f32 %v9960_v7, %v787_v3  ;;  %v6610_v5 = vadd.f32 %v9962_v1, %v787_v3  ;;  %v9964_v51 = vld [vmem:[#allocation167_spill] sm:$0xff]  ;;  %v9966_v15 = vld [vmem:[#allocation168_spill] sm:$0xff]  ;;  %v9968_v57 = vld [vmem:[#allocation169_spill] sm:$0xff] }
 0x1ae   :  { %9957 = vst [vmem:[#allocation163_spill] sm:$0xff] %v6601_v55  ;;  %9959 = vst [vmem:[#allocation164_spill] sm:$0xff] %v6604_v18  ;;  %v6613_v8 = vadd.f32 %v9964_v51, %v787_v3  ;;  %v6616_v2 = vadd.f32 %v9966_v15, %v787_v3  ;;  %v6619_v33 = vadd.f32 %v9968_v57, %v787_v3  ;;  %v9970_v54 = vld [vmem:[#allocation170_spill] sm:$0xff]  ;;  %v197_v1 = vld [vmem:[%s8929_s3 + $0x178] sm:$0xff] }
 0x1af   :  { %9961 = vst [vmem:[#allocation165_spill] sm:$0xff] %v6607_v4  ;;  %9963 = vst [vmem:[#allocation166_spill] sm:$0xff] %v6610_v5  ;;  %v6622_v47 = vadd.f32 %v9970_v54, %v787_v3  ;;  %v196_v57 = vld [vmem:[%s8929_s3 + $0x170] sm:$0xff]  ;;  %v9974_v7 = vld [vmem:[#allocation172_spill] sm:$0xff]  ;;  %1289 = vperm.xlu1 %3842, %v197_v1  }
 0x1b0   :  { %9965 = vst [vmem:[#allocation167_spill] sm:$0xff] %v6613_v8  ;;  %9967 = vst [vmem:[#allocation168_spill] sm:$0xff] %v6616_v2  ;;  %v9972_v17 = vld [vmem:[#allocation171_spill] sm:$0xff]  ;;  %v6642_v18 = vadd.f32 %v9974_v7, %v802_v60  ;;  %v9976_v51 = vld [vmem:[#allocation173_spill] sm:$0xff]  ;;  %v797_v7 = vpop.permute.xlu0 %796  ;;  %1284 = vperm.xlu0 %3841, %v196_v57  }
 0x1b1   :  { %9969 = vst [vmem:[#allocation169_spill] sm:$0xff] %v6619_v33  ;;  %9971 = vst [vmem:[#allocation170_spill] sm:$0xff] %v6622_v47  ;;  %v6639_v13 = vadd.f32 %v802_v60, %v9972_v17  ;;  %v6645_v15 = vadd.f32 %v9976_v51, %v802_v60  ;;  %v9978_v5 = vld [vmem:[#allocation174_spill] sm:$0xff]  ;;  %v9980_v3 = vld [vmem:[#allocation175_spill] sm:$0xff] }
 0x1b2   :  { %9975 = vst [vmem:[#allocation172_spill] sm:$0xff] %v6642_v18  ;;  %v6648_v4 = vadd.f32 %v9978_v5, %v802_v60  ;;  %v6651_v8 = vadd.f32 %v9980_v3, %v802_v60  ;;  %v9982_v19 = vld [vmem:[#allocation176_spill] sm:$0xff]  ;;  %v9984_v49 = vld [vmem:[#allocation177_spill] sm:$0xff]  ;;  %v9986_v17 = vld [vmem:[#allocation178_spill] sm:$0xff] }
 0x1b3   :  { %9973 = vst [vmem:[#allocation171_spill] sm:$0xff] %v6639_v13  ;;  %9977 = vst [vmem:[#allocation173_spill] sm:$0xff] %v6645_v15  ;;  %v6654_v54 = vadd.f32 %v9982_v19, %v802_v60  ;;  %v6657_v47 = vadd.f32 %v9984_v49, %v802_v60  ;;  %v6660_v33 = vadd.f32 %v9986_v17, %v802_v60  ;;  %v199_v5 = vld [vmem:[%s8929_s3 + $0x188] sm:$0xff]  ;;  %v198_v49 = vld [vmem:[%s8929_s3 + $0x180] sm:$0xff] }
 0x1b4   :  { %9979 = vst [vmem:[#allocation174_spill] sm:$0xff] %v6648_v4  ;;  %9981 = vst [vmem:[#allocation175_spill] sm:$0xff] %v6651_v8  ;;  %v9988_v55 = vld [vmem:[#allocation179_spill] sm:$0xff]  ;;  %v9990_v51 = vld [vmem:[#allocation180_spill] sm:$0xff]  ;;  %1299 = vperm.xlu1 %3842, %v199_v5   ;;  %1294 = vperm.xlu0 %3841, %v198_v49  }
 0x1b5   :  { %9983 = vst [vmem:[#allocation176_spill] sm:$0xff] %v6654_v54  ;;  %9985 = vst [vmem:[#allocation177_spill] sm:$0xff] %v6657_v47  ;;  %v6677_v1 = vadd.f32 %v797_v7, %v9988_v55  ;;  %v6680_v18 = vadd.f32 %v9990_v51, %v797_v7  ;;  %v9992_v3 = vld [vmem:[#allocation181_spill] sm:$0xff]  ;;  %v9994_v4 = vld [vmem:[#allocation182_spill] sm:$0xff]  ;;  %v812_v51 = vpop.permute.xlu1 %811 }
 0x1b6   :  { %9987 = vst [vmem:[#allocation178_spill] sm:$0xff] %v6660_v33  ;;  %v6683_v19 = vadd.f32 %v9992_v3, %v797_v7  ;;  %v6686_v15 = vadd.f32 %v9994_v4, %v797_v7  ;;  %v9996_v60 = vld [vmem:[#allocation183_spill] sm:$0xff]  ;;  %v9998_v57 = vld [vmem:[#allocation184_spill] sm:$0xff]  ;;  %v10000_v2 = vld [vmem:[#allocation185_spill] sm:$0xff] }
 0x1b7   :  { %9989 = vst [vmem:[#allocation179_spill] sm:$0xff] %v6677_v1  ;;  %9991 = vst [vmem:[#allocation180_spill] sm:$0xff] %v6680_v18  ;;  %v6689_v8 = vadd.f32 %v9996_v60, %v797_v7  ;;  %v6692_v17 = vadd.f32 %v9998_v57, %v797_v7  ;;  %v6695_v33 = vadd.f32 %v10000_v2, %v797_v7  ;;  %v10002_v55 = vld [vmem:[#allocation186_spill] sm:$0xff]  ;;  %v201_v4 = vld [vmem:[%s8929_s3 + $0x198] sm:$0xff] }
 0x1b8   :  { %9993 = vst [vmem:[#allocation181_spill] sm:$0xff] %v6683_v19  ;;  %9995 = vst [vmem:[#allocation182_spill] sm:$0xff] %v6686_v15  ;;  %v6698_v47 = vadd.f32 %v10002_v55, %v797_v7  ;;  %v200_v2 = vld [vmem:[%s8929_s3 + $0x190] sm:$0xff]  ;;  %v10006_v3 = vld [vmem:[#allocation188_spill] sm:$0xff]  ;;  %1309 = vperm.xlu1 %3842, %v201_v4  }
 0x1b9   :  { %9997 = vst [vmem:[#allocation183_spill] sm:$0xff] %v6689_v8  ;;  %9999 = vst [vmem:[#allocation184_spill] sm:$0xff] %v6692_v17  ;;  %v10004_v13 = vld [vmem:[#allocation187_spill] sm:$0xff]  ;;  %v6718_v18 = vadd.f32 %v10006_v3, %v812_v51  ;;  %v10008_v60 = vld [vmem:[#allocation189_spill] sm:$0xff]  ;;  %v807_v3 = vpop.permute.xlu0 %806  ;;  %1304 = vperm.xlu0 %3841, %v200_v2  }
 0x1ba   :  { %10001 = vst [vmem:[#allocation185_spill] sm:$0xff] %v6695_v33  ;;  %10003 = vst [vmem:[#allocation186_spill] sm:$0xff] %v6698_v47  ;;  %v6715_v5 = vadd.f32 %v812_v51, %v10004_v13  ;;  %v6721_v57 = vadd.f32 %v10008_v60, %v812_v51  ;;  %v10010_v15 = vld [vmem:[#allocation190_spill] sm:$0xff]  ;;  %v10012_v7 = vld [vmem:[#allocation191_spill] sm:$0xff] }
 0x1bb   :  { %10007 = vst [vmem:[#allocation188_spill] sm:$0xff] %v6718_v18  ;;  %v6724_v19 = vadd.f32 %v10010_v15, %v812_v51  ;;  %v6727_v8 = vadd.f32 %v10012_v7, %v812_v51  ;;  %v10014_v49 = vld [vmem:[#allocation192_spill] sm:$0xff]  ;;  %v10016_v54 = vld [vmem:[#allocation193_spill] sm:$0xff]  ;;  %v10018_v13 = vld [vmem:[#allocation194_spill] sm:$0xff] }
 0x1bc   :  { %10005 = vst [vmem:[#allocation187_spill] sm:$0xff] %v6715_v5  ;;  %10009 = vst [vmem:[#allocation189_spill] sm:$0xff] %v6721_v57  ;;  %v6730_v55 = vadd.f32 %v10014_v49, %v812_v51  ;;  %v6733_v47 = vadd.f32 %v10016_v54, %v812_v51  ;;  %v6736_v33 = vadd.f32 %v10018_v13, %v812_v51  ;;  %v203_v15 = vld [vmem:[%s8929_s3 + $0x1a8] sm:$0xff]  ;;  %v202_v54 = vld [vmem:[%s8929_s3 + $0x1a0] sm:$0xff] }
 0x1bd   :  { %10011 = vst [vmem:[#allocation190_spill] sm:$0xff] %v6724_v19  ;;  %10013 = vst [vmem:[#allocation191_spill] sm:$0xff] %v6727_v8  ;;  %v10020_v1 = vld [vmem:[#allocation195_spill] sm:$0xff]  ;;  %v10022_v60 = vld [vmem:[#allocation196_spill] sm:$0xff]  ;;  %1319 = vperm.xlu1 %3842, %v203_v15   ;;  %1314 = vperm.xlu0 %3841, %v202_v54  }
 0x1be   :  { %10015 = vst [vmem:[#allocation192_spill] sm:$0xff] %v6730_v55  ;;  %10017 = vst [vmem:[#allocation193_spill] sm:$0xff] %v6733_v47  ;;  %v6753_v4 = vadd.f32 %v807_v3, %v10020_v1  ;;  %v6756_v18 = vadd.f32 %v10022_v60, %v807_v3  ;;  %v10024_v7 = vld [vmem:[#allocation197_spill] sm:$0xff]  ;;  %v10026_v19 = vld [vmem:[#allocation198_spill] sm:$0xff]  ;;  %v822_v60 = vpop.permute.xlu1 %821 }
 0x1bf   :  { %10019 = vst [vmem:[#allocation194_spill] sm:$0xff] %v6736_v33  ;;  %v6759_v49 = vadd.f32 %v10024_v7, %v807_v3  ;;  %v6762_v57 = vadd.f32 %v10026_v19, %v807_v3  ;;  %v10028_v51 = vld [vmem:[#allocation199_spill] sm:$0xff]  ;;  %v10030_v2 = vld [vmem:[#allocation200_spill] sm:$0xff]  ;;  %v10032_v17 = vld [vmem:[#allocation201_spill] sm:$0xff] }
 0x1c0   :  { %10021 = vst [vmem:[#allocation195_spill] sm:$0xff] %v6753_v4  ;;  %10023 = vst [vmem:[#allocation196_spill] sm:$0xff] %v6756_v18  ;;  %v6765_v8 = vadd.f32 %v10028_v51, %v807_v3  ;;  %v6768_v13 = vadd.f32 %v10030_v2, %v807_v3  ;;  %v6771_v33 = vadd.f32 %v10032_v17, %v807_v3  ;;  %v10034_v1 = vld [vmem:[#allocation202_spill] sm:$0xff]  ;;  %v205_v19 = vld [vmem:[%s8929_s3 + $0x1b8] sm:$0xff] }
 0x1c1   :  { %10025 = vst [vmem:[#allocation197_spill] sm:$0xff] %v6759_v49  ;;  %10027 = vst [vmem:[#allocation198_spill] sm:$0xff] %v6762_v57  ;;  %v6774_v47 = vadd.f32 %v10034_v1, %v807_v3  ;;  %v204_v17 = vld [vmem:[%s8929_s3 + $0x1b0] sm:$0xff]  ;;  %v10038_v7 = vld [vmem:[#allocation204_spill] sm:$0xff]  ;;  %1329 = vperm.xlu1 %3842, %v205_v19  }
 0x1c2   :  { %10029 = vst [vmem:[#allocation199_spill] sm:$0xff] %v6765_v8  ;;  %10031 = vst [vmem:[#allocation200_spill] sm:$0xff] %v6768_v13  ;;  %v10036_v5 = vld [vmem:[#allocation203_spill] sm:$0xff]  ;;  %v6794_v18 = vadd.f32 %v10038_v7, %v822_v60  ;;  %v10040_v51 = vld [vmem:[#allocation205_spill] sm:$0xff]  ;;  %v817_v7 = vpop.permute.xlu0 %816  ;;  %1324 = vperm.xlu0 %3841, %v204_v17  }
 0x1c3   :  { %10033 = vst [vmem:[#allocation201_spill] sm:$0xff] %v6771_v33  ;;  %10035 = vst [vmem:[#allocation202_spill] sm:$0xff] %v6774_v47  ;;  %v6791_v15 = vadd.f32 %v822_v60, %v10036_v5  ;;  %v6797_v2 = vadd.f32 %v10040_v51, %v822_v60  ;;  %v10042_v57 = vld [vmem:[#allocation206_spill] sm:$0xff]  ;;  %v10044_v3 = vld [vmem:[#allocation207_spill] sm:$0xff] }
 0x1c4   :  { %10039 = vst [vmem:[#allocation204_spill] sm:$0xff] %v6794_v18  ;;  %v6800_v49 = vadd.f32 %v10042_v57, %v822_v60  ;;  %v6803_v8 = vadd.f32 %v10044_v3, %v822_v60  ;;  %v10046_v54 = vld [vmem:[#allocation208_spill] sm:$0xff]  ;;  %v10048_v55 = vld [vmem:[#allocation209_spill] sm:$0xff]  ;;  %v10050_v5 = vld [vmem:[#allocation210_spill] sm:$0xff] }
 0x1c5   :  { %10037 = vst [vmem:[#allocation203_spill] sm:$0xff] %v6791_v15  ;;  %10041 = vst [vmem:[#allocation205_spill] sm:$0xff] %v6797_v2  ;;  %v6806_v1 = vadd.f32 %v10046_v54, %v822_v60  ;;  %v6809_v47 = vadd.f32 %v10048_v55, %v822_v60  ;;  %v6812_v33 = vadd.f32 %v10050_v5, %v822_v60  ;;  %v207_v57 = vld [vmem:[%s8929_s3 + $0x1c8] sm:$0xff]  ;;  %v206_v55 = vld [vmem:[%s8929_s3 + $0x1c0] sm:$0xff] }
 0x1c6   :  { %10043 = vst [vmem:[#allocation206_spill] sm:$0xff] %v6800_v49  ;;  %10045 = vst [vmem:[#allocation207_spill] sm:$0xff] %v6803_v8  ;;  %v10052_v4 = vld [vmem:[#allocation211_spill] sm:$0xff]  ;;  %v10054_v51 = vld [vmem:[#allocation212_spill] sm:$0xff]  ;;  %1339 = vperm.xlu1 %3842, %v207_v57   ;;  %1334 = vperm.xlu0 %3841, %v206_v55  }
 0x1c7   :  { %10047 = vst [vmem:[#allocation208_spill] sm:$0xff] %v6806_v1  ;;  %10049 = vst [vmem:[#allocation209_spill] sm:$0xff] %v6809_v47  ;;  %v6829_v19 = vadd.f32 %v817_v7, %v10052_v4  ;;  %v6832_v18 = vadd.f32 %v10054_v51, %v817_v7  ;;  %v10056_v3 = vld [vmem:[#allocation213_spill] sm:$0xff]  ;;  %v10058_v49 = vld [vmem:[#allocation214_spill] sm:$0xff]  ;;  %v832_v51 = vpop.permute.xlu1 %831 }
 0x1c8   :  { %10051 = vst [vmem:[#allocation210_spill] sm:$0xff] %v6812_v33  ;;  %v6835_v54 = vadd.f32 %v10056_v3, %v817_v7  ;;  %v6838_v2 = vadd.f32 %v10058_v49, %v817_v7  ;;  %v10060_v60 = vld [vmem:[#allocation215_spill] sm:$0xff]  ;;  %v10062_v17 = vld [vmem:[#allocation216_spill] sm:$0xff]  ;;  %v10064_v13 = vld [vmem:[#allocation217_spill] sm:$0xff] }
 0x1c9   :  { %10053 = vst [vmem:[#allocation211_spill] sm:$0xff] %v6829_v19  ;;  %10055 = vst [vmem:[#allocation212_spill] sm:$0xff] %v6832_v18  ;;  %v6841_v8 = vadd.f32 %v10060_v60, %v817_v7  ;;  %v6844_v5 = vadd.f32 %v10062_v17, %v817_v7  ;;  %v6847_v33 = vadd.f32 %v10064_v13, %v817_v7  ;;  %v10066_v4 = vld [vmem:[#allocation218_spill] sm:$0xff]  ;;  %v209_v49 = vld [vmem:[%s8929_s3 + $0x1d8] sm:$0xff] }
 0x1ca   :  { %10057 = vst [vmem:[#allocation213_spill] sm:$0xff] %v6835_v54  ;;  %10059 = vst [vmem:[#allocation214_spill] sm:$0xff] %v6838_v2  ;;  %v6850_v47 = vadd.f32 %v10066_v4, %v817_v7  ;;  %v208_v13 = vld [vmem:[%s8929_s3 + $0x1d0] sm:$0xff]  ;;  %v10070_v3 = vld [vmem:[#allocation220_spill] sm:$0xff]  ;;  %1349 = vperm.xlu1 %3842, %v209_v49  }
 0x1cb   :  { %10061 = vst [vmem:[#allocation215_spill] sm:$0xff] %v6841_v8  ;;  %10063 = vst [vmem:[#allocation216_spill] sm:$0xff] %v6844_v5  ;;  %v10068_v15 = vld [vmem:[#allocation219_spill] sm:$0xff]  ;;  %v6870_v18 = vadd.f32 %v10070_v3, %v832_v51  ;;  %v10072_v60 = vld [vmem:[#allocation221_spill] sm:$0xff]  ;;  %v827_v3 = vpop.permute.xlu0 %826  ;;  %1344 = vperm.xlu0 %3841, %v208_v13  }
 0x1cc   :  { %10065 = vst [vmem:[#allocation217_spill] sm:$0xff] %v6847_v33  ;;  %10067 = vst [vmem:[#allocation218_spill] sm:$0xff] %v6850_v47  ;;  %v6867_v57 = vadd.f32 %v832_v51, %v10068_v15  ;;  %v6873_v17 = vadd.f32 %v10072_v60, %v832_v51  ;;  %v10074_v2 = vld [vmem:[#allocation222_spill] sm:$0xff]  ;;  %v10076_v7 = vld [vmem:[#allocation223_spill] sm:$0xff] }
 0x1cd   :  { %10071 = vst [vmem:[#allocation220_spill] sm:$0xff] %v6870_v18  ;;  %v6876_v54 = vadd.f32 %v10074_v2, %v832_v51  ;;  %v6879_v8 = vadd.f32 %v10076_v7, %v832_v51  ;;  %v10078_v55 = vld [vmem:[#allocation224_spill] sm:$0xff]  ;;  %v10080_v1 = vld [vmem:[#allocation225_spill] sm:$0xff]  ;;  %v10082_v15 = vld [vmem:[#allocation226_spill] sm:$0xff] }
 0x1ce   :  { %10069 = vst [vmem:[#allocation219_spill] sm:$0xff] %v6867_v57  ;;  %10073 = vst [vmem:[#allocation221_spill] sm:$0xff] %v6873_v17  ;;  %v6882_v4 = vadd.f32 %v10078_v55, %v832_v51  ;;  %v6885_v47 = vadd.f32 %v10080_v1, %v832_v51  ;;  %v6888_v33 = vadd.f32 %v10082_v15, %v832_v51  ;;  %v211_v2 = vld [vmem:[%s8929_s3 + $0x1e8] sm:$0xff]  ;;  %v210_v1 = vld [vmem:[%s8929_s3 + $0x1e0] sm:$0xff] }
 0x1cf   :  { %10075 = vst [vmem:[#allocation222_spill] sm:$0xff] %v6876_v54  ;;  %10077 = vst [vmem:[#allocation223_spill] sm:$0xff] %v6879_v8  ;;  %v10084_v19 = vld [vmem:[#allocation227_spill] sm:$0xff]  ;;  %v10086_v60 = vld [vmem:[#allocation228_spill] sm:$0xff]  ;;  %1359 = vperm.xlu1 %3842, %v211_v2   ;;  %1354 = vperm.xlu0 %3841, %v210_v1  }
 0x1d0   :  { %10079 = vst [vmem:[#allocation224_spill] sm:$0xff] %v6882_v4  ;;  %10081 = vst [vmem:[#allocation225_spill] sm:$0xff] %v6885_v47  ;;  %v6905_v49 = vadd.f32 %v827_v3, %v10084_v19  ;;  %v6908_v18 = vadd.f32 %v10086_v60, %v827_v3  ;;  %v10088_v7 = vld [vmem:[#allocation229_spill] sm:$0xff]  ;;  %v10090_v54 = vld [vmem:[#allocation230_spill] sm:$0xff]  ;;  %v842_v60 = vpop.permute.xlu1 %841 }
 0x1d1   :  { %10083 = vst [vmem:[#allocation226_spill] sm:$0xff] %v6888_v33  ;;  %v6911_v55 = vadd.f32 %v10088_v7, %v827_v3  ;;  %v6914_v17 = vadd.f32 %v10090_v54, %v827_v3  ;;  %v10092_v51 = vld [vmem:[#allocation231_spill] sm:$0xff]  ;;  %v10094_v13 = vld [vmem:[#allocation232_spill] sm:$0xff]  ;;  %v10096_v5 = vld [vmem:[#allocation233_spill] sm:$0xff] }
 0x1d2   :  { %10085 = vst [vmem:[#allocation227_spill] sm:$0xff] %v6905_v49  ;;  %10087 = vst [vmem:[#allocation228_spill] sm:$0xff] %v6908_v18  ;;  %v6917_v8 = vadd.f32 %v10092_v51, %v827_v3  ;;  %v6920_v15 = vadd.f32 %v10094_v13, %v827_v3  ;;  %v6923_v33 = vadd.f32 %v10096_v5, %v827_v3  ;;  %v10098_v19 = vld [vmem:[#allocation234_spill] sm:$0xff]  ;;  %v213_v54 = vld [vmem:[%s8929_s3 + $0x1f8] sm:$0xff] }
 0x1d3   :  { %10089 = vst [vmem:[#allocation229_spill] sm:$0xff] %v6911_v55  ;;  %10091 = vst [vmem:[#allocation230_spill] sm:$0xff] %v6914_v17  ;;  %v6926_v47 = vadd.f32 %v10098_v19, %v827_v3  ;;  %v212_v5 = vld [vmem:[%s8929_s3 + $0x1f0] sm:$0xff]  ;;  %v10102_v7 = vld [vmem:[#allocation236_spill] sm:$0xff]  ;;  %1369 = vperm.xlu1 %3842, %v213_v54   ;;  %s3868_s3 = smov [#allocation3]  }
 0x1d4   :  { %10093 = vst [vmem:[#allocation231_spill] sm:$0xff] %v6917_v8  ;;  %10095 = vst [vmem:[#allocation232_spill] sm:$0xff] %v6920_v15  ;;  %v10100_v57 = vld [vmem:[#allocation235_spill] sm:$0xff]  ;;  %v6946_v18 = vadd.f32 %v10102_v7, %v842_v60  ;;  %v10104_v51 = vld [vmem:[#allocation237_spill] sm:$0xff]  ;;  %v837_v7 = vpop.permute.xlu0 %836  ;;  %1364 = vperm.xlu0 %3841, %v212_v5   ;;  %s3831_s30 = sshll.u32 %s3868_s3, 4  ;;  %s3832_s30 = int_to_ptr.vmem [resolvable:$true] %s3831_s30 }
 0x1d5   :  { %10097 = vst [vmem:[#allocation233_spill] sm:$0xff] %v6923_v33  ;;  %10099 = vst [vmem:[#allocation234_spill] sm:$0xff] %v6926_v47  ;;  %v6943_v2 = vadd.f32 %v842_v60, %v10100_v57  ;;  %v6949_v13 = vadd.f32 %v10104_v51, %v842_v60  ;;  %v10106_v17 = vld [vmem:[#allocation238_spill] sm:$0xff]  ;;  %v10108_v3 = vld [vmem:[#allocation239_spill] sm:$0xff]  ;;  %s3843_s8 = scalar_lea.vmem %s3832_s30, 128  ;;  %p3848_p1 = scmp.lt.s32.totalorder %s3832_s30, %s3832_s30 }
 0x1d6   :  { %10103 = vst [vmem:[#allocation236_spill] sm:$0xff] %v6946_v18  ;;  %v6952_v55 = vadd.f32 %v10106_v17, %v842_v60  ;;  %v6955_v8 = vadd.f32 %v10108_v3, %v842_v60  ;;  %v10110_v1 = vld [vmem:[#allocation240_spill] sm:$0xff]  ;;  %v10112_v4 = vld [vmem:[#allocation241_spill] sm:$0xff]  ;;  %v10114_v57 = vld [vmem:[#allocation242_spill] sm:$0xff]  ;;  %p3844_p0 = scmp.ne.s32.totalorder %s3832_s30, %s3843_s8  ;;  %p3849_p2 = scmp.lt.s32.totalorder %s3843_s8, %s3843_s8 }
 0x1d7   :  { %10101 = vst [vmem:[#allocation235_spill] sm:$0xff] %v6943_v2  ;;  %10105 = vst [vmem:[#allocation237_spill] sm:$0xff] %v6949_v13  ;;  %v6958_v19 = vadd.f32 %v10110_v1, %v842_v60  ;;  %v6961_v47 = vadd.f32 %v10112_v4, %v842_v60  ;;  %v6964_v33 = vadd.f32 %v10114_v57, %v842_v60  ;;  %v10116_v60 = vld [vmem:[#allocation243_spill] sm:$0xff]  ;;  %v10118_v5 = vld [vmem:[#allocation244_spill] sm:$0xff] }
 0x1d8   :  { %10107 = vst [vmem:[#allocation238_spill] sm:$0xff] %v6952_v55  ;;  %10109 = vst [vmem:[#allocation239_spill] sm:$0xff] %v6955_v8  ;;  %v6975_v57 = vadd.f32 %v837_v7, %v10116_v60  ;;  %v6978_v37 = vadd.f32 %v10118_v5, %v837_v7  ;;  %v10120_v51 = vld [vmem:[#allocation245_spill] sm:$0xff]  ;;  %v10122_v54 = vld [vmem:[#allocation246_spill] sm:$0xff]  ;;  %v852_v5 = vpop.permute.xlu1 %851  ;;  %p3850_p3 = por %p3849_p2, %p3848_p1 }
 0x1d9   :  { %10111 = vst [vmem:[#allocation240_spill] sm:$0xff] %v6958_v19  ;;  %10113 = vst [vmem:[#allocation241_spill] sm:$0xff] %v6961_v47  ;;  %v6981_v17 = vadd.f32 %v10120_v51, %v837_v7  ;;  %v6984_v13 = vadd.f32 %v10122_v54, %v837_v7  ;;  %v10124_v3 = vld [vmem:[#allocation247_spill] sm:$0xff]  ;;  %v10126_v1 = vld [vmem:[#allocation248_spill] sm:$0xff] }
 0x1da   :  { %10115 = vst [vmem:[#allocation242_spill] sm:$0xff] %v6964_v33  ;;  %10117 = vst [vmem:[#allocation243_spill] sm:$0xff] %v6975_v57  ;;  %v6987_v15 = vadd.f32 %v10124_v3, %v837_v7  ;;  %v6990_v19 = vadd.f32 %v10126_v1, %v837_v7  ;;  %v10128_v4 = vld [vmem:[#allocation249_spill] sm:$0xff]  ;;  %v10130_v60 = vld [vmem:[#allocation250_spill] sm:$0xff]  ;;  %p3851_p4 = pnand %p3850_p3, %p3844_p0 }
 0x1db   :  { %10119 = vst [vmem:[#allocation244_spill] sm:$0xff] %v6978_v37  ;;  %10121 = vst [vmem:[#allocation245_spill] sm:$0xff] %v6981_v17  ;;  %v6993_v49 = vadd.f32 %v10128_v4, %v837_v7  ;;  %v6996_v33 = vadd.f32 %v10130_v60, %v837_v7  ;;  %v10132_v18 = vld [vmem:[#allocation251_spill] sm:$0xff]  ;;  %v10134_v60 = vld [vmem:[#allocation252_spill] sm:$0xff] }
 0x1dc   :  { %10123 = vst [vmem:[#allocation246_spill] sm:$0xff] %v6984_v13  ;;  %10125 = vst [vmem:[#allocation247_spill] sm:$0xff] %v6987_v15  ;;  %v7007_v7 = vadd.f32 %v852_v5, %v10132_v18  ;;  %v7010_v2 = vadd.f32 %v10134_v60, %v852_v5  ;;  %v10136_v47 = vld [vmem:[#allocation253_spill] sm:$0xff]  ;;  %v10138_v54 = vld [vmem:[#allocation254_spill] sm:$0xff]  ;;  %v847_v60 = vpop.permute.xlu0 %846 }
 0x1dd   :  { %10127 = vst [vmem:[#allocation248_spill] sm:$0xff] %v6990_v19  ;;  %10129 = vst [vmem:[#allocation249_spill] sm:$0xff] %v6993_v49  ;;  %v7013_v51 = vadd.f32 %v10136_v47, %v852_v5  ;;  %v7016_v17 = vadd.f32 %v10138_v54, %v852_v5  ;;  %v10140_v8 = vld [vmem:[#allocation255_spill] sm:$0xff]  ;;  %v10142_v1 = vld [vmem:[#allocation256_spill] sm:$0xff] }
 0x1de   :  { %10131 = vst [vmem:[#allocation250_spill] sm:$0xff] %v6996_v33  ;;  %10133 = vst [vmem:[#allocation251_spill] sm:$0xff] %v7007_v7  ;;  %v7019_v3 = vadd.f32 %v10140_v8, %v852_v5  ;;  %v7022_v19 = vadd.f32 %v10142_v1, %v852_v5  ;;  %v10144_v55 = vld [vmem:[#allocation257_spill] sm:$0xff]  ;;  %v10146_v18 = vld [vmem:[#allocation258_spill] sm:$0xff] }
 0x1df   :  { %10135 = vst [vmem:[#allocation252_spill] sm:$0xff] %v7010_v2  ;;  %10137 = vst [vmem:[#allocation253_spill] sm:$0xff] %v7013_v51  ;;  %v7025_v4 = vadd.f32 %v10144_v55, %v852_v5  ;;  %v7028_v33 = vadd.f32 %v10146_v18, %v852_v5  ;;  %v10148_v37 = vld [vmem:[#allocation259_spill] sm:$0xff]  ;;  %v10150_v18 = vld [vmem:[#allocation260_spill] sm:$0xff] }
 0x1e0   :  { %10139 = vst [vmem:[#allocation254_spill] sm:$0xff] %v7016_v17  ;;  %10141 = vst [vmem:[#allocation255_spill] sm:$0xff] %v7019_v3  ;;  %v7039_v5 = vadd.f32 %v847_v60, %v10148_v37  ;;  %v7042_v57 = vadd.f32 %v10150_v18, %v847_v60  ;;  %v10152_v49 = vld [vmem:[#allocation261_spill] sm:$0xff]  ;;  %v10154_v54 = vld [vmem:[#allocation262_spill] sm:$0xff]  ;;  %v862_v18 = vpop.permute.xlu1 %861 }
 0x1e1   :  { %10143 = vst [vmem:[#allocation256_spill] sm:$0xff] %v7022_v19  ;;  %10145 = vst [vmem:[#allocation257_spill] sm:$0xff] %v7025_v4  ;;  %v7045_v47 = vadd.f32 %v10152_v49, %v847_v60  ;;  %v7048_v51 = vadd.f32 %v10154_v54, %v847_v60  ;;  %v10156_v15 = vld [vmem:[#allocation263_spill] sm:$0xff]  ;;  %v10158_v1 = vld [vmem:[#allocation264_spill] sm:$0xff] }
 0x1e2   :  { %10147 = vst [vmem:[#allocation258_spill] sm:$0xff] %v7028_v33  ;;  %10149 = vst [vmem:[#allocation259_spill] sm:$0xff] %v7039_v5  ;;  %v7051_v8 = vadd.f32 %v10156_v15, %v847_v60  ;;  %v7054_v19 = vadd.f32 %v10158_v1, %v847_v60  ;;  %v10160_v13 = vld [vmem:[#allocation265_spill] sm:$0xff]  ;;  %v10162_v37 = vld [vmem:[#allocation266_spill] sm:$0xff] }
 0x1e3   :  { %10151 = vst [vmem:[#allocation260_spill] sm:$0xff] %v7042_v57  ;;  %10153 = vst [vmem:[#allocation261_spill] sm:$0xff] %v7045_v47  ;;  %v7057_v55 = vadd.f32 %v10160_v13, %v847_v60  ;;  %v7060_v33 = vadd.f32 %v10162_v37, %v847_v60  ;;  %v10164_v2 = vld [vmem:[#allocation267_spill] sm:$0xff]  ;;  %v10166_v37 = vld [vmem:[#allocation268_spill] sm:$0xff] }
 0x1e4   :  { %10155 = vst [vmem:[#allocation262_spill] sm:$0xff] %v7048_v51  ;;  %10157 = vst [vmem:[#allocation263_spill] sm:$0xff] %v7051_v8  ;;  %v7071_v60 = vadd.f32 %v862_v18, %v10164_v2  ;;  %v7074_v7 = vadd.f32 %v10166_v37, %v862_v18  ;;  %v10168_v4 = vld [vmem:[#allocation269_spill] sm:$0xff]  ;;  %v10170_v54 = vld [vmem:[#allocation270_spill] sm:$0xff]  ;;  %v857_v37 = vpop.permute.xlu0 %856 }
 0x1e5   :  { %10159 = vst [vmem:[#allocation264_spill] sm:$0xff] %v7054_v19  ;;  %10161 = vst [vmem:[#allocation265_spill] sm:$0xff] %v7057_v55  ;;  %v7077_v49 = vadd.f32 %v10168_v4, %v862_v18  ;;  %v7080_v47 = vadd.f32 %v10170_v54, %v862_v18  ;;  %v10172_v3 = vld [vmem:[#allocation271_spill] sm:$0xff]  ;;  %v10174_v1 = vld [vmem:[#allocation272_spill] sm:$0xff] }
 0x1e6   :  { %10163 = vst [vmem:[#allocation266_spill] sm:$0xff] %v7060_v33  ;;  %10165 = vst [vmem:[#allocation267_spill] sm:$0xff] %v7071_v60  ;;  %v7083_v15 = vadd.f32 %v10172_v3, %v862_v18  ;;  %v7086_v19 = vadd.f32 %v10174_v1, %v862_v18  ;;  %v10176_v17 = vld [vmem:[#allocation273_spill] sm:$0xff]  ;;  %v10178_v2 = vld [vmem:[#allocation274_spill] sm:$0xff] }
 0x1e7   :  { %10167 = vst [vmem:[#allocation268_spill] sm:$0xff] %v7074_v7  ;;  %10169 = vst [vmem:[#allocation269_spill] sm:$0xff] %v7077_v49  ;;  %v7089_v13 = vadd.f32 %v10176_v17, %v862_v18  ;;  %v7092_v33 = vadd.f32 %v10178_v2, %v862_v18  ;;  %v10180_v57 = vld [vmem:[#allocation275_spill] sm:$0xff]  ;;  %v10182_v2 = vld [vmem:[#allocation276_spill] sm:$0xff] }
 0x1e8   :  { %10171 = vst [vmem:[#allocation270_spill] sm:$0xff] %v7080_v47  ;;  %10173 = vst [vmem:[#allocation271_spill] sm:$0xff] %v7083_v15  ;;  %v7103_v18 = vadd.f32 %v857_v37, %v10180_v57  ;;  %v7106_v5 = vadd.f32 %v10182_v2, %v857_v37  ;;  %v10184_v55 = vld [vmem:[#allocation277_spill] sm:$0xff]  ;;  %v10186_v54 = vld [vmem:[#allocation278_spill] sm:$0xff]  ;;  %v872_v2 = vpop.permute.xlu1 %871 }
 0x1e9   :  { %10175 = vst [vmem:[#allocation272_spill] sm:$0xff] %v7086_v19  ;;  %10177 = vst [vmem:[#allocation273_spill] sm:$0xff] %v7089_v13  ;;  %v7109_v4 = vadd.f32 %v10184_v55, %v857_v37  ;;  %v7112_v49 = vadd.f32 %v10186_v54, %v857_v37  ;;  %v10188_v8 = vld [vmem:[#allocation279_spill] sm:$0xff]  ;;  %v10190_v1 = vld [vmem:[#allocation280_spill] sm:$0xff] }
 0x1ea   :  { %10179 = vst [vmem:[#allocation274_spill] sm:$0xff] %v7092_v33  ;;  %10181 = vst [vmem:[#allocation275_spill] sm:$0xff] %v7103_v18  ;;  %v7115_v3 = vadd.f32 %v10188_v8, %v857_v37  ;;  %v7118_v19 = vadd.f32 %v10190_v1, %v857_v37  ;;  %v10192_v51 = vld [vmem:[#allocation281_spill] sm:$0xff]  ;;  %v10194_v57 = vld [vmem:[#allocation282_spill] sm:$0xff] }
 0x1eb   :  { %10183 = vst [vmem:[#allocation276_spill] sm:$0xff] %v7106_v5  ;;  %10185 = vst [vmem:[#allocation277_spill] sm:$0xff] %v7109_v4  ;;  %v7121_v17 = vadd.f32 %v10192_v51, %v857_v37  ;;  %v7124_v33 = vadd.f32 %v10194_v57, %v857_v37  ;;  %v10196_v7 = vld [vmem:[#allocation283_spill] sm:$0xff]  ;;  %v10198_v57 = vld [vmem:[#allocation284_spill] sm:$0xff] }
 0x1ec   :  { %10187 = vst [vmem:[#allocation278_spill] sm:$0xff] %v7112_v49  ;;  %10189 = vst [vmem:[#allocation279_spill] sm:$0xff] %v7115_v3  ;;  %v7135_v37 = vadd.f32 %v872_v2, %v10196_v7  ;;  %v7138_v60 = vadd.f32 %v10198_v57, %v872_v2  ;;  %v10200_v13 = vld [vmem:[#allocation285_spill] sm:$0xff]  ;;  %v10202_v54 = vld [vmem:[#allocation286_spill] sm:$0xff]  ;;  %v867_v57 = vpop.permute.xlu0 %866 }
 0x1ed   :  { %10191 = vst [vmem:[#allocation280_spill] sm:$0xff] %v7118_v19  ;;  %10193 = vst [vmem:[#allocation281_spill] sm:$0xff] %v7121_v17  ;;  %v7141_v55 = vadd.f32 %v10200_v13, %v872_v2  ;;  %v7144_v4 = vadd.f32 %v10202_v54, %v872_v2  ;;  %v10204_v15 = vld [vmem:[#allocation287_spill] sm:$0xff]  ;;  %v10206_v1 = vld [vmem:[#allocation288_spill] sm:$0xff] }
 0x1ee   :  { %10195 = vst [vmem:[#allocation282_spill] sm:$0xff] %v7124_v33  ;;  %10197 = vst [vmem:[#allocation283_spill] sm:$0xff] %v7135_v37  ;;  %v7147_v8 = vadd.f32 %v10204_v15, %v872_v2  ;;  %v7150_v19 = vadd.f32 %v10206_v1, %v872_v2  ;;  %v10208_v47 = vld [vmem:[#allocation289_spill] sm:$0xff]  ;;  %v10210_v7 = vld [vmem:[#allocation290_spill] sm:$0xff] }
 0x1ef   :  { %10199 = vst [vmem:[#allocation284_spill] sm:$0xff] %v7138_v60  ;;  %10201 = vst [vmem:[#allocation285_spill] sm:$0xff] %v7141_v55  ;;  %v7153_v51 = vadd.f32 %v10208_v47, %v872_v2  ;;  %v7156_v33 = vadd.f32 %v10210_v7, %v872_v2  ;;  %v10212_v5 = vld [vmem:[#allocation291_spill] sm:$0xff]  ;;  %v10214_v7 = vld [vmem:[#allocation292_spill] sm:$0xff] }
 0x1f0   :  { %10203 = vst [vmem:[#allocation286_spill] sm:$0xff] %v7144_v4  ;;  %10205 = vst [vmem:[#allocation287_spill] sm:$0xff] %v7147_v8  ;;  %v7167_v2 = vadd.f32 %v867_v57, %v10212_v5  ;;  %v7170_v18 = vadd.f32 %v10214_v7, %v867_v57  ;;  %v10216_v17 = vld [vmem:[#allocation293_spill] sm:$0xff]  ;;  %v10218_v54 = vld [vmem:[#allocation294_spill] sm:$0xff]  ;;  %v882_v7 = vpop.permute.xlu1 %881 }
 0x1f1   :  { %10207 = vst [vmem:[#allocation288_spill] sm:$0xff] %v7150_v19  ;;  %10209 = vst [vmem:[#allocation289_spill] sm:$0xff] %v7153_v51  ;;  %v7173_v13 = vadd.f32 %v10216_v17, %v867_v57  ;;  %v7176_v55 = vadd.f32 %v10218_v54, %v867_v57  ;;  %v10220_v3 = vld [vmem:[#allocation295_spill] sm:$0xff]  ;;  %v10222_v1 = vld [vmem:[#allocation296_spill] sm:$0xff] }
 0x1f2   :  { %10211 = vst [vmem:[#allocation290_spill] sm:$0xff] %v7156_v33  ;;  %10213 = vst [vmem:[#allocation291_spill] sm:$0xff] %v7167_v2  ;;  %v7179_v15 = vadd.f32 %v10220_v3, %v867_v57  ;;  %v7182_v19 = vadd.f32 %v10222_v1, %v867_v57  ;;  %v10224_v49 = vld [vmem:[#allocation297_spill] sm:$0xff]  ;;  %v10226_v5 = vld [vmem:[#allocation298_spill] sm:$0xff] }
 0x1f3   :  { %10215 = vst [vmem:[#allocation292_spill] sm:$0xff] %v7170_v18  ;;  %10217 = vst [vmem:[#allocation293_spill] sm:$0xff] %v7173_v13  ;;  %v7185_v47 = vadd.f32 %v10224_v49, %v867_v57  ;;  %v7188_v33 = vadd.f32 %v10226_v5, %v867_v57  ;;  %v10228_v60 = vld [vmem:[#allocation299_spill] sm:$0xff]  ;;  %v10230_v5 = vld [vmem:[#allocation300_spill] sm:$0xff] }
 0x1f4   :  { %10219 = vst [vmem:[#allocation294_spill] sm:$0xff] %v7176_v55  ;;  %10221 = vst [vmem:[#allocation295_spill] sm:$0xff] %v7179_v15  ;;  %v7199_v57 = vadd.f32 %v882_v7, %v10228_v60  ;;  %v7202_v37 = vadd.f32 %v10230_v5, %v882_v7  ;;  %v10232_v51 = vld [vmem:[#allocation301_spill] sm:$0xff]  ;;  %v10234_v54 = vld [vmem:[#allocation302_spill] sm:$0xff]  ;;  %v877_v5 = vpop.permute.xlu0 %876 }
 0x1f5   :  { %10223 = vst [vmem:[#allocation296_spill] sm:$0xff] %v7182_v19  ;;  %10225 = vst [vmem:[#allocation297_spill] sm:$0xff] %v7185_v47  ;;  %v7205_v17 = vadd.f32 %v10232_v51, %v882_v7  ;;  %v7208_v13 = vadd.f32 %v10234_v54, %v882_v7  ;;  %v10236_v8 = vld [vmem:[#allocation303_spill] sm:$0xff]  ;;  %v10238_v1 = vld [vmem:[#allocation304_spill] sm:$0xff] }
 0x1f6   :  { %10227 = vst [vmem:[#allocation298_spill] sm:$0xff] %v7188_v33  ;;  %10229 = vst [vmem:[#allocation299_spill] sm:$0xff] %v7199_v57  ;;  %v7211_v3 = vadd.f32 %v10236_v8, %v882_v7  ;;  %v7214_v19 = vadd.f32 %v10238_v1, %v882_v7  ;;  %v10240_v4 = vld [vmem:[#allocation305_spill] sm:$0xff]  ;;  %v10242_v60 = vld [vmem:[#allocation306_spill] sm:$0xff] }
 0x1f7   :  { %10231 = vst [vmem:[#allocation300_spill] sm:$0xff] %v7202_v37  ;;  %10233 = vst [vmem:[#allocation301_spill] sm:$0xff] %v7205_v17  ;;  %v7217_v49 = vadd.f32 %v10240_v4, %v882_v7  ;;  %v7220_v33 = vadd.f32 %v10242_v60, %v882_v7  ;;  %v10244_v18 = vld [vmem:[#allocation307_spill] sm:$0xff]  ;;  %v10246_v60 = vld [vmem:[#allocation308_spill] sm:$0xff] }
 0x1f8   :  { %10235 = vst [vmem:[#allocation302_spill] sm:$0xff] %v7208_v13  ;;  %10237 = vst [vmem:[#allocation303_spill] sm:$0xff] %v7211_v3  ;;  %v7231_v7 = vadd.f32 %v877_v5, %v10244_v18  ;;  %v7234_v2 = vadd.f32 %v10246_v60, %v877_v5  ;;  %v10248_v47 = vld [vmem:[#allocation309_spill] sm:$0xff]  ;;  %v10250_v54 = vld [vmem:[#allocation310_spill] sm:$0xff]  ;;  %v892_v60 = vpop.permute.xlu1 %891  ;;  %v887_v37 = vpop.permute.xlu0 %886 }
 0x1f9   :  { %10239 = vst [vmem:[#allocation304_spill] sm:$0xff] %v7214_v19  ;;  %10241 = vst [vmem:[#allocation305_spill] sm:$0xff] %v7217_v49  ;;  %v7237_v51 = vadd.f32 %v10248_v47, %v877_v5  ;;  %v7240_v17 = vadd.f32 %v10250_v54, %v877_v5  ;;  %v10252_v15 = vld [vmem:[#allocation311_spill] sm:$0xff]  ;;  %v10254_v1 = vld [vmem:[#allocation312_spill] sm:$0xff] }
 0x1fa   :  { %10243 = vst [vmem:[#allocation306_spill] sm:$0xff] %v7220_v33  ;;  %10245 = vst [vmem:[#allocation307_spill] sm:$0xff] %v7231_v7  ;;  %v7243_v8 = vadd.f32 %v10252_v15, %v877_v5  ;;  %v7246_v19 = vadd.f32 %v10254_v1, %v877_v5  ;;  %v10256_v55 = vld [vmem:[#allocation313_spill] sm:$0xff]  ;;  %v10258_v18 = vld [vmem:[#allocation314_spill] sm:$0xff] }
 0x1fb   :  { %10247 = vst [vmem:[#allocation308_spill] sm:$0xff] %v7234_v2  ;;  %10249 = vst [vmem:[#allocation309_spill] sm:$0xff] %v7237_v51  ;;  %v7249_v4 = vadd.f32 %v10256_v55, %v877_v5  ;;  %v7252_v33 = vadd.f32 %v10258_v18, %v877_v5  ;;  %v10260_v5 = vld [vmem:[#allocation315_spill] sm:$0xff]  ;;  %v10262_v57 = vld [vmem:[#allocation316_spill] sm:$0xff] }
 0x1fc   :  { %10251 = vst [vmem:[#allocation310_spill] sm:$0xff] %v7240_v17  ;;  %10253 = vst [vmem:[#allocation311_spill] sm:$0xff] %v7243_v8  ;;  %v7263_v18 = vadd.f32 %v892_v60, %v10260_v5  ;;  %v7266_v49 = vadd.f32 %v10262_v57, %v892_v60  ;;  %v10264_v47 = vld [vmem:[#allocation317_spill] sm:$0xff]  ;;  %v10266_v54 = vld [vmem:[#allocation318_spill] sm:$0xff]  ;;  %v902_v51 = vpop.permute.xlu1 %901 }
 0x1fd   :  { %10255 = vst [vmem:[#allocation312_spill] sm:$0xff] %v7246_v19  ;;  %10257 = vst [vmem:[#allocation313_spill] sm:$0xff] %v7249_v4  ;;  %v7269_v2 = vadd.f32 %v10264_v47, %v892_v60  ;;  %v7272_v3 = vadd.f32 %v10266_v54, %v892_v60  ;;  %v10268_v15 = vld [vmem:[#allocation319_spill] sm:$0xff]  ;;  %v10270_v1 = vld [vmem:[#allocation320_spill] sm:$0xff] }
 0x1fe   :  { %10259 = vst [vmem:[#allocation314_spill] sm:$0xff] %v7252_v33  ;;  %10261 = vst [vmem:[#allocation315_spill] sm:$0xff] %v7263_v18  ;;  %v7275_v8 = vadd.f32 %v10268_v15, %v892_v60  ;;  %v7278_v13 = vadd.f32 %v10270_v1, %v892_v60  ;;  %v10272_v55 = vld [vmem:[#allocation321_spill] sm:$0xff]  ;;  %v10274_v5 = vld [vmem:[#allocation322_spill] sm:$0xff] }
 0x1ff   :  { %10263 = vst [vmem:[#allocation316_spill] sm:$0xff] %v7266_v49  ;;  %10265 = vst [vmem:[#allocation317_spill] sm:$0xff] %v7269_v2  ;;  %v7281_v33 = vadd.f32 %v10272_v55, %v892_v60  ;;  %v7284_v4 = vadd.f32 %v10274_v5, %v892_v60  ;;  %v10276_v7 = vld [vmem:[#allocation323_spill] sm:$0xff]  ;;  %v10277_v5 = vld [vmem:[#allocation324_spill] sm:$0xff] }
 0x200   :  { %10267 = vst [vmem:[#allocation318_spill] sm:$0xff] %v7272_v3  ;;  %10269 = vst [vmem:[#allocation319_spill] sm:$0xff] %v7275_v8  ;;  %v7295_v60 = vadd.f32 %v887_v37, %v10276_v7  ;;  %v7298_v57 = vadd.f32 %v10277_v5, %v887_v37  ;;  %v10279_v47 = vld [vmem:[#allocation325_spill] sm:$0xff]  ;;  %v10281_v19 = vld [vmem:[#allocation326_spill] sm:$0xff]  ;;  %v897_v5 = vpop.permute.xlu0 %896 }
 0x201   :  { %10271 = vst [vmem:[#allocation320_spill] sm:$0xff] %v7278_v13  ;;  %10273 = vst [vmem:[#allocation321_spill] sm:$0xff] %v7281_v33  ;;  %v7301_v49 = vadd.f32 %v10279_v47, %v887_v37  ;;  %v7304_v54 = vadd.f32 %v10281_v19, %v887_v37  ;;  %v10283_v15 = vld [vmem:[#allocation327_spill] sm:$0xff]  ;;  %v10285_v17 = vld [vmem:[#allocation328_spill] sm:$0xff] }
 0x202   :  { %10275 = vst [vmem:[#allocation322_spill] sm:$0xff] %v7284_v4  ;;  %10278 = vst [vmem:[#allocation323_spill] sm:$0xff] %v7298_v57  ;;  %v7307_v8 = vadd.f32 %v10283_v15, %v887_v37  ;;  %v7310_v1 = vadd.f32 %v10285_v17, %v887_v37  ;;  %v10287_v55 = vld [vmem:[#allocation329_spill] sm:$0xff]  ;;  %v10289_v7 = vld [vmem:[#allocation330_spill] sm:$0xff] }
 0x203   :  { %10280 = vst [vmem:[#allocation324_spill] sm:$0xff] %v7301_v49  ;;  %10282 = vst [vmem:[#allocation325_spill] sm:$0xff] %v7304_v54  ;;  %v7313_v4 = vadd.f32 %v10287_v55, %v887_v37  ;;  %v7316_v33 = vadd.f32 %v10289_v7, %v887_v37  ;;  %v10291_v18 = vld [vmem:[#allocation331_spill] sm:$0xff]  ;;  %v10292_v7 = vld [vmem:[#allocation332_spill] sm:$0xff] }
 0x204   :  { %10284 = vst [vmem:[#allocation326_spill] sm:$0xff] %v7307_v8  ;;  %10286 = vst [vmem:[#allocation327_spill] sm:$0xff] %v7310_v1  ;;  %v7327_v37 = vadd.f32 %v902_v51, %v10291_v18  ;;  %v7330_v63 = vadd.f32 %v10292_v7, %v902_v51  ;;  %v10294_v13 = vld [vmem:[#allocation333_spill] sm:$0xff]  ;;  %v10296_v19 = vld [vmem:[#allocation334_spill] sm:$0xff]  ;;  %v7348_v18 = vadd.f32 %v5532_v12, %v902_v51  ;;  %v912_v7 = vpop.permute.xlu1 %911  ;;  %v907_v54 = vpop.permute.xlu0 %906 }
 0x205   :  { %10288 = vst [vmem:[#allocation328_spill] sm:$0xff] %v7313_v4  ;;  %10290 = vst [vmem:[#allocation329_spill] sm:$0xff] %v7316_v33  ;;  %v7333_v47 = vadd.f32 %v10294_v13, %v902_v51  ;;  %v7336_v49 = vadd.f32 %v10296_v19, %v902_v51  ;;  %v10298_v3 = vld [vmem:[#allocation335_spill] sm:$0xff]  ;;  %v10300_v17 = vld [vmem:[#allocation336_spill] sm:$0xff] }
 0x206   :  { %10293 = vst [vmem:[#allocation330_spill] sm:$0xff] %v7330_v63  ;;  %v7339_v15 = vadd.f32 %v10298_v3, %v902_v51  ;;  %v7342_v1 = vadd.f32 %v10300_v17, %v902_v51  ;;  %v10302_v2 = vld [vmem:[#allocation337_spill] sm:$0xff]  ;;  %10304 = vst [vmem:[#allocation336_spill] sm:$0xff] %v7348_v18  ;;  %v10305_v12 = vld [vmem:[#allocation338_spill] sm:$0xff] }
 0x207   :  { %10295 = vst [vmem:[#allocation331_spill] sm:$0xff] %v7333_v47  ;;  %10297 = vst [vmem:[#allocation332_spill] sm:$0xff] %v7336_v49  ;;  %v7345_v55 = vadd.f32 %v10302_v2, %v902_v51  ;;  %v7359_v51 = vadd.f32 %v897_v5, %v10305_v12  ;;  %v10307_v57 = vld [vmem:[#allocation339_spill] sm:$0xff]  ;;  %v10308_v13 = vld [vmem:[#allocation340_spill] sm:$0xff] }
 0x208   :  { %10299 = vst [vmem:[#allocation333_spill] sm:$0xff] %v7339_v15  ;;  %10301 = vst [vmem:[#allocation334_spill] sm:$0xff] %v7342_v1  ;;  %v7362_v33 = vadd.f32 %v10307_v57, %v897_v5  ;;  %v7365_v63 = vadd.f32 %v10308_v13, %v897_v5  ;;  %v10309_v19 = vld [vmem:[#allocation341_spill] sm:$0xff]  ;;  %v10311_v3 = vld [vmem:[#allocation344_spill] sm:$0xff]  ;;  %v7390_v47 = vpop.permute.xlu1 %921 }
 0x209   :  { %10303 = vst [vmem:[#allocation335_spill] sm:$0xff] %v7345_v55  ;;  %10306 = vst [vmem:[#allocation337_spill] sm:$0xff] %v7359_v51  ;;  %v7368_v4 = vadd.f32 %v10309_v19, %v897_v5  ;;  %v7371_v15 = vadd.f32 %v10311_v3, %v897_v5  ;;  %v10312_v17 = vld [vmem:[#allocation345_spill] sm:$0xff]  ;;  %v10314_v2 = vld [vmem:[#allocation346_spill] sm:$0xff] }
 0x20a   :  { %v7374_v8 = vadd.f32 %v10312_v17, %v897_v5  ;;  %v7377_v18 = vadd.f32 %v10314_v2, %v897_v5  ;;  %v10316_v12 = vld [vmem:[#allocation347_spill] sm:$0xff]  ;;  %10318 = vst [vmem:[#allocation344_spill] sm:$0xff] %v7390_v47  ;;  %v10320_v57 = vld [vmem:[#allocation349_spill] sm:$0xff]  ;;  %v10321_v13 = vld [vmem:[#allocation350_spill] sm:$0xff]  ;;  %v7411_v2 = vadd.f32 %v5587_v21, %v912_v7  ;;  %v7433_v47 = vadd.f32 %v5599_v20, %v907_v54 }
 0x20b   :  { %10310 = vst [vmem:[#allocation338_spill] sm:$0xff] %v7368_v4  ;;  %v7380_v55 = vadd.f32 %v10316_v12, %v897_v5  ;;  %v10319_v5 = vld [vmem:[#allocation348_spill] sm:$0xff]  ;;  %v7396_v51 = vadd.f32 %v10320_v57, %v912_v7  ;;  %v7399_v1 = vadd.f32 %v10321_v13, %v912_v7  ;;  %v10322_v19 = vld [vmem:[#allocation351_spill] sm:$0xff]  ;;  %v10325_v17 = vld [vmem:[#allocation353_spill] sm:$0xff]  ;;  %v7416_v57 = vpop.permute.xlu0 %916  ;;  %v10343_v20 = vmax.f32 %v5629_v25, 0.0 }
 0x20c   :  { %10313 = vst [vmem:[#allocation339_spill] sm:$0xff] %v7374_v8  ;;  %10315 = vst [vmem:[#allocation340_spill] sm:$0xff] %v7377_v18  ;;  %v7393_v12 = vadd.f32 %v912_v7, %v10319_v5  ;;  %v7402_v4 = vadd.f32 %v10322_v19, %v912_v7  ;;  %v10323_v3 = vld [vmem:[#allocation352_spill] sm:$0xff]  ;;  %v7408_v18 = vadd.f32 %v10325_v17, %v912_v7  ;;  %v10335_v17 = vld [vmem:[#allocation355_spill] sm:$0xff]  ;;  %v10350_v25 = vmax.f32 %v5660_v16, 0.0 }
 0x20d   :  { %10317 = vst [vmem:[#allocation341_spill] sm:$0xff] %v7380_v55  ;;  %v7405_v49 = vadd.f32 %v10323_v3, %v912_v7  ;;  %10327 = vst [vmem:[#allocation347_spill] sm:$0xff] %v7411_v2  ;;  %v7414_v5 = vadd.f32 %v5590_v38, %v912_v7  ;;  %v7427_v38 = vadd.f32 %v907_v54, %v5593_v42  ;;  %v10333_v3 = vld [vmem:[#allocation354_spill] sm:$0xff]  ;;  %v10337_v21 = vld [vmem:[#allocation356_spill] sm:$0xff]  ;;  %v10344_v2 = vmax.f32 %v5632_v39, 0.0 }
 0x20e   :  { %10326 = vst [vmem:[#allocation346_spill] sm:$0xff] %v7408_v18  ;;  %10329 = vst [vmem:[#allocation349_spill] sm:$0xff] %v7416_v57  ;;  %v7430_v7 = vadd.f32 %v5596_v26, %v907_v54  ;;  %v7436_v19 = vadd.f32 %v5602_v43, %v907_v54  ;;  %v7439_v55 = vadd.f32 %v10333_v3, %v907_v54  ;;  %v10339_v42 = vld [vmem:[#allocation357_spill] sm:$0xff]  ;;  %v1060_v26 = vpop.permute.xlu1 %1059  ;;  %v10345_v3 = vmax.f32 %v5635_v9, 0.0 }
 0x20f   :  { %10324 = vst [vmem:[#allocation345_spill] sm:$0xff] %v7405_v49  ;;  %10328 = vst [vmem:[#allocation348_spill] sm:$0xff] %v7414_v5  ;;  %v7442_v13 = vadd.f32 %v10335_v17, %v907_v54  ;;  %v7445_v8 = vadd.f32 %v10337_v21, %v907_v54  ;;  %v7448_v57 = vadd.f32 %v10339_v42, %v907_v54  ;;  %v1055_v49 = vpop.permute.xlu0 %1054  ;;  %v10341_v54 = vmax.f32 %v5617_v44, 0.0 }
 0x210   :  { %10330 = vst [vmem:[#allocation350_spill] sm:$0xff] %v7427_v38  ;;  %10331 = vst [vmem:[#allocation351_spill] sm:$0xff] %v7433_v47  ;;  %v10342_v5 = vmax.f32 %v5620_v45, 0.0  ;;  %v2036_v43 = vmul.f32 %v10343_v20, %v1060_v26  ;;  %v2698_v17 = vmul.f32 %v10345_v3, %v1060_v26  ;;  %v10346_v18 = vmax.f32 %v5638_v10, 0.0 }
 0x211   :  { %10332 = vst [vmem:[#allocation352_spill] sm:$0xff] %v7436_v19  ;;  %10334 = vst [vmem:[#allocation353_spill] sm:$0xff] %v7439_v55  ;;  %v1373_v42 = vmul.f32 %v1060_v26, %v10341_v54  ;;  %v2367_v19 = vmul.f32 %v10344_v2, %v1060_v26  ;;  %v10347_v21 = vmax.f32 %v5643_v41, 0.0  ;;  %v10348_v44 = vmax.f32 %v5646_v40, 0.0 }
 0x212   :  { %10336 = vst [vmem:[#allocation354_spill] sm:$0xff] %v7442_v13  ;;  %10338 = vst [vmem:[#allocation355_spill] sm:$0xff] %v7445_v8  ;;  %v1705_v38 = vmul.f32 %v10342_v5, %v1060_v26  ;;  %v3029_v8 = vmul.f32 %v10346_v18, %v1060_v26  ;;  %v10349_v45 = vmax.f32 %v5657_v27, 0.0  ;;  %v1704_v20 = vmul.f32 %v10350_v25, %v1055_v49  ;;  %v10356_v27 = vld [vmem:[#allocation358_spill] sm:$0xff]  ;;  %v1070_v16 = vpop.permute.xlu1 %1069 }
 0x213   :  { %10340 = vst [vmem:[#allocation356_spill] sm:$0xff] %v7448_v57  ;;  %v3360_v57 = vmul.f32 %v10347_v21, %v1060_v26  ;;  %v3691_v54 = vmul.f32 %v10348_v44, %v1060_v26  ;;  %v10351_v39 = vmax.f32 %v5669_v46, 0.0  ;;  %v10352_v9 = vmax.f32 %v5672_v48, 0.0 }
 0x214   :  { %v1372_v5 = vmul.f32 %v1055_v49, %v10349_v45  ;;  %v10353_v10 = vmax.f32 %v5675_v52, 0.0  ;;  %v10354_v41 = vmax.f32 %v5678_v53, 0.0  ;;  %v10355_v40 = vmax.f32 %v5683_v23, 0.0  ;;  %v1065_v52 = vpop.permute.xlu0 %1064 }
 0x215   :  { %v2035_v2 = vmul.f32 %v10351_v39, %v1055_v49  ;;  %v2366_v3 = vmul.f32 %v10352_v9, %v1055_v49  ;;  %v10357_v44 = vmax.f32 %v10356_v27, 0.0  ;;  %v1768_v13 = vadd.f32 %v1705_v38, %v1704_v20 }
 0x216   :  { %v2697_v18 = vmul.f32 %v10353_v10, %v1055_v49  ;;  %v3028_v21 = vmul.f32 %v10354_v41, %v1055_v49  ;;  %v3359_v26 = vmul.f32 %v10355_v40, %v1055_v49  ;;  %v1436_v25 = vadd.f32 %v1373_v42, %v1372_v5 }
 0x217   :  { %v3690_v45 = vmul.f32 %v10357_v44, %v1055_v49  ;;  %v2099_v46 = vadd.f32 %v2036_v43, %v2035_v2  ;;  %v2430_v39 = vadd.f32 %v2367_v19, %v2366_v3  ;;  %v10358_v10 = vmax.f32 %v5699_v61, 0.0 }
 0x218   :  { %v2761_v55 = vadd.f32 %v2698_v17, %v2697_v18  ;;  %v3092_v48 = vadd.f32 %v3029_v8, %v3028_v21  ;;  %v3423_v9 = vadd.f32 %v3360_v57, %v3359_v26  ;;  %v10359_v41 = vmax.f32 %v5702_v50, 0.0 }
 0x219   :  { %v3754_v47 = vadd.f32 %v3691_v54, %v3690_v45  ;;  %v1375_v53 = vmul.f32 %v1070_v16, %v10358_v10  ;;  %v10360_v40 = vmax.f32 %v5711_v11, 0.0  ;;  %v10361_v49 = vmax.f32 %v5714_v22, 0.0  ;;  %v10367_v11 = vld [vmem:[#allocation359_spill] sm:$0xff] }
 0x21a   :  { %v1707_v23 = vmul.f32 %v10359_v41, %v1070_v16  ;;  %v10362_v38 = vmax.f32 %v5717_v28, 0.0  ;;  %v10363_v8 = vmax.f32 %v5720_v29, 0.0  ;;  %v10364_v43 = vmax.f32 %v5725_v59, 0.0  ;;  %v10371_v29 = vld [vmem:[#allocation360_spill] sm:$0xff]  ;;  %v10373_v59 = vld [vmem:[#allocation361_spill] sm:$0xff] }
 0x21b   :  { %v2038_v27 = vmul.f32 %v10360_v40, %v1070_v16  ;;  %v2369_v42 = vmul.f32 %v10361_v49, %v1070_v16  ;;  %v10365_v61 = vmax.f32 %v5728_v58, 0.0  ;;  %v10366_v50 = vmax.f32 %v5742_v36, 0.0  ;;  %v10375_v58 = vld [vmem:[#allocation362_spill] sm:$0xff]  ;;  %v10377_v36 = vld [vmem:[#allocation363_spill] sm:$0xff]  ;;  %v1080_v49 = vpop.permute.xlu1 %1079 }
 0x21c   :  { %v2700_v19 = vmul.f32 %v10362_v38, %v1070_v16  ;;  %v3031_v57 = vmul.f32 %v10363_v8, %v1070_v16  ;;  %v3362_v17 = vmul.f32 %v10364_v43, %v1070_v16  ;;  %v10368_v20 = vmax.f32 %v10367_v11, 0.0 }
 0x21d   :  { %v3693_v54 = vmul.f32 %v10365_v61, %v1070_v16  ;;  %v1374_v5 = vmul.f32 %v1065_v52, %v10366_v50  ;;  %v10369_v22 = vmax.f32 %v5756_v24, 0.0  ;;  %v10370_v28 = vmax.f32 %v5760_v62, 0.0 }
 0x21e   :  { %v1706_v2 = vmul.f32 %v10368_v20, %v1065_v52  ;;  %v10372_v21 = vmax.f32 %v10371_v29, 0.0  ;;  %v10374_v44 = vmax.f32 %v10373_v59, 0.0  ;;  %v10376_v16 = vmax.f32 %v10375_v58, 0.0  ;;  %v10379_v20 = vld [vmem:[#allocation364_spill] sm:$0xff]  ;;  %v10381_v29 = vld [vmem:[#allocation365_spill] sm:$0xff] }
 0x21f   :  { %v2037_v3 = vmul.f32 %v10369_v22, %v1065_v52  ;;  %v2368_v18 = vmul.f32 %v10370_v28, %v1065_v52  ;;  %v10378_v41 = vmax.f32 %v10377_v36, 0.0  ;;  %v1437_v38 = vadd.f32 %v1436_v25, %v1374_v5  ;;  %v10385_v36 = vld [vmem:[#allocation367_spill] sm:$0xff]  ;;  %v10387_v25 = vld [vmem:[#allocation20_spill] sm:$0xff] }
 0x220   :  { %v2699_v26 = vmul.f32 %v10372_v21, %v1065_v52  ;;  %v3030_v45 = vmul.f32 %v10374_v44, %v1065_v52  ;;  %v3361_v10 = vmul.f32 %v10376_v16, %v1065_v52  ;;  %v1769_v8 = vadd.f32 %v1768_v13, %v1706_v2  ;;  %v10383_v44 = vld [vmem:[#allocation366_spill] sm:$0xff]  ;;  %v10393_v2 = vld [vmem:[#allocation369_spill] sm:$0xff] }
 0x221   :  { %v3692_v40 = vmul.f32 %v10378_v41, %v1065_v52  ;;  %v2100_v24 = vadd.f32 %v2099_v46, %v2037_v3  ;;  %v2431_v43 = vadd.f32 %v2430_v39, %v2368_v18  ;;  %v10380_v22 = vmax.f32 %v10379_v20, 0.0  ;;  %v10389_v39 = vld [vmem:[#allocation21_spill] sm:$0xff] }
 0x222   :  { %v2762_v61 = vadd.f32 %v2761_v55, %v2699_v26  ;;  %v3093_v62 = vadd.f32 %v3092_v48, %v3030_v45  ;;  %v3424_v50 = vadd.f32 %v3423_v9, %v3361_v10  ;;  %v10382_v21 = vmax.f32 %v10381_v29, 0.0  ;;  %v10391_v9 = vld [vmem:[#allocation368_spill] sm:$0xff]  ;;  %v1075_v26 = vpop.permute.xlu0 %1074 }
 0x223   :  { %v3755_v11 = vadd.f32 %v3754_v47, %v3692_v40  ;;  %v1377_v28 = vmul.f32 %v1080_v49, %v10380_v22  ;;  %v10384_v58 = vmax.f32 %v10383_v44, 0.0  ;;  %v10386_v52 = vmax.f32 %v10385_v36, 0.0 }
 0x224   :  { %v1709_v59 = vmul.f32 %v10382_v21, %v1080_v49  ;;  %v10388_v13 = vmax.f32 %v10387_v25, 0.0  ;;  %v10390_v55 = vmax.f32 %v10389_v39, 0.0  ;;  %v10392_v47 = vmax.f32 %v10391_v9, 0.0  ;;  %v10397_v25 = vld [vmem:[#allocation25_spill] sm:$0xff] }
 0x225   :  { %v2040_v16 = vmul.f32 %v10384_v58, %v1080_v49  ;;  %v2371_v41 = vmul.f32 %v10386_v52, %v1080_v49  ;;  %v10394_v3 = vmax.f32 %v10393_v2, 0.0  ;;  %v1438_v45 = vadd.f32 %v1437_v38, %v1375_v53  ;;  %v10395_v58 = vld [vmem:[#allocation24_spill] sm:$0xff]  ;;  %v10401_v53 = vld [vmem:[#allocation26_spill] sm:$0xff] }
 0x226   :  { %v2702_v46 = vmul.f32 %v10388_v13, %v1080_v49  ;;  %v3033_v48 = vmul.f32 %v10390_v55, %v1080_v49  ;;  %v3364_v5 = vmul.f32 %v10392_v47, %v1080_v49  ;;  %v1770_v10 = vadd.f32 %v1769_v8, %v1707_v23  ;;  %v10407_v8 = vld [vmem:[#allocation29_spill] sm:$0xff] }
 0x227   :  { %v3695_v18 = vmul.f32 %v10394_v3, %v1080_v49  ;;  %v2101_v40 = vadd.f32 %v2100_v24, %v2038_v27  ;;  %v2432_v20 = vadd.f32 %v2431_v43, %v2369_v42  ;;  %v2763_v22 = vadd.f32 %v2762_v61, %v2700_v19  ;;  %v10403_v42 = vld [vmem:[#allocation27_spill] sm:$0xff]  ;;  %v1090_v61 = vpop.permute.xlu1 %1089 }
 0x228   :  { %v3094_v29 = vadd.f32 %v3093_v62, %v3031_v57  ;;  %v3425_v21 = vadd.f32 %v3424_v50, %v3362_v17  ;;  %v3756_v44 = vadd.f32 %v3755_v11, %v3693_v54  ;;  %v10396_v36 = vmax.f32 %v10395_v58, 0.0  ;;  %v10405_v17 = vld [vmem:[#allocation28_spill] sm:$0xff] }
 0x229   :  { %v10398_v13 = vmax.f32 %v10397_v25, 0.0  ;;  %v10399_v55 = vmax.f32 %v5856_v31, 0.0  ;;  %v10400_v49 = vmax.f32 %v5860_v30, 0.0  ;;  %v10402_v23 = vmax.f32 %v10401_v53, 0.0 }
 0x22a   :  { %v1376_v52 = vmul.f32 %v1075_v26, %v10396_v36  ;;  %v10404_v19 = vmax.f32 %v10403_v42, 0.0  ;;  %v10406_v54 = vmax.f32 %v10405_v17, 0.0  ;;  %v10408_v24 = vmax.f32 %v10407_v8, 0.0  ;;  %v10409_v36 = vld [vmem:[#allocation30_spill] sm:$0xff]  ;;  %v10415_v17 = vld [vmem:[#allocation33_spill] sm:$0xff] }
 0x22b   :  { %v1708_v39 = vmul.f32 %v10398_v13, %v1075_v26  ;;  %v2039_v9 = vmul.f32 %v10399_v55, %v1075_v26  ;;  %v2370_v47 = vmul.f32 %v10400_v49, %v1075_v26  ;;  %v2701_v27 = vmul.f32 %v10402_v23, %v1075_v26  ;;  %v10411_v55 = vld [vmem:[#allocation31_spill] sm:$0xff]  ;;  %v10413_v23 = vld [vmem:[#allocation32_spill] sm:$0xff] }
 0x22c   :  { %v3032_v57 = vmul.f32 %v10404_v19, %v1075_v26  ;;  %v3363_v38 = vmul.f32 %v10406_v54, %v1075_v26  ;;  %v3694_v43 = vmul.f32 %v10408_v24, %v1075_v26  ;;  %v1439_v62 = vadd.f32 %v1438_v45, %v1376_v52  ;;  %v10417_v45 = vld [vmem:[#allocation34_spill] sm:$0xff] }
 0x22d   :  { %v1771_v50 = vadd.f32 %v1770_v10, %v1708_v39  ;;  %v2102_v31 = vadd.f32 %v2101_v40, %v2039_v9  ;;  %v2433_v11 = vadd.f32 %v2432_v20, %v2370_v47  ;;  %v2764_v2 = vadd.f32 %v2763_v22, %v2701_v27  ;;  %v10419_v20 = vld [vmem:[#allocation35_spill] sm:$0xff]  ;;  %v10423_v39 = vld [vmem:[#allocation37_spill] sm:$0xff]  ;;  %v1085_v27 = vpop.permute.xlu0 %1084 }
 0x22e   :  { %v3095_v30 = vadd.f32 %v3094_v29, %v3032_v57  ;;  %v3426_v3 = vadd.f32 %v3425_v21, %v3363_v38  ;;  %v3757_v58 = vadd.f32 %v3756_v44, %v3694_v43  ;;  %v10410_v25 = vmax.f32 %v10409_v36, 0.0  ;;  %v10421_v21 = vld [vmem:[#allocation36_spill] sm:$0xff] }
 0x22f   :  { %v10412_v49 = vmax.f32 %v10411_v55, 0.0  ;;  %v10414_v42 = vmax.f32 %v10413_v23, 0.0  ;;  %v10416_v26 = vmax.f32 %v10415_v17, 0.0  ;;  %v10418_v10 = vmax.f32 %v10417_v45, 0.0 }
 0x230   :  { %v1379_v13 = vmul.f32 %v1090_v61, %v10410_v25  ;;  %v10420_v22 = vmax.f32 %v10419_v20, 0.0  ;;  %v10422_v44 = vmax.f32 %v10421_v21, 0.0  ;;  %v10424_v9 = vmax.f32 %v10423_v39, 0.0 }
 0x231   :  { %v1711_v53 = vmul.f32 %v10412_v49, %v1090_v61  ;;  %v2042_v19 = vmul.f32 %v10414_v42, %v1090_v61  ;;  %v2373_v54 = vmul.f32 %v10416_v26, %v1090_v61  ;;  %v2704_v40 = vmul.f32 %v10418_v10, %v1090_v61  ;;  %v10426_v42 = vld [vmem:[#allocation40_spill] sm:$0xff] }
 0x232   :  { %v3035_v29 = vmul.f32 %v10420_v22, %v1090_v61  ;;  %v3366_v52 = vmul.f32 %v10422_v44, %v1090_v61  ;;  %v3697_v47 = vmul.f32 %v10424_v9, %v1090_v61  ;;  %v1440_v57 = vadd.f32 %v1439_v62, %v1377_v28  ;;  %v10430_v28 = vld [vmem:[#allocation41_spill] sm:$0xff]  ;;  %v10439_v9 = vld [vmem:[#allocation47_spill] sm:$0xff] }
 0x233   :  { %v1772_v38 = vadd.f32 %v1771_v50, %v1709_v59  ;;  %v2103_v8 = vadd.f32 %v2102_v31, %v2040_v16  ;;  %v2434_v24 = vadd.f32 %v2433_v11, %v2371_v41  ;;  %v2765_v43 = vadd.f32 %v2764_v2, %v2702_v46  ;;  %v10432_v41 = vld [vmem:[#allocation42_spill] sm:$0xff]  ;;  %v1100_v11 = vpop.permute.xlu1 %1099 }
 0x234   :  { %v3096_v36 = vadd.f32 %v3095_v30, %v3033_v48  ;;  %v3427_v25 = vadd.f32 %v3426_v3, %v3364_v5  ;;  %v3758_v55 = vadd.f32 %v3757_v58, %v3695_v18  ;;  %v10425_v49 = vmax.f32 %v5942_v32, 0.0  ;;  %v10434_v5 = vld [vmem:[#allocation43_spill] sm:$0xff]  ;;  %v10436_v32 = vld [vmem:[#allocation44_spill] sm:$0xff] }
 0x235   :  { %v10427_v17 = vmax.f32 %v10426_v42, 0.0  ;;  %v10428_v45 = vmax.f32 %v5956_v0, 0.0  ;;  %v10429_v61 = vmax.f32 %v5960_v14, 0.0  ;;  %v10431_v59 = vmax.f32 %v10430_v28, 0.0  ;;  %v10443_v28 = vld [vmem:[#allocation49_spill] sm:$0xff] }
 0x236   :  { %v1378_v23 = vmul.f32 %v1085_v27, %v10425_v49  ;;  %v10433_v46 = vmax.f32 %v10432_v41, 0.0  ;;  %v10435_v18 = vmax.f32 %v10434_v5, 0.0  ;;  %v10437_v50 = vmax.f32 %v10436_v32, 0.0 }
 0x237   :  { %v1710_v26 = vmul.f32 %v10427_v17, %v1085_v27  ;;  %v2041_v10 = vmul.f32 %v10428_v45, %v1085_v27  ;;  %v2372_v20 = vmul.f32 %v10429_v61, %v1085_v27  ;;  %v2703_v16 = vmul.f32 %v10431_v59, %v1085_v27  ;;  %v10441_v17 = vld [vmem:[#allocation48_spill] sm:$0xff] }
 0x238   :  { %v3034_v48 = vmul.f32 %v10433_v46, %v1085_v27  ;;  %v3365_v62 = vmul.f32 %v10435_v18, %v1085_v27  ;;  %v3696_v31 = vmul.f32 %v10437_v50, %v1085_v27  ;;  %v1441_v2 = vadd.f32 %v1440_v57, %v1378_v23  ;;  %v10445_v57 = vld [vmem:[#allocation50_spill] sm:$0xff] }
 0x239   :  { %v1773_v30 = vadd.f32 %v1772_v38, %v1710_v26  ;;  %v2104_v0 = vadd.f32 %v2103_v8, %v2041_v10  ;;  %v2435_v3 = vadd.f32 %v2434_v24, %v2372_v20  ;;  %v2766_v58 = vadd.f32 %v2765_v43, %v2703_v16  ;;  %v10447_v24 = vld [vmem:[#allocation51_spill] sm:$0xff]  ;;  %v1095_v20 = vpop.permute.xlu0 %1094 }
 0x23a   :  { %v3097_v14 = vadd.f32 %v3096_v36, %v3034_v48  ;;  %v3428_v22 = vadd.f32 %v3427_v25, %v3365_v62  ;;  %v3759_v21 = vadd.f32 %v3758_v55, %v3696_v31  ;;  %v10438_v44 = vmax.f32 %v5992_v56, 0.0  ;;  %v10449_v25 = vld [vmem:[#allocation52_spill] sm:$0xff]  ;;  %v10451_v56 = vld [vmem:[#allocation55_spill] sm:$0xff] }
 0x23b   :  { %v10440_v49 = vmax.f32 %v10439_v9, 0.0  ;;  %v10442_v45 = vmax.f32 %v10441_v17, 0.0  ;;  %v10444_v27 = vmax.f32 %v10443_v28, 0.0  ;;  %v10446_v38 = vmax.f32 %v10445_v57, 0.0  ;;  %v10456_v17 = vld [vmem:[#allocation57_spill] sm:$0xff] }
 0x23c   :  { %v1381_v39 = vmul.f32 %v1100_v11, %v10438_v44  ;;  %v10448_v43 = vmax.f32 %v10447_v24, 0.0  ;;  %v10450_v55 = vmax.f32 %v10449_v25, 0.0  ;;  %v10452_v26 = vmax.f32 %v10451_v56, 0.0  ;;  %v10454_v44 = vld [vmem:[#allocation56_spill] sm:$0xff] }
 0x23d   :  { %v1713_v42 = vmul.f32 %v10440_v49, %v1100_v11  ;;  %v2044_v61 = vmul.f32 %v10442_v45, %v1100_v11  ;;  %v2375_v59 = vmul.f32 %v10444_v27, %v1100_v11  ;;  %v2706_v8 = vmul.f32 %v10446_v38, %v1100_v11  ;;  %v10458_v27 = vld [vmem:[#allocation58_spill] sm:$0xff] }
 0x23e   :  { %v3037_v36 = vmul.f32 %v10448_v43, %v1100_v11  ;;  %v3368_v23 = vmul.f32 %v10450_v55, %v1100_v11  ;;  %v3699_v10 = vmul.f32 %v10452_v26, %v1100_v11  ;;  %v1442_v16 = vadd.f32 %v1441_v2, %v1379_v13  ;;  %v10460_v13 = vld [vmem:[#allocation59_spill] sm:$0xff]  ;;  %v10469_v26 = vld [vmem:[#allocation64_spill] sm:$0xff] }
 0x23f   :  { %v1774_v41 = vadd.f32 %v1773_v30, %v1711_v53  ;;  %v2105_v46 = vadd.f32 %v2104_v0, %v2042_v19  ;;  %v2436_v48 = vadd.f32 %v2435_v3, %v2373_v54  ;;  %v2767_v5 = vadd.f32 %v2766_v58, %v2704_v40  ;;  %v10462_v54 = vld [vmem:[#allocation60_spill] sm:$0xff]  ;;  %v1110_v3 = vpop.permute.xlu1 %1109 }
 0x240   :  { %v3098_v18 = vadd.f32 %v3097_v14, %v3035_v29  ;;  %v3429_v62 = vadd.f32 %v3428_v22, %v3366_v52  ;;  %v3760_v32 = vadd.f32 %v3759_v21, %v3697_v47  ;;  %v10453_v50 = vmax.f32 %v6042_v6, 0.0  ;;  %v10464_v52 = vld [vmem:[#allocation61_spill] sm:$0xff]  ;;  %v10466_v6 = vld [vmem:[#allocation62_spill] sm:$0xff] }
 0x241   :  { %v10455_v9 = vmax.f32 %v10454_v44, 0.0  ;;  %v10457_v45 = vmax.f32 %v10456_v17, 0.0  ;;  %v10459_v11 = vmax.f32 %v10458_v27, 0.0  ;;  %v10461_v53 = vmax.f32 %v10460_v13, 0.0  ;;  %v10473_v27 = vld [vmem:[#allocation66_spill] sm:$0xff] }
 0x242   :  { %v1380_v31 = vmul.f32 %v1095_v20, %v10453_v50  ;;  %v10463_v40 = vmax.f32 %v10462_v54, 0.0  ;;  %v10465_v47 = vmax.f32 %v10464_v52, 0.0  ;;  %v10467_v30 = vmax.f32 %v10466_v6, 0.0 }
 0x243   :  { %v1712_v49 = vmul.f32 %v10455_v9, %v1095_v20  ;;  %v2043_v28 = vmul.f32 %v10457_v45, %v1095_v20  ;;  %v2374_v57 = vmul.f32 %v10459_v11, %v1095_v20  ;;  %v2705_v19 = vmul.f32 %v10461_v53, %v1095_v20  ;;  %v10471_v9 = vld [vmem:[#allocation65_spill] sm:$0xff] }
 0x244   :  { %v3036_v29 = vmul.f32 %v10463_v40, %v1095_v20  ;;  %v3367_v2 = vmul.f32 %v10465_v47, %v1095_v20  ;;  %v3698_v0 = vmul.f32 %v10467_v30, %v1095_v20  ;;  %v1443_v58 = vadd.f32 %v1442_v16, %v1380_v31  ;;  %v10475_v16 = vld [vmem:[#allocation67_spill] sm:$0xff]  ;;  %v10484_v30 = vld [vmem:[#allocation74_spill] sm:$0xff] }
 0x245   :  { %v1775_v14 = vadd.f32 %v1774_v41, %v1712_v49  ;;  %v2106_v22 = vadd.f32 %v2105_v46, %v2043_v28  ;;  %v2437_v21 = vadd.f32 %v2436_v48, %v2374_v57  ;;  %v2768_v38 = vadd.f32 %v2767_v5, %v2705_v19  ;;  %v10477_v48 = vld [vmem:[#allocation68_spill] sm:$0xff]  ;;  %v1105_v57 = vpop.permute.xlu0 %1104 }
 0x246   :  { %v3099_v24 = vadd.f32 %v3098_v18, %v3036_v29  ;;  %v3430_v43 = vadd.f32 %v3429_v62, %v3367_v2  ;;  %v3761_v25 = vadd.f32 %v3760_v32, %v3698_v0  ;;  %v10468_v55 = vmax.f32 %v6092_v34, 0.0  ;;  %v10479_v62 = vld [vmem:[#allocation71_spill] sm:$0xff]  ;;  %v10481_v34 = vld [vmem:[#allocation72_spill] sm:$0xff] }
 0x247   :  { %v10470_v50 = vmax.f32 %v10469_v26, 0.0  ;;  %v10472_v17 = vmax.f32 %v10471_v9, 0.0  ;;  %v10474_v20 = vmax.f32 %v10473_v27, 0.0  ;;  %v10476_v41 = vmax.f32 %v10475_v16, 0.0  ;;  %v10486_v26 = vld [vmem:[#allocation75_spill] sm:$0xff] }
 0x248   :  { %v1383_v56 = vmul.f32 %v1110_v3, %v10468_v55  ;;  %v10478_v5 = vmax.f32 %v10477_v48, 0.0  ;;  %v10480_v32 = vmax.f32 %v10479_v62, 0.0  ;;  %v10482_v49 = vmax.f32 %v10481_v34, 0.0  ;;  %v10500_v34 = vld [vmem:[#allocation83_spill] sm:$0xff] }
 0x249   :  { %v1715_v44 = vmul.f32 %v10470_v50, %v1110_v3  ;;  %v2046_v45 = vmul.f32 %v10472_v17, %v1110_v3  ;;  %v2377_v11 = vmul.f32 %v10474_v20, %v1110_v3  ;;  %v2708_v46 = vmul.f32 %v10476_v41, %v1110_v3  ;;  %v10488_v17 = vld [vmem:[#allocation76_spill] sm:$0xff] }
 0x24a   :  { %v3039_v18 = vmul.f32 %v10478_v5, %v1110_v3  ;;  %v3370_v31 = vmul.f32 %v10480_v32, %v1110_v3  ;;  %v3701_v28 = vmul.f32 %v10482_v49, %v1110_v3  ;;  %v1444_v13 = vadd.f32 %v1443_v58, %v1381_v39  ;;  %v10490_v39 = vld [vmem:[#allocation77_spill] sm:$0xff]  ;;  %v10498_v5 = vld [vmem:[#allocation82_spill] sm:$0xff] }
 0x24b   :  { %v1776_v53 = vadd.f32 %v1775_v14, %v1713_v42  ;;  %v2107_v19 = vadd.f32 %v2106_v22, %v2044_v61  ;;  %v2438_v54 = vadd.f32 %v2437_v21, %v2375_v59  ;;  %v2769_v40 = vadd.f32 %v2768_v38, %v2706_v8  ;;  %v10492_v59 = vld [vmem:[#allocation78_spill] sm:$0xff]  ;;  %v1120_v21 = vpop.permute.xlu1 %1119 }
 0x24c   :  { %v3100_v29 = vadd.f32 %v3099_v24, %v3037_v36  ;;  %v3431_v52 = vadd.f32 %v3430_v43, %v3368_v23  ;;  %v3762_v47 = vadd.f32 %v3761_v25, %v3699_v10  ;;  %v10483_v2 = vmax.f32 %v6142_v35, 0.0  ;;  %v10494_v23 = vld [vmem:[#allocation79_spill] sm:$0xff]  ;;  %v10496_v35 = vld [vmem:[#allocation80_spill] sm:$0xff] }
 0x24d   :  { %v10485_v0 = vmax.f32 %v10484_v30, 0.0  ;;  %v10487_v50 = vmax.f32 %v10486_v26, 0.0  ;;  %v10489_v3 = vmax.f32 %v10488_v17, 0.0  ;;  %v10491_v42 = vmax.f32 %v10490_v39, 0.0  ;;  %v10502_v30 = vld [vmem:[#allocation84_spill] sm:$0xff] }
 0x24e   :  { %v1382_v6 = vmul.f32 %v1105_v57, %v10483_v2  ;;  %v10493_v8 = vmax.f32 %v10492_v59, 0.0  ;;  %v10495_v10 = vmax.f32 %v10494_v23, 0.0  ;;  %v10497_v14 = vmax.f32 %v10496_v35, 0.0 }
 0x24f   :  { %v1714_v55 = vmul.f32 %v10485_v0, %v1105_v57  ;;  %v2045_v9 = vmul.f32 %v10487_v50, %v1105_v57  ;;  %v2376_v27 = vmul.f32 %v10489_v3, %v1105_v57  ;;  %v2707_v61 = vmul.f32 %v10491_v42, %v1105_v57  ;;  %v10504_v50 = vld [vmem:[#allocation85_spill] sm:$0xff] }
 0x250   :  { %v3038_v36 = vmul.f32 %v10493_v8, %v1105_v57  ;;  %v3369_v58 = vmul.f32 %v10495_v10, %v1105_v57  ;;  %v3700_v22 = vmul.f32 %v10497_v14, %v1105_v57  ;;  %v1445_v38 = vadd.f32 %v1444_v13, %v1382_v6  ;;  %v10506_v13 = vld [vmem:[#allocation88_spill] sm:$0xff] }
 0x251   :  { %v1777_v24 = vadd.f32 %v1776_v53, %v1714_v55  ;;  %v2108_v43 = vadd.f32 %v2107_v19, %v2045_v9  ;;  %v2439_v25 = vadd.f32 %v2438_v54, %v2376_v27  ;;  %v2770_v20 = vadd.f32 %v2769_v40, %v2707_v61  ;;  %v10508_v54 = vld [vmem:[#allocation89_spill] sm:$0xff]  ;;  %v10512_v55 = vld [vmem:[#allocation91_spill] sm:$0xff]  ;;  %v1115_v27 = vpop.permute.xlu0 %1114 }
 0x252   :  { %v3101_v16 = vadd.f32 %v3100_v29, %v3038_v36  ;;  %v3432_v41 = vadd.f32 %v3431_v52, %v3369_v58  ;;  %v3763_v48 = vadd.f32 %v3762_v47, %v3700_v22  ;;  %v10499_v62 = vmax.f32 %v10498_v5, 0.0  ;;  %v10510_v52 = vld [vmem:[#allocation90_spill] sm:$0xff]  ;;  %v10514_v58 = vld [vmem:[#allocation92_spill] sm:$0xff]  ;;  %v10516_v22 = vld [vmem:[#allocation93_spill] sm:$0xff] }
 0x253   :  { %v10501_v49 = vmax.f32 %v10500_v34, 0.0  ;;  %v10503_v0 = vmax.f32 %v10502_v30, 0.0  ;;  %v10505_v57 = vmax.f32 %v10504_v50, 0.0  ;;  %v10507_v53 = vmax.f32 %v10506_v13, 0.0  ;;  %v10518_v34 = vld [vmem:[#allocation94_spill] sm:$0xff] }
 0x254   :  { %v1385_v32 = vmul.f32 %v1120_v21, %v10499_v62  ;;  %v10509_v40 = vmax.f32 %v10508_v54, 0.0  ;;  %v10511_v47 = vmax.f32 %v10510_v52, 0.0  ;;  %v10513_v9 = vmax.f32 %v10512_v55, 0.0  ;;  %v10530_v52 = vld [vmem:[#allocation106_spill] sm:$0xff] }
 0x255   :  { %v1717_v2 = vmul.f32 %v10501_v49, %v1120_v21  ;;  %v2048_v26 = vmul.f32 %v10503_v0, %v1120_v21  ;;  %v2379_v17 = vmul.f32 %v10505_v57, %v1120_v21  ;;  %v2710_v19 = vmul.f32 %v10507_v53, %v1120_v21  ;;  %v10531_v55 = vld [vmem:[#allocation370_spill] sm:$0xff] }
 0x256   :  { %v3041_v29 = vmul.f32 %v10509_v40, %v1120_v21  ;;  %v7664_v6 = vmul.f32 %v10511_v47, %v1120_v21  ;;  %v7668_v3 = vmul.f32 %v10513_v9, %v1120_v21  ;;  %v1446_v39 = vadd.f32 %v1445_v38, %v1383_v56  ;;  %v10520_v21 = vld [vmem:[#allocation95_spill] sm:$0xff]  ;;  %v10522_v56 = vld [vmem:[#allocation96_spill] sm:$0xff]  ;;  %v10532_v9 = vld [vmem:[#allocation14_spill] sm:$0xff] }
 0x257   :  { %v1778_v42 = vadd.f32 %v1777_v24, %v1715_v44  ;;  %v2109_v61 = vadd.f32 %v2108_v43, %v2046_v45  ;;  %v2440_v59 = vadd.f32 %v2439_v25, %v2377_v11  ;;  %v2771_v8 = vadd.f32 %v2770_v20, %v2708_v46  ;;  %v10524_v11 = vld [vmem:[#allocation97_spill] sm:$0xff]  ;;  %v10528_v24 = vld [vmem:[#allocation99_spill] sm:$0xff]  ;;  %v1130_v20 = vpop.permute.xlu1 %1129 }
 0x258   :  { %v3102_v36 = vadd.f32 %v3101_v16, %v3039_v18  ;;  %v3433_v23 = vadd.f32 %v3432_v41, %v3370_v31  ;;  %v3764_v10 = vadd.f32 %v3763_v48, %v3701_v28  ;;  %v10515_v35 = vmax.f32 %v10514_v58, 0.0  ;;  %v10526_v31 = vld [vmem:[#allocation98_spill] sm:$0xff] }
 0x259   :  { %v10517_v5 = vmax.f32 %v10516_v22, 0.0  ;;  %v10519_v49 = vmax.f32 %v10518_v34, 0.0  ;;  %v10521_v0 = vmax.f32 %v10520_v21, 0.0  ;;  %v10523_v44 = vmax.f32 %v10522_v56, 0.0  ;;  %v10535_v34 = vld [vmem:[#allocation101_spill] sm:$0xff]  ;;  %v10545_v56 = vld [vmem:[#allocation15_spill] sm:$0xff] }
 0x25a   :  { %v1384_v14 = vmul.f32 %v1115_v27, %v10515_v35  ;;  %v10525_v46 = vmax.f32 %v10524_v11, 0.0  ;;  %v10527_v28 = vmax.f32 %v10526_v31, 0.0  ;;  %v10529_v43 = vmax.f32 %v10528_v24, 0.0  ;;  %v10533_v35 = vld [vmem:[#allocation100_spill] sm:$0xff] }
 0x25b   :  { %v1716_v62 = vmul.f32 %v10517_v5, %v1115_v27  ;;  %v2047_v30 = vmul.f32 %v10519_v49, %v1115_v27  ;;  %v2378_v50 = vmul.f32 %v10521_v0, %v1115_v27  ;;  %v2709_v45 = vmul.f32 %v10523_v44, %v1115_v27  ;;  %v10546_v44 = vld [vmem:[#allocation6_spill] sm:$0xff] }
 0x25c   :  { %v3040_v18 = vmul.f32 %v10525_v46, %v1115_v27  ;;  %v3371_v38 = vmul.f32 %v10527_v28, %v1115_v27  ;;  %v3702_v25 = vmul.f32 %v10529_v43, %v1115_v27  ;;  %v1447_v16 = vadd.f32 %v1446_v39, %v1384_v14  ;;  %v10537_v39 = vld [vmem:[#allocation102_spill] sm:$0xff]  ;;  %v10547_v46 = vld [vmem:[#allocation7_spill] sm:$0xff]  ;;  %v10548_v28 = vld [vmem:[#allocation8_spill] sm:$0xff] }
 0x25d   :  { %v1779_v41 = vadd.f32 %v1778_v42, %v1716_v62  ;;  %v2110_v48 = vadd.f32 %v2109_v61, %v2047_v30  ;;  %v2441_v57 = vadd.f32 %v2440_v59, %v2378_v50  ;;  %v2772_v13 = vadd.f32 %v2771_v8, %v2709_v45  ;;  %v10539_v59 = vld [vmem:[#allocation103_spill] sm:$0xff]  ;;  %v10543_v62 = vld [vmem:[#allocation105_spill] sm:$0xff] }
 0x25e   :  { %v3103_v53 = vadd.f32 %v3102_v36, %v3040_v18  ;;  %v3434_v54 = vadd.f32 %v3433_v23, %v3371_v38  ;;  %v3765_v40 = vadd.f32 %v3764_v10, %v3702_v25  ;;  %v3310_v47 = vmax.f32 %v10530_v52, 0.0  ;;  %v10541_v23 = vld [vmem:[#allocation104_spill] sm:$0xff]  ;;  %v10549_v25 = vld [vmem:[#allocation371_spill] sm:$0xff] }
 0x25f   :  { %v3577_v58 = vadd.f32 %v10532_v9, %v10531_v55  ;;  %v10534_v22 = vmax.f32 %v10533_v35, 0.0  ;;  %v10536_v27 = vmax.f32 %v10535_v34, 0.0  ;;  %v10538_v42 = vmax.f32 %v10537_v39, 0.0  ;;  %v10550_v55 = vld [vmem:[#allocation9_spill] sm:$0xff]  ;;  %v1125_v34 = vpop.permute.xlu0 %1124 }
 0x260   :  { %v10540_v8 = vmax.f32 %v10539_v59, 0.0  ;;  %v10542_v10 = vmax.f32 %v10541_v23, 0.0  ;;  %v10544_v30 = vmax.f32 %v10543_v62, 0.0  ;;  %v7713_v50 = vmul.f32 %v3310_v47, %v1130_v20 }
 0x261   :  { %v7691_v5 = vmul.f32 %v1130_v20, %v10534_v22  ;;  %v7695_v49 = vmul.f32 %v10536_v27, %v1130_v20  ;;  %v7699_v61 = vmul.f32 %v10538_v42, %v1130_v20  ;;  %v3641_v0 = vmax.f32 %v3577_v58, 0.0 }
 0x262   :  { %v7703_v36 = vmul.f32 %v10540_v8, %v1130_v20  ;;  %v7707_v14 = vmul.f32 %v10542_v10, %v1130_v20  ;;  %v7711_v21 = vmul.f32 %v10544_v30, %v1130_v20  ;;  %v554_v45 = vmul.f32 %v10546_v44, %v10545_v56 }
 0x263   :  { %v1448_v11 = vadd.f32 %v1447_v16, %v1385_v32  ;;  %v1526_v18 = vmul.f32 %v10547_v46, %v10545_v56  ;;  %v1780_v31 = vadd.f32 %v1779_v41, %v1717_v2  ;;  %v1857_v38 = vmul.f32 %v10548_v28, %v10545_v56  ;;  %v10551_v16 = vld [vmem:[#allocation10_spill] sm:$0xff] }
 0x264   :  { %v2111_v24 = vadd.f32 %v2110_v48, %v2048_v26  ;;  %v7721_v43 = vmul.f32 %v3641_v0, %v1130_v20  ;;  %v938_v52 = vadd.f32 %v10549_v25, %v554_v45  ;;  %v2188_v47 = vmul.f32 %v10550_v55, %v10545_v56  ;;  %v10552_v26 = vld [vmem:[#allocation11_spill] sm:$0xff] }
 0x265   :  { %v2442_v9 = vadd.f32 %v2441_v57, %v2379_v17  ;;  %v1590_v58 = vadd.f32 %v1526_v18, %v10549_v25  ;;  %v1921_v32 = vadd.f32 %v1857_v38, %v10549_v25  ;;  %v2519_v35 = vmul.f32 %v10551_v16, %v10545_v56  ;;  %v10553_v57 = vld [vmem:[#allocation12_spill] sm:$0xff] }
 0x266   :  { %v2773_v2 = vadd.f32 %v2772_v13, %v2710_v19  ;;  %v1002_v41 = vmax.f32 %v938_v52, 0.0  ;;  %v2252_v22 = vadd.f32 %v2188_v47, %v10549_v25  ;;  %v2850_v20 = vmul.f32 %v10552_v26, %v10545_v56  ;;  %v10554_v13 = vld [vmem:[#allocation13_spill] sm:$0xff] }
 0x267   :  { %v3104_v48 = vadd.f32 %v3103_v53, %v3041_v29  ;;  %v1654_v27 = vmax.f32 %v1590_v58, 0.0  ;;  %v1985_v39 = vmax.f32 %v1921_v32, 0.0  ;;  %v2583_v17 = vadd.f32 %v2519_v35, %v10549_v25 }
 0x268   :  { %v3181_v42 = vmul.f32 %v10553_v57, %v10545_v56  ;;  %v2316_v59 = vmax.f32 %v2252_v22, 0.0  ;;  %v2914_v8 = vadd.f32 %v2850_v20, %v10549_v25  ;;  %v3435_v19 = vadd.f32 %v3434_v54, %v7664_v6 }
 0x269   :  { %v3512_v23 = vmul.f32 %v10554_v13, %v10545_v56  ;;  %v2647_v10 = vmax.f32 %v2583_v17, 0.0  ;;  %v3766_v29 = vadd.f32 %v3765_v40, %v7668_v3  ;;  %v1386_v53 = vmul.f32 %v1125_v34, %v1002_v41  ;;  %v10555_v17 = vld [vmem:[#allocation16_spill] sm:$0xff] }
 0x26a   :  { %v3245_v62 = vadd.f32 %v3181_v42, %v10549_v25  ;;  %v2978_v30 = vmax.f32 %v2914_v8, 0.0  ;;  %v1718_v45 = vmul.f32 %v1654_v27, %v1125_v34  ;;  %v2049_v18 = vmul.f32 %v1985_v39, %v1125_v34  ;;  %v10556_v39 = vld [vmem:[#allocation45_spill] sm:$0xff] }
 0x26b   :  { %v3576_v0 = vadd.f32 %v3512_v23, %v10549_v25  ;;  %v1449_v52 = vadd.f32 %v1448_v11, %v1386_v53  ;;  %v2380_v47 = vmul.f32 %v2316_v59, %v1125_v34  ;;  %v2711_v58 = vmul.f32 %v2647_v10, %v1125_v34  ;;  %v1140_v59 = vpop.permute.xlu1 %1139 }
 0x26c   :  { %v3309_v38 = vmax.f32 %v3245_v62, 0.0  ;;  %v1781_v6 = vadd.f32 %v1780_v31, %v1718_v45  ;;  %v2112_v54 = vadd.f32 %v2111_v24, %v2049_v18  ;;  %v3042_v35 = vmul.f32 %v2978_v30, %v1125_v34 }
 0x26d   :  { %v3640_v32 = vmax.f32 %v3576_v0, 0.0  ;;  %v2443_v56 = vadd.f32 %v2442_v9, %v2380_v47  ;;  %v2774_v22 = vadd.f32 %v2773_v2, %v2711_v58  ;;  %v557_v3 = vmul.f32 %v10546_v44, %v10555_v17 }
 0x26e   :  { %v3373_v20 = vmul.f32 %v3309_v38, %v1125_v34  ;;  %v3105_v40 = vadd.f32 %v3104_v48, %v3042_v35  ;;  %v1529_v25 = vmul.f32 %v10547_v46, %v10555_v17  ;;  %v1860_v11 = vmul.f32 %v10548_v28, %v10555_v17 }
 0x26f   :  { %v3704_v41 = vmul.f32 %v3640_v32, %v1125_v34  ;;  %v941_v42 = vadd.f32 %v10556_v39, %v557_v3  ;;  %v2191_v31 = vmul.f32 %v10550_v55, %v10555_v17  ;;  %v2522_v24 = vmul.f32 %v10551_v16, %v10555_v17 }
 0x270   :  { %v3436_v27 = vadd.f32 %v3435_v19, %v3373_v20  ;;  %v1593_v2 = vadd.f32 %v1529_v25, %v10556_v39  ;;  %v1924_v48 = vadd.f32 %v1860_v11, %v10556_v39  ;;  %v2853_v34 = vmul.f32 %v10552_v26, %v10555_v17  ;;  %v10557_v25 = vld [vmem:[#allocation17_spill] sm:$0xff] }
 0x271   :  { %v3767_v9 = vadd.f32 %v3766_v29, %v3704_v41  ;;  %v1005_v8 = vmax.f32 %v941_v42, 0.0  ;;  %v2255_v19 = vadd.f32 %v2191_v31, %v10556_v39  ;;  %v2586_v23 = vadd.f32 %v2522_v24, %v10556_v39 }
 0x272   :  { %v3184_v10 = vmul.f32 %v10553_v57, %v10555_v17  ;;  %v1657_v62 = vmax.f32 %v1593_v2, 0.0  ;;  %v1988_v53 = vmax.f32 %v1924_v48, 0.0  ;;  %v2917_v29 = vadd.f32 %v2853_v34, %v10556_v39  ;;  %v10558_v2 = vld [vmem:[#allocation46_spill] sm:$0xff] }
 0x273   :  { %v3515_v30 = vmul.f32 %v10554_v13, %v10555_v17  ;;  %v2319_v0 = vmax.f32 %v2255_v19, 0.0  ;;  %v2650_v45 = vmax.f32 %v2586_v23, 0.0  ;;  %v7766_v38 = vmul.f32 %v1140_v59, %v1005_v8 }
 0x274   :  { %v3248_v18 = vadd.f32 %v3184_v10, %v10556_v39  ;;  %v2981_v47 = vmax.f32 %v2917_v29, 0.0  ;;  %v7769_v32 = vmul.f32 %v1657_v62, %v1140_v59  ;;  %v7771_v35 = vmul.f32 %v1988_v53, %v1140_v59 }
 0x275   :  { %v3579_v58 = vadd.f32 %v3515_v30, %v10556_v39  ;;  %v7773_v3 = vmul.f32 %v2319_v0, %v1140_v59  ;;  %v7775_v41 = vmul.f32 %v2650_v45, %v1140_v59  ;;  %v556_v17 = vmul.f32 %v10546_v44, %v10557_v25 }
 0x276   :  { %v3312_v20 = vmax.f32 %v3248_v18, 0.0  ;;  %v7779_v42 = vmul.f32 %v2981_v47, %v1140_v59  ;;  %v1450_v31 = vadd.f32 %v1449_v52, %v7691_v5  ;;  %v1528_v39 = vmul.f32 %v10547_v46, %v10557_v25 }
 0x277   :  { %v3643_v11 = vmax.f32 %v3579_v58, 0.0  ;;  %v940_v48 = vadd.f32 %v10558_v2, %v556_v17  ;;  %v1782_v34 = vadd.f32 %v1781_v6, %v7695_v49  ;;  %v1859_v8 = vmul.f32 %v10548_v28, %v10557_v25 }
 0x278   :  { %v7784_v24 = vmul.f32 %v3312_v20, %v1140_v59  ;;  %v1592_v23 = vadd.f32 %v1528_v39, %v10558_v2  ;;  %v2113_v10 = vadd.f32 %v2112_v54, %v7699_v61  ;;  %v2190_v5 = vmul.f32 %v10550_v55, %v10557_v25  ;;  %v1135_v61 = vpop.permute.xlu0 %1134 }
 0x279   :  { %v7790_v19 = vmul.f32 %v3643_v11, %v1140_v59  ;;  %v1004_v52 = vmax.f32 %v940_v48, 0.0  ;;  %v1923_v62 = vadd.f32 %v1859_v8, %v10558_v2  ;;  %v2444_v53 = vadd.f32 %v2443_v56, %v7703_v36 }
 0x27a   :  { %v2521_v49 = vmul.f32 %v10551_v16, %v10557_v25  ;;  %v1656_v6 = vmax.f32 %v1592_v23, 0.0  ;;  %v2254_v29 = vadd.f32 %v2190_v5, %v10558_v2  ;;  %v2775_v59 = vadd.f32 %v2774_v22, %v7707_v14 }
 0x27b   :  { %v2852_v30 = vmul.f32 %v10552_v26, %v10557_v25  ;;  %v1987_v54 = vmax.f32 %v1923_v62, 0.0  ;;  %v3106_v45 = vadd.f32 %v3105_v40, %v7711_v21  ;;  %v3183_v36 = vmul.f32 %v10553_v57, %v10557_v25 }
 0x27c   :  { %v2585_v0 = vadd.f32 %v2521_v49, %v10558_v2  ;;  %v2318_v56 = vmax.f32 %v2254_v29, 0.0  ;;  %v3437_v47 = vadd.f32 %v3436_v27, %v7713_v50  ;;  %v3514_v14 = vmul.f32 %v10554_v13, %v10557_v25 }
 0x27d   :  { %v2916_v18 = vadd.f32 %v2852_v30, %v10558_v2  ;;  %v3247_v58 = vadd.f32 %v3183_v36, %v10558_v2  ;;  %v3768_v20 = vadd.f32 %v3767_v9, %v7721_v43  ;;  %v1388_v17 = vmul.f32 %v1135_v61, %v1004_v52 }
 0x27e   :  { %v2649_v22 = vmax.f32 %v2585_v0, 0.0  ;;  %v3578_v21 = vadd.f32 %v3514_v14, %v10558_v2  ;;  %v1720_v40 = vmul.f32 %v1656_v6, %v1135_v61  ;;  %v2051_v39 = vmul.f32 %v1987_v54, %v1135_v61  ;;  %v10559_v0 = vld [vmem:[#allocation18_spill] sm:$0xff]  ;;  %v10560_v54 = vld [vmem:[#allocation372_spill] sm:$0xff] }
 0x27f   :  { %v2980_v11 = vmax.f32 %v2916_v18, 0.0  ;;  %v3311_v48 = vmax.f32 %v3247_v58, 0.0  ;;  %v1451_v8 = vadd.f32 %v1450_v31, %v1388_v17  ;;  %v2382_v23 = vmul.f32 %v2318_v56, %v1135_v61  ;;  %v1150_v56 = vpop.permute.xlu1 %1149 }
 0x280   :  { %v2713_v5 = vmul.f32 %v2649_v22, %v1135_v61  ;;  %v3642_v62 = vmax.f32 %v3578_v21, 0.0  ;;  %v1783_v50 = vadd.f32 %v1782_v34, %v1720_v40  ;;  %v2114_v27 = vadd.f32 %v2113_v10, %v2051_v39 }
 0x281   :  { %v3044_v49 = vmul.f32 %v2980_v11, %v1135_v61  ;;  %v2445_v25 = vadd.f32 %v2444_v53, %v2382_v23  ;;  %v3375_v30 = vmul.f32 %v3311_v48, %v1135_v61  ;;  %v559_v43 = vmul.f32 %v10546_v44, %v10559_v0 }
 0x282   :  { %v2776_v29 = vadd.f32 %v2775_v59, %v2713_v5  ;;  %v3706_v52 = vmul.f32 %v3642_v62, %v1135_v61  ;;  %v1531_v2 = vmul.f32 %v10547_v46, %v10559_v0  ;;  %v1862_v31 = vmul.f32 %v10548_v28, %v10559_v0 }
 0x283   :  { %v3107_v9 = vadd.f32 %v3106_v45, %v3044_v49  ;;  %v3438_v6 = vadd.f32 %v3437_v47, %v3375_v30  ;;  %v943_v36 = vadd.f32 %v10560_v54, %v559_v43  ;;  %v2193_v34 = vmul.f32 %v10550_v55, %v10559_v0 }
 0x284   :  { %v2524_v10 = vmul.f32 %v10551_v16, %v10559_v0  ;;  %v3769_v53 = vadd.f32 %v3768_v20, %v3706_v52  ;;  %v1595_v59 = vadd.f32 %v1531_v2, %v10560_v54  ;;  %v1926_v61 = vadd.f32 %v1862_v31, %v10560_v54  ;;  %v10561_v2 = vld [vmem:[#allocation19_spill] sm:$0xff] }
 0x285   :  { %v2855_v45 = vmul.f32 %v10552_v26, %v10559_v0  ;;  %v1007_v18 = vmax.f32 %v943_v36, 0.0  ;;  %v2257_v47 = vadd.f32 %v2193_v34, %v10560_v54  ;;  %v3186_v22 = vmul.f32 %v10553_v57, %v10559_v0 }
 0x286   :  { %v2588_v14 = vadd.f32 %v2524_v10, %v10560_v54  ;;  %v1659_v58 = vmax.f32 %v1595_v59, 0.0  ;;  %v1990_v17 = vmax.f32 %v1926_v61, 0.0  ;;  %v3517_v11 = vmul.f32 %v10554_v13, %v10559_v0  ;;  %v10562_v59 = vld [vmem:[#allocation373_spill] sm:$0xff] }
 0x287   :  { %v2919_v20 = vadd.f32 %v2855_v45, %v10560_v54  ;;  %v2321_v21 = vmax.f32 %v2257_v47, 0.0  ;;  %v3250_v39 = vadd.f32 %v3186_v22, %v10560_v54  ;;  %v7838_v48 = vmul.f32 %v1150_v56, %v1007_v18 }
 0x288   :  { %v2652_v40 = vmax.f32 %v2588_v14, 0.0  ;;  %v3581_v5 = vadd.f32 %v3517_v11, %v10560_v54  ;;  %v7841_v62 = vmul.f32 %v1659_v58, %v1150_v56  ;;  %v7843_v49 = vmul.f32 %v1990_v17, %v1150_v56 }
 0x289   :  { %v2983_v23 = vmax.f32 %v2919_v20, 0.0  ;;  %v3314_v30 = vmax.f32 %v3250_v39, 0.0  ;;  %v7845_v43 = vmul.f32 %v2321_v21, %v1150_v56  ;;  %v558_v0 = vmul.f32 %v10546_v44, %v10561_v2 }
 0x28a   :  { %v7847_v52 = vmul.f32 %v2652_v40, %v1150_v56  ;;  %v3645_v31 = vmax.f32 %v3581_v5, 0.0  ;;  %v1452_v34 = vadd.f32 %v1451_v8, %v7766_v38  ;;  %v1530_v54 = vmul.f32 %v10547_v46, %v10561_v2 }
 0x28b   :  { %v7851_v36 = vmul.f32 %v2983_v23, %v1150_v56  ;;  %v7856_v10 = vmul.f32 %v3314_v30, %v1150_v56  ;;  %v942_v61 = vadd.f32 %v10562_v59, %v558_v0  ;;  %v1784_v45 = vadd.f32 %v1783_v50, %v7769_v32 }
 0x28c   :  { %v1861_v18 = vmul.f32 %v10548_v28, %v10561_v2  ;;  %v7862_v47 = vmul.f32 %v3645_v31, %v1150_v56  ;;  %v1594_v14 = vadd.f32 %v1530_v54, %v10562_v59  ;;  %v2115_v22 = vadd.f32 %v2114_v27, %v7771_v35  ;;  %v1145_v35 = vpop.permute.xlu0 %1144 }
 0x28d   :  { %v2192_v38 = vmul.f32 %v10550_v55, %v10561_v2  ;;  %v1006_v8 = vmax.f32 %v942_v61, 0.0  ;;  %v2446_v17 = vadd.f32 %v2445_v25, %v7773_v3  ;;  %v2523_v32 = vmul.f32 %v10551_v16, %v10561_v2 }
 0x28e   :  { %v1925_v58 = vadd.f32 %v1861_v18, %v10562_v59  ;;  %v1658_v50 = vmax.f32 %v1594_v14, 0.0  ;;  %v2777_v56 = vadd.f32 %v2776_v29, %v7775_v41  ;;  %v2854_v11 = vmul.f32 %v10552_v26, %v10561_v2 }
 0x28f   :  { %v2256_v20 = vadd.f32 %v2192_v38, %v10562_v59  ;;  %v2587_v21 = vadd.f32 %v2523_v32, %v10562_v59  ;;  %v3108_v40 = vadd.f32 %v3107_v9, %v7779_v42  ;;  %v3185_v3 = vmul.f32 %v10553_v57, %v10561_v2 }
 0x290   :  { %v1989_v27 = vmax.f32 %v1925_v58, 0.0  ;;  %v2918_v39 = vadd.f32 %v2854_v11, %v10562_v59  ;;  %v3439_v23 = vadd.f32 %v3438_v6, %v7784_v24  ;;  %v3516_v41 = vmul.f32 %v10554_v13, %v10561_v2 }
 0x291   :  { %v2320_v25 = vmax.f32 %v2256_v20, 0.0  ;;  %v2651_v29 = vmax.f32 %v2587_v21, 0.0  ;;  %v3249_v5 = vadd.f32 %v3185_v3, %v10562_v59  ;;  %v3770_v30 = vadd.f32 %v3769_v53, %v7790_v19  ;;  %v10563_v21 = vld [vmem:[#allocation22_spill] sm:$0xff] }
 0x292   :  { %v1390_v0 = vmul.f32 %v1145_v35, %v1006_v8  ;;  %v2982_v31 = vmax.f32 %v2918_v39, 0.0  ;;  %v3580_v42 = vadd.f32 %v3516_v41, %v10562_v59  ;;  %v1722_v9 = vmul.f32 %v1658_v50, %v1145_v35 }
 0x293   :  { %v2053_v54 = vmul.f32 %v1989_v27, %v1145_v35  ;;  %v3313_v61 = vmax.f32 %v3249_v5, 0.0  ;;  %v2384_v14 = vmul.f32 %v2320_v25, %v1145_v35  ;;  %v2715_v38 = vmul.f32 %v2651_v29, %v1145_v35  ;;  %v10564_v27 = vld [vmem:[#allocation63_spill] sm:$0xff]  ;;  %v1160_v25 = vpop.permute.xlu1 %1159 }
 0x294   :  { %v1453_v18 = vadd.f32 %v1452_v34, %v1390_v0  ;;  %v3644_v58 = vmax.f32 %v3580_v42, 0.0  ;;  %v1785_v24 = vadd.f32 %v1784_v45, %v1722_v9  ;;  %v3046_v32 = vmul.f32 %v2982_v31, %v1145_v35 }
 0x295   :  { %v2116_v6 = vadd.f32 %v2115_v22, %v2053_v54  ;;  %v2447_v2 = vadd.f32 %v2446_v17, %v2384_v14  ;;  %v2778_v20 = vadd.f32 %v2777_v56, %v2715_v38  ;;  %v3377_v11 = vmul.f32 %v3313_v61, %v1145_v35 }
 0x296   :  { %v561_v19 = vmul.f32 %v10546_v44, %v10563_v21  ;;  %v3109_v53 = vadd.f32 %v3108_v40, %v3046_v32  ;;  %v3708_v8 = vmul.f32 %v3644_v58, %v1145_v35  ;;  %v1533_v59 = vmul.f32 %v10547_v46, %v10563_v21 }
 0x297   :  { %v1864_v34 = vmul.f32 %v10548_v28, %v10563_v21  ;;  %v3440_v50 = vadd.f32 %v3439_v23, %v3377_v11  ;;  %v2195_v45 = vmul.f32 %v10550_v55, %v10563_v21  ;;  %v2526_v22 = vmul.f32 %v10551_v16, %v10563_v21 }
 0x298   :  { %v945_v3 = vadd.f32 %v10564_v27, %v561_v19  ;;  %v3771_v17 = vadd.f32 %v3770_v30, %v3708_v8  ;;  %v1597_v56 = vadd.f32 %v1533_v59, %v10564_v27  ;;  %v2857_v40 = vmul.f32 %v10552_v26, %v10563_v21  ;;  %v10565_v59 = vld [vmem:[#allocation23_spill] sm:$0xff] }
 0x299   :  { %v1928_v35 = vadd.f32 %v1864_v34, %v10564_v27  ;;  %v2259_v23 = vadd.f32 %v2195_v45, %v10564_v27  ;;  %v2590_v41 = vadd.f32 %v2526_v22, %v10564_v27  ;;  %v3188_v29 = vmul.f32 %v10553_v57, %v10563_v21 }
 0x29a   :  { %v1009_v39 = vmax.f32 %v945_v3, 0.0  ;;  %v1661_v5 = vmax.f32 %v1597_v56, 0.0  ;;  %v2921_v30 = vadd.f32 %v2857_v40, %v10564_v27  ;;  %v3519_v31 = vmul.f32 %v10554_v13, %v10563_v21  ;;  %v10566_v56 = vld [vmem:[#allocation374_spill] sm:$0xff] }
 0x29b   :  { %v1992_v0 = vmax.f32 %v1928_v35, 0.0  ;;  %v2323_v42 = vmax.f32 %v2259_v23, 0.0  ;;  %v2654_v9 = vmax.f32 %v2590_v41, 0.0  ;;  %v3252_v54 = vadd.f32 %v3188_v29, %v10564_v27 }
 0x29c   :  { %v7910_v61 = vmul.f32 %v1160_v25, %v1009_v39  ;;  %v2985_v14 = vmax.f32 %v2921_v30, 0.0  ;;  %v3583_v38 = vadd.f32 %v3519_v31, %v10564_v27  ;;  %v7913_v58 = vmul.f32 %v1661_v5, %v1160_v25 }
 0x29d   :  { %v7915_v32 = vmul.f32 %v1992_v0, %v1160_v25  ;;  %v3316_v11 = vmax.f32 %v3252_v54, 0.0  ;;  %v7917_v19 = vmul.f32 %v2323_v42, %v1160_v25  ;;  %v7919_v8 = vmul.f32 %v2654_v9, %v1160_v25 }
 0x29e   :  { %v560_v21 = vmul.f32 %v10546_v44, %v10565_v59  ;;  %v3647_v34 = vmax.f32 %v3583_v38, 0.0  ;;  %v7923_v3 = vmul.f32 %v2985_v14, %v1160_v25  ;;  %v1454_v45 = vadd.f32 %v1453_v18, %v7838_v48 }
 0x29f   :  { %v1532_v27 = vmul.f32 %v10547_v46, %v10565_v59  ;;  %v7928_v22 = vmul.f32 %v3316_v11, %v1160_v25  ;;  %v1786_v40 = vadd.f32 %v1785_v24, %v7841_v62  ;;  %v1863_v39 = vmul.f32 %v10548_v28, %v10565_v59 }
 0x2a0   :  { %v944_v35 = vadd.f32 %v10566_v56, %v560_v21  ;;  %v7934_v23 = vmul.f32 %v3647_v34, %v1160_v25  ;;  %v2117_v29 = vadd.f32 %v2116_v6, %v7843_v49  ;;  %v2194_v48 = vmul.f32 %v10550_v55, %v10565_v59  ;;  %v1155_v49 = vpop.permute.xlu0 %1154 }
 0x2a1   :  { %v1596_v41 = vadd.f32 %v1532_v27, %v10566_v56  ;;  %v1927_v5 = vadd.f32 %v1863_v39, %v10566_v56  ;;  %v2448_v0 = vadd.f32 %v2447_v2, %v7845_v43  ;;  %v2525_v62 = vmul.f32 %v10551_v16, %v10565_v59 }
 0x2a2   :  { %v1008_v18 = vmax.f32 %v944_v35, 0.0  ;;  %v2258_v30 = vadd.f32 %v2194_v48, %v10566_v56  ;;  %v2779_v25 = vadd.f32 %v2778_v20, %v7847_v52  ;;  %v2856_v31 = vmul.f32 %v10552_v26, %v10565_v59 }
 0x2a3   :  { %v1660_v24 = vmax.f32 %v1596_v41, 0.0  ;;  %v1991_v6 = vmax.f32 %v1927_v5, 0.0  ;;  %v2589_v42 = vadd.f32 %v2525_v62, %v10566_v56  ;;  %v3110_v9 = vadd.f32 %v3109_v53, %v7851_v36 }
 0x2a4   :  { %v3187_v43 = vmul.f32 %v10553_v57, %v10565_v59  ;;  %v2322_v2 = vmax.f32 %v2258_v30, 0.0  ;;  %v2920_v54 = vadd.f32 %v2856_v31, %v10566_v56  ;;  %v3441_v14 = vadd.f32 %v3440_v50, %v7856_v10 }
 0x2a5   :  { %v3518_v52 = vmul.f32 %v10554_v13, %v10565_v59  ;;  %v2653_v20 = vmax.f32 %v2589_v42, 0.0  ;;  %v3772_v11 = vadd.f32 %v3771_v17, %v7862_v47  ;;  %v1392_v21 = vmul.f32 %v1155_v49, %v1008_v18  ;;  %v10567_v42 = vld [vmem:[#allocation38_spill] sm:$0xff] }
 0x2a6   :  { %v3251_v38 = vadd.f32 %v3187_v43, %v10566_v56  ;;  %v2984_v34 = vmax.f32 %v2920_v54, 0.0  ;;  %v1724_v53 = vmul.f32 %v1660_v24, %v1155_v49  ;;  %v2055_v27 = vmul.f32 %v1991_v6, %v1155_v49  ;;  %v10568_v6 = vld [vmem:[#allocation73_spill] sm:$0xff] }
 0x2a7   :  { %v3582_v36 = vadd.f32 %v3518_v52, %v10566_v56  ;;  %v1455_v39 = vadd.f32 %v1454_v45, %v1392_v21  ;;  %v2386_v41 = vmul.f32 %v2322_v2, %v1155_v49  ;;  %v2717_v48 = vmul.f32 %v2653_v20, %v1155_v49  ;;  %v1170_v2 = vpop.permute.xlu1 %1169 }
 0x2a8   :  { %v3315_v35 = vmax.f32 %v3251_v38, 0.0  ;;  %v1787_v10 = vadd.f32 %v1786_v40, %v1724_v53  ;;  %v2118_v50 = vadd.f32 %v2117_v29, %v2055_v27  ;;  %v3048_v62 = vmul.f32 %v2984_v34, %v1155_v49 }
 0x2a9   :  { %v3646_v5 = vmax.f32 %v3582_v36, 0.0  ;;  %v2449_v59 = vadd.f32 %v2448_v0, %v2386_v41  ;;  %v2780_v30 = vadd.f32 %v2779_v25, %v2717_v48  ;;  %v563_v47 = vmul.f32 %v10546_v44, %v10567_v42 }
 0x2aa   :  { %v3379_v31 = vmul.f32 %v3315_v35, %v1155_v49  ;;  %v3111_v17 = vadd.f32 %v3110_v9, %v3048_v62  ;;  %v1535_v56 = vmul.f32 %v10547_v46, %v10567_v42  ;;  %v1866_v45 = vmul.f32 %v10548_v28, %v10567_v42 }
 0x2ab   :  { %v3710_v18 = vmul.f32 %v3646_v5, %v1155_v49  ;;  %v947_v43 = vadd.f32 %v10568_v6, %v563_v47  ;;  %v2197_v40 = vmul.f32 %v10550_v55, %v10567_v42  ;;  %v2528_v29 = vmul.f32 %v10551_v16, %v10567_v42 }
 0x2ac   :  { %v3442_v24 = vadd.f32 %v3441_v14, %v3379_v31  ;;  %v1599_v25 = vadd.f32 %v1535_v56, %v10568_v6  ;;  %v1930_v49 = vadd.f32 %v1866_v45, %v10568_v6  ;;  %v2859_v9 = vmul.f32 %v10552_v26, %v10567_v42  ;;  %v10569_v56 = vld [vmem:[#allocation39_spill] sm:$0xff] }
 0x2ad   :  { %v3773_v0 = vadd.f32 %v3772_v11, %v3710_v18  ;;  %v1011_v54 = vmax.f32 %v947_v43, 0.0  ;;  %v2261_v14 = vadd.f32 %v2197_v40, %v10568_v6  ;;  %v2592_v52 = vadd.f32 %v2528_v29, %v10568_v6 }
 0x2ae   :  { %v3190_v20 = vmul.f32 %v10553_v57, %v10567_v42  ;;  %v1663_v38 = vmax.f32 %v1599_v25, 0.0  ;;  %v1994_v21 = vmax.f32 %v1930_v49, 0.0  ;;  %v2923_v11 = vadd.f32 %v2859_v9, %v10568_v6  ;;  %v10570_v25 = vld [vmem:[#allocation375_spill] sm:$0xff] }
 0x2af   :  { %v3521_v34 = vmul.f32 %v10554_v13, %v10567_v42  ;;  %v2325_v36 = vmax.f32 %v2261_v14, 0.0  ;;  %v2656_v53 = vmax.f32 %v2592_v52, 0.0  ;;  %v7982_v35 = vmul.f32 %v1170_v2, %v1011_v54 }
 0x2b0   :  { %v3254_v27 = vadd.f32 %v3190_v20, %v10568_v6  ;;  %v2987_v41 = vmax.f32 %v2923_v11, 0.0  ;;  %v7985_v5 = vmul.f32 %v1663_v38, %v1170_v2  ;;  %v7987_v62 = vmul.f32 %v1994_v21, %v1170_v2 }
 0x2b1   :  { %v3585_v48 = vadd.f32 %v3521_v34, %v10568_v6  ;;  %v7989_v47 = vmul.f32 %v2325_v36, %v1170_v2  ;;  %v7991_v18 = vmul.f32 %v2656_v53, %v1170_v2  ;;  %v562_v42 = vmul.f32 %v10546_v44, %v10569_v56 }
 0x2b2   :  { %v3318_v31 = vmax.f32 %v3254_v27, 0.0  ;;  %v7995_v43 = vmul.f32 %v2987_v41, %v1170_v2  ;;  %v1456_v40 = vadd.f32 %v1455_v39, %v7910_v61  ;;  %v1534_v6 = vmul.f32 %v10547_v46, %v10569_v56 }
 0x2b3   :  { %v3649_v45 = vmax.f32 %v3585_v48, 0.0  ;;  %v946_v49 = vadd.f32 %v10570_v25, %v562_v42  ;;  %v1788_v9 = vadd.f32 %v1787_v10, %v7913_v58  ;;  %v1865_v54 = vmul.f32 %v10548_v28, %v10569_v56 }
 0x2b4   :  { %v8000_v29 = vmul.f32 %v3318_v31, %v1170_v2  ;;  %v1598_v52 = vadd.f32 %v1534_v6, %v10570_v25  ;;  %v2119_v20 = vadd.f32 %v2118_v50, %v7915_v32  ;;  %v2196_v61 = vmul.f32 %v10550_v55, %v10569_v56  ;;  %v1165_v32 = vpop.permute.xlu0 %1164 }
 0x2b5   :  { %v8006_v14 = vmul.f32 %v3649_v45, %v1170_v2  ;;  %v1010_v39 = vmax.f32 %v946_v49, 0.0  ;;  %v1929_v38 = vadd.f32 %v1865_v54, %v10570_v25  ;;  %v2450_v21 = vadd.f32 %v2449_v59, %v7917_v19 }
 0x2b6   :  { %v2527_v58 = vmul.f32 %v10551_v16, %v10569_v56  ;;  %v1662_v10 = vmax.f32 %v1598_v52, 0.0  ;;  %v2260_v11 = vadd.f32 %v2196_v61, %v10570_v25  ;;  %v2781_v2 = vadd.f32 %v2780_v30, %v7919_v8 }
 0x2b7   :  { %v2858_v34 = vmul.f32 %v10552_v26, %v10569_v56  ;;  %v1993_v50 = vmax.f32 %v1929_v38, 0.0  ;;  %v3112_v53 = vadd.f32 %v3111_v17, %v7923_v3  ;;  %v3189_v19 = vmul.f32 %v10553_v57, %v10569_v56 }
 0x2b8   :  { %v2591_v36 = vadd.f32 %v2527_v58, %v10570_v25  ;;  %v2324_v59 = vmax.f32 %v2260_v11, 0.0  ;;  %v3443_v41 = vadd.f32 %v3442_v24, %v7928_v22  ;;  %v3520_v8 = vmul.f32 %v10554_v13, %v10569_v56 }
 0x2b9   :  { %v2922_v27 = vadd.f32 %v2858_v34, %v10570_v25  ;;  %v3253_v48 = vadd.f32 %v3189_v19, %v10570_v25  ;;  %v3774_v31 = vadd.f32 %v3773_v0, %v7934_v23  ;;  %v1394_v42 = vmul.f32 %v1165_v32, %v1010_v39 }
 0x2ba   :  { %v2655_v30 = vmax.f32 %v2591_v36, 0.0  ;;  %v3584_v3 = vadd.f32 %v3520_v8, %v10570_v25  ;;  %v1726_v17 = vmul.f32 %v1662_v10, %v1165_v32  ;;  %v2057_v6 = vmul.f32 %v1993_v50, %v1165_v32  ;;  %v10571_v36 = vld [vmem:[#allocation53_spill] sm:$0xff] }
 0x2bb   :  { %v2986_v45 = vmax.f32 %v2922_v27, 0.0  ;;  %v3317_v49 = vmax.f32 %v3253_v48, 0.0  ;;  %v1457_v54 = vadd.f32 %v1456_v40, %v1394_v42  ;;  %v2388_v52 = vmul.f32 %v2324_v59, %v1165_v32  ;;  %v10572_v50 = vld [vmem:[#allocation81_spill] sm:$0xff]  ;;  %v1180_v59 = vpop.permute.xlu1 %1179 }
 0x2bc   :  { %v2719_v61 = vmul.f32 %v2655_v30, %v1165_v32  ;;  %v3648_v38 = vmax.f32 %v3584_v3, 0.0  ;;  %v1789_v22 = vadd.f32 %v1788_v9, %v1726_v17  ;;  %v2120_v24 = vadd.f32 %v2119_v20, %v2057_v6 }
 0x2bd   :  { %v3050_v58 = vmul.f32 %v2986_v45, %v1165_v32  ;;  %v2451_v56 = vadd.f32 %v2450_v21, %v2388_v52  ;;  %v3381_v34 = vmul.f32 %v3317_v49, %v1165_v32  ;;  %v565_v23 = vmul.f32 %v10546_v44, %v10571_v36 }
 0x2be   :  { %v2782_v11 = vadd.f32 %v2781_v2, %v2719_v61  ;;  %v3712_v39 = vmul.f32 %v3648_v38, %v1165_v32  ;;  %v1537_v25 = vmul.f32 %v10547_v46, %v10571_v36  ;;  %v1868_v40 = vmul.f32 %v10548_v28, %v10571_v36 }
 0x2bf   :  { %v3113_v0 = vadd.f32 %v3112_v53, %v3050_v58  ;;  %v3444_v10 = vadd.f32 %v3443_v41, %v3381_v34  ;;  %v949_v19 = vadd.f32 %v10572_v50, %v565_v23  ;;  %v2199_v9 = vmul.f32 %v10550_v55, %v10571_v36 }
 0x2c0   :  { %v2530_v20 = vmul.f32 %v10551_v16, %v10571_v36  ;;  %v3775_v21 = vadd.f32 %v3774_v31, %v3712_v39  ;;  %v1601_v2 = vadd.f32 %v1537_v25, %v10572_v50  ;;  %v1932_v32 = vadd.f32 %v1868_v40, %v10572_v50  ;;  %v10573_v25 = vld [vmem:[#allocation54_spill] sm:$0xff] }
 0x2c1   :  { %v2861_v53 = vmul.f32 %v10552_v26, %v10571_v36  ;;  %v1013_v27 = vmax.f32 %v949_v19, 0.0  ;;  %v2263_v41 = vadd.f32 %v2199_v9, %v10572_v50  ;;  %v3192_v30 = vmul.f32 %v10553_v57, %v10571_v36 }
 0x2c2   :  { %v2594_v8 = vadd.f32 %v2530_v20, %v10572_v50  ;;  %v1665_v48 = vmax.f32 %v1601_v2, 0.0  ;;  %v1996_v42 = vmax.f32 %v1932_v32, 0.0  ;;  %v3523_v45 = vmul.f32 %v10554_v13, %v10571_v36  ;;  %v10574_v2 = vld [vmem:[#allocation376_spill] sm:$0xff] }
 0x2c3   :  { %v2925_v31 = vadd.f32 %v2861_v53, %v10572_v50  ;;  %v2327_v3 = vmax.f32 %v2263_v41, 0.0  ;;  %v3256_v6 = vadd.f32 %v3192_v30, %v10572_v50  ;;  %v8054_v49 = vmul.f32 %v1180_v59, %v1013_v27 }
 0x2c4   :  { %v2658_v17 = vmax.f32 %v2594_v8, 0.0  ;;  %v3587_v61 = vadd.f32 %v3523_v45, %v10572_v50  ;;  %v8057_v38 = vmul.f32 %v1665_v48, %v1180_v59  ;;  %v8059_v58 = vmul.f32 %v1996_v42, %v1180_v59 }
 0x2c5   :  { %v2989_v52 = vmax.f32 %v2925_v31, 0.0  ;;  %v3320_v34 = vmax.f32 %v3256_v6, 0.0  ;;  %v8061_v23 = vmul.f32 %v2327_v3, %v1180_v59  ;;  %v564_v36 = vmul.f32 %v10546_v44, %v10573_v25 }
 0x2c6   :  { %v8063_v39 = vmul.f32 %v2658_v17, %v1180_v59  ;;  %v3651_v40 = vmax.f32 %v3587_v61, 0.0  ;;  %v1458_v9 = vadd.f32 %v1457_v54, %v7982_v35  ;;  %v1536_v50 = vmul.f32 %v10547_v46, %v10573_v25 }
 0x2c7   :  { %v8067_v19 = vmul.f32 %v2989_v52, %v1180_v59  ;;  %v8072_v20 = vmul.f32 %v3320_v34, %v1180_v59  ;;  %v948_v32 = vadd.f32 %v10574_v2, %v564_v36  ;;  %v1790_v53 = vadd.f32 %v1789_v22, %v7985_v5 }
 0x2c8   :  { %v1867_v27 = vmul.f32 %v10548_v28, %v10573_v25  ;;  %v8078_v41 = vmul.f32 %v3651_v40, %v1180_v59  ;;  %v1600_v8 = vadd.f32 %v1536_v50, %v10574_v2  ;;  %v2121_v30 = vadd.f32 %v2120_v24, %v7987_v62  ;;  %v1175_v62 = vpop.permute.xlu0 %1174 }
 0x2c9   :  { %v2198_v35 = vmul.f32 %v10550_v55, %v10573_v25  ;;  %v1012_v54 = vmax.f32 %v948_v32, 0.0  ;;  %v2452_v42 = vadd.f32 %v2451_v56, %v7989_v47  ;;  %v2529_v5 = vmul.f32 %v10551_v16, %v10573_v25 }
 0x2ca   :  { %v1931_v48 = vadd.f32 %v1867_v27, %v10574_v2  ;;  %v1664_v22 = vmax.f32 %v1600_v8, 0.0  ;;  %v2783_v59 = vadd.f32 %v2782_v11, %v7991_v18  ;;  %v2860_v45 = vmul.f32 %v10552_v26, %v10573_v25 }
 0x2cb   :  { %v2262_v31 = vadd.f32 %v2198_v35, %v10574_v2  ;;  %v2593_v3 = vadd.f32 %v2529_v5, %v10574_v2  ;;  %v3114_v17 = vadd.f32 %v3113_v0, %v7995_v43  ;;  %v3191_v47 = vmul.f32 %v10553_v57, %v10573_v25 }
 0x2cc   :  { %v1995_v24 = vmax.f32 %v1931_v48, 0.0  ;;  %v2924_v6 = vadd.f32 %v2860_v45, %v10574_v2  ;;  %v3445_v52 = vadd.f32 %v3444_v10, %v8000_v29  ;;  %v3522_v18 = vmul.f32 %v10554_v13, %v10573_v25 }
 0x2cd   :  { %v2326_v56 = vmax.f32 %v2262_v31, 0.0  ;;  %v2657_v11 = vmax.f32 %v2593_v3, 0.0  ;;  %v3255_v61 = vadd.f32 %v3191_v47, %v10574_v2  ;;  %v3776_v34 = vadd.f32 %v3775_v21, %v8006_v14  ;;  %v10575_v3 = vld [vmem:[#allocation69_spill] sm:$0xff] }
 0x2ce   :  { %v1396_v36 = vmul.f32 %v1175_v62, %v1012_v54  ;;  %v2988_v40 = vmax.f32 %v2924_v6, 0.0  ;;  %v3586_v43 = vadd.f32 %v3522_v18, %v10574_v2  ;;  %v1728_v0 = vmul.f32 %v1664_v22, %v1175_v62 }
 0x2cf   :  { %v2059_v50 = vmul.f32 %v1995_v24, %v1175_v62  ;;  %v3319_v32 = vmax.f32 %v3255_v61, 0.0  ;;  %v2390_v8 = vmul.f32 %v2326_v56, %v1175_v62  ;;  %v2721_v35 = vmul.f32 %v2657_v11, %v1175_v62  ;;  %v10576_v24 = vld [vmem:[#allocation377_spill] sm:$0xff]  ;;  %v1190_v56 = vpop.permute.xlu1 %1189 }
 0x2d0   :  { %v1459_v27 = vadd.f32 %v1458_v9, %v1396_v36  ;;  %v3650_v48 = vmax.f32 %v3586_v43, 0.0  ;;  %v1791_v29 = vadd.f32 %v1790_v53, %v1728_v0  ;;  %v3052_v5 = vmul.f32 %v2988_v40, %v1175_v62 }
 0x2d1   :  { %v2122_v10 = vadd.f32 %v2121_v30, %v2059_v50  ;;  %v2453_v25 = vadd.f32 %v2452_v42, %v2390_v8  ;;  %v2784_v31 = vadd.f32 %v2783_v59, %v2721_v35  ;;  %v3383_v45 = vmul.f32 %v3319_v32, %v1175_v62 }
 0x2d2   :  { %v567_v14 = vmul.f32 %v10546_v44, %v10575_v3  ;;  %v3115_v21 = vadd.f32 %v3114_v17, %v3052_v5  ;;  %v3714_v54 = vmul.f32 %v3650_v48, %v1175_v62  ;;  %v1539_v2 = vmul.f32 %v10547_v46, %v10575_v3 }
 0x2d3   :  { %v1870_v9 = vmul.f32 %v10548_v28, %v10575_v3  ;;  %v3446_v22 = vadd.f32 %v3445_v52, %v3383_v45  ;;  %v2201_v53 = vmul.f32 %v10550_v55, %v10575_v3  ;;  %v2532_v30 = vmul.f32 %v10551_v16, %v10575_v3 }
 0x2d4   :  { %v951_v47 = vadd.f32 %v10576_v24, %v567_v14  ;;  %v3777_v42 = vadd.f32 %v3776_v34, %v3714_v54  ;;  %v1603_v59 = vadd.f32 %v1539_v2, %v10576_v24  ;;  %v2863_v17 = vmul.f32 %v10552_v26, %v10575_v3  ;;  %v10577_v2 = vld [vmem:[#allocation70_spill] sm:$0xff] }
 0x2d5   :  { %v1934_v62 = vadd.f32 %v1870_v9, %v10576_v24  ;;  %v2265_v52 = vadd.f32 %v2201_v53, %v10576_v24  ;;  %v2596_v18 = vadd.f32 %v2532_v30, %v10576_v24  ;;  %v3194_v11 = vmul.f32 %v10553_v57, %v10575_v3 }
 0x2d6   :  { %v1015_v6 = vmax.f32 %v951_v47, 0.0  ;;  %v1667_v61 = vmax.f32 %v1603_v59, 0.0  ;;  %v2927_v34 = vadd.f32 %v2863_v17, %v10576_v24  ;;  %v3525_v40 = vmul.f32 %v10554_v13, %v10575_v3  ;;  %v10578_v59 = vld [vmem:[#allocation378_spill] sm:$0xff] }
 0x2d7   :  { %v1998_v36 = vmax.f32 %v1934_v62, 0.0  ;;  %v2329_v43 = vmax.f32 %v2265_v52, 0.0  ;;  %v2660_v0 = vmax.f32 %v2596_v18, 0.0  ;;  %v3258_v50 = vadd.f32 %v3194_v11, %v10576_v24 }
 0x2d8   :  { %v8126_v32 = vmul.f32 %v1190_v56, %v1015_v6  ;;  %v2991_v8 = vmax.f32 %v2927_v34, 0.0  ;;  %v3589_v35 = vadd.f32 %v3525_v40, %v10576_v24  ;;  %v8129_v48 = vmul.f32 %v1667_v61, %v1190_v56 }
 0x2d9   :  { %v8131_v5 = vmul.f32 %v1998_v36, %v1190_v56  ;;  %v3322_v45 = vmax.f32 %v3258_v50, 0.0  ;;  %v8133_v14 = vmul.f32 %v2329_v43, %v1190_v56  ;;  %v8135_v54 = vmul.f32 %v2660_v0, %v1190_v56 }
 0x2da   :  { %v566_v3 = vmul.f32 %v10546_v44, %v10577_v2  ;;  %v3653_v9 = vmax.f32 %v3589_v35, 0.0  ;;  %v8139_v47 = vmul.f32 %v2991_v8, %v1190_v56  ;;  %v1460_v53 = vadd.f32 %v1459_v27, %v8054_v49 }
 0x2db   :  { %v1538_v24 = vmul.f32 %v10547_v46, %v10577_v2  ;;  %v8144_v30 = vmul.f32 %v3322_v45, %v1190_v56  ;;  %v1792_v17 = vadd.f32 %v1791_v29, %v8057_v38  ;;  %v1869_v6 = vmul.f32 %v10548_v28, %v10577_v2 }
 0x2dc   :  { %v950_v62 = vadd.f32 %v10578_v59, %v566_v3  ;;  %v8150_v52 = vmul.f32 %v3653_v9, %v1190_v56  ;;  %v2123_v11 = vadd.f32 %v2122_v10, %v8059_v58  ;;  %v2200_v49 = vmul.f32 %v10550_v55, %v10577_v2  ;;  %v1185_v58 = vpop.permute.xlu0 %1184 }
 0x2dd   :  { %v1602_v18 = vadd.f32 %v1538_v24, %v10578_v59  ;;  %v1933_v61 = vadd.f32 %v1869_v6, %v10578_v59  ;;  %v2454_v36 = vadd.f32 %v2453_v25, %v8061_v23  ;;  %v2531_v38 = vmul.f32 %v10551_v16, %v10577_v2 }
 0x2de   :  { %v1014_v27 = vmax.f32 %v950_v62, 0.0  ;;  %v2264_v34 = vadd.f32 %v2200_v49, %v10578_v59  ;;  %v2785_v56 = vadd.f32 %v2784_v31, %v8063_v39  ;;  %v2862_v40 = vmul.f32 %v10552_v26, %v10577_v2 }
 0x2df   :  { %v1666_v29 = vmax.f32 %v1602_v18, 0.0  ;;  %v1997_v10 = vmax.f32 %v1933_v61, 0.0  ;;  %v2595_v43 = vadd.f32 %v2531_v38, %v10578_v59  ;;  %v3116_v0 = vadd.f32 %v3115_v21, %v8067_v19 }
 0x2e0   :  { %v3193_v23 = vmul.f32 %v10553_v57, %v10577_v2  ;;  %v2328_v25 = vmax.f32 %v2264_v34, 0.0  ;;  %v2926_v50 = vadd.f32 %v2862_v40, %v10578_v59  ;;  %v3447_v8 = vadd.f32 %v3446_v22, %v8072_v20 }
 0x2e1   :  { %v3524_v39 = vmul.f32 %v10554_v13, %v10577_v2  ;;  %v2659_v31 = vmax.f32 %v2595_v43, 0.0  ;;  %v3778_v45 = vadd.f32 %v3777_v42, %v8078_v41  ;;  %v1398_v3 = vmul.f32 %v1185_v58, %v1014_v27  ;;  %v10579_v43 = vld [vmem:[#allocation86_spill] sm:$0xff] }
 0x2e2   :  { %v3257_v35 = vadd.f32 %v3193_v23, %v10578_v59  ;;  %v2990_v9 = vmax.f32 %v2926_v50, 0.0  ;;  %v1730_v21 = vmul.f32 %v1666_v29, %v1185_v58  ;;  %v2061_v24 = vmul.f32 %v1997_v10, %v1185_v58  ;;  %v10580_v10 = vld [vmem:[#allocation379_spill] sm:$0xff] }
 0x2e3   :  { %v3588_v19 = vadd.f32 %v3524_v39, %v10578_v59  ;;  %v1461_v6 = vadd.f32 %v1460_v53, %v1398_v3  ;;  %v2392_v18 = vmul.f32 %v2328_v25, %v1185_v58  ;;  %v2723_v49 = vmul.f32 %v2659_v31, %v1185_v58  ;;  %v1200_v25 = vpop.permute.xlu1 %1199 }
 0x2e4   :  { %v3321_v62 = vmax.f32 %v3257_v35, 0.0  ;;  %v1793_v20 = vadd.f32 %v1792_v17, %v1730_v21  ;;  %v2124_v22 = vadd.f32 %v2123_v11, %v2061_v24  ;;  %v3054_v38 = vmul.f32 %v2990_v9, %v1185_v58 }
 0x2e5   :  { %v3652_v61 = vmax.f32 %v3588_v19, 0.0  ;;  %v2455_v2 = vadd.f32 %v2454_v36, %v2392_v18  ;;  %v2786_v34 = vadd.f32 %v2785_v56, %v2723_v49  ;;  %v569_v41 = vmul.f32 %v10546_v44, %v10579_v43 }
 0x2e6   :  { %v3385_v40 = vmul.f32 %v3321_v62, %v1185_v58  ;;  %v3117_v42 = vadd.f32 %v3116_v0, %v3054_v38  ;;  %v1541_v59 = vmul.f32 %v10547_v46, %v10579_v43  ;;  %v1872_v53 = vmul.f32 %v10548_v28, %v10579_v43 }
 0x2e7   :  { %v3716_v27 = vmul.f32 %v3652_v61, %v1185_v58  ;;  %v953_v23 = vadd.f32 %v10580_v10, %v569_v41  ;;  %v2203_v17 = vmul.f32 %v10550_v55, %v10579_v43  ;;  %v2534_v11 = vmul.f32 %v10551_v16, %v10579_v43 }
 0x2e8   :  { %v3448_v29 = vadd.f32 %v3447_v8, %v3385_v40  ;;  %v1605_v56 = vadd.f32 %v1541_v59, %v10580_v10  ;;  %v1936_v58 = vadd.f32 %v1872_v53, %v10580_v10  ;;  %v2865_v0 = vmul.f32 %v10552_v26, %v10579_v43  ;;  %v10581_v59 = vld [vmem:[#allocation87_spill] sm:$0xff] }
 0x2e9   :  { %v3779_v36 = vadd.f32 %v3778_v45, %v3716_v27  ;;  %v1017_v50 = vmax.f32 %v953_v23, 0.0  ;;  %v2267_v8 = vadd.f32 %v2203_v17, %v10580_v10  ;;  %v2598_v39 = vadd.f32 %v2534_v11, %v10580_v10 }
 0x2ea   :  { %v3196_v31 = vmul.f32 %v10553_v57, %v10579_v43  ;;  %v1669_v35 = vmax.f32 %v1605_v56, 0.0  ;;  %v2000_v3 = vmax.f32 %v1936_v58, 0.0  ;;  %v2929_v45 = vadd.f32 %v2865_v0, %v10580_v10  ;;  %v10582_v56 = vld [vmem:[#allocation380_spill] sm:$0xff] }
 0x2eb   :  { %v3527_v9 = vmul.f32 %v10554_v13, %v10579_v43  ;;  %v2331_v19 = vmax.f32 %v2267_v8, 0.0  ;;  %v2662_v21 = vmax.f32 %v2598_v39, 0.0  ;;  %v8198_v62 = vmul.f32 %v1200_v25, %v1017_v50 }
 0x2ec   :  { %v3260_v24 = vadd.f32 %v3196_v31, %v10580_v10  ;;  %v2993_v18 = vmax.f32 %v2929_v45, 0.0  ;;  %v8201_v61 = vmul.f32 %v1669_v35, %v1200_v25  ;;  %v8203_v38 = vmul.f32 %v2000_v3, %v1200_v25 }
 0x2ed   :  { %v3591_v49 = vadd.f32 %v3527_v9, %v10580_v10  ;;  %v8205_v41 = vmul.f32 %v2331_v19, %v1200_v25  ;;  %v8207_v27 = vmul.f32 %v2662_v21, %v1200_v25  ;;  %v568_v43 = vmul.f32 %v10546_v44, %v10581_v59 }
 0x2ee   :  { %v3324_v40 = vmax.f32 %v3260_v24, 0.0  ;;  %v8211_v23 = vmul.f32 %v2993_v18, %v1200_v25  ;;  %v1462_v17 = vadd.f32 %v1461_v6, %v8126_v32  ;;  %v1540_v10 = vmul.f32 %v10547_v46, %v10581_v59 }
 0x2ef   :  { %v3655_v53 = vmax.f32 %v3591_v49, 0.0  ;;  %v952_v58 = vadd.f32 %v10582_v56, %v568_v43  ;;  %v1794_v0 = vadd.f32 %v1793_v20, %v8129_v48  ;;  %v1871_v50 = vmul.f32 %v10548_v28, %v10581_v59 }
 0x2f0   :  { %v8216_v11 = vmul.f32 %v3324_v40, %v1200_v25  ;;  %v1604_v39 = vadd.f32 %v1540_v10, %v10582_v56  ;;  %v2125_v31 = vadd.f32 %v2124_v22, %v8131_v5  ;;  %v2202_v32 = vmul.f32 %v10550_v55, %v10581_v59  ;;  %v1195_v5 = vpop.permute.xlu0 %1194 }
 0x2f1   :  { %v3719_v8 = vmul.f32 %v3655_v53, %v1200_v25  ;;  %v1016_v6 = vmax.f32 %v952_v58, 0.0  ;;  %v1935_v35 = vadd.f32 %v1871_v50, %v10582_v56  ;;  %v2456_v3 = vadd.f32 %v2455_v2, %v8133_v14  ;;  %v1210_v58 = vpop.permute.xlu1 %1209 }
 0x2f2   :  { %v2533_v45 = vmul.f32 %v10551_v16, %v10581_v59  ;;  %v1668_v48 = vmax.f32 %v1604_v39, 0.0  ;;  %v2266_v20 = vadd.f32 %v2202_v32, %v10582_v56  ;;  %v2787_v25 = vadd.f32 %v2786_v34, %v8135_v54 }
 0x2f3   :  { %v2864_v9 = vmul.f32 %v10552_v26, %v10581_v59  ;;  %v1999_v22 = vmax.f32 %v1935_v35, 0.0  ;;  %v3118_v21 = vadd.f32 %v3117_v42, %v8139_v47  ;;  %v3195_v14 = vmul.f32 %v10553_v57, %v10581_v59 }
 0x2f4   :  { %v2597_v19 = vadd.f32 %v2533_v45, %v10582_v56  ;;  %v2330_v2 = vmax.f32 %v2266_v20, 0.0  ;;  %v3449_v18 = vadd.f32 %v3448_v29, %v8144_v30  ;;  %v3526_v54 = vmul.f32 %v10554_v13, %v10581_v59 }
 0x2f5   :  { %v2928_v24 = vadd.f32 %v2864_v9, %v10582_v56  ;;  %v3259_v49 = vadd.f32 %v3195_v14, %v10582_v56  ;;  %v3780_v40 = vadd.f32 %v3779_v36, %v8150_v52  ;;  %v1400_v43 = vmul.f32 %v1195_v5, %v1016_v6  ;;  %v10583_v14 = vld [vmem:[#allocation107_spill] sm:$0xff] }
 0x2f6   :  { %v2661_v34 = vmax.f32 %v2597_v19, 0.0  ;;  %v3590_v47 = vadd.f32 %v3526_v54, %v10582_v56  ;;  %v1732_v42 = vmul.f32 %v1668_v48, %v1195_v5  ;;  %v2063_v10 = vmul.f32 %v1999_v22, %v1195_v5  ;;  %v10585_v56 = vld [vmem:[#allocation108_spill] sm:$0xff]  ;;  %v10587_v54 = vld [vmem:[#allocation109_spill] sm:$0xff] }
 0x2f7   :  { %v2992_v53 = vmax.f32 %v2928_v24, 0.0  ;;  %v3323_v50 = vmax.f32 %v3259_v49, 0.0  ;;  %v1463_v39 = vadd.f32 %v1462_v17, %v1400_v43  ;;  %v2394_v32 = vmul.f32 %v2330_v2, %v1195_v5 }
 0x2f8   :  { %v2725_v35 = vmul.f32 %v2661_v34, %v1195_v5  ;;  %v3654_v30 = vmax.f32 %v3590_v47, 0.0  ;;  %v1795_v29 = vadd.f32 %v1794_v0, %v1732_v42  ;;  %v2126_v45 = vadd.f32 %v2125_v31, %v2063_v10  ;;  %v10589_v34 = vld [vmem:[#allocation110_spill] sm:$0xff]  ;;  %v10591_v31 = vld [vmem:[#allocation111_spill] sm:$0xff]  ;;  %v1205_v10 = vpop.permute.xlu0 %1204 }
 0x2f9   :  { %v3056_v59 = vmul.f32 %v2992_v53, %v1195_v5  ;;  %v2457_v20 = vadd.f32 %v2456_v3, %v2394_v32  ;;  %v3387_v19 = vmul.f32 %v3323_v50, %v1195_v5  ;;  %v10584_v52 = vmax.f32 %v10583_v14, 0.0 }
 0x2fa   :  { %v2788_v9 = vadd.f32 %v2787_v25, %v2725_v35  ;;  %v3718_v24 = vmul.f32 %v3654_v30, %v1195_v5  ;;  %v10586_v48 = vmax.f32 %v10585_v56, 0.0  ;;  %v10588_v49 = vmax.f32 %v10587_v54, 0.0  ;;  %v10593_v25 = vld [vmem:[#allocation112_spill] sm:$0xff]  ;;  %v10597_v35 = vld [vmem:[#allocation114_spill] sm:$0xff]  ;;  %v10599_v54 = vld [vmem:[#allocation115_spill] sm:$0xff] }
 0x2fb   :  { %v1403_v36 = vmul.f32 %v1210_v58, %v10584_v52  ;;  %v3119_v6 = vadd.f32 %v3118_v21, %v3056_v59  ;;  %v3450_v2 = vadd.f32 %v3449_v18, %v3387_v19  ;;  %v10590_v43 = vmax.f32 %v10589_v34, 0.0  ;;  %v10595_v21 = vld [vmem:[#allocation113_spill] sm:$0xff] }
 0x2fc   :  { %v1735_v22 = vmul.f32 %v10586_v48, %v1210_v58  ;;  %v2066_v17 = vmul.f32 %v10588_v49, %v1210_v58  ;;  %v10592_v53 = vmax.f32 %v10591_v31, 0.0  ;;  %v10594_v47 = vmax.f32 %v10593_v25, 0.0 }
 0x2fd   :  { %v2397_v0 = vmul.f32 %v10590_v43, %v1210_v58  ;;  %v3781_v50 = vadd.f32 %v3780_v40, %v3718_v24  ;;  %v10596_v5 = vmax.f32 %v10595_v21, 0.0  ;;  %v10598_v30 = vmax.f32 %v10597_v35, 0.0  ;;  %v10601_v43 = vld [vmem:[#allocation116_spill] sm:$0xff] }
 0x2fe   :  { %v2728_v3 = vmul.f32 %v10592_v53, %v1210_v58  ;;  %v3059_v42 = vmul.f32 %v10594_v47, %v1210_v58  ;;  %v1464_v14 = vadd.f32 %v1463_v39, %v8198_v62  ;;  %v1796_v18 = vadd.f32 %v1795_v29, %v8201_v61  ;;  %v10603_v62 = vld [vmem:[#allocation117_spill] sm:$0xff]  ;;  %v10605_v29 = vld [vmem:[#allocation118_spill] sm:$0xff] }
 0x2ff   :  { %v3390_v32 = vmul.f32 %v10596_v5, %v1210_v58  ;;  %v3721_v59 = vmul.f32 %v10598_v30, %v1210_v58  ;;  %v2127_v19 = vadd.f32 %v2126_v45, %v8203_v38  ;;  %v2458_v52 = vadd.f32 %v2457_v20, %v8205_v41  ;;  %v10607_v41 = vld [vmem:[#allocation119_spill] sm:$0xff]  ;;  %v10613_v47 = vld [vmem:[#allocation122_spill] sm:$0xff] }
 0x300   :  { %v2789_v56 = vadd.f32 %v2788_v9, %v8207_v27  ;;  %v3120_v48 = vadd.f32 %v3119_v6, %v8211_v23  ;;  %v3451_v40 = vadd.f32 %v3450_v2, %v8216_v11  ;;  %v3782_v24 = vadd.f32 %v3781_v50, %v3719_v8  ;;  %v1220_v9 = vpop.permute.xlu1 %1219  ;;  %v10609_v6 = vld [vmem:[#allocation120_spill] sm:$0xff]  ;;  %v10611_v2 = vld [vmem:[#allocation121_spill] sm:$0xff] }
 0x301   :  { %v10600_v49 = vmax.f32 %v10599_v54, 0.0  ;;  %v10602_v58 = vmax.f32 %v10601_v43, 0.0  ;;  %v10604_v39 = vmax.f32 %v10603_v62, 0.0  ;;  %v10606_v38 = vmax.f32 %v10605_v29, 0.0  ;;  %v10615_v62 = vld [vmem:[#allocation123_spill] sm:$0xff] }
 0x302   :  { %v10608_v20 = vmax.f32 %v10607_v41, 0.0  ;;  %v10610_v11 = vmax.f32 %v10609_v6, 0.0  ;;  %v10612_v53 = vmax.f32 %v10611_v2, 0.0  ;;  %v10614_v50 = vmax.f32 %v10613_v47, 0.0  ;;  %v10619_v41 = vld [vmem:[#allocation125_spill] sm:$0xff] }
 0x303   :  { %v1402_v34 = vmul.f32 %v1205_v10, %v10600_v49  ;;  %v1734_v31 = vmul.f32 %v10602_v58, %v1205_v10  ;;  %v2065_v61 = vmul.f32 %v10604_v39, %v1205_v10  ;;  %v2396_v45 = vmul.f32 %v10606_v38, %v1205_v10 }
 0x304   :  { %v2727_v27 = vmul.f32 %v10608_v20, %v1205_v10  ;;  %v3058_v8 = vmul.f32 %v10610_v11, %v1205_v10  ;;  %v3389_v25 = vmul.f32 %v10612_v53, %v1205_v10  ;;  %v3720_v21 = vmul.f32 %v10614_v50, %v1205_v10  ;;  %v10621_v11 = vld [vmem:[#allocation126_spill] sm:$0xff]  ;;  %v10623_v10 = vld [vmem:[#allocation127_spill] sm:$0xff] }
 0x305   :  { %v1465_v23 = vadd.f32 %v1464_v14, %v1402_v34  ;;  %v1797_v5 = vadd.f32 %v1796_v18, %v1734_v31  ;;  %v2128_v35 = vadd.f32 %v2127_v19, %v2065_v61  ;;  %v2459_v30 = vadd.f32 %v2458_v52, %v2396_v45  ;;  %v10617_v14 = vld [vmem:[#allocation124_spill] sm:$0xff]  ;;  %v1215_v52 = vpop.permute.xlu0 %1214  ;;  %v10629_v45 = vld [vmem:[#allocation130_spill] sm:$0xff] }
 0x306   :  { %v2790_v54 = vadd.f32 %v2789_v56, %v2727_v27  ;;  %v3121_v49 = vadd.f32 %v3120_v48, %v3058_v8  ;;  %v3452_v43 = vadd.f32 %v3451_v40, %v3389_v25  ;;  %v3783_v58 = vadd.f32 %v3782_v24, %v3720_v21  ;;  %v10625_v56 = vld [vmem:[#allocation128_spill] sm:$0xff]  ;;  %v10627_v24 = vld [vmem:[#allocation129_spill] sm:$0xff] }
 0x307   :  { %v10616_v39 = vmax.f32 %v10615_v62, 0.0  ;;  %v10618_v34 = vmax.f32 %v10617_v14, 0.0  ;;  %v10620_v20 = vmax.f32 %v10619_v41, 0.0  ;;  %v10622_v2 = vmax.f32 %v10621_v11, 0.0  ;;  %v10631_v41 = vld [vmem:[#allocation131_spill] sm:$0xff] }
 0x308   :  { %v10624_v18 = vmax.f32 %v10623_v10, 0.0  ;;  %v10626_v48 = vmax.f32 %v10625_v56, 0.0  ;;  %v10628_v31 = vmax.f32 %v10627_v24, 0.0  ;;  %v10630_v27 = vmax.f32 %v10629_v45, 0.0  ;;  %v10635_v56 = vld [vmem:[#allocation133_spill] sm:$0xff] }
 0x309   :  { %v1405_v29 = vmul.f32 %v1220_v9, %v10616_v39  ;;  %v1737_v38 = vmul.f32 %v10618_v34, %v1220_v9  ;;  %v2068_v6 = vmul.f32 %v10620_v20, %v1220_v9  ;;  %v2399_v53 = vmul.f32 %v10622_v2, %v1220_v9  ;;  %v10633_v2 = vld [vmem:[#allocation132_spill] sm:$0xff] }
 0x30a   :  { %v2730_v19 = vmul.f32 %v10624_v18, %v1220_v9  ;;  %v3061_v40 = vmul.f32 %v10626_v48, %v1220_v9  ;;  %v3392_v61 = vmul.f32 %v10628_v31, %v1220_v9  ;;  %v3723_v8 = vmul.f32 %v10630_v27, %v1220_v9  ;;  %v10637_v31 = vld [vmem:[#allocation134_spill] sm:$0xff] }
 0x30b   :  { %v1466_v25 = vadd.f32 %v1465_v23, %v1403_v36  ;;  %v1798_v47 = vadd.f32 %v1797_v5, %v1735_v22  ;;  %v2129_v50 = vadd.f32 %v2128_v35, %v2066_v17  ;;  %v2460_v21 = vadd.f32 %v2459_v30, %v2397_v0  ;;  %v10639_v36 = vld [vmem:[#allocation135_spill] sm:$0xff]  ;;  %v1230_v0 = vpop.permute.xlu1 %1229  ;;  %v10643_v23 = vld [vmem:[#allocation137_spill] sm:$0xff]  ;;  %v10645_v30 = vld [vmem:[#allocation138_spill] sm:$0xff] }
 0x30c   :  { %v2791_v62 = vadd.f32 %v2790_v54, %v2728_v3  ;;  %v3122_v39 = vadd.f32 %v3121_v49, %v3059_v42  ;;  %v3453_v14 = vadd.f32 %v3452_v43, %v3390_v32  ;;  %v3784_v34 = vadd.f32 %v3783_v58, %v3721_v59  ;;  %v10641_v42 = vld [vmem:[#allocation136_spill] sm:$0xff] }
 0x30d   :  { %v10632_v20 = vmax.f32 %v10631_v41, 0.0  ;;  %v10634_v10 = vmax.f32 %v10633_v2, 0.0  ;;  %v10636_v48 = vmax.f32 %v10635_v56, 0.0  ;;  %v10638_v45 = vmax.f32 %v10637_v31, 0.0  ;;  %v10647_v56 = vld [vmem:[#allocation139_spill] sm:$0xff] }
 0x30e   :  { %v10640_v22 = vmax.f32 %v10639_v36, 0.0  ;;  %v10642_v32 = vmax.f32 %v10641_v42, 0.0  ;;  %v10644_v5 = vmax.f32 %v10643_v23, 0.0  ;;  %v10646_v54 = vmax.f32 %v10645_v30, 0.0  ;;  %v10651_v36 = vld [vmem:[#allocation141_spill] sm:$0xff] }
 0x30f   :  { %v1404_v11 = vmul.f32 %v1215_v52, %v10632_v20  ;;  %v1736_v18 = vmul.f32 %v10634_v10, %v1215_v52  ;;  %v2067_v24 = vmul.f32 %v10636_v48, %v1215_v52  ;;  %v2398_v9 = vmul.f32 %v10638_v45, %v1215_v52 }
 0x310   :  { %v2729_v17 = vmul.f32 %v10640_v22, %v1215_v52  ;;  %v3060_v59 = vmul.f32 %v10642_v32, %v1215_v52  ;;  %v3391_v35 = vmul.f32 %v10644_v5, %v1215_v52  ;;  %v3722_v49 = vmul.f32 %v10646_v54, %v1215_v52  ;;  %v10653_v32 = vld [vmem:[#allocation142_spill] sm:$0xff]  ;;  %v10655_v52 = vld [vmem:[#allocation143_spill] sm:$0xff] }
 0x311   :  { %v1467_v3 = vadd.f32 %v1466_v25, %v1404_v11  ;;  %v1799_v43 = vadd.f32 %v1798_v47, %v1736_v18  ;;  %v2130_v58 = vadd.f32 %v2129_v50, %v2067_v24  ;;  %v2461_v27 = vadd.f32 %v2460_v21, %v2398_v9  ;;  %v10649_v25 = vld [vmem:[#allocation140_spill] sm:$0xff]  ;;  %v1225_v21 = vpop.permute.xlu0 %1224  ;;  %v10661_v9 = vld [vmem:[#allocation146_spill] sm:$0xff] }
 0x312   :  { %v2792_v41 = vadd.f32 %v2791_v62, %v2729_v17  ;;  %v3123_v20 = vadd.f32 %v3122_v39, %v3060_v59  ;;  %v3454_v2 = vadd.f32 %v3453_v14, %v3391_v35  ;;  %v3785_v10 = vadd.f32 %v3784_v34, %v3722_v49  ;;  %v10657_v62 = vld [vmem:[#allocation144_spill] sm:$0xff]  ;;  %v10659_v34 = vld [vmem:[#allocation145_spill] sm:$0xff] }
 0x313   :  { %v10648_v48 = vmax.f32 %v10647_v56, 0.0  ;;  %v10650_v11 = vmax.f32 %v10649_v25, 0.0  ;;  %v10652_v22 = vmax.f32 %v10651_v36, 0.0  ;;  %v10654_v23 = vmax.f32 %v10653_v32, 0.0  ;;  %v10663_v36 = vld [vmem:[#allocation147_spill] sm:$0xff] }
 0x314   :  { %v10656_v47 = vmax.f32 %v10655_v52, 0.0  ;;  %v10658_v39 = vmax.f32 %v10657_v62, 0.0  ;;  %v10660_v18 = vmax.f32 %v10659_v34, 0.0  ;;  %v10662_v17 = vmax.f32 %v10661_v9, 0.0  ;;  %v10667_v62 = vld [vmem:[#allocation149_spill] sm:$0xff] }
 0x315   :  { %v1407_v31 = vmul.f32 %v1230_v0, %v10648_v48  ;;  %v1739_v45 = vmul.f32 %v10650_v11, %v1230_v0  ;;  %v2070_v42 = vmul.f32 %v10652_v22, %v1230_v0  ;;  %v2401_v5 = vmul.f32 %v10654_v23, %v1230_v0  ;;  %v10665_v23 = vld [vmem:[#allocation148_spill] sm:$0xff] }
 0x316   :  { %v2732_v50 = vmul.f32 %v10656_v47, %v1230_v0  ;;  %v3063_v14 = vmul.f32 %v10658_v39, %v1230_v0  ;;  %v3394_v24 = vmul.f32 %v10660_v18, %v1230_v0  ;;  %v3725_v59 = vmul.f32 %v10662_v17, %v1230_v0  ;;  %v10669_v18 = vld [vmem:[#allocation150_spill] sm:$0xff] }
 0x317   :  { %v1468_v35 = vadd.f32 %v1467_v3, %v1405_v29  ;;  %v1800_v30 = vadd.f32 %v1799_v43, %v1737_v38  ;;  %v2131_v54 = vadd.f32 %v2130_v58, %v2068_v6  ;;  %v2462_v49 = vadd.f32 %v2461_v27, %v2399_v53  ;;  %v10671_v29 = vld [vmem:[#allocation151_spill] sm:$0xff]  ;;  %v1240_v53 = vpop.permute.xlu1 %1239  ;;  %v10675_v3 = vld [vmem:[#allocation153_spill] sm:$0xff]  ;;  %v10677_v27 = vld [vmem:[#allocation154_spill] sm:$0xff] }
 0x318   :  { %v2793_v56 = vadd.f32 %v2792_v41, %v2730_v19  ;;  %v3124_v48 = vadd.f32 %v3123_v20, %v3061_v40  ;;  %v3455_v25 = vadd.f32 %v3454_v2, %v3392_v61  ;;  %v3786_v11 = vadd.f32 %v3785_v10, %v3723_v8  ;;  %v10673_v40 = vld [vmem:[#allocation152_spill] sm:$0xff] }
 0x319   :  { %v10664_v22 = vmax.f32 %v10663_v36, 0.0  ;;  %v10666_v52 = vmax.f32 %v10665_v23, 0.0  ;;  %v10668_v39 = vmax.f32 %v10667_v62, 0.0  ;;  %v10670_v9 = vmax.f32 %v10669_v18, 0.0  ;;  %v10679_v62 = vld [vmem:[#allocation155_spill] sm:$0xff] }
 0x31a   :  { %v10672_v38 = vmax.f32 %v10671_v29, 0.0  ;;  %v10674_v61 = vmax.f32 %v10673_v40, 0.0  ;;  %v10676_v43 = vmax.f32 %v10675_v3, 0.0  ;;  %v10678_v41 = vmax.f32 %v10677_v27, 0.0  ;;  %v10683_v29 = vld [vmem:[#allocation157_spill] sm:$0xff] }
 0x31b   :  { %v1406_v32 = vmul.f32 %v1225_v21, %v10664_v22  ;;  %v1738_v47 = vmul.f32 %v10666_v52, %v1225_v21  ;;  %v2069_v34 = vmul.f32 %v10668_v39, %v1225_v21  ;;  %v2400_v0 = vmul.f32 %v10670_v9, %v1225_v21 }
 0x31c   :  { %v2731_v6 = vmul.f32 %v10672_v38, %v1225_v21  ;;  %v3062_v8 = vmul.f32 %v10674_v61, %v1225_v21  ;;  %v3393_v58 = vmul.f32 %v10676_v43, %v1225_v21  ;;  %v3724_v20 = vmul.f32 %v10678_v41, %v1225_v21  ;;  %v10685_v61 = vld [vmem:[#allocation158_spill] sm:$0xff]  ;;  %v10687_v21 = vld [vmem:[#allocation159_spill] sm:$0xff] }
 0x31d   :  { %v1469_v19 = vadd.f32 %v1468_v35, %v1406_v32  ;;  %v1801_v2 = vadd.f32 %v1800_v30, %v1738_v47  ;;  %v2132_v10 = vadd.f32 %v2131_v54, %v2069_v34  ;;  %v2463_v17 = vadd.f32 %v2462_v49, %v2400_v0  ;;  %v10681_v35 = vld [vmem:[#allocation156_spill] sm:$0xff]  ;;  %v1235_v49 = vpop.permute.xlu0 %1234  ;;  %v10693_v0 = vld [vmem:[#allocation162_spill] sm:$0xff] }
 0x31e   :  { %v2794_v36 = vadd.f32 %v2793_v56, %v2731_v6  ;;  %v3125_v22 = vadd.f32 %v3124_v48, %v3062_v8  ;;  %v3456_v23 = vadd.f32 %v3455_v25, %v3393_v58  ;;  %v3787_v52 = vadd.f32 %v3786_v11, %v3724_v20  ;;  %v10689_v56 = vld [vmem:[#allocation160_spill] sm:$0xff]  ;;  %v10691_v11 = vld [vmem:[#allocation161_spill] sm:$0xff] }
 0x31f   :  { %v10680_v39 = vmax.f32 %v10679_v62, 0.0  ;;  %v10682_v32 = vmax.f32 %v10681_v35, 0.0  ;;  %v10684_v38 = vmax.f32 %v10683_v29, 0.0  ;;  %v10686_v3 = vmax.f32 %v10685_v61, 0.0  ;;  %v10695_v29 = vld [vmem:[#allocation163_spill] sm:$0xff] }
 0x320   :  { %v10688_v30 = vmax.f32 %v10687_v21, 0.0  ;;  %v10690_v48 = vmax.f32 %v10689_v56, 0.0  ;;  %v10692_v47 = vmax.f32 %v10691_v11, 0.0  ;;  %v10694_v6 = vmax.f32 %v10693_v0, 0.0  ;;  %v10699_v56 = vld [vmem:[#allocation165_spill] sm:$0xff] }
 0x321   :  { %v1409_v18 = vmul.f32 %v1240_v53, %v10680_v39  ;;  %v1741_v9 = vmul.f32 %v10682_v32, %v1240_v53  ;;  %v2072_v40 = vmul.f32 %v10684_v38, %v1240_v53  ;;  %v2403_v43 = vmul.f32 %v10686_v3, %v1240_v53  ;;  %v10697_v3 = vld [vmem:[#allocation164_spill] sm:$0xff] }
 0x322   :  { %v2734_v54 = vmul.f32 %v10688_v30, %v1240_v53  ;;  %v3065_v25 = vmul.f32 %v10690_v48, %v1240_v53  ;;  %v3396_v34 = vmul.f32 %v10692_v47, %v1240_v53  ;;  %v3727_v8 = vmul.f32 %v10694_v6, %v1240_v53  ;;  %v10701_v47 = vld [vmem:[#allocation166_spill] sm:$0xff] }
 0x323   :  { %v1470_v58 = vadd.f32 %v1469_v19, %v1407_v31  ;;  %v1802_v27 = vadd.f32 %v1801_v2, %v1739_v45  ;;  %v2133_v41 = vadd.f32 %v2132_v10, %v2070_v42  ;;  %v2464_v20 = vadd.f32 %v2463_v17, %v2401_v5  ;;  %v10703_v31 = vld [vmem:[#allocation167_spill] sm:$0xff]  ;;  %v1250_v5 = vpop.permute.xlu1 %1249  ;;  %v10707_v19 = vld [vmem:[#allocation169_spill] sm:$0xff]  ;;  %v10709_v17 = vld [vmem:[#allocation170_spill] sm:$0xff] }
 0x324   :  { %v2795_v62 = vadd.f32 %v2794_v36, %v2732_v50  ;;  %v3126_v39 = vadd.f32 %v3125_v22, %v3063_v14  ;;  %v3457_v35 = vadd.f32 %v3456_v23, %v3394_v24  ;;  %v3788_v32 = vadd.f32 %v3787_v52, %v3725_v59  ;;  %v10705_v14 = vld [vmem:[#allocation168_spill] sm:$0xff] }
 0x325   :  { %v10696_v38 = vmax.f32 %v10695_v29, 0.0  ;;  %v10698_v21 = vmax.f32 %v10697_v3, 0.0  ;;  %v10700_v48 = vmax.f32 %v10699_v56, 0.0  ;;  %v10702_v0 = vmax.f32 %v10701_v47, 0.0  ;;  %v10711_v56 = vld [vmem:[#allocation171_spill] sm:$0xff] }
 0x326   :  { %v10704_v45 = vmax.f32 %v10703_v31, 0.0  ;;  %v10706_v24 = vmax.f32 %v10705_v14, 0.0  ;;  %v10708_v2 = vmax.f32 %v10707_v19, 0.0  ;;  %v10710_v36 = vmax.f32 %v10709_v17, 0.0  ;;  %v10715_v31 = vld [vmem:[#allocation173_spill] sm:$0xff] }
 0x327   :  { %v1408_v61 = vmul.f32 %v1235_v49, %v10696_v38  ;;  %v1740_v30 = vmul.f32 %v10698_v21, %v1235_v49  ;;  %v2071_v11 = vmul.f32 %v10700_v48, %v1235_v49  ;;  %v2402_v53 = vmul.f32 %v10702_v0, %v1235_v49 }
 0x328   :  { %v2733_v42 = vmul.f32 %v10704_v45, %v1235_v49  ;;  %v3064_v59 = vmul.f32 %v10706_v24, %v1235_v49  ;;  %v3395_v10 = vmul.f32 %v10708_v2, %v1235_v49  ;;  %v3726_v22 = vmul.f32 %v10710_v36, %v1235_v49  ;;  %v10717_v24 = vld [vmem:[#allocation174_spill] sm:$0xff]  ;;  %v10719_v49 = vld [vmem:[#allocation175_spill] sm:$0xff] }
 0x329   :  { %v1471_v50 = vadd.f32 %v1470_v58, %v1408_v61  ;;  %v1803_v23 = vadd.f32 %v1802_v27, %v1740_v30  ;;  %v2134_v52 = vadd.f32 %v2133_v41, %v2071_v11  ;;  %v2465_v6 = vadd.f32 %v2464_v20, %v2402_v53  ;;  %v10713_v58 = vld [vmem:[#allocation172_spill] sm:$0xff]  ;;  %v1245_v20 = vpop.permute.xlu0 %1244  ;;  %v10725_v53 = vld [vmem:[#allocation178_spill] sm:$0xff] }
 0x32a   :  { %v2796_v29 = vadd.f32 %v2795_v62, %v2733_v42  ;;  %v3127_v38 = vadd.f32 %v3126_v39, %v3064_v59  ;;  %v3458_v3 = vadd.f32 %v3457_v35, %v3395_v10  ;;  %v3789_v21 = vadd.f32 %v3788_v32, %v3726_v22  ;;  %v10721_v62 = vld [vmem:[#allocation176_spill] sm:$0xff]  ;;  %v10723_v32 = vld [vmem:[#allocation177_spill] sm:$0xff] }
 0x32b   :  { %v10712_v48 = vmax.f32 %v10711_v56, 0.0  ;;  %v10714_v61 = vmax.f32 %v10713_v58, 0.0  ;;  %v10716_v45 = vmax.f32 %v10715_v31, 0.0  ;;  %v10718_v19 = vmax.f32 %v10717_v24, 0.0  ;;  %v10727_v31 = vld [vmem:[#allocation179_spill] sm:$0xff] }
 0x32c   :  { %v10720_v27 = vmax.f32 %v10719_v49, 0.0  ;;  %v10722_v39 = vmax.f32 %v10721_v62, 0.0  ;;  %v10724_v30 = vmax.f32 %v10723_v32, 0.0  ;;  %v10726_v42 = vmax.f32 %v10725_v53, 0.0  ;;  %v10731_v62 = vld [vmem:[#allocation181_spill] sm:$0xff] }
 0x32d   :  { %v1411_v47 = vmul.f32 %v1250_v5, %v10712_v48  ;;  %v1743_v0 = vmul.f32 %v10714_v61, %v1250_v5  ;;  %v2074_v14 = vmul.f32 %v10716_v45, %v1250_v5  ;;  %v2405_v2 = vmul.f32 %v10718_v19, %v1250_v5  ;;  %v10729_v19 = vld [vmem:[#allocation180_spill] sm:$0xff] }
 0x32e   :  { %v2736_v41 = vmul.f32 %v10720_v27, %v1250_v5  ;;  %v3067_v35 = vmul.f32 %v10722_v39, %v1250_v5  ;;  %v3398_v11 = vmul.f32 %v10724_v30, %v1250_v5  ;;  %v3729_v59 = vmul.f32 %v10726_v42, %v1250_v5  ;;  %v10733_v30 = vld [vmem:[#allocation182_spill] sm:$0xff] }
 0x32f   :  { %v1472_v10 = vadd.f32 %v1471_v50, %v1409_v18  ;;  %v1804_v17 = vadd.f32 %v1803_v23, %v1741_v9  ;;  %v2135_v36 = vadd.f32 %v2134_v52, %v2072_v40  ;;  %v2466_v22 = vadd.f32 %v2465_v6, %v2403_v43  ;;  %v10735_v18 = vld [vmem:[#allocation183_spill] sm:$0xff]  ;;  %v1260_v43 = vpop.permute.xlu1 %1259  ;;  %v10739_v50 = vld [vmem:[#allocation185_spill] sm:$0xff]  ;;  %v10741_v6 = vld [vmem:[#allocation186_spill] sm:$0xff] }
 0x330   :  { %v2797_v56 = vadd.f32 %v2796_v29, %v2734_v54  ;;  %v3128_v48 = vadd.f32 %v3127_v38, %v3065_v25  ;;  %v3459_v58 = vadd.f32 %v3458_v3, %v3396_v34  ;;  %v3790_v61 = vadd.f32 %v3789_v21, %v3727_v8  ;;  %v10737_v25 = vld [vmem:[#allocation184_spill] sm:$0xff] }
 0x331   :  { %v10728_v45 = vmax.f32 %v10727_v31, 0.0  ;;  %v10730_v49 = vmax.f32 %v10729_v19, 0.0  ;;  %v10732_v39 = vmax.f32 %v10731_v62, 0.0  ;;  %v10734_v53 = vmax.f32 %v10733_v30, 0.0  ;;  %v10743_v62 = vld [vmem:[#allocation187_spill] sm:$0xff] }
 0x332   :  { %v10736_v9 = vmax.f32 %v10735_v18, 0.0  ;;  %v10738_v34 = vmax.f32 %v10737_v25, 0.0  ;;  %v10740_v23 = vmax.f32 %v10739_v50, 0.0  ;;  %v10742_v29 = vmax.f32 %v10741_v6, 0.0  ;;  %v10747_v18 = vld [vmem:[#allocation189_spill] sm:$0xff] }
 0x333   :  { %v1410_v24 = vmul.f32 %v1245_v20, %v10728_v45  ;;  %v1742_v27 = vmul.f32 %v10730_v49, %v1245_v20  ;;  %v2073_v32 = vmul.f32 %v10732_v39, %v1245_v20  ;;  %v2404_v5 = vmul.f32 %v10734_v53, %v1245_v20 }
 0x334   :  { %v2735_v40 = vmul.f32 %v10736_v9, %v1245_v20  ;;  %v3066_v8 = vmul.f32 %v10738_v34, %v1245_v20  ;;  %v3397_v52 = vmul.f32 %v10740_v23, %v1245_v20  ;;  %v3728_v38 = vmul.f32 %v10742_v29, %v1245_v20  ;;  %v10749_v34 = vld [vmem:[#allocation190_spill] sm:$0xff]  ;;  %v10751_v20 = vld [vmem:[#allocation191_spill] sm:$0xff] }
 0x335   :  { %v1473_v54 = vadd.f32 %v1472_v10, %v1410_v24  ;;  %v1805_v3 = vadd.f32 %v1804_v17, %v1742_v27  ;;  %v2136_v21 = vadd.f32 %v2135_v36, %v2073_v32  ;;  %v2467_v42 = vadd.f32 %v2466_v22, %v2404_v5  ;;  %v10745_v10 = vld [vmem:[#allocation188_spill] sm:$0xff]  ;;  %v1255_v22 = vpop.permute.xlu0 %1254  ;;  %v10757_v5 = vld [vmem:[#allocation194_spill] sm:$0xff] }
 0x336   :  { %v2798_v31 = vadd.f32 %v2797_v56, %v2735_v40  ;;  %v3129_v45 = vadd.f32 %v3128_v48, %v3066_v8  ;;  %v3460_v19 = vadd.f32 %v3459_v58, %v3397_v52  ;;  %v3791_v49 = vadd.f32 %v3790_v61, %v3728_v38  ;;  %v10753_v56 = vld [vmem:[#allocation192_spill] sm:$0xff]  ;;  %v10755_v61 = vld [vmem:[#allocation193_spill] sm:$0xff] }
 0x337   :  { %v10744_v39 = vmax.f32 %v10743_v62, 0.0  ;;  %v10746_v24 = vmax.f32 %v10745_v10, 0.0  ;;  %v10748_v9 = vmax.f32 %v10747_v18, 0.0  ;;  %v10750_v50 = vmax.f32 %v10749_v34, 0.0  ;;  %v10759_v18 = vld [vmem:[#allocation195_spill] sm:$0xff] }
 0x338   :  { %v10752_v17 = vmax.f32 %v10751_v20, 0.0  ;;  %v10754_v48 = vmax.f32 %v10753_v56, 0.0  ;;  %v10756_v27 = vmax.f32 %v10755_v61, 0.0  ;;  %v10758_v40 = vmax.f32 %v10757_v5, 0.0  ;;  %v10763_v56 = vld [vmem:[#allocation197_spill] sm:$0xff] }
 0x339   :  { %v1413_v30 = vmul.f32 %v1260_v43, %v10744_v39  ;;  %v1745_v53 = vmul.f32 %v10746_v24, %v1260_v43  ;;  %v2076_v25 = vmul.f32 %v10748_v9, %v1260_v43  ;;  %v2407_v23 = vmul.f32 %v10750_v50, %v1260_v43  ;;  %v10761_v50 = vld [vmem:[#allocation196_spill] sm:$0xff] }
 0x33a   :  { %v2738_v36 = vmul.f32 %v10752_v17, %v1260_v43  ;;  %v3069_v58 = vmul.f32 %v10754_v48, %v1260_v43  ;;  %v3400_v32 = vmul.f32 %v10756_v27, %v1260_v43  ;;  %v3731_v8 = vmul.f32 %v10758_v40, %v1260_v43  ;;  %v10765_v27 = vld [vmem:[#allocation198_spill] sm:$0xff] }
 0x33b   :  { %v1474_v52 = vadd.f32 %v1473_v54, %v1411_v47  ;;  %v1806_v6 = vadd.f32 %v1805_v3, %v1743_v0  ;;  %v2137_v29 = vadd.f32 %v2136_v21, %v2074_v14  ;;  %v2468_v38 = vadd.f32 %v2467_v42, %v2405_v2  ;;  %v10767_v47 = vld [vmem:[#allocation199_spill] sm:$0xff]  ;;  %v1270_v2 = vpop.permute.xlu1 %1269  ;;  %v10771_v54 = vld [vmem:[#allocation201_spill] sm:$0xff]  ;;  %v10773_v42 = vld [vmem:[#allocation202_spill] sm:$0xff] }
 0x33c   :  { %v2799_v62 = vadd.f32 %v2798_v31, %v2736_v41  ;;  %v3130_v39 = vadd.f32 %v3129_v45, %v3067_v35  ;;  %v3461_v10 = vadd.f32 %v3460_v19, %v3398_v11  ;;  %v3792_v24 = vadd.f32 %v3791_v49, %v3729_v59  ;;  %v10769_v35 = vld [vmem:[#allocation200_spill] sm:$0xff] }
 0x33d   :  { %v10760_v9 = vmax.f32 %v10759_v18, 0.0  ;;  %v10762_v20 = vmax.f32 %v10761_v50, 0.0  ;;  %v10764_v48 = vmax.f32 %v10763_v56, 0.0  ;;  %v10766_v5 = vmax.f32 %v10765_v27, 0.0  ;;  %v10775_v56 = vld [vmem:[#allocation203_spill] sm:$0xff] }
 0x33e   :  { %v10768_v0 = vmax.f32 %v10767_v47, 0.0  ;;  %v10770_v11 = vmax.f32 %v10769_v35, 0.0  ;;  %v10772_v3 = vmax.f32 %v10771_v54, 0.0  ;;  %v10774_v31 = vmax.f32 %v10773_v42, 0.0  ;;  %v10779_v47 = vld [vmem:[#allocation205_spill] sm:$0xff] }
 0x33f   :  { %v1412_v34 = vmul.f32 %v1255_v22, %v10760_v9  ;;  %v1744_v17 = vmul.f32 %v10762_v20, %v1255_v22  ;;  %v2075_v61 = vmul.f32 %v10764_v48, %v1255_v22  ;;  %v2406_v43 = vmul.f32 %v10766_v5, %v1255_v22 }
 0x340   :  { %v2737_v14 = vmul.f32 %v10768_v0, %v1255_v22  ;;  %v3068_v59 = vmul.f32 %v10770_v11, %v1255_v22  ;;  %v3399_v21 = vmul.f32 %v10772_v3, %v1255_v22  ;;  %v3730_v45 = vmul.f32 %v10774_v31, %v1255_v22  ;;  %v10781_v11 = vld [vmem:[#allocation206_spill] sm:$0xff]  ;;  %v10783_v22 = vld [vmem:[#allocation207_spill] sm:$0xff] }
 0x341   :  { %v1475_v41 = vadd.f32 %v1474_v52, %v1412_v34  ;;  %v1807_v19 = vadd.f32 %v1806_v6, %v1744_v17  ;;  %v2138_v49 = vadd.f32 %v2137_v29, %v2075_v61  ;;  %v2469_v40 = vadd.f32 %v2468_v38, %v2406_v43  ;;  %v10777_v52 = vld [vmem:[#allocation204_spill] sm:$0xff]  ;;  %v1265_v38 = vpop.permute.xlu0 %1264  ;;  %v10789_v43 = vld [vmem:[#allocation210_spill] sm:$0xff] }
 0x342   :  { %v2800_v18 = vadd.f32 %v2799_v62, %v2737_v14  ;;  %v3131_v9 = vadd.f32 %v3130_v39, %v3068_v59  ;;  %v3462_v50 = vadd.f32 %v3461_v10, %v3399_v21  ;;  %v3793_v20 = vadd.f32 %v3792_v24, %v3730_v45  ;;  %v10785_v62 = vld [vmem:[#allocation208_spill] sm:$0xff]  ;;  %v10787_v24 = vld [vmem:[#allocation209_spill] sm:$0xff] }
 0x343   :  { %v10776_v48 = vmax.f32 %v10775_v56, 0.0  ;;  %v10778_v34 = vmax.f32 %v10777_v52, 0.0  ;;  %v10780_v0 = vmax.f32 %v10779_v47, 0.0  ;;  %v10782_v54 = vmax.f32 %v10781_v11, 0.0  ;;  %v10791_v47 = vld [vmem:[#allocation211_spill] sm:$0xff] }
 0x344   :  { %v10784_v6 = vmax.f32 %v10783_v22, 0.0  ;;  %v10786_v39 = vmax.f32 %v10785_v62, 0.0  ;;  %v10788_v17 = vmax.f32 %v10787_v24, 0.0  ;;  %v10790_v14 = vmax.f32 %v10789_v43, 0.0  ;;  %v10795_v62 = vld [vmem:[#allocation213_spill] sm:$0xff] }
 0x345   :  { %v1415_v27 = vmul.f32 %v1270_v2, %v10776_v48  ;;  %v1747_v5 = vmul.f32 %v10778_v34, %v1270_v2  ;;  %v2078_v35 = vmul.f32 %v10780_v0, %v1270_v2  ;;  %v2409_v3 = vmul.f32 %v10782_v54, %v1270_v2  ;;  %v10793_v54 = vld [vmem:[#allocation212_spill] sm:$0xff] }
 0x346   :  { %v2740_v29 = vmul.f32 %v10784_v6, %v1270_v2  ;;  %v3071_v10 = vmul.f32 %v10786_v39, %v1270_v2  ;;  %v3402_v61 = vmul.f32 %v10788_v17, %v1270_v2  ;;  %v3733_v59 = vmul.f32 %v10790_v14, %v1270_v2  ;;  %v10797_v17 = vld [vmem:[#allocation214_spill] sm:$0xff] }
 0x347   :  { %v1476_v21 = vadd.f32 %v1475_v41, %v1413_v30  ;;  %v1808_v42 = vadd.f32 %v1807_v19, %v1745_v53  ;;  %v2139_v31 = vadd.f32 %v2138_v49, %v2076_v25  ;;  %v2470_v45 = vadd.f32 %v2469_v40, %v2407_v23  ;;  %v10799_v30 = vld [vmem:[#allocation215_spill] sm:$0xff]  ;;  %v1280_v23 = vpop.permute.xlu1 %1279  ;;  %v10803_v41 = vld [vmem:[#allocation217_spill] sm:$0xff]  ;;  %v10805_v40 = vld [vmem:[#allocation218_spill] sm:$0xff] }
 0x348   :  { %v2801_v56 = vadd.f32 %v2800_v18, %v2738_v36  ;;  %v3132_v48 = vadd.f32 %v3131_v9, %v3069_v58  ;;  %v3463_v52 = vadd.f32 %v3462_v50, %v3400_v32  ;;  %v3794_v34 = vadd.f32 %v3793_v20, %v3731_v8  ;;  %v10801_v58 = vld [vmem:[#allocation216_spill] sm:$0xff] }
 0x349   :  { %v10792_v0 = vmax.f32 %v10791_v47, 0.0  ;;  %v10794_v22 = vmax.f32 %v10793_v54, 0.0  ;;  %v10796_v39 = vmax.f32 %v10795_v62, 0.0  ;;  %v10798_v43 = vmax.f32 %v10797_v17, 0.0  ;;  %v10807_v62 = vld [vmem:[#allocation219_spill] sm:$0xff] }
 0x34a   :  { %v10800_v53 = vmax.f32 %v10799_v30, 0.0  ;;  %v10802_v32 = vmax.f32 %v10801_v58, 0.0  ;;  %v10804_v19 = vmax.f32 %v10803_v41, 0.0  ;;  %v10806_v18 = vmax.f32 %v10805_v40, 0.0  ;;  %v10811_v30 = vld [vmem:[#allocation221_spill] sm:$0xff] }
 0x34b   :  { %v1414_v11 = vmul.f32 %v1265_v38, %v10792_v0  ;;  %v1746_v6 = vmul.f32 %v10794_v22, %v1265_v38  ;;  %v2077_v24 = vmul.f32 %v10796_v39, %v1265_v38  ;;  %v2408_v2 = vmul.f32 %v10798_v43, %v1265_v38 }
 0x34c   :  { %v2739_v25 = vmul.f32 %v10800_v53, %v1265_v38  ;;  %v3070_v8 = vmul.f32 %v10802_v32, %v1265_v38  ;;  %v3401_v49 = vmul.f32 %v10804_v19, %v1265_v38  ;;  %v3732_v9 = vmul.f32 %v10806_v18, %v1265_v38  ;;  %v10813_v32 = vld [vmem:[#allocation222_spill] sm:$0xff]  ;;  %v10815_v38 = vld [vmem:[#allocation223_spill] sm:$0xff] }
 0x34d   :  { %v1477_v36 = vadd.f32 %v1476_v21, %v1414_v11  ;;  %v1809_v50 = vadd.f32 %v1808_v42, %v1746_v6  ;;  %v2140_v20 = vadd.f32 %v2139_v31, %v2077_v24  ;;  %v2471_v14 = vadd.f32 %v2470_v45, %v2408_v2  ;;  %v10809_v21 = vld [vmem:[#allocation220_spill] sm:$0xff]  ;;  %v1275_v45 = vpop.permute.xlu0 %1274  ;;  %v10821_v2 = vld [vmem:[#allocation226_spill] sm:$0xff] }
 0x34e   :  { %v2802_v47 = vadd.f32 %v2801_v56, %v2739_v25  ;;  %v3133_v0 = vadd.f32 %v3132_v48, %v3070_v8  ;;  %v3464_v54 = vadd.f32 %v3463_v52, %v3401_v49  ;;  %v3795_v22 = vadd.f32 %v3794_v34, %v3732_v9  ;;  %v10817_v56 = vld [vmem:[#allocation224_spill] sm:$0xff]  ;;  %v10819_v34 = vld [vmem:[#allocation225_spill] sm:$0xff] }
 0x34f   :  { %v10808_v39 = vmax.f32 %v10807_v62, 0.0  ;;  %v10810_v11 = vmax.f32 %v10809_v21, 0.0  ;;  %v10812_v53 = vmax.f32 %v10811_v30, 0.0  ;;  %v10814_v41 = vmax.f32 %v10813_v32, 0.0  ;;  %v10823_v30 = vld [vmem:[#allocation227_spill] sm:$0xff] }
 0x350   :  { %v10816_v42 = vmax.f32 %v10815_v38, 0.0  ;;  %v10818_v48 = vmax.f32 %v10817_v56, 0.0  ;;  %v10820_v6 = vmax.f32 %v10819_v34, 0.0  ;;  %v10822_v25 = vmax.f32 %v10821_v2, 0.0  ;;  %v10827_v56 = vld [vmem:[#allocation229_spill] sm:$0xff] }
 0x351   :  { %v1417_v17 = vmul.f32 %v1280_v23, %v10808_v39  ;;  %v1749_v43 = vmul.f32 %v10810_v11, %v1280_v23  ;;  %v2080_v58 = vmul.f32 %v10812_v53, %v1280_v23  ;;  %v2411_v19 = vmul.f32 %v10814_v41, %v1280_v23  ;;  %v10825_v41 = vld [vmem:[#allocation228_spill] sm:$0xff] }
 0x352   :  { %v2742_v31 = vmul.f32 %v10816_v42, %v1280_v23  ;;  %v3073_v52 = vmul.f32 %v10818_v48, %v1280_v23  ;;  %v3404_v24 = vmul.f32 %v10820_v6, %v1280_v23  ;;  %v3735_v8 = vmul.f32 %v10822_v25, %v1280_v23  ;;  %v10829_v6 = vld [vmem:[#allocation230_spill] sm:$0xff] }
 0x353   :  { %v1478_v49 = vadd.f32 %v1477_v36, %v1415_v27  ;;  %v1810_v40 = vadd.f32 %v1809_v50, %v1747_v5  ;;  %v2141_v18 = vadd.f32 %v2140_v20, %v2078_v35  ;;  %v2472_v9 = vadd.f32 %v2471_v14, %v2409_v3  ;;  %v10831_v27 = vld [vmem:[#allocation231_spill] sm:$0xff]  ;;  %v1290_v3 = vpop.permute.xlu1 %1289  ;;  %v10835_v36 = vld [vmem:[#allocation233_spill] sm:$0xff]  ;;  %v10837_v14 = vld [vmem:[#allocation234_spill] sm:$0xff] }
 0x354   :  { %v2803_v62 = vadd.f32 %v2802_v47, %v2740_v29  ;;  %v3134_v39 = vadd.f32 %v3133_v0, %v3071_v10  ;;  %v3465_v21 = vadd.f32 %v3464_v54, %v3402_v61  ;;  %v3796_v11 = vadd.f32 %v3795_v22, %v3733_v59  ;;  %v10833_v10 = vld [vmem:[#allocation232_spill] sm:$0xff] }
 0x355   :  { %v10824_v53 = vmax.f32 %v10823_v30, 0.0  ;;  %v10826_v38 = vmax.f32 %v10825_v41, 0.0  ;;  %v10828_v48 = vmax.f32 %v10827_v56, 0.0  ;;  %v10830_v2 = vmax.f32 %v10829_v6, 0.0  ;;  %v10839_v56 = vld [vmem:[#allocation235_spill] sm:$0xff] }
 0x356   :  { %v10832_v5 = vmax.f32 %v10831_v27, 0.0  ;;  %v10834_v61 = vmax.f32 %v10833_v10, 0.0  ;;  %v10836_v50 = vmax.f32 %v10835_v36, 0.0  ;;  %v10838_v47 = vmax.f32 %v10837_v14, 0.0  ;;  %v10843_v27 = vld [vmem:[#allocation237_spill] sm:$0xff] }
 0x357   :  { %v1416_v32 = vmul.f32 %v1275_v45, %v10824_v53  ;;  %v1748_v42 = vmul.f32 %v10826_v38, %v1275_v45  ;;  %v2079_v34 = vmul.f32 %v10828_v48, %v1275_v45  ;;  %v2410_v23 = vmul.f32 %v10830_v2, %v1275_v45 }
 0x358   :  { %v2741_v35 = vmul.f32 %v10832_v5, %v1275_v45  ;;  %v3072_v59 = vmul.f32 %v10834_v61, %v1275_v45  ;;  %v3403_v20 = vmul.f32 %v10836_v50, %v1275_v45  ;;  %v3734_v0 = vmul.f32 %v10838_v47, %v1275_v45  ;;  %v10845_v61 = vld [vmem:[#allocation238_spill] sm:$0xff]  ;;  %v10847_v45 = vld [vmem:[#allocation239_spill] sm:$0xff] }
 0x359   :  { %v1479_v29 = vadd.f32 %v1478_v49, %v1416_v32  ;;  %v1811_v54 = vadd.f32 %v1810_v40, %v1748_v42  ;;  %v2142_v22 = vadd.f32 %v2141_v18, %v2079_v34  ;;  %v2473_v25 = vadd.f32 %v2472_v9, %v2410_v23  ;;  %v10841_v49 = vld [vmem:[#allocation236_spill] sm:$0xff]  ;;  %v1285_v9 = vpop.permute.xlu0 %1284  ;;  %v10853_v23 = vld [vmem:[#allocation242_spill] sm:$0xff] }
 0x35a   :  { %v2804_v30 = vadd.f32 %v2803_v62, %v2741_v35  ;;  %v3135_v53 = vadd.f32 %v3134_v39, %v3072_v59  ;;  %v3466_v41 = vadd.f32 %v3465_v21, %v3403_v20  ;;  %v3797_v38 = vadd.f32 %v3796_v11, %v3734_v0  ;;  %v10849_v62 = vld [vmem:[#allocation240_spill] sm:$0xff]  ;;  %v10851_v11 = vld [vmem:[#allocation241_spill] sm:$0xff] }
 0x35b   :  { %v10840_v48 = vmax.f32 %v10839_v56, 0.0  ;;  %v10842_v32 = vmax.f32 %v10841_v49, 0.0  ;;  %v10844_v5 = vmax.f32 %v10843_v27, 0.0  ;;  %v10846_v36 = vmax.f32 %v10845_v61, 0.0  ;;  %v10855_v27 = vld [vmem:[#allocation243_spill] sm:$0xff] }
 0x35c   :  { %v10848_v40 = vmax.f32 %v10847_v45, 0.0  ;;  %v10850_v39 = vmax.f32 %v10849_v62, 0.0  ;;  %v10852_v42 = vmax.f32 %v10851_v11, 0.0  ;;  %v10854_v35 = vmax.f32 %v10853_v23, 0.0  ;;  %v10859_v62 = vld [vmem:[#allocation245_spill] sm:$0xff] }
 0x35d   :  { %v1419_v6 = vmul.f32 %v1290_v3, %v10840_v48  ;;  %v1751_v2 = vmul.f32 %v10842_v32, %v1290_v3  ;;  %v2082_v10 = vmul.f32 %v10844_v5, %v1290_v3  ;;  %v2413_v50 = vmul.f32 %v10846_v36, %v1290_v3  ;;  %v10857_v36 = vld [vmem:[#allocation244_spill] sm:$0xff] }
 0x35e   :  { %v2744_v18 = vmul.f32 %v10848_v40, %v1290_v3  ;;  %v3075_v21 = vmul.f32 %v10850_v39, %v1290_v3  ;;  %v3406_v34 = vmul.f32 %v10852_v42, %v1290_v3  ;;  %v3737_v59 = vmul.f32 %v10854_v35, %v1290_v3  ;;  %v10861_v42 = vld [vmem:[#allocation246_spill] sm:$0xff] }
 0x35f   :  { %v1480_v20 = vadd.f32 %v1479_v29, %v1417_v17  ;;  %v1812_v14 = vadd.f32 %v1811_v54, %v1749_v43  ;;  %v2143_v47 = vadd.f32 %v2142_v22, %v2080_v58  ;;  %v2474_v0 = vadd.f32 %v2473_v25, %v2411_v19  ;;  %v10863_v17 = vld [vmem:[#allocation247_spill] sm:$0xff]  ;;  %v1300_v19 = vpop.permute.xlu1 %1299  ;;  %v10867_v29 = vld [vmem:[#allocation249_spill] sm:$0xff]  ;;  %v10869_v25 = vld [vmem:[#allocation250_spill] sm:$0xff] }
 0x360   :  { %v2805_v56 = vadd.f32 %v2804_v30, %v2742_v31  ;;  %v3136_v48 = vadd.f32 %v3135_v53, %v3073_v52  ;;  %v3467_v49 = vadd.f32 %v3466_v41, %v3404_v24  ;;  %v3798_v32 = vadd.f32 %v3797_v38, %v3735_v8  ;;  %v10865_v52 = vld [vmem:[#allocation248_spill] sm:$0xff] }
 0x361   :  { %v10856_v5 = vmax.f32 %v10855_v27, 0.0  ;;  %v10858_v45 = vmax.f32 %v10857_v36, 0.0  ;;  %v10860_v39 = vmax.f32 %v10859_v62, 0.0  ;;  %v10862_v23 = vmax.f32 %v10861_v42, 0.0  ;;  %v10871_v62 = vld [vmem:[#allocation251_spill] sm:$0xff] }
 0x362   :  { %v10864_v43 = vmax.f32 %v10863_v17, 0.0  ;;  %v10866_v24 = vmax.f32 %v10865_v52, 0.0  ;;  %v10868_v54 = vmax.f32 %v10867_v29, 0.0  ;;  %v10870_v30 = vmax.f32 %v10869_v25, 0.0  ;;  %v10875_v17 = vld [vmem:[#allocation253_spill] sm:$0xff] }
 0x363   :  { %v1418_v61 = vmul.f32 %v1285_v9, %v10856_v5  ;;  %v1750_v40 = vmul.f32 %v10858_v45, %v1285_v9  ;;  %v2081_v11 = vmul.f32 %v10860_v39, %v1285_v9  ;;  %v2412_v3 = vmul.f32 %v10862_v23, %v1285_v9 }
 0x364   :  { %v2743_v58 = vmul.f32 %v10864_v43, %v1285_v9  ;;  %v3074_v8 = vmul.f32 %v10866_v24, %v1285_v9  ;;  %v3405_v22 = vmul.f32 %v10868_v54, %v1285_v9  ;;  %v3736_v53 = vmul.f32 %v10870_v30, %v1285_v9  ;;  %v10877_v24 = vld [vmem:[#allocation254_spill] sm:$0xff]  ;;  %v10879_v9 = vld [vmem:[#allocation255_spill] sm:$0xff] }
 0x365   :  { %v1481_v31 = vadd.f32 %v1480_v20, %v1418_v61  ;;  %v1813_v41 = vadd.f32 %v1812_v14, %v1750_v40  ;;  %v2144_v38 = vadd.f32 %v2143_v47, %v2081_v11  ;;  %v2475_v35 = vadd.f32 %v2474_v0, %v2412_v3  ;;  %v10873_v20 = vld [vmem:[#allocation252_spill] sm:$0xff]  ;;  %v1295_v0 = vpop.permute.xlu0 %1294  ;;  %v10885_v3 = vld [vmem:[#allocation258_spill] sm:$0xff] }
 0x366   :  { %v2806_v27 = vadd.f32 %v2805_v56, %v2743_v58  ;;  %v3137_v5 = vadd.f32 %v3136_v48, %v3074_v8  ;;  %v3468_v36 = vadd.f32 %v3467_v49, %v3405_v22  ;;  %v3799_v45 = vadd.f32 %v3798_v32, %v3736_v53  ;;  %v10881_v56 = vld [vmem:[#allocation256_spill] sm:$0xff]  ;;  %v10883_v32 = vld [vmem:[#allocation257_spill] sm:$0xff] }
 0x367   :  { %v10872_v39 = vmax.f32 %v10871_v62, 0.0  ;;  %v10874_v61 = vmax.f32 %v10873_v20, 0.0  ;;  %v10876_v43 = vmax.f32 %v10875_v17, 0.0  ;;  %v10878_v29 = vmax.f32 %v10877_v24, 0.0  ;;  %v10887_v17 = vld [vmem:[#allocation259_spill] sm:$0xff] }
 0x368   :  { %v10880_v14 = vmax.f32 %v10879_v9, 0.0  ;;  %v10882_v48 = vmax.f32 %v10881_v56, 0.0  ;;  %v10884_v40 = vmax.f32 %v10883_v32, 0.0  ;;  %v10886_v58 = vmax.f32 %v10885_v3, 0.0  ;;  %v10891_v56 = vld [vmem:[#allocation261_spill] sm:$0xff] }
 0x369   :  { %v1421_v42 = vmul.f32 %v1300_v19, %v10872_v39  ;;  %v1753_v23 = vmul.f32 %v10874_v61, %v1300_v19  ;;  %v2084_v52 = vmul.f32 %v10876_v43, %v1300_v19  ;;  %v2415_v54 = vmul.f32 %v10878_v29, %v1300_v19  ;;  %v10889_v29 = vld [vmem:[#allocation260_spill] sm:$0xff] }
 0x36a   :  { %v2746_v47 = vmul.f32 %v10880_v14, %v1300_v19  ;;  %v3077_v49 = vmul.f32 %v10882_v48, %v1300_v19  ;;  %v3408_v11 = vmul.f32 %v10884_v40, %v1300_v19  ;;  %v3739_v8 = vmul.f32 %v10886_v58, %v1300_v19  ;;  %v10893_v40 = vld [vmem:[#allocation262_spill] sm:$0xff] }
 0x36b   :  { %v1482_v22 = vadd.f32 %v1481_v31, %v1419_v6  ;;  %v1814_v25 = vadd.f32 %v1813_v41, %v1751_v2  ;;  %v2145_v30 = vadd.f32 %v2144_v38, %v2082_v10  ;;  %v2476_v53 = vadd.f32 %v2475_v35, %v2413_v50  ;;  %v10895_v6 = vld [vmem:[#allocation263_spill] sm:$0xff]  ;;  %v1310_v50 = vpop.permute.xlu1 %1309  ;;  %v10899_v31 = vld [vmem:[#allocation265_spill] sm:$0xff]  ;;  %v10901_v35 = vld [vmem:[#allocation266_spill] sm:$0xff] }
 0x36c   :  { %v2807_v62 = vadd.f32 %v2806_v27, %v2744_v18  ;;  %v3138_v39 = vadd.f32 %v3137_v5, %v3075_v21  ;;  %v3469_v20 = vadd.f32 %v3468_v36, %v3406_v34  ;;  %v3800_v61 = vadd.f32 %v3799_v45, %v3737_v59  ;;  %v10897_v21 = vld [vmem:[#allocation264_spill] sm:$0xff] }
 0x36d   :  { %v10888_v43 = vmax.f32 %v10887_v17, 0.0  ;;  %v10890_v9 = vmax.f32 %v10889_v29, 0.0  ;;  %v10892_v48 = vmax.f32 %v10891_v56, 0.0  ;;  %v10894_v3 = vmax.f32 %v10893_v40, 0.0  ;;  %v10903_v56 = vld [vmem:[#allocation267_spill] sm:$0xff] }
 0x36e   :  { %v10896_v2 = vmax.f32 %v10895_v6, 0.0  ;;  %v10898_v34 = vmax.f32 %v10897_v21, 0.0  ;;  %v10900_v41 = vmax.f32 %v10899_v31, 0.0  ;;  %v10902_v27 = vmax.f32 %v10901_v35, 0.0  ;;  %v10907_v6 = vld [vmem:[#allocation269_spill] sm:$0xff] }
 0x36f   :  { %v1420_v24 = vmul.f32 %v1295_v0, %v10888_v43  ;;  %v1752_v14 = vmul.f32 %v10890_v9, %v1295_v0  ;;  %v2083_v32 = vmul.f32 %v10892_v48, %v1295_v0  ;;  %v2414_v19 = vmul.f32 %v10894_v3, %v1295_v0 }
 0x370   :  { %v2745_v10 = vmul.f32 %v10896_v2, %v1295_v0  ;;  %v3076_v59 = vmul.f32 %v10898_v34, %v1295_v0  ;;  %v3407_v38 = vmul.f32 %v10900_v41, %v1295_v0  ;;  %v3738_v5 = vmul.f32 %v10902_v27, %v1295_v0  ;;  %v10909_v34 = vld [vmem:[#allocation270_spill] sm:$0xff]  ;;  %v10911_v0 = vld [vmem:[#allocation271_spill] sm:$0xff] }
 0x371   :  { %v1483_v18 = vadd.f32 %v1482_v22, %v1420_v24  ;;  %v1815_v36 = vadd.f32 %v1814_v25, %v1752_v14  ;;  %v2146_v45 = vadd.f32 %v2145_v30, %v2083_v32  ;;  %v2477_v58 = vadd.f32 %v2476_v53, %v2414_v19  ;;  %v10905_v22 = vld [vmem:[#allocation268_spill] sm:$0xff]  ;;  %v1305_v53 = vpop.permute.xlu0 %1304  ;;  %v10917_v19 = vld [vmem:[#allocation274_spill] sm:$0xff] }
 0x372   :  { %v2808_v17 = vadd.f32 %v2807_v62, %v2745_v10  ;;  %v3139_v43 = vadd.f32 %v3138_v39, %v3076_v59  ;;  %v3470_v29 = vadd.f32 %v3469_v20, %v3407_v38  ;;  %v3801_v9 = vadd.f32 %v3800_v61, %v3738_v5  ;;  %v10913_v62 = vld [vmem:[#allocation272_spill] sm:$0xff]  ;;  %v10915_v61 = vld [vmem:[#allocation273_spill] sm:$0xff] }
 0x373   :  { %v10904_v48 = vmax.f32 %v10903_v56, 0.0  ;;  %v10906_v24 = vmax.f32 %v10905_v22, 0.0  ;;  %v10908_v2 = vmax.f32 %v10907_v6, 0.0  ;;  %v10910_v31 = vmax.f32 %v10909_v34, 0.0  ;;  %v10919_v6 = vld [vmem:[#allocation275_spill] sm:$0xff] }
 0x374   :  { %v10912_v25 = vmax.f32 %v10911_v0, 0.0  ;;  %v10914_v39 = vmax.f32 %v10913_v62, 0.0  ;;  %v10916_v14 = vmax.f32 %v10915_v61, 0.0  ;;  %v10918_v10 = vmax.f32 %v10917_v19, 0.0  ;;  %v10923_v62 = vld [vmem:[#allocation277_spill] sm:$0xff] }
 0x375   :  { %v1423_v40 = vmul.f32 %v1310_v50, %v10904_v48  ;;  %v1755_v3 = vmul.f32 %v10906_v24, %v1310_v50  ;;  %v2086_v21 = vmul.f32 %v10908_v2, %v1310_v50  ;;  %v2417_v41 = vmul.f32 %v10910_v31, %v1310_v50  ;;  %v10921_v31 = vld [vmem:[#allocation276_spill] sm:$0xff] }
 0x376   :  { %v2748_v30 = vmul.f32 %v10912_v25, %v1310_v50  ;;  %v3079_v20 = vmul.f32 %v10914_v39, %v1310_v50  ;;  %v3410_v32 = vmul.f32 %v10916_v14, %v1310_v50  ;;  %v3741_v59 = vmul.f32 %v10918_v10, %v1310_v50  ;;  %v10925_v14 = vld [vmem:[#allocation278_spill] sm:$0xff] }
 0x377   :  { %v1484_v38 = vadd.f32 %v1483_v18, %v1421_v42  ;;  %v1816_v35 = vadd.f32 %v1815_v36, %v1753_v23  ;;  %v2147_v27 = vadd.f32 %v2146_v45, %v2084_v52  ;;  %v2478_v5 = vadd.f32 %v2477_v58, %v2415_v54  ;;  %v10927_v42 = vld [vmem:[#allocation279_spill] sm:$0xff]  ;;  %v1320_v54 = vpop.permute.xlu1 %1319  ;;  %v10931_v18 = vld [vmem:[#allocation281_spill] sm:$0xff]  ;;  %v10933_v58 = vld [vmem:[#allocation282_spill] sm:$0xff] }
 0x378   :  { %v2809_v56 = vadd.f32 %v2808_v17, %v2746_v47  ;;  %v3140_v48 = vadd.f32 %v3139_v43, %v3077_v49  ;;  %v3471_v22 = vadd.f32 %v3470_v29, %v3408_v11  ;;  %v3802_v24 = vadd.f32 %v3801_v9, %v3739_v8  ;;  %v10929_v49 = vld [vmem:[#allocation280_spill] sm:$0xff] }
 0x379   :  { %v10920_v2 = vmax.f32 %v10919_v6, 0.0  ;;  %v10922_v0 = vmax.f32 %v10921_v31, 0.0  ;;  %v10924_v39 = vmax.f32 %v10923_v62, 0.0  ;;  %v10926_v19 = vmax.f32 %v10925_v14, 0.0  ;;  %v10935_v62 = vld [vmem:[#allocation283_spill] sm:$0xff] }
 0x37a   :  { %v10928_v23 = vmax.f32 %v10927_v42, 0.0  ;;  %v10930_v11 = vmax.f32 %v10929_v49, 0.0  ;;  %v10932_v36 = vmax.f32 %v10931_v18, 0.0  ;;  %v10934_v17 = vmax.f32 %v10933_v58, 0.0  ;;  %v10939_v42 = vld [vmem:[#allocation285_spill] sm:$0xff] }
 0x37b   :  { %v1422_v34 = vmul.f32 %v1305_v53, %v10920_v2  ;;  %v1754_v25 = vmul.f32 %v10922_v0, %v1305_v53  ;;  %v2085_v61 = vmul.f32 %v10924_v39, %v1305_v53  ;;  %v2416_v50 = vmul.f32 %v10926_v19, %v1305_v53 }
 0x37c   :  { %v2747_v52 = vmul.f32 %v10928_v23, %v1305_v53  ;;  %v3078_v8 = vmul.f32 %v10930_v11, %v1305_v53  ;;  %v3409_v45 = vmul.f32 %v10932_v36, %v1305_v53  ;;  %v3740_v43 = vmul.f32 %v10934_v17, %v1305_v53  ;;  %v10941_v11 = vld [vmem:[#allocation286_spill] sm:$0xff]  ;;  %v10943_v53 = vld [vmem:[#allocation287_spill] sm:$0xff] }
 0x37d   :  { %v1485_v47 = vadd.f32 %v1484_v38, %v1422_v34  ;;  %v1817_v29 = vadd.f32 %v1816_v35, %v1754_v25  ;;  %v2148_v9 = vadd.f32 %v2147_v27, %v2085_v61  ;;  %v2479_v10 = vadd.f32 %v2478_v5, %v2416_v50  ;;  %v10937_v38 = vld [vmem:[#allocation284_spill] sm:$0xff]  ;;  %v1315_v5 = vpop.permute.xlu0 %1314  ;;  %v10949_v50 = vld [vmem:[#allocation290_spill] sm:$0xff] }
 0x37e   :  { %v2810_v6 = vadd.f32 %v2809_v56, %v2747_v52  ;;  %v3141_v2 = vadd.f32 %v3140_v48, %v3078_v8  ;;  %v3472_v31 = vadd.f32 %v3471_v22, %v3409_v45  ;;  %v3803_v0 = vadd.f32 %v3802_v24, %v3740_v43  ;;  %v10945_v56 = vld [vmem:[#allocation288_spill] sm:$0xff]  ;;  %v10947_v24 = vld [vmem:[#allocation289_spill] sm:$0xff] }
 0x37f   :  { %v10936_v39 = vmax.f32 %v10935_v62, 0.0  ;;  %v10938_v34 = vmax.f32 %v10937_v38, 0.0  ;;  %v10940_v23 = vmax.f32 %v10939_v42, 0.0  ;;  %v10942_v18 = vmax.f32 %v10941_v11, 0.0  ;;  %v10951_v42 = vld [vmem:[#allocation291_spill] sm:$0xff] }
 0x380   :  { %v10944_v35 = vmax.f32 %v10943_v53, 0.0  ;;  %v10946_v48 = vmax.f32 %v10945_v56, 0.0  ;;  %v10948_v25 = vmax.f32 %v10947_v24, 0.0  ;;  %v10950_v52 = vmax.f32 %v10949_v50, 0.0  ;;  %v10955_v56 = vld [vmem:[#allocation293_spill] sm:$0xff] }
 0x381   :  { %v1425_v14 = vmul.f32 %v1320_v54, %v10936_v39  ;;  %v1757_v19 = vmul.f32 %v10938_v34, %v1320_v54  ;;  %v2088_v49 = vmul.f32 %v10940_v23, %v1320_v54  ;;  %v2419_v36 = vmul.f32 %v10942_v18, %v1320_v54  ;;  %v10953_v18 = vld [vmem:[#allocation292_spill] sm:$0xff] }
 0x382   :  { %v2750_v27 = vmul.f32 %v10944_v35, %v1320_v54  ;;  %v3081_v22 = vmul.f32 %v10946_v48, %v1320_v54  ;;  %v3412_v61 = vmul.f32 %v10948_v25, %v1320_v54  ;;  %v3743_v8 = vmul.f32 %v10950_v52, %v1320_v54  ;;  %v10957_v25 = vld [vmem:[#allocation294_spill] sm:$0xff] }
 0x383   :  { %v1486_v45 = vadd.f32 %v1485_v47, %v1423_v40  ;;  %v1818_v58 = vadd.f32 %v1817_v29, %v1755_v3  ;;  %v2149_v17 = vadd.f32 %v2148_v9, %v2086_v21  ;;  %v2480_v43 = vadd.f32 %v2479_v10, %v2417_v41  ;;  %v10959_v40 = vld [vmem:[#allocation295_spill] sm:$0xff]  ;;  %v1330_v41 = vpop.permute.xlu1 %1329  ;;  %v10963_v47 = vld [vmem:[#allocation297_spill] sm:$0xff]  ;;  %v10965_v10 = vld [vmem:[#allocation298_spill] sm:$0xff] }
 0x384   :  { %v2811_v62 = vadd.f32 %v2810_v6, %v2748_v30  ;;  %v3142_v39 = vadd.f32 %v3141_v2, %v3079_v20  ;;  %v3473_v38 = vadd.f32 %v3472_v31, %v3410_v32  ;;  %v3804_v34 = vadd.f32 %v3803_v0, %v3741_v59  ;;  %v10961_v20 = vld [vmem:[#allocation296_spill] sm:$0xff] }
 0x385   :  { %v10952_v23 = vmax.f32 %v10951_v42, 0.0  ;;  %v10954_v53 = vmax.f32 %v10953_v18, 0.0  ;;  %v10956_v48 = vmax.f32 %v10955_v56, 0.0  ;;  %v10958_v50 = vmax.f32 %v10957_v25, 0.0  ;;  %v10967_v56 = vld [vmem:[#allocation299_spill] sm:$0xff] }
 0x386   :  { %v10960_v3 = vmax.f32 %v10959_v40, 0.0  ;;  %v10962_v32 = vmax.f32 %v10961_v20, 0.0  ;;  %v10964_v29 = vmax.f32 %v10963_v47, 0.0  ;;  %v10966_v6 = vmax.f32 %v10965_v10, 0.0  ;;  %v10971_v40 = vld [vmem:[#allocation301_spill] sm:$0xff] }
 0x387   :  { %v1424_v11 = vmul.f32 %v1315_v5, %v10952_v23  ;;  %v1756_v35 = vmul.f32 %v10954_v53, %v1315_v5  ;;  %v2087_v24 = vmul.f32 %v10956_v48, %v1315_v5  ;;  %v2418_v54 = vmul.f32 %v10958_v50, %v1315_v5 }
 0x388   :  { %v2749_v21 = vmul.f32 %v10960_v3, %v1315_v5  ;;  %v3080_v59 = vmul.f32 %v10962_v32, %v1315_v5  ;;  %v3411_v9 = vmul.f32 %v10964_v29, %v1315_v5  ;;  %v3742_v2 = vmul.f32 %v10966_v6, %v1315_v5  ;;  %v10973_v32 = vld [vmem:[#allocation302_spill] sm:$0xff]  ;;  %v10975_v5 = vld [vmem:[#allocation303_spill] sm:$0xff] }
 0x389   :  { %v1487_v30 = vadd.f32 %v1486_v45, %v1424_v11  ;;  %v1819_v31 = vadd.f32 %v1818_v58, %v1756_v35  ;;  %v2150_v0 = vadd.f32 %v2149_v17, %v2087_v24  ;;  %v2481_v52 = vadd.f32 %v2480_v43, %v2418_v54  ;;  %v10969_v45 = vld [vmem:[#allocation300_spill] sm:$0xff]  ;;  %v1325_v43 = vpop.permute.xlu0 %1324  ;;  %v10981_v54 = vld [vmem:[#allocation306_spill] sm:$0xff] }
 0x38a   :  { %v2812_v42 = vadd.f32 %v2811_v62, %v2749_v21  ;;  %v3143_v23 = vadd.f32 %v3142_v39, %v3080_v59  ;;  %v3474_v18 = vadd.f32 %v3473_v38, %v3411_v9  ;;  %v3805_v53 = vadd.f32 %v3804_v34, %v3742_v2  ;;  %v10977_v62 = vld [vmem:[#allocation304_spill] sm:$0xff]  ;;  %v10979_v34 = vld [vmem:[#allocation305_spill] sm:$0xff] }
 0x38b   :  { %v10968_v48 = vmax.f32 %v10967_v56, 0.0  ;;  %v10970_v11 = vmax.f32 %v10969_v45, 0.0  ;;  %v10972_v3 = vmax.f32 %v10971_v40, 0.0  ;;  %v10974_v47 = vmax.f32 %v10973_v32, 0.0  ;;  %v10983_v40 = vld [vmem:[#allocation307_spill] sm:$0xff] }
 0x38c   :  { %v10976_v58 = vmax.f32 %v10975_v5, 0.0  ;;  %v10978_v39 = vmax.f32 %v10977_v62, 0.0  ;;  %v10980_v35 = vmax.f32 %v10979_v34, 0.0  ;;  %v10982_v21 = vmax.f32 %v10981_v54, 0.0  ;;  %v10987_v62 = vld [vmem:[#allocation309_spill] sm:$0xff] }
 0x38d   :  { %v1427_v25 = vmul.f32 %v1330_v41, %v10968_v48  ;;  %v1759_v50 = vmul.f32 %v10970_v11, %v1330_v41  ;;  %v2090_v20 = vmul.f32 %v10972_v3, %v1330_v41  ;;  %v2421_v29 = vmul.f32 %v10974_v47, %v1330_v41  ;;  %v10985_v47 = vld [vmem:[#allocation308_spill] sm:$0xff] }
 0x38e   :  { %v2752_v17 = vmul.f32 %v10976_v58, %v1330_v41  ;;  %v3083_v38 = vmul.f32 %v10978_v39, %v1330_v41  ;;  %v3414_v24 = vmul.f32 %v10980_v35, %v1330_v41  ;;  %v3745_v59 = vmul.f32 %v10982_v21, %v1330_v41  ;;  %v10989_v35 = vld [vmem:[#allocation310_spill] sm:$0xff] }
 0x38f   :  { %v1488_v9 = vadd.f32 %v1487_v30, %v1425_v14  ;;  %v1820_v10 = vadd.f32 %v1819_v31, %v1757_v19  ;;  %v2151_v6 = vadd.f32 %v2150_v0, %v2088_v49  ;;  %v2482_v2 = vadd.f32 %v2481_v52, %v2419_v36  ;;  %v10991_v14 = vld [vmem:[#allocation311_spill] sm:$0xff]  ;;  %v1340_v36 = vpop.permute.xlu1 %1339  ;;  %v10995_v30 = vld [vmem:[#allocation313_spill] sm:$0xff]  ;;  %v10997_v52 = vld [vmem:[#allocation314_spill] sm:$0xff] }
 0x390   :  { %v2813_v56 = vadd.f32 %v2812_v42, %v2750_v27  ;;  %v3144_v48 = vadd.f32 %v3143_v23, %v3081_v22  ;;  %v3475_v45 = vadd.f32 %v3474_v18, %v3412_v61  ;;  %v3806_v11 = vadd.f32 %v3805_v53, %v3743_v8  ;;  %v10993_v22 = vld [vmem:[#allocation312_spill] sm:$0xff] }
 0x391   :  { %v10984_v3 = vmax.f32 %v10983_v40, 0.0  ;;  %v10986_v5 = vmax.f32 %v10985_v47, 0.0  ;;  %v10988_v39 = vmax.f32 %v10987_v62, 0.0  ;;  %v10990_v54 = vmax.f32 %v10989_v35, 0.0  ;;  %v10999_v62 = vld [vmem:[#allocation315_spill] sm:$0xff] }
 0x392   :  { %v10992_v19 = vmax.f32 %v10991_v14, 0.0  ;;  %v10994_v61 = vmax.f32 %v10993_v22, 0.0  ;;  %v10996_v31 = vmax.f32 %v10995_v30, 0.0  ;;  %v10998_v42 = vmax.f32 %v10997_v52, 0.0  ;;  %v11003_v14 = vld [vmem:[#allocation317_spill] sm:$0xff] }
 0x393   :  { %v1426_v32 = vmul.f32 %v1325_v43, %v10984_v3  ;;  %v1758_v58 = vmul.f32 %v10986_v5, %v1325_v43  ;;  %v2089_v34 = vmul.f32 %v10988_v39, %v1325_v43  ;;  %v2420_v41 = vmul.f32 %v10990_v54, %v1325_v43 }
 0x394   :  { %v2751_v49 = vmul.f32 %v10992_v19, %v1325_v43  ;;  %v3082_v8 = vmul.f32 %v10994_v61, %v1325_v43  ;;  %v3413_v0 = vmul.f32 %v10996_v31, %v1325_v43  ;;  %v3744_v23 = vmul.f32 %v10998_v42, %v1325_v43  ;;  %v11005_v61 = vld [vmem:[#allocation318_spill] sm:$0xff]  ;;  %v11007_v43 = vld [vmem:[#allocation319_spill] sm:$0xff] }
 0x395   :  { %v1489_v27 = vadd.f32 %v1488_v9, %v1426_v32  ;;  %v1821_v18 = vadd.f32 %v1820_v10, %v1758_v58  ;;  %v2152_v53 = vadd.f32 %v2151_v6, %v2089_v34  ;;  %v2483_v21 = vadd.f32 %v2482_v2, %v2420_v41  ;;  %v11001_v9 = vld [vmem:[#allocation316_spill] sm:$0xff]  ;;  %v1335_v2 = vpop.permute.xlu0 %1334  ;;  %v11013_v41 = vld [vmem:[#allocation322_spill] sm:$0xff] }
 0x396   :  { %v2814_v40 = vadd.f32 %v2813_v56, %v2751_v49  ;;  %v3145_v3 = vadd.f32 %v3144_v48, %v3082_v8  ;;  %v3476_v47 = vadd.f32 %v3475_v45, %v3413_v0  ;;  %v3807_v5 = vadd.f32 %v3806_v11, %v3744_v23  ;;  %v11009_v56 = vld [vmem:[#allocation320_spill] sm:$0xff]  ;;  %v11011_v11 = vld [vmem:[#allocation321_spill] sm:$0xff] }
 0x397   :  { %v11000_v39 = vmax.f32 %v10999_v62, 0.0  ;;  %v11002_v32 = vmax.f32 %v11001_v9, 0.0  ;;  %v11004_v19 = vmax.f32 %v11003_v14, 0.0  ;;  %v11006_v30 = vmax.f32 %v11005_v61, 0.0  ;;  %v11016_v61 = vld [vmem:[#allocation323_spill] sm:$0xff] }
 0x398   :  { %v11008_v10 = vmax.f32 %v11007_v43, 0.0  ;;  %v11010_v48 = vmax.f32 %v11009_v56, 0.0  ;;  %v11012_v58 = vmax.f32 %v11011_v11, 0.0  ;;  %v11014_v49 = vmax.f32 %v11013_v41, 0.0  ;;  %v11020_v11 = vld [vmem:[#allocation325_spill] sm:$0xff] }
 0x399   :  { %v1429_v35 = vmul.f32 %v1340_v36, %v11000_v39  ;;  %v1761_v54 = vmul.f32 %v11002_v32, %v1340_v36  ;;  %v2092_v22 = vmul.f32 %v11004_v19, %v1340_v36  ;;  %v2423_v31 = vmul.f32 %v11006_v30, %v1340_v36 }
 0x39a   :  { %v2754_v6 = vmul.f32 %v11008_v10, %v1340_v36  ;;  %v3085_v45 = vmul.f32 %v11010_v48, %v1340_v36  ;;  %v3416_v34 = vmul.f32 %v11012_v58, %v1340_v36  ;;  %v3747_v8 = vmul.f32 %v11014_v49, %v1340_v36  ;;  %v11018_v10 = vld [vmem:[#allocation324_spill] sm:$0xff] }
 0x39b   :  { %v1490_v0 = vadd.f32 %v1489_v27, %v1427_v25  ;;  %v1822_v52 = vadd.f32 %v1821_v18, %v1759_v50  ;;  %v2153_v42 = vadd.f32 %v2152_v53, %v2090_v20  ;;  %v2484_v23 = vadd.f32 %v2483_v21, %v2421_v29  ;;  %v11022_v25 = vld [vmem:[#allocation326_spill] sm:$0xff]  ;;  %v1350_v29 = vpop.permute.xlu1 %1349  ;;  %v11026_v27 = vld [vmem:[#allocation328_spill] sm:$0xff]  ;;  %v11028_v53 = vld [vmem:[#allocation329_spill] sm:$0xff] }
 0x39c   :  { %v2815_v62 = vadd.f32 %v2814_v40, %v2752_v17  ;;  %v3146_v39 = vadd.f32 %v3145_v3, %v3083_v38  ;;  %v3477_v9 = vadd.f32 %v3476_v47, %v3414_v24  ;;  %v3808_v32 = vadd.f32 %v3807_v5, %v3745_v59  ;;  %v11024_v38 = vld [vmem:[#allocation327_spill] sm:$0xff] }
 0x39d   :  { %v11015_v14 = vmax.f32 %v7295_v60, 0.0  ;;  %v11017_v30 = vmax.f32 %v11016_v61, 0.0  ;;  %v11019_v56 = vmax.f32 %v11018_v10, 0.0  ;;  %v11021_v58 = vmax.f32 %v11020_v11, 0.0  ;;  %v11033_v11 = vld [vmem:[#allocation331_spill] sm:$0xff] }
 0x39e   :  { %v11023_v50 = vmax.f32 %v11022_v25, 0.0  ;;  %v11025_v24 = vmax.f32 %v11024_v38, 0.0  ;;  %v11027_v60 = vmax.f32 %v11026_v27, 0.0  ;;  %v11029_v21 = vmax.f32 %v11028_v53, 0.0 }
 0x39f   :  { %v1428_v19 = vmul.f32 %v1335_v2, %v11015_v14  ;;  %v1760_v43 = vmul.f32 %v11017_v30, %v1335_v2  ;;  %v2091_v48 = vmul.f32 %v11019_v56, %v1335_v2  ;;  %v2422_v36 = vmul.f32 %v11021_v58, %v1335_v2 }
 0x3a0   :  { %v2753_v20 = vmul.f32 %v11023_v50, %v1335_v2  ;;  %v3084_v59 = vmul.f32 %v11025_v24, %v1335_v2  ;;  %v3415_v18 = vmul.f32 %v11027_v60, %v1335_v2  ;;  %v3746_v40 = vmul.f32 %v11029_v21, %v1335_v2  ;;  %v11035_v2 = vld [vmem:[#allocation332_spill] sm:$0xff] }
 0x3a1   :  { %v1491_v17 = vadd.f32 %v1490_v0, %v1428_v19  ;;  %v1823_v3 = vadd.f32 %v1822_v52, %v1760_v43  ;;  %v2154_v47 = vadd.f32 %v2153_v42, %v2091_v48  ;;  %v2485_v5 = vadd.f32 %v2484_v23, %v2422_v36  ;;  %v11031_v0 = vld [vmem:[#allocation330_spill] sm:$0xff]  ;;  %v11037_v23 = vld [vmem:[#allocation333_spill] sm:$0xff]  ;;  %v11041_v48 = vld [vmem:[#allocation335_spill] sm:$0xff] }
 0x3a2   :  { %v2816_v41 = vadd.f32 %v2815_v62, %v2753_v20  ;;  %v3147_v49 = vadd.f32 %v3146_v39, %v3084_v59  ;;  %v3478_v14 = vadd.f32 %v3477_v9, %v3415_v18  ;;  %v3809_v61 = vadd.f32 %v3808_v32, %v3746_v40  ;;  %v1345_v9 = vpop.permute.xlu0 %1344  ;;  %v11043_v20 = vld [vmem:[#allocation336_spill] sm:$0xff] }
 0x3a3   :  { %v11030_v30 = vmax.f32 %v7327_v37, 0.0  ;;  %v11032_v19 = vmax.f32 %v11031_v0, 0.0  ;;  %v11034_v58 = vmax.f32 %v11033_v11, 0.0  ;;  %v11036_v52 = vmax.f32 %v11035_v2, 0.0  ;;  %v11039_v37 = vld [vmem:[#allocation334_spill] sm:$0xff]  ;;  %v11045_v0 = vld [vmem:[#allocation337_spill] sm:$0xff] }
 0x3a4   :  { %v11038_v62 = vmax.f32 %v11037_v23, 0.0  ;;  %v11040_v32 = vmax.f32 %v11039_v37, 0.0  ;;  %v11042_v36 = vmax.f32 %v11041_v48, 0.0  ;;  %v11044_v38 = vmax.f32 %v11043_v20, 0.0 }
 0x3a5   :  { %v8702_v10 = vmul.f32 %v1350_v29, %v11030_v30  ;;  %v8706_v56 = vmul.f32 %v11032_v19, %v1350_v29  ;;  %v8710_v25 = vmul.f32 %v11034_v58, %v1350_v29  ;;  %v8714_v42 = vmul.f32 %v11036_v52, %v1350_v29 }
 0x3a6   :  { %v8718_v39 = vmul.f32 %v11038_v62, %v1350_v29  ;;  %v8722_v43 = vmul.f32 %v11040_v32, %v1350_v29  ;;  %v8726_v50 = vmul.f32 %v11042_v36, %v1350_v29  ;;  %v8730_v24 = vmul.f32 %v11044_v38, %v1350_v29  ;;  %v11049_v62 = vld [vmem:[#allocation338_spill] sm:$0xff] }
 0x3a7   :  { %v1492_v59 = vadd.f32 %v1491_v17, %v1429_v35  ;;  %v1824_v27 = vadd.f32 %v1823_v3, %v1761_v54  ;;  %v2155_v60 = vadd.f32 %v2154_v47, %v2092_v22  ;;  %v2486_v18 = vadd.f32 %v2485_v5, %v2423_v31  ;;  %v1360_v22 = vpop.permute.xlu1 %1359  ;;  %v11056_v47 = vld [vmem:[#allocation341_spill] sm:$0xff] }
 0x3a8   :  { %v2817_v53 = vadd.f32 %v2816_v41, %v2754_v6  ;;  %v3148_v21 = vadd.f32 %v3147_v49, %v3085_v45  ;;  %v3479_v40 = vadd.f32 %v3478_v14, %v3416_v34  ;;  %v3810_v30 = vadd.f32 %v3809_v61, %v3747_v8  ;;  %v11052_v6 = vld [vmem:[#allocation339_spill] sm:$0xff]  ;;  %v11054_v8 = vld [vmem:[#allocation340_spill] sm:$0xff]  ;;  %v1355_v61 = vpop.permute.xlu0 %1354 }
 0x3a9   :  { %v11046_v19 = vmax.f32 %v11045_v0, 0.0  ;;  %v11047_v58 = vmax.f32 %v7362_v33, 0.0  ;;  %v11048_v52 = vmax.f32 %v7365_v63, 0.0  ;;  %v11050_v29 = vmax.f32 %v11049_v62, 0.0 }
 0x3aa   :  { %v11051_v35 = vmax.f32 %v7371_v15, 0.0  ;;  %v11053_v45 = vmax.f32 %v11052_v6, 0.0  ;;  %v11055_v17 = vmax.f32 %v11054_v8, 0.0  ;;  %v11057_v33 = vmax.f32 %v11056_v47, 0.0  ;;  %v11075_v6 = vld [vmem:[#allocation352_spill] sm:$0xff]  ;;  %v11077_v8 = vld [vmem:[#allocation353_spill] sm:$0xff] }
 0x3ab   :  { %v1430_v11 = vmul.f32 %v1345_v9, %v11046_v19  ;;  %v1762_v2 = vmul.f32 %v11047_v58, %v1345_v9  ;;  %v2093_v23 = vmul.f32 %v11048_v52, %v1345_v9  ;;  %v2424_v37 = vmul.f32 %v11050_v29, %v1345_v9  ;;  %v11066_v19 = vld [vmem:[#allocation347_spill] sm:$0xff]  ;;  %v11068_v58 = vld [vmem:[#allocation348_spill] sm:$0xff]  ;;  %v11070_v52 = vld [vmem:[#allocation350_spill] sm:$0xff] }
 0x3ac   :  { %v2755_v54 = vmul.f32 %v11051_v35, %v1345_v9  ;;  %v3086_v34 = vmul.f32 %v11053_v45, %v1345_v9  ;;  %v3417_v3 = vmul.f32 %v11055_v17, %v1345_v9  ;;  %v3748_v5 = vmul.f32 %v11057_v33, %v1345_v9  ;;  %v11079_v47 = vld [vmem:[#allocation354_spill] sm:$0xff] }
 0x3ad   :  { %v1493_v31 = vadd.f32 %v1492_v59, %v1430_v11  ;;  %v1825_v41 = vadd.f32 %v1824_v27, %v1762_v2  ;;  %v2156_v63 = vadd.f32 %v2155_v60, %v2093_v23  ;;  %v8748_v49 = vadd.f32 %v2486_v18, %v2424_v37  ;;  %v11073_v37 = vld [vmem:[#allocation351_spill] sm:$0xff] }
 0x3ae   :  { %v8750_v14 = vadd.f32 %v2817_v53, %v2755_v54  ;;  %v8752_v15 = vadd.f32 %v3148_v21, %v3086_v34  ;;  %v8754_v32 = vadd.f32 %v3479_v40, %v3417_v3  ;;  %v8756_v48 = vadd.f32 %v3810_v30, %v3748_v5  ;;  %v11062_v53 = vld [vmem:[#allocation345_spill] sm:$0xff]  ;;  %v11064_v30 = vld [vmem:[#allocation346_spill] sm:$0xff]  ;;  %v11081_v5 = vld [vmem:[#allocation355_spill] sm:$0xff] }
 0x3af   :  { %v11058_v36 = vmax.f32 %v7393_v12, 0.0  ;;  %v11059_v38 = vmax.f32 %v7396_v51, 0.0  ;;  %v11060_v59 = vmax.f32 %v7399_v1, 0.0  ;;  %v11061_v60 = vmax.f32 %v7402_v4, 0.0 }
 0x3b0   :  { %v11063_v21 = vmax.f32 %v11062_v53, 0.0  ;;  %v11065_v12 = vmax.f32 %v11064_v30, 0.0  ;;  %v11067_v51 = vmax.f32 %v11066_v19, 0.0  ;;  %v11069_v1 = vmax.f32 %v11068_v58, 0.0  ;;  %v11085_v53 = vld [vmem:[#allocation342_spill] sm:$0xff]  ;;  %v11086_v58 = vld [vmem:[#allocation344_spill] sm:$0xff] }
 0x3b1   :  { %v8760_v20 = vmul.f32 %v1360_v22, %v11058_v36  ;;  %v8764_v9 = vmul.f32 %v11059_v38, %v1360_v22  ;;  %v8768_v27 = vmul.f32 %v11060_v59, %v1360_v22  ;;  %v8772_v18 = vmul.f32 %v11061_v60, %v1360_v22 }
 0x3b2   :  { %v8776_v40 = vmul.f32 %v11063_v21, %v1360_v22  ;;  %v8780_v0 = vmul.f32 %v11065_v12, %v1360_v22  ;;  %v8784_v11 = vmul.f32 %v11067_v51, %v1360_v22  ;;  %v8788_v2 = vmul.f32 %v11069_v1, %v1360_v22 }
 0x3b3   :  { %v11071_v4 = vmax.f32 %v11070_v52, 0.0  ;;  %v11072_v62 = vmax.f32 %v7430_v7, 0.0  ;;  %v11074_v35 = vmax.f32 %v11073_v37, 0.0  ;;  %v11076_v45 = vmax.f32 %v11075_v6, 0.0  ;;  %v11083_v7 = vld [vmem:[#allocation356_spill] sm:$0xff] }
 0x3b4   :  { %v11078_v17 = vmax.f32 %v11077_v8, 0.0  ;;  %v11080_v33 = vmax.f32 %v11079_v47, 0.0  ;;  %v11082_v36 = vmax.f32 %v11081_v5, 0.0  ;;  %v11084_v59 = vmax.f32 %v11083_v7, 0.0 }
 0x3b5   :  { %v1432_v23 = vmul.f32 %v1355_v61, %v11071_v4  ;;  %v1764_v29 = vmul.f32 %v11072_v62, %v1355_v61  ;;  %v2095_v54 = vmul.f32 %v11074_v35, %v1355_v61  ;;  %v2426_v34 = vmul.f32 %v11076_v45, %v1355_v61  ;;  %v1370_v45 = vpop.permute.xlu1 %1369 }
 0x3b6   :  { %v8800_v3 = vmul.f32 %v11078_v17, %v1355_v61  ;;  %v8804_v22 = vmul.f32 %v11080_v33, %v1355_v61  ;;  %v8808_v38 = vmul.f32 %v11082_v36, %v1355_v61  ;;  %v8812_v60 = vmul.f32 %v11084_v59, %v1355_v61 }
 0x3b7   :  { %v603_v21 = vmul.f32 %v10546_v44, %v11085_v53  ;;  %v1575_v30 = vmul.f32 %v10547_v46, %v11085_v53  ;;  %v1906_v12 = vmul.f32 %v10548_v28, %v11085_v53  ;;  %v2237_v19 = vmul.f32 %v10550_v55, %v11085_v53 }
 0x3b8   :  { %v2568_v51 = vmul.f32 %v10551_v16, %v11085_v53  ;;  %v2899_v61 = vmul.f32 %v10552_v26, %v11085_v53  ;;  %v3230_v52 = vmul.f32 %v10553_v57, %v11085_v53  ;;  %v3561_v4 = vmul.f32 %v10554_v13, %v11085_v53 }
 0x3b9   :  { %v987_v1 = vadd.f32 %v11086_v58, %v603_v21  ;;  %v1639_v62 = vadd.f32 %v1575_v30, %v11086_v58  ;;  %v1970_v37 = vadd.f32 %v1906_v12, %v11086_v58  ;;  %v2301_v35 = vadd.f32 %v2237_v19, %v11086_v58 }
 0x3ba   :  { %v2632_v6 = vadd.f32 %v2568_v51, %v11086_v58  ;;  %v2963_v17 = vadd.f32 %v2899_v61, %v11086_v58  ;;  %v3294_v47 = vadd.f32 %v3230_v52, %v11086_v58  ;;  %v3625_v33 = vadd.f32 %v3561_v4, %v11086_v58 }
 0x3bb   :  { %v1051_v8 = vmax.f32 %v987_v1, 0.0  ;;  %v1703_v5 = vmax.f32 %v1639_v62, 0.0  ;;  %v2034_v36 = vmax.f32 %v1970_v37, 0.0  ;;  %v2365_v7 = vmax.f32 %v2301_v35, 0.0  ;;  %v11087_v62 = vld [vmem:[#allocation343_spill] sm:$0xff] }
 0x3bc   :  { %v2696_v59 = vmax.f32 %v2632_v6, 0.0  ;;  %v3027_v53 = vmax.f32 %v2963_v17, 0.0  ;;  %v3358_v21 = vmax.f32 %v3294_v47, 0.0  ;;  %v3689_v30 = vmax.f32 %v3625_v33, 0.0  ;;  %v11088_v47 = vld [vmem:[#allocation349_spill] sm:$0xff] }
 0x3bd   :  { %v8838_v12 = vmul.f32 %v1370_v45, %v1051_v8  ;;  %v8840_v19 = vmul.f32 %v1703_v5, %v1370_v45  ;;  %v8842_v51 = vmul.f32 %v2034_v36, %v1370_v45  ;;  %v8844_v1 = vmul.f32 %v2365_v7, %v1370_v45 }
 0x3be   :  { %v8846_v61 = vmul.f32 %v2696_v59, %v1370_v45  ;;  %v8848_v52 = vmul.f32 %v3027_v53, %v1370_v45  ;;  %v8850_v58 = vmul.f32 %v3358_v21, %v1370_v45  ;;  %v8852_v4 = vmul.f32 %v3689_v30, %v1370_v45 }
 0x3bf   :  { %v602_v37 = vmul.f32 %v10546_v44, %v11087_v62  ;;  %v1494_v35 = vadd.f32 %v1493_v31, %v8702_v10  ;;  %v1574_v6 = vmul.f32 %v10547_v46, %v11087_v62  ;;  %v1826_v8 = vadd.f32 %v1825_v41, %v8706_v56 }
 0x3c0   :  { %v1905_v17 = vmul.f32 %v10548_v28, %v11087_v62  ;;  %v2157_v5 = vadd.f32 %v2156_v63, %v8710_v25  ;;  %v2236_v45 = vmul.f32 %v10550_v55, %v11087_v62  ;;  %v2488_v44 = vadd.f32 %v8748_v49, %v8714_v42 }
 0x3c1   :  { %v986_v33 = vadd.f32 %v11088_v47, %v602_v37  ;;  %v1495_v36 = vadd.f32 %v1494_v35, %v1432_v23  ;;  %v1638_v10 = vadd.f32 %v1574_v6, %v11088_v47  ;;  %v1827_v31 = vadd.f32 %v1826_v8, %v1764_v29 }
 0x3c2   :  { %v1969_v46 = vadd.f32 %v1905_v17, %v11088_v47  ;;  %v2158_v41 = vadd.f32 %v2157_v5, %v2095_v54  ;;  %v2300_v28 = vadd.f32 %v2236_v45, %v11088_v47  ;;  %v2489_v7 = vadd.f32 %v2488_v44, %v2426_v34 }
 0x3c3   :  { %v1050_v56 = vmax.f32 %v986_v33, 0.0  ;;  %v1496_v59 = vadd.f32 %v1495_v36, %v8760_v20  ;;  %v1702_v25 = vmax.f32 %v1638_v10, 0.0  ;;  %v1828_v63 = vadd.f32 %v1827_v31, %v8764_v9 }
 0x3c4   :  { %v2033_v55 = vmax.f32 %v1969_v46, 0.0  ;;  %v2159_v53 = vadd.f32 %v2158_v41, %v8768_v27  ;;  %v2364_v42 = vmax.f32 %v2300_v28, 0.0  ;;  %v2490_v49 = vadd.f32 %v2489_v7, %v8772_v18 }
 0x3c5   :  { %v2567_v23 = vmul.f32 %v10551_v16, %v11087_v62  ;;  %v2819_v29 = vadd.f32 %v8750_v14, %v8718_v39  ;;  %v2898_v54 = vmul.f32 %v10552_v26, %v11087_v62  ;;  %v3150_v20 = vadd.f32 %v8752_v15, %v8722_v43 }
 0x3c6   :  { %v3229_v9 = vmul.f32 %v10553_v57, %v11087_v62  ;;  %v3481_v18 = vadd.f32 %v8754_v32, %v8726_v50  ;;  %v3560_v16 = vmul.f32 %v10554_v13, %v11087_v62  ;;  %v3812_v39 = vadd.f32 %v8756_v48, %v8730_v24  ;;  %v1365_v57 = vpop.permute.xlu0 %1364 }
 0x3c7   :  { %v2631_v27 = vadd.f32 %v2567_v23, %v11088_v47  ;;  %v2820_v14 = vadd.f32 %v2819_v29, %v8800_v3  ;;  %v2962_v26 = vadd.f32 %v2898_v54, %v11088_v47  ;;  %v3151_v43 = vadd.f32 %v3150_v20, %v8804_v22 }
 0x3c8   :  { %v3293_v15 = vadd.f32 %v3229_v9, %v11088_v47  ;;  %v3482_v21 = vadd.f32 %v3481_v18, %v8808_v38  ;;  %v3624_v50 = vadd.f32 %v3560_v16, %v11088_v47  ;;  %v3813_v32 = vadd.f32 %v3812_v39, %v8812_v60 }
 0x3c9   :  { %v2695_v34 = vmax.f32 %v2631_v27, 0.0  ;;  %v2821_v13 = vadd.f32 %v2820_v14, %v8776_v40  ;;  %v3026_v30 = vmax.f32 %v2962_v26, 0.0  ;;  %v3152_v24 = vadd.f32 %v3151_v43, %v8780_v0 }
 0x3ca   :  { %v3357_v48 = vmax.f32 %v3293_v15, 0.0  ;;  %v3483_v3 = vadd.f32 %v3482_v21, %v8784_v11  ;;  %v3688_v62 = vmax.f32 %v3624_v50, 0.0  ;;  %v3814_v22 = vadd.f32 %v3813_v32, %v8788_v2 }
 0x3cb   :  { %v1434_v37 = vmul.f32 %v1365_v57, %v1050_v56  ;;  %v1766_v35 = vmul.f32 %v1702_v25, %v1365_v57  ;;  %v2097_v6 = vmul.f32 %v2033_v55, %v1365_v57  ;;  %v2428_v8 = vmul.f32 %v2364_v42, %v1365_v57 }
 0x3cc   :  { %v2759_v38 = vmul.f32 %v2695_v34, %v1365_v57  ;;  %v3090_v47 = vmul.f32 %v3026_v30, %v1365_v57  ;;  %v3421_v33 = vmul.f32 %v3357_v48, %v1365_v57  ;;  %v3752_v60 = vmul.f32 %v3688_v62, %v1365_v57 }
 0x3cd   :  { %v1497_v17 = vadd.f32 %v1496_v59, %v1434_v37  ;;  %v1829_v5 = vadd.f32 %v1828_v63, %v1766_v35  ;;  %v2160_v40 = vadd.f32 %v2159_v53, %v2097_v6  ;;  %v2491_v45 = vadd.f32 %v2490_v49, %v2428_v8 }
 0x3ce   :  { %v2822_v44 = vadd.f32 %v2821_v13, %v2759_v38  ;;  %v3153_v36 = vadd.f32 %v3152_v24, %v3090_v47  ;;  %v3484_v11 = vadd.f32 %v3483_v3, %v3421_v33  ;;  %v3815_v10 = vadd.f32 %v3814_v22, %v3752_v60 }
 0x3cf   :  { %v1498_v0 = vadd.f32 %v1497_v17, %v8838_v12  ;;  %v1830_v2 = vadd.f32 %v1829_v5, %v8840_v19  ;;  %v2161_v31 = vadd.f32 %v2160_v40, %v8842_v51  ;;  %v2492_v46 = vadd.f32 %v2491_v45, %v8844_v1 }
 0x3d0   :  { %v2823_v56 = vadd.f32 %v2822_v44, %v8846_v61  ;;  %v3154_v28 = vadd.f32 %v3153_v36, %v8848_v52  ;;  %v3485_v7 = vadd.f32 %v3484_v11, %v8850_v58  ;;  %v3816_v59 = vadd.f32 %v3815_v10, %v8852_v4 }
 0x3d1   :  { %v1499_v41 = vrot.slane %v1498_v0, 4  ;;  %v1831_v25 = vrot.slane %v1830_v2, 4  ;;  %v2162_v12 = vrot.slane %v2161_v31, 4  ;;  %v2493_v63 = vrot.slane %v2492_v46, 4 }
 0x3d2   :  { %v2824_v55 = vrot.slane %v2823_v56, 4  ;;  %v3155_v42 = vrot.slane %v3154_v28, 4  ;;  %v3486_v19 = vrot.slane %v3485_v7, 4  ;;  %v3817_v49 = vrot.slane %v3816_v59, 4 }
 0x3d3   :  { %v1500_v53 = vadd.f32 %v1499_v41, %v1498_v0  ;;  %v1832_v51 = vadd.f32 %v1831_v25, %v1830_v2  ;;  %v2163_v23 = vadd.f32 %v2162_v12, %v2161_v31  ;;  %v2494_v1 = vadd.f32 %v2493_v63, %v2492_v46 }
 0x3d4   :  { %v2825_v29 = vadd.f32 %v2824_v55, %v2823_v56  ;;  %v3156_v54 = vadd.f32 %v3155_v42, %v3154_v28  ;;  %v3487_v20 = vadd.f32 %v3486_v19, %v3485_v7  ;;  %v3818_v52 = vadd.f32 %v3817_v49, %v3816_v59 }
 0x3d5   :  { %v1501_v61 = vrot.slane %v1500_v53, 2  ;;  %v1833_v9 = vrot.slane %v1832_v51, 2  ;;  %v2164_v58 = vrot.slane %v2163_v23, 2  ;;  %v2495_v27 = vrot.slane %v2494_v1, 2 }
 0x3d6   :  { %v2826_v4 = vrot.slane %v2825_v29, 2  ;;  %v3157_v16 = vrot.slane %v3156_v54, 2  ;;  %v3488_v39 = vrot.slane %v3487_v20, 2  ;;  %v3819_v14 = vrot.slane %v3818_v52, 2 }
 0x3d7   :  { %v1502_v18 = vadd.f32 %v1501_v61, %v1500_v53  ;;  %v1834_v26 = vadd.f32 %v1833_v9, %v1832_v51  ;;  %v2165_v43 = vadd.f32 %v2164_v58, %v2163_v23  ;;  %v2496_v15 = vadd.f32 %v2495_v27, %v2494_v1 }
 0x3d8   :  { %v2827_v57 = vadd.f32 %v2826_v4, %v2825_v29  ;;  %v3158_v21 = vadd.f32 %v3157_v16, %v3156_v54  ;;  %v3489_v50 = vadd.f32 %v3488_v39, %v3487_v20  ;;  %v3820_v32 = vadd.f32 %v3819_v14, %v3818_v52 }
 0x3d9   :  { %v1503_v34 = vrot.slane %v1502_v18, 1  ;;  %v1835_v13 = vrot.slane %v1834_v26, 1  ;;  %v2166_v30 = vrot.slane %v2165_v43, 1  ;;  %v2497_v24 = vrot.slane %v2496_v15, 1 }
 0x3da   :  { %v2828_v48 = vrot.slane %v2827_v57, 1  ;;  %v3159_v62 = vrot.slane %v3158_v21, 1  ;;  %v3490_v22 = vrot.slane %v3489_v50, 1  ;;  %v3821_v37 = vrot.slane %v3820_v32, 1 }
 0x3db   :  { %v1504_v3 = vadd.f32 %v1503_v34, %v1502_v18  ;;  %v1836_v35 = vadd.f32 %v1835_v13, %v1834_v26  ;;  %v2167_v6 = vadd.f32 %v2166_v30, %v2165_v43  ;;  %v2498_v8 = vadd.f32 %v2497_v24, %v2496_v15 }
 0x3dc   :  { %v2829_v38 = vadd.f32 %v2828_v48, %v2827_v57  ;;  %v3160_v17 = vadd.f32 %v3159_v62, %v3158_v21  ;;  %v3491_v47 = vadd.f32 %v3490_v22, %v3489_v50  ;;  %v3822_v33 = vadd.f32 %v3821_v37, %v3820_v32 }
 0x3dd   :  { %v1505_v60 = vstv %s8930_s4 }
 0x3de   :  { %v1506_v5 = vadd.f32 %v1505_v60, %v1504_v3  ;;  %v1837_v40 = vadd.f32 %v1836_v35, %v1505_v60  ;;  %v2168_v45 = vadd.f32 %v2167_v6, %v1505_v60  ;;  %v2499_v44 = vadd.f32 %v2498_v8, %v1505_v60 }
 0x3df   :  { %v2830_v0 = vadd.f32 %v2829_v38, %v1505_v60  ;;  %v3161_v36 = vadd.f32 %v3160_v17, %v1505_v60  ;;  %v3492_v11 = vadd.f32 %v3491_v47, %v1505_v60  ;;  %v3823_v10 = vadd.f32 %v3822_v33, %v1505_v60 }
 0x3e0   :  { %1507 = vst [vmem:[#allocation3] sm:$0x1] %v1506_v5  ;;  %1838 = vst [vmem:[#allocation3 + $0x1] sm:$0x1] %v1837_v40 }
 0x3e1   :  { %2169 = vst [vmem:[#allocation3 + $0x2] sm:$0x1] %v2168_v45  ;;  %2500 = vst [vmem:[#allocation3 + $0x3] sm:$0x1] %v2499_v44 }
 0x3e2   :  { %2831 = vst [vmem:[#allocation3 + $0x4] sm:$0x1] %v2830_v0  ;;  %3162 = vst [vmem:[#allocation3 + $0x5] sm:$0x1] %v3161_v36 }
 0x3e3   :  { %3493 = vst [vmem:[#allocation3 + $0x6] sm:$0x1] %v3492_v11  ;;  %3824 = vst [vmem:[#allocation3 + $0x7] sm:$0x1] %v3823_v10 }
 0x3e4   :  { %3854 = shalt.err (!%p3851_p4)
}
 0x3e5   :  { %s3855_s10 = scalar_lea.hbm %s8931_s5, 128 }
 0x3e6   :  { %p3856_p5 = scmp.ne.s32.totalorder %s8931_s5, %s3855_s10  ;;  %p3859_p6 = scmp.lt.u32.totalorder %s3855_s10, %s8931_s5 }
 0x3e8   :  { %p3861_p7 = pnand %p3859_p6, %p3856_p5 }
 0x3ea   :  { %3864 = shalt.err (!%p3861_p7)
}
 0x3eb   :  { %3834 = dma.vmem_to_hbm [thread:$0]  %s3832_s30, 128, %s8931_s5, [#allocation4]  }
 0x3ec   :  { %3865 = dma.done.wait [#allocation4], 128  }
 0x3ed   :  { %3866 = vsyncadd [#allocation4], 4294967168 }
 0x3ee   :  { %3838 = vsyncpa [#allocation4], 1 }

</bundles_post_ra>
